<compile_context>
chip_gen: v6e
topology: v6e:2x2x1
jax: 0.10.0
libtpu: 0.0.40
codegen_flags: <defaults>
</compile_context>

<pallas_src>
import functools

import jax
import jax.numpy as jnp
from jax import lax
from jax.experimental import pallas as pl
from jax.experimental.pallas import tpu as pltpu

LANE = 128


def _round_up(v, m):
    return (v + m - 1) // m * m


# ------------------------------ fused kernel ------------------------------ #

def _res_decoder_kernel(x_ref, cinw_ref, resw1_ref, resw2_ref, upwe_ref, upwo_ref,
                        midw_ref, outw_ref, bmid_ref, bout_ref,
                        o_ref, hpad_ref,
                        *, down_t, dilations, t0, x_pad, pad):
    f32 = jnp.float32
    cmid = hpad_ref.shape[1]

    bidx = [0]

    def next_bias():
        i = bidx[0]
        bidx[0] += 1
        return bmid_ref[pl.ds(i, 1), :]                 # (1, Cmid) f32, broadcasts over L

    # Borders of the padded scratch only need rewriting when the stage length changes
    # (trace starts at the smallest length, so every grid step re-zeros stale data).
    border_len = [-1]

    def stage_h(h_bf, length):
        if border_len[0] != length:
            hpad_ref[pl.ds(0, pad), :] = jnp.zeros((pad, cmid), hpad_ref.dtype)
            hpad_ref[pl.ds(pad + length, pad), :] = jnp.zeros((pad, cmid), hpad_ref.dtype)
            border_len[0] = length
        hpad_ref[pl.ds(pad, length), :] = h_bf

    def conv3_from(ref, base, length, dil, wtap, bias):
        """Conv1d(k=3, pad=dil, dilation=dil) as 3 tap-wise MXU matmuls, f32 accumulation."""
        acc = jnp.dot(ref[pl.ds(base - dil, length), :], wtap(0), preferred_element_type=f32)
        acc = acc + jnp.dot(ref[pl.ds(base, length), :], wtap(1), preferred_element_type=f32)
        acc = acc + jnp.dot(ref[pl.ds(base + dil, length), :], wtap(2), preferred_element_type=f32)
        return acc + bias

    # ---- conv_in (k=3, pad=1) + ReLU ; x arrives pre-padded (x_pad halo rows) in bf16.
    h = conv3_from(x_ref, x_pad, t0, 1, lambda k: cinw_ref[k], next_bias())
    h = jnp.maximum(h, 0.0)                             # f32 residual path

    length = t0
    blk = 0
    for stage in range(down_t):
        # ---- Resnet1D (reversed dilations); norm=None -> Identity, activation=relu.
        for dil in dilations:
            b1 = next_bias()
            b2 = next_bias()
            stage_h(jnp.maximum(h, 0.0).astype(hpad_ref.dtype), length)
            t = conv3_from(hpad_ref, pad, length, dil,
                           lambda k, _b=blk: resw1_ref[_b, k], b1)
            t = jnp.maximum(t, 0.0)
            t = jnp.dot(t.astype(hpad_ref.dtype), resw2_ref[blk],
                        preferred_element_type=f32) + b2
            # TODO(synk): nn.Dropout modeled as identity (inference mode only).
            h = h + t
            blk += 1

        # ---- Upsample(x2, nearest) + Conv1d(mid, mid, 3, 1, 1) fused:
        #      even[i] = w0*h[i-1] + (w1+w2)*h[i] ; odd[i] = (w0+w1)*h[i] + w2*h[i+1]
        bu = next_bias()
        stage_h(h.astype(hpad_ref.dtype), length)
        left = hpad_ref[pl.ds(pad - 1, length), :]
        mid = hpad_ref[pl.ds(pad, length), :]
        right = hpad_ref[pl.ds(pad + 1, length), :]
        even = (jnp.dot(left, upwe_ref[stage, 0], preferred_element_type=f32)
                + jnp.dot(mid, upwe_ref[stage, 1], preferred_element_type=f32) + bu)
        odd = (jnp.dot(mid, upwo_ref[stage, 0], preferred_element_type=f32)
               + jnp.dot(right, upwo_ref[stage, 1], preferred_element_type=f32) + bu)
        h = jnp.stack([even, odd], axis=1).reshape(2 * length, cmid)   # interleave rows
        length = 2 * length

    # ---- conv_mid + ReLU
    stage_h(h.astype(hpad_ref.dtype), length)
    h = jnp.maximum(conv3_from(hpad_ref, pad, length, 1,
                               lambda k: midw_ref[k], next_bias()), 0.0)

    # ---- conv_out (output already channel-last -> PyTorch permute(0, 2, 1) is free)
    stage_h(h.astype(hpad_ref.dtype), length)
    out = conv3_from(hpad_ref, pad, length, 1, lambda k: outw_ref[k], bout_ref[...])
    o_ref[...] = out.astype(o_ref.dtype)                # lane-dense (T_out, Cout_pad) store


# --------------------------------- wrapper ---------------------------------- #

def res_decoder_pallas(x, params, down_t, *, mxu_dtype=jnp.bfloat16, weight_buffers=1):
    """x: (B, out_width, T) NCL like PyTorch.  Returns (B, T * 2**down_t, in_width) f32."""
    B, cin0, t0 = x.shape
    dilations = tuple(int(d) for d in params["dilations"])
    n_depth = len(dilations)
    cmid = params["conv_in"][0].shape[0]
    cout = params["conv_out"][0].shape[0]

    cin0_p = _round_up(cin0, LANE)
    cmid_p = _round_up(cmid, LANE)
    cout_p = _round_up(cout, LANE)
    t_out = t0 * (2 ** down_t)
    pad = _round_up(max(dilations + (1,)), 8)           # scratch halo, sublane-aligned
    x_pad = 1                                           # conv_in halo, pre-padded in HBM

    def tap_mats(w, cin_p, co_p):
        """(Co, Cin, K) PyTorch weight -> (K, cin_p, co_p) per-tap matmul slabs (f32)."""
        co, cin, _ = w.shape
        m = jnp.transpose(w, (2, 1, 0))
        return jnp.pad(m, ((0, 0), (0, cin_p - cin), (0, co_p - co)))

    def bias_row(b, co_p):
        return jnp.pad(b, (0, co_p - b.shape[0])).astype(jnp.float32)

    cin_w = tap_mats(params["conv_in"][0], cin0_p, cmid_p).astype(mxu_dtype)
    biases = [bias_row(params["conv_in"][1], cmid_p)]
    res_w1, res_w2, up_we, up_wo = [], [], [], []
    for i in range(down_t):
        for j in range(n_depth):
            w1, b1, w2, b2 = params["res"][i][j]
            res_w1.append(tap_mats(w1, cmid_p, cmid_p).astype(mxu_dtype))
            res_w2.append(tap_mats(w2, cmid_p, cmid_p)[0].astype(mxu_dtype))
            biases.append(bias_row(b1, cmid_p))
            biases.append(bias_row(b2, cmid_p))
        wu, bu = params["up_conv"][i]
        m = tap_mats(wu, cmid_p, cmid_p)                # sum taps in f32, cast once
        up_we.append(jnp.stack([m[0], m[1] + m[2]]).astype(mxu_dtype))
        up_wo.append(jnp.stack([m[0] + m[1], m[2]]).astype(mxu_dtype))
        biases.append(bias_row(bu, cmid_p))
    mid_w = tap_mats(params["conv_mid"][0], cmid_p, cmid_p).astype(mxu_dtype)
    biases.append(bias_row(params["conv_mid"][1], cmid_p))
    out_w = tap_mats(params["conv_out"][0], cmid_p, cout_p).astype(mxu_dtype)
    b_out = bias_row(params["conv_out"][1], cout_p).reshape(1, cout_p)

    weights = [cin_w, jnp.stack(res_w1), jnp.stack(res_w2),
               jnp.stack(up_we), jnp.stack(up_wo), mid_w, out_w,
               jnp.stack(biases), b_out]

    # channel-last, channel-padded, time-halo-padded, bf16 input
    x_cl = jnp.transpose(x, (0, 2, 1))
    x_cl = jnp.pad(x_cl, ((0, 0), (x_pad, x_pad), (0, cin0_p - cin0))).astype(mxu_dtype)

    spec_kw = {} if weight_buffers is None else dict(pipeline_mode=pl.Buffered(weight_buffers))
    in_specs = [pl.BlockSpec((None, t0 + 2 * x_pad, cin0_p), lambda b: (b, 0, 0))]
    # Constant index maps -> weight slabs are DMA'd once and stay resident across the grid.
    in_specs += [pl.BlockSpec(a.shape, (lambda b, _n=a.ndim: (0,) * _n), **spec_kw)
                 for a in weights]
    out_spec = pl.BlockSpec((None, t_out, cout_p), lambda b: (b, 0, 0))

    scratch = [pltpu.VMEM((t_out + 2 * pad, cmid_p), mxu_dtype)]   # padded activation slab

    # Generation-aware VMEM limit: resident slabs (x buffering) + tiles + scratch + headroom.
    wbytes = sum(int(a.size) * a.dtype.itemsize for a in weights)
    wbytes *= 1 if weight_buffers == 1 else 2
    tile_bytes = 2 * int(x_cl[0].size) * x_cl.dtype.itemsize + 2 * t_out * cout_p * 4
    scratch_bytes = (t_out + 2 * pad) * cmid_p * 2
    headroom = max(8 << 20, 8 * t_out * cmid_p * 4)
    need = wbytes + tile_bytes + scratch_bytes + headroom
    try:
        cap = int(pltpu.get_tpu_info().vmem_capacity_bytes)
    except Exception:
        cap = 64 << 20                                   # conservative (v7x per-TC VMEM)
    vmem_limit = int(min(cap - (2 << 20), max(need, 32 << 20)))

    kern = functools.partial(_res_decoder_kernel, down_t=down_t, dilations=dilations,
                             t0=t0, x_pad=x_pad, pad=pad)

    out = pl.pallas_call(
        kern,
        out_shape=jax.ShapeDtypeStruct((B, t_out, cout_p), jnp.float32),
        grid=(B,),
        in_specs=in_specs,
        out_specs=out_spec,
        scratch_shapes=scratch,
        compiler_params=pltpu.CompilerParams(
            dimension_semantics=("parallel",),           # v7x: 2 TCs split the batch
            vmem_limit_bytes=vmem_limit),
    )(x_cl, *weights)
    return out[..., :cout]                               # drop lane padding outside the kernel


# --------------------------- parameter construction -------------------------- #

def init_conv(key, cin, co, k):
    """Deterministic Conv1d init (PyTorch-style uniform bounds)."""
    k1, k2 = jax.random.split(key)
    bound = 1.0 / float(jnp.sqrt(cin * k))
    w = jax.random.uniform(k1, (co, cin, k), jnp.float32, -bound, bound)
    b = jax.random.uniform(k2, (co,), jnp.float32, -bound, bound)
    return w, b


def build_res_decoder_params(key, in_width, mid_width, out_width,
                             down_t, n_depth, dilation_growth_rate):
    keys = iter(jax.random.split(key, 64))
    params = {}
    params["conv_in"] = init_conv(next(keys), out_width, mid_width, 3)
    params["res"] = []
    params["up_conv"] = []
    # reverse_dilation=True
    dilations = [dilation_growth_rate ** d for d in range(n_depth)][::-1]
    for _ in range(down_t):
        blocks = []
        for _dil in dilations:
            w1, b1 = init_conv(next(keys), mid_width, mid_width, 3)   # conv1 (dilated, k=3)
            w2, b2 = init_conv(next(keys), mid_width, mid_width, 1)   # conv2 (1x1)
            blocks.append((w1, b1, w2, b2))
        params["res"].append(blocks)
        params["up_conv"].append(init_conv(next(keys), mid_width, mid_width, 3))
    params["conv_mid"] = init_conv(next(keys), mid_width, mid_width, 3)
    params["conv_out"] = init_conv(next(keys), mid_width, in_width, 3)
    params["dilations"] = dilations
    return params


# ----------------------- pure-JAX reference (correctness) -------------------- #
# Mirrors the kernel's dtype policy by default (bf16 at conv inputs, f32 accumulation);
# call with mxu_dtype=jnp.float32 for a full-precision PyTorch-equivalent reference.

def _conv1d_ref(x, w, b, dilation=1, padding=0, mxu_dtype=jnp.bfloat16):
    out = lax.conv_general_dilated(
        x.astype(mxu_dtype), w.astype(mxu_dtype), window_strides=(1,),
        padding=[(padding, padding)], rhs_dilation=(dilation,),
        dimension_numbers=("NCH", "OIH", "NCH"),
        preferred_element_type=jnp.float32)
    return out + b[None, :, None]


def res_decoder_forward_ref(x, params, down_t, mxu_dtype=jnp.bfloat16):
    relu = lambda t: jnp.maximum(t, 0.0)
    conv = functools.partial(_conv1d_ref, mxu_dtype=mxu_dtype)
    h = relu(conv(x, *params["conv_in"], dilation=1, padding=1))
    for i in range(down_t):
        for j, dil in enumerate(params["dilations"]):
            w1, b1, w2, b2 = params["res"][i][j]
            t = conv(relu(h), w1, b1, dilation=dil, padding=dil)
            t = conv(relu(t), w2, b2, dilation=1, padding=0)
            h = t + h
        h = jnp.repeat(h, 2, axis=-1)
        h = conv(h, *params["up_conv"][i], dilation=1, padding=1)
    h = relu(conv(h, *params["conv_mid"], dilation=1, padding=1))
    h = conv(h, *params["conv_out"], dilation=1, padding=1)
    return jnp.transpose(h, (0, 2, 1))


# ------------------------------------ main ----------------------------------- #

if __name__ == "__main__":
    # Small, module-consistent config (defaults scaled down):
    B, T = 2, 8
    in_width, mid_width, out_width = 8, 16, 12
    down_t, n_depth, growth = 2, 2, 3

    key = jax.random.PRNGKey(0)
    k_x, k_p = jax.random.split(key)
    x = jax.random.normal(k_x, (B, out_width, T), jnp.float32)   # NCL input, like PyTorch
    params = build_res_decoder_params(k_p, in_width, mid_width, out_width,
                                      down_t, n_depth, growth)

    def run(weight_buffers):
        fwd = jax.jit(lambda xx: res_decoder_pallas(xx, params, down_t,
                                                    weight_buffers=weight_buffers))
        return jax.block_until_ready(fwd(x))

    try:
        out = run(1)          # single-buffered resident weight slabs
    except Exception:
        out = run(None)       # fall back to default buffering if Buffered(1) unsupported

    ref_bf16 = jax.block_until_ready(res_decoder_forward_ref(x, params, down_t))
    ref_f32 = jax.block_until_ready(
        res_decoder_forward_ref(x, params, down_t, mxu_dtype=jnp.float32))

    assert out.shape == (B, T * (2 ** down_t), in_width), out.shape
    err_bf16 = float(jnp.max(jnp.abs(out - ref_bf16)))
    err_f32 = float(jnp.max(jnp.abs(out - ref_f32)))    # kernel-vs-f32 sanity (informational)
    assert jnp.allclose(out, ref_bf16, rtol=2e-2, atol=2e-2), (err_bf16, err_f32)

    print("KERNEL_OK")
</pallas_src>

<mosaic_0001>
module attributes {stable_mosaic.version = 11 : i64} {
  func.func @_res_decoder_kernel(%arg0: i32, %arg1: memref<1x10x128xbf16, #tpu.memory_space<vmem>>, %arg2: memref<3x128x128xbf16, #tpu.memory_space<vmem>>, %arg3: memref<4x3x128x128xbf16, #tpu.memory_space<vmem>>, %arg4: memref<4x128x128xbf16, #tpu.memory_space<vmem>>, %arg5: memref<2x2x128x128xbf16, #tpu.memory_space<vmem>>, %arg6: memref<2x2x128x128xbf16, #tpu.memory_space<vmem>>, %arg7: memref<3x128x128xbf16, #tpu.memory_space<vmem>>, %arg8: memref<3x128x128xbf16, #tpu.memory_space<vmem>>, %arg9: memref<12x128xf32, #tpu.memory_space<vmem>>, %arg10: memref<1x128xf32, #tpu.memory_space<vmem>>, %arg11: memref<1x32x128xf32, #tpu.memory_space<vmem>>, %arg12: memref<48x128xbf16, #tpu.memory_space<vmem>>) attributes {dimension_semantics = [#tpu.dimension_semantics<parallel>], iteration_bounds = array<i64: 2>, scalar_prefetch = 0 : i64, scratch_operands = 1 : i64, tpu.core_type = #tpu.core_type<tc>, window_params = [{transform_indices = @transform_0, window_bounds = array<i64: 1, 10, 128>}, {pipeline_mode = #tpu.pipeline_mode<synchronous>, transform_indices = @transform_1, window_bounds = array<i64: 3, 128, 128>}, {pipeline_mode = #tpu.pipeline_mode<synchronous>, transform_indices = @transform_2, window_bounds = array<i64: 4, 3, 128, 128>}, {pipeline_mode = #tpu.pipeline_mode<synchronous>, transform_indices = @transform_3, window_bounds = array<i64: 4, 128, 128>}, {pipeline_mode = #tpu.pipeline_mode<synchronous>, transform_indices = @transform_4, window_bounds = array<i64: 2, 2, 128, 128>}, {pipeline_mode = #tpu.pipeline_mode<synchronous>, transform_indices = @transform_5, window_bounds = array<i64: 2, 2, 128, 128>}, {pipeline_mode = #tpu.pipeline_mode<synchronous>, transform_indices = @transform_6, window_bounds = array<i64: 3, 128, 128>}, {pipeline_mode = #tpu.pipeline_mode<synchronous>, transform_indices = @transform_7, window_bounds = array<i64: 3, 128, 128>}, {pipeline_mode = #tpu.pipeline_mode<synchronous>, transform_indices = @transform_8, window_bounds = array<i64: 12, 128>}, {pipeline_mode = #tpu.pipeline_mode<synchronous>, transform_indices = @transform_9, window_bounds = array<i64: 1, 128>}, {transform_indices = @transform_10, window_bounds = array<i64: 1, 32, 128>}]} {
    %c0 = arith.constant 0 : index
    %c0_0 = arith.constant 0 : index
    %0 = vector.load %arg9[%c0, %c0_0] : memref<12x128xf32, #tpu.memory_space<vmem>>, vector<1x128xf32>
    %c0_1 = arith.constant 0 : index
    %c0_2 = arith.constant 0 : index
    %c0_3 = arith.constant 0 : index
    %1 = vector.load %arg1[%c0_1, %c0_2, %c0_3] : memref<1x10x128xbf16, #tpu.memory_space<vmem>>, vector<1x8x128xbf16>
    %2 = vector.shape_cast %1 : vector<1x8x128xbf16> to vector<8x128xbf16>
    %c0_4 = arith.constant 0 : index
    %c0_5 = arith.constant 0 : index
    %c0_6 = arith.constant 0 : index
    %3 = vector.load %arg2[%c0_4, %c0_5, %c0_6] : memref<3x128x128xbf16, #tpu.memory_space<vmem>>, vector<1x128x128xbf16>
    %4 = vector.shape_cast %3 : vector<1x128x128xbf16> to vector<128x128xbf16>
    %cst = arith.constant dense<0.000000e+00> : vector<8x128xf32>
    %5 = tpu.matmul %2, %4, %cst {dimension_numbers = #tpu.dot_dimension_numbers<[1], [0], [0], [1], [0, 0, 1, 1], [], []>} : vector<8x128xbf16>, vector<128x128xbf16>, vector<8x128xf32> -> vector<8x128xf32>
    %c0_7 = arith.constant 0 : index
    %c1 = arith.constant 1 : index
    %c0_8 = arith.constant 0 : index
    %6 = vector.load %arg1[%c0_7, %c1, %c0_8] : memref<1x10x128xbf16, #tpu.memory_space<vmem>>, vector<1x8x128xbf16>
    %7 = vector.shape_cast %6 : vector<1x8x128xbf16> to vector<8x128xbf16>
    %c1_9 = arith.constant 1 : index
    %c0_10 = arith.constant 0 : index
    %c0_11 = arith.constant 0 : index
    %8 = vector.load %arg2[%c1_9, %c0_10, %c0_11] : memref<3x128x128xbf16, #tpu.memory_space<vmem>>, vector<1x128x128xbf16>
    %9 = vector.shape_cast %8 : vector<1x128x128xbf16> to vector<128x128xbf16>
    %cst_12 = arith.constant dense<0.000000e+00> : vector<8x128xf32>
    %10 = tpu.matmul %7, %9, %cst_12 {dimension_numbers = #tpu.dot_dimension_numbers<[1], [0], [0], [1], [0, 0, 1, 1], [], []>} : vector<8x128xbf16>, vector<128x128xbf16>, vector<8x128xf32> -> vector<8x128xf32>
    %11 = arith.addf %5, %10 : vector<8x128xf32>
    %c0_13 = arith.constant 0 : index
    %c2 = arith.constant 2 : index
    %c0_14 = arith.constant 0 : index
    %12 = vector.load %arg1[%c0_13, %c2, %c0_14] : memref<1x10x128xbf16, #tpu.memory_space<vmem>>, vector<1x8x128xbf16>
    %13 = vector.shape_cast %12 : vector<1x8x128xbf16> to vector<8x128xbf16>
    %c2_15 = arith.constant 2 : index
    %c0_16 = arith.constant 0 : index
    %c0_17 = arith.constant 0 : index
    %14 = vector.load %arg2[%c2_15, %c0_16, %c0_17] : memref<3x128x128xbf16, #tpu.memory_space<vmem>>, vector<1x128x128xbf16>
    %15 = vector.shape_cast %14 : vector<1x128x128xbf16> to vector<128x128xbf16>
    %cst_18 = arith.constant dense<0.000000e+00> : vector<8x128xf32>
    %16 = tpu.matmul %13, %15, %cst_18 {dimension_numbers = #tpu.dot_dimension_numbers<[1], [0], [0], [1], [0, 0, 1, 1], [], []>} : vector<8x128xbf16>, vector<128x128xbf16>, vector<8x128xf32> -> vector<8x128xf32>
    %17 = arith.addf %11, %16 : vector<8x128xf32>
    %18 = vector.broadcast %0 : vector<1x128xf32> to vector<8x128xf32>
    %19 = arith.addf %17, %18 : vector<8x128xf32>
    %cst_19 = arith.constant 0.000000e+00 : f32
    %20 = vector.broadcast %cst_19 : f32 to vector<8x128xf32>
    %21 = arith.maximumf %19, %20 : vector<8x128xf32>
    %c1_20 = arith.constant 1 : index
    %c0_21 = arith.constant 0 : index
    %22 = vector.load %arg9[%c1_20, %c0_21] : memref<12x128xf32, #tpu.memory_space<vmem>>, vector<1x128xf32>
    %c2_22 = arith.constant 2 : index
    %c0_23 = arith.constant 0 : index
    %23 = vector.load %arg9[%c2_22, %c0_23] : memref<12x128xf32, #tpu.memory_space<vmem>>, vector<1x128xf32>
    %cst_24 = arith.constant 0.000000e+00 : f32
    %24 = vector.broadcast %cst_24 : f32 to vector<8x128xf32>
    %25 = arith.maximumf %21, %24 : vector<8x128xf32>
    %26 = arith.truncf %25 : vector<8x128xf32> to vector<8x128xbf16>
    %cst_25 = arith.constant 0.000000e+00 : bf16
    %27 = vector.broadcast %cst_25 : bf16 to vector<8x128xbf16>
    %c0_26 = arith.constant 0 : index
    %c0_27 = arith.constant 0 : index
    %28 = vector.load %arg12[%c0_26, %c0_27] : memref<48x128xbf16, #tpu.memory_space<vmem>>, vector<8x128xbf16>
    tpu.vector_store %arg12[%c0_26, %c0_27], %27 {strides = array<i32>} : memref<48x128xbf16, #tpu.memory_space<vmem>>, vector<8x128xbf16>,
    %cst_28 = arith.constant 0.000000e+00 : bf16
    %29 = vector.broadcast %cst_28 : bf16 to vector<8x128xbf16>
    %c16 = arith.constant 16 : index
    %c0_29 = arith.constant 0 : index
    %30 = vector.load %arg12[%c16, %c0_29] : memref<48x128xbf16, #tpu.memory_space<vmem>>, vector<8x128xbf16>
    tpu.vector_store %arg12[%c16, %c0_29], %29 {strides = array<i32>} : memref<48x128xbf16, #tpu.memory_space<vmem>>, vector<8x128xbf16>,
    %c8 = arith.constant 8 : index
    %c0_30 = arith.constant 0 : index
    %31 = vector.load %arg12[%c8, %c0_30] : memref<48x128xbf16, #tpu.memory_space<vmem>>, vector<8x128xbf16>
    tpu.vector_store %arg12[%c8, %c0_30], %26 {strides = array<i32>} : memref<48x128xbf16, #tpu.memory_space<vmem>>, vector<8x128xbf16>,
    %c5 = arith.constant 5 : index
    %c0_31 = arith.constant 0 : index
    %32 = vector.load %arg12[%c5, %c0_31] : memref<48x128xbf16, #tpu.memory_space<vmem>>, vector<8x128xbf16>
    %c0_32 = arith.constant 0 : index
    %c0_33 = arith.constant 0 : index
    %c0_34 = arith.constant 0 : index
    %c0_35 = arith.constant 0 : index
    %33 = vector.load %arg3[%c0_32, %c0_33, %c0_34, %c0_35] : memref<4x3x128x128xbf16, #tpu.memory_space<vmem>>, vector<1x1x128x128xbf16>
    %34 = vector.shape_cast %33 : vector<1x1x128x128xbf16> to vector<128x128xbf16>
    %cst_36 = arith.constant dense<0.000000e+00> : vector<8x128xf32>
    %35 = tpu.matmul %32, %34, %cst_36 {dimension_numbers = #tpu.dot_dimension_numbers<[1], [0], [0], [1], [0, 0, 1, 1], [], []>} : vector<8x128xbf16>, vector<128x128xbf16>, vector<8x128xf32> -> vector<8x128xf32>
    %c8_37 = arith.constant 8 : index
    %c0_38 = arith.constant 0 : index
    %36 = vector.load %arg12[%c8_37, %c0_38] : memref<48x128xbf16, #tpu.memory_space<vmem>>, vector<8x128xbf16>
    %c0_39 = arith.constant 0 : index
    %c1_40 = arith.constant 1 : index
    %c0_41 = arith.constant 0 : index
    %c0_42 = arith.constant 0 : index
    %37 = vector.load %arg3[%c0_39, %c1_40, %c0_41, %c0_42] : memref<4x3x128x128xbf16, #tpu.memory_space<vmem>>, vector<1x1x128x128xbf16>
    %38 = vector.shape_cast %37 : vector<1x1x128x128xbf16> to vector<128x128xbf16>
    %cst_43 = arith.constant dense<0.000000e+00> : vector<8x128xf32>
    %39 = tpu.matmul %36, %38, %cst_43 {dimension_numbers = #tpu.dot_dimension_numbers<[1], [0], [0], [1], [0, 0, 1, 1], [], []>} : vector<8x128xbf16>, vector<128x128xbf16>, vector<8x128xf32> -> vector<8x128xf32>
    %40 = arith.addf %35, %39 : vector<8x128xf32>
    %c11 = arith.constant 11 : index
    %c0_44 = arith.constant 0 : index
    %41 = vector.load %arg12[%c11, %c0_44] : memref<48x128xbf16, #tpu.memory_space<vmem>>, vector<8x128xbf16>
    %c0_45 = arith.constant 0 : index
    %c2_46 = arith.constant 2 : index
    %c0_47 = arith.constant 0 : index
    %c0_48 = arith.constant 0 : index
    %42 = vector.load %arg3[%c0_45, %c2_46, %c0_47, %c0_48] : memref<4x3x128x128xbf16, #tpu.memory_space<vmem>>, vector<1x1x128x128xbf16>
    %43 = vector.shape_cast %42 : vector<1x1x128x128xbf16> to vector<128x128xbf16>
    %cst_49 = arith.constant dense<0.000000e+00> : vector<8x128xf32>
    %44 = tpu.matmul %41, %43, %cst_49 {dimension_numbers = #tpu.dot_dimension_numbers<[1], [0], [0], [1], [0, 0, 1, 1], [], []>} : vector<8x128xbf16>, vector<128x128xbf16>, vector<8x128xf32> -> vector<8x128xf32>
    %45 = arith.addf %40, %44 : vector<8x128xf32>
    %46 = vector.broadcast %22 : vector<1x128xf32> to vector<8x128xf32>
    %47 = arith.addf %45, %46 : vector<8x128xf32>
    %cst_50 = arith.constant 0.000000e+00 : f32
    %48 = vector.broadcast %cst_50 : f32 to vector<8x128xf32>
    %49 = arith.maximumf %47, %48 : vector<8x128xf32>
    %50 = arith.truncf %49 : vector<8x128xf32> to vector<8x128xbf16>
    %c0_51 = arith.constant 0 : index
    %c0_52 = arith.constant 0 : index
    %c0_53 = arith.constant 0 : index
    %51 = vector.load %arg4[%c0_51, %c0_52, %c0_53] : memref<4x128x128xbf16, #tpu.memory_space<vmem>>, vector<1x128x128xbf16>
    %52 = vector.shape_cast %51 : vector<1x128x128xbf16> to vector<128x128xbf16>
    %cst_54 = arith.constant dense<0.000000e+00> : vector<8x128xf32>
    %53 = tpu.matmul %50, %52, %cst_54 {dimension_numbers = #tpu.dot_dimension_numbers<[1], [0], [0], [1], [0, 0, 1, 1], [], []>} : vector<8x128xbf16>, vector<128x128xbf16>, vector<8x128xf32> -> vector<8x128xf32>
    %54 = vector.broadcast %23 : vector<1x128xf32> to vector<8x128xf32>
    %55 = arith.addf %53, %54 : vector<8x128xf32>
    %56 = arith.addf %21, %55 : vector<8x128xf32>
    %c3 = arith.constant 3 : index
    %c0_55 = arith.constant 0 : index
    %57 = vector.load %arg9[%c3, %c0_55] : memref<12x128xf32, #tpu.memory_space<vmem>>, vector<1x128xf32>
    %c4 = arith.constant 4 : index
    %c0_56 = arith.constant 0 : index
    %58 = vector.load %arg9[%c4, %c0_56] : memref<12x128xf32, #tpu.memory_space<vmem>>, vector<1x128xf32>
    %cst_57 = arith.constant 0.000000e+00 : f32
    %59 = vector.broadcast %cst_57 : f32 to vector<8x128xf32>
    %60 = arith.maximumf %56, %59 : vector<8x128xf32>
    %61 = arith.truncf %60 : vector<8x128xf32> to vector<8x128xbf16>
    %c8_58 = arith.constant 8 : index
    %c0_59 = arith.constant 0 : index
    %62 = vector.load %arg12[%c8_58, %c0_59] : memref<48x128xbf16, #tpu.memory_space<vmem>>, vector<8x128xbf16>
    tpu.vector_store %arg12[%c8_58, %c0_59], %61 {strides = array<i32>} : memref<48x128xbf16, #tpu.memory_space<vmem>>, vector<8x128xbf16>,
    %c7 = arith.constant 7 : index
    %c0_60 = arith.constant 0 : index
    %63 = vector.load %arg12[%c7, %c0_60] : memref<48x128xbf16, #tpu.memory_space<vmem>>, vector<8x128xbf16>
    %c1_61 = arith.constant 1 : index
    %c0_62 = arith.constant 0 : index
    %c0_63 = arith.constant 0 : index
    %c0_64 = arith.constant 0 : index
    %64 = vector.load %arg3[%c1_61, %c0_62, %c0_63, %c0_64] : memref<4x3x128x128xbf16, #tpu.memory_space<vmem>>, vector<1x1x128x128xbf16>
    %65 = vector.shape_cast %64 : vector<1x1x128x128xbf16> to vector<128x128xbf16>
    %cst_65 = arith.constant dense<0.000000e+00> : vector<8x128xf32>
    %66 = tpu.matmul %63, %65, %cst_65 {dimension_numbers = #tpu.dot_dimension_numbers<[1], [0], [0], [1], [0, 0, 1, 1], [], []>} : vector<8x128xbf16>, vector<128x128xbf16>, vector<8x128xf32> -> vector<8x128xf32>
    %c8_66 = arith.constant 8 : index
    %c0_67 = arith.constant 0 : index
    %67 = vector.load %arg12[%c8_66, %c0_67] : memref<48x128xbf16, #tpu.memory_space<vmem>>, vector<8x128xbf16>
    %c1_68 = arith.constant 1 : index
    %c1_69 = arith.constant 1 : index
    %c0_70 = arith.constant 0 : index
    %c0_71 = arith.constant 0 : index
    %68 = vector.load %arg3[%c1_68, %c1_69, %c0_70, %c0_71] : memref<4x3x128x128xbf16, #tpu.memory_space<vmem>>, vector<1x1x128x128xbf16>
    %69 = vector.shape_cast %68 : vector<1x1x128x128xbf16> to vector<128x128xbf16>
    %cst_72 = arith.constant dense<0.000000e+00> : vector<8x128xf32>
    %70 = tpu.matmul %67, %69, %cst_72 {dimension_numbers = #tpu.dot_dimension_numbers<[1], [0], [0], [1], [0, 0, 1, 1], [], []>} : vector<8x128xbf16>, vector<128x128xbf16>, vector<8x128xf32> -> vector<8x128xf32>
    %71 = arith.addf %66, %70 : vector<8x128xf32>
    %c9 = arith.constant 9 : index
    %c0_73 = arith.constant 0 : index
    %72 = vector.load %arg12[%c9, %c0_73] : memref<48x128xbf16, #tpu.memory_space<vmem>>, vector<8x128xbf16>
    %c1_74 = arith.constant 1 : index
    %c2_75 = arith.constant 2 : index
    %c0_76 = arith.constant 0 : index
    %c0_77 = arith.constant 0 : index
    %73 = vector.load %arg3[%c1_74, %c2_75, %c0_76, %c0_77] : memref<4x3x128x128xbf16, #tpu.memory_space<vmem>>, vector<1x1x128x128xbf16>
    %74 = vector.shape_cast %73 : vector<1x1x128x128xbf16> to vector<128x128xbf16>
    %cst_78 = arith.constant dense<0.000000e+00> : vector<8x128xf32>
    %75 = tpu.matmul %72, %74, %cst_78 {dimension_numbers = #tpu.dot_dimension_numbers<[1], [0], [0], [1], [0, 0, 1, 1], [], []>} : vector<8x128xbf16>, vector<128x128xbf16>, vector<8x128xf32> -> vector<8x128xf32>
    %76 = arith.addf %71, %75 : vector<8x128xf32>
    %77 = vector.broadcast %57 : vector<1x128xf32> to vector<8x128xf32>
    %78 = arith.addf %76, %77 : vector<8x128xf32>
    %cst_79 = arith.constant 0.000000e+00 : f32
    %79 = vector.broadcast %cst_79 : f32 to vector<8x128xf32>
    %80 = arith.maximumf %78, %79 : vector<8x128xf32>
    %81 = arith.truncf %80 : vector<8x128xf32> to vector<8x128xbf16>
    %c1_80 = arith.constant 1 : index
    %c0_81 = arith.constant 0 : index
    %c0_82 = arith.constant 0 : index
    %82 = vector.load %arg4[%c1_80, %c0_81, %c0_82] : memref<4x128x128xbf16, #tpu.memory_space<vmem>>, vector<1x128x128xbf16>
    %83 = vector.shape_cast %82 : vector<1x128x128xbf16> to vector<128x128xbf16>
    %cst_83 = arith.constant dense<0.000000e+00> : vector<8x128xf32>
    %84 = tpu.matmul %81, %83, %cst_83 {dimension_numbers = #tpu.dot_dimension_numbers<[1], [0], [0], [1], [0, 0, 1, 1], [], []>} : vector<8x128xbf16>, vector<128x128xbf16>, vector<8x128xf32> -> vector<8x128xf32>
    %85 = vector.broadcast %58 : vector<1x128xf32> to vector<8x128xf32>
    %86 = arith.addf %84, %85 : vector<8x128xf32>
    %87 = arith.addf %56, %86 : vector<8x128xf32>
    %c5_84 = arith.constant 5 : index
    %c0_85 = arith.constant 0 : index
    %88 = vector.load %arg9[%c5_84, %c0_85] : memref<12x128xf32, #tpu.memory_space<vmem>>, vector<1x128xf32>
    %89 = arith.truncf %87 : vector<8x128xf32> to vector<8x128xbf16>
    %c8_86 = arith.constant 8 : index
    %c0_87 = arith.constant 0 : index
    %90 = vector.load %arg12[%c8_86, %c0_87] : memref<48x128xbf16, #tpu.memory_space<vmem>>, vector<8x128xbf16>
    tpu.vector_store %arg12[%c8_86, %c0_87], %89 {strides = array<i32>} : memref<48x128xbf16, #tpu.memory_space<vmem>>, vector<8x128xbf16>,
    %c7_88 = arith.constant 7 : index
    %c0_89 = arith.constant 0 : index
    %91 = vector.load %arg12[%c7_88, %c0_89] : memref<48x128xbf16, #tpu.memory_space<vmem>>, vector<8x128xbf16>
    %c8_90 = arith.constant 8 : index
    %c0_91 = arith.constant 0 : index
    %92 = vector.load %arg12[%c8_90, %c0_91] : memref<48x128xbf16, #tpu.memory_space<vmem>>, vector<8x128xbf16>
    %c9_92 = arith.constant 9 : index
    %c0_93 = arith.constant 0 : index
    %93 = vector.load %arg12[%c9_92, %c0_93] : memref<48x128xbf16, #tpu.memory_space<vmem>>, vector<8x128xbf16>
    %c0_94 = arith.constant 0 : index
    %c0_95 = arith.constant 0 : index
    %c0_96 = arith.constant 0 : index
    %c0_97 = arith.constant 0 : index
    %94 = vector.load %arg5[%c0_94, %c0_95, %c0_96, %c0_97] : memref<2x2x128x128xbf16, #tpu.memory_space<vmem>>, vector<1x1x128x128xbf16>
    %95 = vector.shape_cast %94 : vector<1x1x128x128xbf16> to vector<128x128xbf16>
    %cst_98 = arith.constant dense<0.000000e+00> : vector<8x128xf32>
    %96 = tpu.matmul %91, %95, %cst_98 {dimension_numbers = #tpu.dot_dimension_numbers<[1], [0], [0], [1], [0, 0, 1, 1], [], []>} : vector<8x128xbf16>, vector<128x128xbf16>, vector<8x128xf32> -> vector<8x128xf32>
    %c0_99 = arith.constant 0 : index
    %c1_100 = arith.constant 1 : index
    %c0_101 = arith.constant 0 : index
    %c0_102 = arith.constant 0 : index
    %97 = vector.load %arg5[%c0_99, %c1_100, %c0_101, %c0_102] : memref<2x2x128x128xbf16, #tpu.memory_space<vmem>>, vector<1x1x128x128xbf16>
    %98 = vector.shape_cast %97 : vector<1x1x128x128xbf16> to vector<128x128xbf16>
    %cst_103 = arith.constant dense<0.000000e+00> : vector<8x128xf32>
    %99 = tpu.matmul %92, %98, %cst_103 {dimension_numbers = #tpu.dot_dimension_numbers<[1], [0], [0], [1], [0, 0, 1, 1], [], []>} : vector<8x128xbf16>, vector<128x128xbf16>, vector<8x128xf32> -> vector<8x128xf32>
    %100 = arith.addf %96, %99 : vector<8x128xf32>
    %101 = vector.broadcast %88 : vector<1x128xf32> to vector<8x128xf32>
    %102 = arith.addf %100, %101 : vector<8x128xf32>
    %c0_104 = arith.constant 0 : index
    %c0_105 = arith.constant 0 : index
    %c0_106 = arith.constant 0 : index
    %c0_107 = arith.constant 0 : index
    %103 = vector.load %arg6[%c0_104, %c0_105, %c0_106, %c0_107] : memref<2x2x128x128xbf16, #tpu.memory_space<vmem>>, vector<1x1x128x128xbf16>
    %104 = vector.shape_cast %103 : vector<1x1x128x128xbf16> to vector<128x128xbf16>
    %cst_108 = arith.constant dense<0.000000e+00> : vector<8x128xf32>
    %105 = tpu.matmul %92, %104, %cst_108 {dimension_numbers = #tpu.dot_dimension_numbers<[1], [0], [0], [1], [0, 0, 1, 1], [], []>} : vector<8x128xbf16>, vector<128x128xbf16>, vector<8x128xf32> -> vector<8x128xf32>
    %c0_109 = arith.constant 0 : index
    %c1_110 = arith.constant 1 : index
    %c0_111 = arith.constant 0 : index
    %c0_112 = arith.constant 0 : index
    %106 = vector.load %arg6[%c0_109, %c1_110, %c0_111, %c0_112] : memref<2x2x128x128xbf16, #tpu.memory_space<vmem>>, vector<1x1x128x128xbf16>
    %107 = vector.shape_cast %106 : vector<1x1x128x128xbf16> to vector<128x128xbf16>
    %cst_113 = arith.constant dense<0.000000e+00> : vector<8x128xf32>
    %108 = tpu.matmul %93, %107, %cst_113 {dimension_numbers = #tpu.dot_dimension_numbers<[1], [0], [0], [1], [0, 0, 1, 1], [], []>} : vector<8x128xbf16>, vector<128x128xbf16>, vector<8x128xf32> -> vector<8x128xf32>
    %109 = arith.addf %105, %108 : vector<8x128xf32>
    %110 = vector.broadcast %88 : vector<1x128xf32> to vector<8x128xf32>
    %111 = arith.addf %109, %110 : vector<8x128xf32>
    %112 = vector.shape_cast %102 : vector<8x128xf32> to vector<8x1x128xf32>
    %113 = vector.shape_cast %111 : vector<8x128xf32> to vector<8x1x128xf32>
    %114 = tpu.concatenate %112, %113 in 1 : vector<8x1x128xf32>, vector<8x1x128xf32> -> vector<8x2x128xf32>
    %115 = vector.shape_cast %114 : vector<8x2x128xf32> to vector<16x128xf32>
    %c6 = arith.constant 6 : index
    %c0_114 = arith.constant 0 : index
    %116 = vector.load %arg9[%c6, %c0_114] : memref<12x128xf32, #tpu.memory_space<vmem>>, vector<1x128xf32>
    %c7_115 = arith.constant 7 : index
    %c0_116 = arith.constant 0 : index
    %117 = vector.load %arg9[%c7_115, %c0_116] : memref<12x128xf32, #tpu.memory_space<vmem>>, vector<1x128xf32>
    %cst_117 = arith.constant 0.000000e+00 : f32
    %118 = vector.broadcast %cst_117 : f32 to vector<16x128xf32>
    %119 = arith.maximumf %115, %118 : vector<16x128xf32>
    %120 = arith.truncf %119 : vector<16x128xf32> to vector<16x128xbf16>
    %cst_118 = arith.constant 0.000000e+00 : bf16
    %121 = vector.broadcast %cst_118 : bf16 to vector<8x128xbf16>
    %c0_119 = arith.constant 0 : index
    %c0_120 = arith.constant 0 : index
    %122 = vector.load %arg12[%c0_119, %c0_120] : memref<48x128xbf16, #tpu.memory_space<vmem>>, vector<8x128xbf16>
    tpu.vector_store %arg12[%c0_119, %c0_120], %121 {strides = array<i32>} : memref<48x128xbf16, #tpu.memory_space<vmem>>, vector<8x128xbf16>,
    %cst_121 = arith.constant 0.000000e+00 : bf16
    %123 = vector.broadcast %cst_121 : bf16 to vector<8x128xbf16>
    %c24 = arith.constant 24 : index
    %c0_122 = arith.constant 0 : index
    %124 = vector.load %arg12[%c24, %c0_122] : memref<48x128xbf16, #tpu.memory_space<vmem>>, vector<8x128xbf16>
    tpu.vector_store %arg12[%c24, %c0_122], %123 {strides = array<i32>} : memref<48x128xbf16, #tpu.memory_space<vmem>>, vector<8x128xbf16>,
    %c8_123 = arith.constant 8 : index
    %c0_124 = arith.constant 0 : index
    %125 = vector.load %arg12[%c8_123, %c0_124] : memref<48x128xbf16, #tpu.memory_space<vmem>>, vector<16x128xbf16>
    tpu.vector_store %arg12[%c8_123, %c0_124], %120 {strides = array<i32>} : memref<48x128xbf16, #tpu.memory_space<vmem>>, vector<16x128xbf16>,
    %c5_125 = arith.constant 5 : index
    %c0_126 = arith.constant 0 : index
    %126 = vector.load %arg12[%c5_125, %c0_126] : memref<48x128xbf16, #tpu.memory_space<vmem>>, vector<16x128xbf16>
    %c2_127 = arith.constant 2 : index
    %c0_128 = arith.constant 0 : index
    %c0_129 = arith.constant 0 : index
    %c0_130 = arith.constant 0 : index
    %127 = vector.load %arg3[%c2_127, %c0_128, %c0_129, %c0_130] : memref<4x3x128x128xbf16, #tpu.memory_space<vmem>>, vector<1x1x128x128xbf16>
    %128 = vector.shape_cast %127 : vector<1x1x128x128xbf16> to vector<128x128xbf16>
    %cst_131 = arith.constant dense<0.000000e+00> : vector<16x128xf32>
    %129 = tpu.matmul %126, %128, %cst_131 {dimension_numbers = #tpu.dot_dimension_numbers<[1], [0], [0], [1], [0, 0, 1, 1], [], []>} : vector<16x128xbf16>, vector<128x128xbf16>, vector<16x128xf32> -> vector<16x128xf32>
    %c8_132 = arith.constant 8 : index
    %c0_133 = arith.constant 0 : index
    %130 = vector.load %arg12[%c8_132, %c0_133] : memref<48x128xbf16, #tpu.memory_space<vmem>>, vector<16x128xbf16>
    %c2_134 = arith.constant 2 : index
    %c1_135 = arith.constant 1 : index
    %c0_136 = arith.constant 0 : index
    %c0_137 = arith.constant 0 : index
    %131 = vector.load %arg3[%c2_134, %c1_135, %c0_136, %c0_137] : memref<4x3x128x128xbf16, #tpu.memory_space<vmem>>, vector<1x1x128x128xbf16>
    %132 = vector.shape_cast %131 : vector<1x1x128x128xbf16> to vector<128x128xbf16>
    %cst_138 = arith.constant dense<0.000000e+00> : vector<16x128xf32>
    %133 = tpu.matmul %130, %132, %cst_138 {dimension_numbers = #tpu.dot_dimension_numbers<[1], [0], [0], [1], [0, 0, 1, 1], [], []>} : vector<16x128xbf16>, vector<128x128xbf16>, vector<16x128xf32> -> vector<16x128xf32>
    %134 = arith.addf %129, %133 : vector<16x128xf32>
    %c11_139 = arith.constant 11 : index
    %c0_140 = arith.constant 0 : index
    %135 = vector.load %arg12[%c11_139, %c0_140] : memref<48x128xbf16, #tpu.memory_space<vmem>>, vector<16x128xbf16>
    %c2_141 = arith.constant 2 : index
    %c2_142 = arith.constant 2 : index
    %c0_143 = arith.constant 0 : index
    %c0_144 = arith.constant 0 : index
    %136 = vector.load %arg3[%c2_141, %c2_142, %c0_143, %c0_144] : memref<4x3x128x128xbf16, #tpu.memory_space<vmem>>, vector<1x1x128x128xbf16>
    %137 = vector.shape_cast %136 : vector<1x1x128x128xbf16> to vector<128x128xbf16>
    %cst_145 = arith.constant dense<0.000000e+00> : vector<16x128xf32>
    %138 = tpu.matmul %135, %137, %cst_145 {dimension_numbers = #tpu.dot_dimension_numbers<[1], [0], [0], [1], [0, 0, 1, 1], [], []>} : vector<16x128xbf16>, vector<128x128xbf16>, vector<16x128xf32> -> vector<16x128xf32>
    %139 = arith.addf %134, %138 : vector<16x128xf32>
    %140 = vector.broadcast %116 : vector<1x128xf32> to vector<16x128xf32>
    %141 = arith.addf %139, %140 : vector<16x128xf32>
    %cst_146 = arith.constant 0.000000e+00 : f32
    %142 = vector.broadcast %cst_146 : f32 to vector<16x128xf32>
    %143 = arith.maximumf %141, %142 : vector<16x128xf32>
    %144 = arith.truncf %143 : vector<16x128xf32> to vector<16x128xbf16>
    %c2_147 = arith.constant 2 : index
    %c0_148 = arith.constant 0 : index
    %c0_149 = arith.constant 0 : index
    %145 = vector.load %arg4[%c2_147, %c0_148, %c0_149] : memref<4x128x128xbf16, #tpu.memory_space<vmem>>, vector<1x128x128xbf16>
    %146 = vector.shape_cast %145 : vector<1x128x128xbf16> to vector<128x128xbf16>
    %cst_150 = arith.constant dense<0.000000e+00> : vector<16x128xf32>
    %147 = tpu.matmul %144, %146, %cst_150 {dimension_numbers = #tpu.dot_dimension_numbers<[1], [0], [0], [1], [0, 0, 1, 1], [], []>} : vector<16x128xbf16>, vector<128x128xbf16>, vector<16x128xf32> -> vector<16x128xf32>
    %148 = vector.broadcast %117 : vector<1x128xf32> to vector<16x128xf32>
    %149 = arith.addf %147, %148 : vector<16x128xf32>
    %150 = arith.addf %115, %149 : vector<16x128xf32>
    %c8_151 = arith.constant 8 : index
    %c0_152 = arith.constant 0 : index
    %151 = vector.load %arg9[%c8_151, %c0_152] : memref<12x128xf32, #tpu.memory_space<vmem>>, vector<1x128xf32>
    %c9_153 = arith.constant 9 : index
    %c0_154 = arith.constant 0 : index
    %152 = vector.load %arg9[%c9_153, %c0_154] : memref<12x128xf32, #tpu.memory_space<vmem>>, vector<1x128xf32>
    %cst_155 = arith.constant 0.000000e+00 : f32
    %153 = vector.broadcast %cst_155 : f32 to vector<16x128xf32>
    %154 = arith.maximumf %150, %153 : vector<16x128xf32>
    %155 = arith.truncf %154 : vector<16x128xf32> to vector<16x128xbf16>
    %c8_156 = arith.constant 8 : index
    %c0_157 = arith.constant 0 : index
    %156 = vector.load %arg12[%c8_156, %c0_157] : memref<48x128xbf16, #tpu.memory_space<vmem>>, vector<16x128xbf16>
    tpu.vector_store %arg12[%c8_156, %c0_157], %155 {strides = array<i32>} : memref<48x128xbf16, #tpu.memory_space<vmem>>, vector<16x128xbf16>,
    %c7_158 = arith.constant 7 : index
    %c0_159 = arith.constant 0 : index
    %157 = vector.load %arg12[%c7_158, %c0_159] : memref<48x128xbf16, #tpu.memory_space<vmem>>, vector<16x128xbf16>
    %c3_160 = arith.constant 3 : index
    %c0_161 = arith.constant 0 : index
    %c0_162 = arith.constant 0 : index
    %c0_163 = arith.constant 0 : index
    %158 = vector.load %arg3[%c3_160, %c0_161, %c0_162, %c0_163] : memref<4x3x128x128xbf16, #tpu.memory_space<vmem>>, vector<1x1x128x128xbf16>
    %159 = vector.shape_cast %158 : vector<1x1x128x128xbf16> to vector<128x128xbf16>
    %cst_164 = arith.constant dense<0.000000e+00> : vector<16x128xf32>
    %160 = tpu.matmul %157, %159, %cst_164 {dimension_numbers = #tpu.dot_dimension_numbers<[1], [0], [0], [1], [0, 0, 1, 1], [], []>} : vector<16x128xbf16>, vector<128x128xbf16>, vector<16x128xf32> -> vector<16x128xf32>
    %c8_165 = arith.constant 8 : index
    %c0_166 = arith.constant 0 : index
    %161 = vector.load %arg12[%c8_165, %c0_166] : memref<48x128xbf16, #tpu.memory_space<vmem>>, vector<16x128xbf16>
    %c3_167 = arith.constant 3 : index
    %c1_168 = arith.constant 1 : index
    %c0_169 = arith.constant 0 : index
    %c0_170 = arith.constant 0 : index
    %162 = vector.load %arg3[%c3_167, %c1_168, %c0_169, %c0_170] : memref<4x3x128x128xbf16, #tpu.memory_space<vmem>>, vector<1x1x128x128xbf16>
    %163 = vector.shape_cast %162 : vector<1x1x128x128xbf16> to vector<128x128xbf16>
    %cst_171 = arith.constant dense<0.000000e+00> : vector<16x128xf32>
    %164 = tpu.matmul %161, %163, %cst_171 {dimension_numbers = #tpu.dot_dimension_numbers<[1], [0], [0], [1], [0, 0, 1, 1], [], []>} : vector<16x128xbf16>, vector<128x128xbf16>, vector<16x128xf32> -> vector<16x128xf32>
    %165 = arith.addf %160, %164 : vector<16x128xf32>
    %c9_172 = arith.constant 9 : index
    %c0_173 = arith.constant 0 : index
    %166 = vector.load %arg12[%c9_172, %c0_173] : memref<48x128xbf16, #tpu.memory_space<vmem>>, vector<16x128xbf16>
    %c3_174 = arith.constant 3 : index
    %c2_175 = arith.constant 2 : index
    %c0_176 = arith.constant 0 : index
    %c0_177 = arith.constant 0 : index
    %167 = vector.load %arg3[%c3_174, %c2_175, %c0_176, %c0_177] : memref<4x3x128x128xbf16, #tpu.memory_space<vmem>>, vector<1x1x128x128xbf16>
    %168 = vector.shape_cast %167 : vector<1x1x128x128xbf16> to vector<128x128xbf16>
    %cst_178 = arith.constant dense<0.000000e+00> : vector<16x128xf32>
    %169 = tpu.matmul %166, %168, %cst_178 {dimension_numbers = #tpu.dot_dimension_numbers<[1], [0], [0], [1], [0, 0, 1, 1], [], []>} : vector<16x128xbf16>, vector<128x128xbf16>, vector<16x128xf32> -> vector<16x128xf32>
    %170 = arith.addf %165, %169 : vector<16x128xf32>
    %171 = vector.broadcast %151 : vector<1x128xf32> to vector<16x128xf32>
    %172 = arith.addf %170, %171 : vector<16x128xf32>
    %cst_179 = arith.constant 0.000000e+00 : f32
    %173 = vector.broadcast %cst_179 : f32 to vector<16x128xf32>
    %174 = arith.maximumf %172, %173 : vector<16x128xf32>
    %175 = arith.truncf %174 : vector<16x128xf32> to vector<16x128xbf16>
    %c3_180 = arith.constant 3 : index
    %c0_181 = arith.constant 0 : index
    %c0_182 = arith.constant 0 : index
    %176 = vector.load %arg4[%c3_180, %c0_181, %c0_182] : memref<4x128x128xbf16, #tpu.memory_space<vmem>>, vector<1x128x128xbf16>
    %177 = vector.shape_cast %176 : vector<1x128x128xbf16> to vector<128x128xbf16>
    %cst_183 = arith.constant dense<0.000000e+00> : vector<16x128xf32>
    %178 = tpu.matmul %175, %177, %cst_183 {dimension_numbers = #tpu.dot_dimension_numbers<[1], [0], [0], [1], [0, 0, 1, 1], [], []>} : vector<16x128xbf16>, vector<128x128xbf16>, vector<16x128xf32> -> vector<16x128xf32>
    %179 = vector.broadcast %152 : vector<1x128xf32> to vector<16x128xf32>
    %180 = arith.addf %178, %179 : vector<16x128xf32>
    %181 = arith.addf %150, %180 : vector<16x128xf32>
    %c10 = arith.constant 10 : index
    %c0_184 = arith.constant 0 : index
    %182 = vector.load %arg9[%c10, %c0_184] : memref<12x128xf32, #tpu.memory_space<vmem>>, vector<1x128xf32>
    %183 = arith.truncf %181 : vector<16x128xf32> to vector<16x128xbf16>
    %c8_185 = arith.constant 8 : index
    %c0_186 = arith.constant 0 : index
    %184 = vector.load %arg12[%c8_185, %c0_186] : memref<48x128xbf16, #tpu.memory_space<vmem>>, vector<16x128xbf16>
    tpu.vector_store %arg12[%c8_185, %c0_186], %183 {strides = array<i32>} : memref<48x128xbf16, #tpu.memory_space<vmem>>, vector<16x128xbf16>,
    %c7_187 = arith.constant 7 : index
    %c0_188 = arith.constant 0 : index
    %185 = vector.load %arg12[%c7_187, %c0_188] : memref<48x128xbf16, #tpu.memory_space<vmem>>, vector<16x128xbf16>
    %c8_189 = arith.constant 8 : index
    %c0_190 = arith.constant 0 : index
    %186 = vector.load %arg12[%c8_189, %c0_190] : memref<48x128xbf16, #tpu.memory_space<vmem>>, vector<16x128xbf16>
    %c9_191 = arith.constant 9 : index
    %c0_192 = arith.constant 0 : index
    %187 = vector.load %arg12[%c9_191, %c0_192] : memref<48x128xbf16, #tpu.memory_space<vmem>>, vector<16x128xbf16>
    %c1_193 = arith.constant 1 : index
    %c0_194 = arith.constant 0 : index
    %c0_195 = arith.constant 0 : index
    %c0_196 = arith.constant 0 : index
    %188 = vector.load %arg5[%c1_193, %c0_194, %c0_195, %c0_196] : memref<2x2x128x128xbf16, #tpu.memory_space<vmem>>, vector<1x1x128x128xbf16>
    %189 = vector.shape_cast %188 : vector<1x1x128x128xbf16> to vector<128x128xbf16>
    %cst_197 = arith.constant dense<0.000000e+00> : vector<16x128xf32>
    %190 = tpu.matmul %185, %189, %cst_197 {dimension_numbers = #tpu.dot_dimension_numbers<[1], [0], [0], [1], [0, 0, 1, 1], [], []>} : vector<16x128xbf16>, vector<128x128xbf16>, vector<16x128xf32> -> vector<16x128xf32>
    %c1_198 = arith.constant 1 : index
    %c1_199 = arith.constant 1 : index
    %c0_200 = arith.constant 0 : index
    %c0_201 = arith.constant 0 : index
    %191 = vector.load %arg5[%c1_198, %c1_199, %c0_200, %c0_201] : memref<2x2x128x128xbf16, #tpu.memory_space<vmem>>, vector<1x1x128x128xbf16>
    %192 = vector.shape_cast %191 : vector<1x1x128x128xbf16> to vector<128x128xbf16>
    %cst_202 = arith.constant dense<0.000000e+00> : vector<16x128xf32>
    %193 = tpu.matmul %186, %192, %cst_202 {dimension_numbers = #tpu.dot_dimension_numbers<[1], [0], [0], [1], [0, 0, 1, 1], [], []>} : vector<16x128xbf16>, vector<128x128xbf16>, vector<16x128xf32> -> vector<16x128xf32>
    %194 = arith.addf %190, %193 : vector<16x128xf32>
    %195 = vector.broadcast %182 : vector<1x128xf32> to vector<16x128xf32>
    %196 = arith.addf %194, %195 : vector<16x128xf32>
    %c1_203 = arith.constant 1 : index
    %c0_204 = arith.constant 0 : index
    %c0_205 = arith.constant 0 : index
    %c0_206 = arith.constant 0 : index
    %197 = vector.load %arg6[%c1_203, %c0_204, %c0_205, %c0_206] : memref<2x2x128x128xbf16, #tpu.memory_space<vmem>>, vector<1x1x128x128xbf16>
    %198 = vector.shape_cast %197 : vector<1x1x128x128xbf16> to vector<128x128xbf16>
    %cst_207 = arith.constant dense<0.000000e+00> : vector<16x128xf32>
    %199 = tpu.matmul %186, %198, %cst_207 {dimension_numbers = #tpu.dot_dimension_numbers<[1], [0], [0], [1], [0, 0, 1, 1], [], []>} : vector<16x128xbf16>, vector<128x128xbf16>, vector<16x128xf32> -> vector<16x128xf32>
    %c1_208 = arith.constant 1 : index
    %c1_209 = arith.constant 1 : index
    %c0_210 = arith.constant 0 : index
    %c0_211 = arith.constant 0 : index
    %200 = vector.load %arg6[%c1_208, %c1_209, %c0_210, %c0_211] : memref<2x2x128x128xbf16, #tpu.memory_space<vmem>>, vector<1x1x128x128xbf16>
    %201 = vector.shape_cast %200 : vector<1x1x128x128xbf16> to vector<128x128xbf16>
    %cst_212 = arith.constant dense<0.000000e+00> : vector<16x128xf32>
    %202 = tpu.matmul %187, %201, %cst_212 {dimension_numbers = #tpu.dot_dimension_numbers<[1], [0], [0], [1], [0, 0, 1, 1], [], []>} : vector<16x128xbf16>, vector<128x128xbf16>, vector<16x128xf32> -> vector<16x128xf32>
    %203 = arith.addf %199, %202 : vector<16x128xf32>
    %204 = vector.broadcast %182 : vector<1x128xf32> to vector<16x128xf32>
    %205 = arith.addf %203, %204 : vector<16x128xf32>
    %206 = vector.shape_cast %196 : vector<16x128xf32> to vector<16x1x128xf32>
    %207 = vector.shape_cast %205 : vector<16x128xf32> to vector<16x1x128xf32>
    %208 = tpu.concatenate %206, %207 in 1 : vector<16x1x128xf32>, vector<16x1x128xf32> -> vector<16x2x128xf32>
    %209 = vector.shape_cast %208 : vector<16x2x128xf32> to vector<32x128xf32>
    %210 = arith.truncf %209 : vector<32x128xf32> to vector<32x128xbf16>
    %cst_213 = arith.constant 0.000000e+00 : bf16
    %211 = vector.broadcast %cst_213 : bf16 to vector<8x128xbf16>
    %c0_214 = arith.constant 0 : index
    %c0_215 = arith.constant 0 : index
    %212 = vector.load %arg12[%c0_214, %c0_215] : memref<48x128xbf16, #tpu.memory_space<vmem>>, vector<8x128xbf16>
    tpu.vector_store %arg12[%c0_214, %c0_215], %211 {strides = array<i32>} : memref<48x128xbf16, #tpu.memory_space<vmem>>, vector<8x128xbf16>,
    %cst_216 = arith.constant 0.000000e+00 : bf16
    %213 = vector.broadcast %cst_216 : bf16 to vector<8x128xbf16>
    %c40 = arith.constant 40 : index
    %c0_217 = arith.constant 0 : index
    %214 = vector.load %arg12[%c40, %c0_217] : memref<48x128xbf16, #tpu.memory_space<vmem>>, vector<8x128xbf16>
    tpu.vector_store %arg12[%c40, %c0_217], %213 {strides = array<i32>} : memref<48x128xbf16, #tpu.memory_space<vmem>>, vector<8x128xbf16>,
    %c8_218 = arith.constant 8 : index
    %c0_219 = arith.constant 0 : index
    %215 = vector.load %arg12[%c8_218, %c0_219] : memref<48x128xbf16, #tpu.memory_space<vmem>>, vector<32x128xbf16>
    tpu.vector_store %arg12[%c8_218, %c0_219], %210 {strides = array<i32>} : memref<48x128xbf16, #tpu.memory_space<vmem>>, vector<32x128xbf16>,
    %c11_220 = arith.constant 11 : index
    %c0_221 = arith.constant 0 : index
    %216 = vector.load %arg9[%c11_220, %c0_221] : memref<12x128xf32, #tpu.memory_space<vmem>>, vector<1x128xf32>
    %c7_222 = arith.constant 7 : index
    %c0_223 = arith.constant 0 : index
    %217 = vector.load %arg12[%c7_222, %c0_223] : memref<48x128xbf16, #tpu.memory_space<vmem>>, vector<32x128xbf16>
    %c0_224 = arith.constant 0 : index
    %c0_225 = arith.constant 0 : index
    %c0_226 = arith.constant 0 : index
    %218 = vector.load %arg7[%c0_224, %c0_225, %c0_226] : memref<3x128x128xbf16, #tpu.memory_space<vmem>>, vector<1x128x128xbf16>
    %219 = vector.shape_cast %218 : vector<1x128x128xbf16> to vector<128x128xbf16>
    %cst_227 = arith.constant dense<0.000000e+00> : vector<32x128xf32>
    %220 = tpu.matmul %217, %219, %cst_227 {dimension_numbers = #tpu.dot_dimension_numbers<[1], [0], [0], [1], [0, 0, 1, 1], [], []>} : vector<32x128xbf16>, vector<128x128xbf16>, vector<32x128xf32> -> vector<32x128xf32>
    %c8_228 = arith.constant 8 : index
    %c0_229 = arith.constant 0 : index
    %221 = vector.load %arg12[%c8_228, %c0_229] : memref<48x128xbf16, #tpu.memory_space<vmem>>, vector<32x128xbf16>
    %c1_230 = arith.constant 1 : index
    %c0_231 = arith.constant 0 : index
    %c0_232 = arith.constant 0 : index
    %222 = vector.load %arg7[%c1_230, %c0_231, %c0_232] : memref<3x128x128xbf16, #tpu.memory_space<vmem>>, vector<1x128x128xbf16>
    %223 = vector.shape_cast %222 : vector<1x128x128xbf16> to vector<128x128xbf16>
    %cst_233 = arith.constant dense<0.000000e+00> : vector<32x128xf32>
    %224 = tpu.matmul %221, %223, %cst_233 {dimension_numbers = #tpu.dot_dimension_numbers<[1], [0], [0], [1], [0, 0, 1, 1], [], []>} : vector<32x128xbf16>, vector<128x128xbf16>, vector<32x128xf32> -> vector<32x128xf32>
    %225 = arith.addf %220, %224 : vector<32x128xf32>
    %c9_234 = arith.constant 9 : index
    %c0_235 = arith.constant 0 : index
    %226 = vector.load %arg12[%c9_234, %c0_235] : memref<48x128xbf16, #tpu.memory_space<vmem>>, vector<32x128xbf16>
    %c2_236 = arith.constant 2 : index
    %c0_237 = arith.constant 0 : index
    %c0_238 = arith.constant 0 : index
    %227 = vector.load %arg7[%c2_236, %c0_237, %c0_238] : memref<3x128x128xbf16, #tpu.memory_space<vmem>>, vector<1x128x128xbf16>
    %228 = vector.shape_cast %227 : vector<1x128x128xbf16> to vector<128x128xbf16>
    %cst_239 = arith.constant dense<0.000000e+00> : vector<32x128xf32>
    %229 = tpu.matmul %226, %228, %cst_239 {dimension_numbers = #tpu.dot_dimension_numbers<[1], [0], [0], [1], [0, 0, 1, 1], [], []>} : vector<32x128xbf16>, vector<128x128xbf16>, vector<32x128xf32> -> vector<32x128xf32>
    %230 = arith.addf %225, %229 : vector<32x128xf32>
    %231 = vector.broadcast %216 : vector<1x128xf32> to vector<32x128xf32>
    %232 = arith.addf %230, %231 : vector<32x128xf32>
    %cst_240 = arith.constant 0.000000e+00 : f32
    %233 = vector.broadcast %cst_240 : f32 to vector<32x128xf32>
    %234 = arith.maximumf %232, %233 : vector<32x128xf32>
    %235 = arith.truncf %234 : vector<32x128xf32> to vector<32x128xbf16>
    %c8_241 = arith.constant 8 : index
    %c0_242 = arith.constant 0 : index
    %236 = vector.load %arg12[%c8_241, %c0_242] : memref<48x128xbf16, #tpu.memory_space<vmem>>, vector<32x128xbf16>
    tpu.vector_store %arg12[%c8_241, %c0_242], %235 {strides = array<i32>} : memref<48x128xbf16, #tpu.memory_space<vmem>>, vector<32x128xbf16>,
    %c0_243 = arith.constant 0 : index
    %c0_244 = arith.constant 0 : index
    %237 = vector.load %arg10[%c0_243, %c0_244] : memref<1x128xf32, #tpu.memory_space<vmem>>, vector<1x128xf32>
    %c7_245 = arith.constant 7 : index
    %c0_246 = arith.constant 0 : index
    %238 = vector.load %arg12[%c7_245, %c0_246] : memref<48x128xbf16, #tpu.memory_space<vmem>>, vector<32x128xbf16>
    %c0_247 = arith.constant 0 : index
    %c0_248 = arith.constant 0 : index
    %c0_249 = arith.constant 0 : index
    %239 = vector.load %arg8[%c0_247, %c0_248, %c0_249] : memref<3x128x128xbf16, #tpu.memory_space<vmem>>, vector<1x128x128xbf16>
    %240 = vector.shape_cast %239 : vector<1x128x128xbf16> to vector<128x128xbf16>
    %cst_250 = arith.constant dense<0.000000e+00> : vector<32x128xf32>
    %241 = tpu.matmul %238, %240, %cst_250 {dimension_numbers = #tpu.dot_dimension_numbers<[1], [0], [0], [1], [0, 0, 1, 1], [], []>} : vector<32x128xbf16>, vector<128x128xbf16>, vector<32x128xf32> -> vector<32x128xf32>
    %c8_251 = arith.constant 8 : index
    %c0_252 = arith.constant 0 : index
    %242 = vector.load %arg12[%c8_251, %c0_252] : memref<48x128xbf16, #tpu.memory_space<vmem>>, vector<32x128xbf16>
    %c1_253 = arith.constant 1 : index
    %c0_254 = arith.constant 0 : index
    %c0_255 = arith.constant 0 : index
    %243 = vector.load %arg8[%c1_253, %c0_254, %c0_255] : memref<3x128x128xbf16, #tpu.memory_space<vmem>>, vector<1x128x128xbf16>
    %244 = vector.shape_cast %243 : vector<1x128x128xbf16> to vector<128x128xbf16>
    %cst_256 = arith.constant dense<0.000000e+00> : vector<32x128xf32>
    %245 = tpu.matmul %242, %244, %cst_256 {dimension_numbers = #tpu.dot_dimension_numbers<[1], [0], [0], [1], [0, 0, 1, 1], [], []>} : vector<32x128xbf16>, vector<128x128xbf16>, vector<32x128xf32> -> vector<32x128xf32>
    %246 = arith.addf %241, %245 : vector<32x128xf32>
    %c9_257 = arith.constant 9 : index
    %c0_258 = arith.constant 0 : index
    %247 = vector.load %arg12[%c9_257, %c0_258] : memref<48x128xbf16, #tpu.memory_space<vmem>>, vector<32x128xbf16>
    %c2_259 = arith.constant 2 : index
    %c0_260 = arith.constant 0 : index
    %c0_261 = arith.constant 0 : index
    %248 = vector.load %arg8[%c2_259, %c0_260, %c0_261] : memref<3x128x128xbf16, #tpu.memory_space<vmem>>, vector<1x128x128xbf16>
    %249 = vector.shape_cast %248 : vector<1x128x128xbf16> to vector<128x128xbf16>
    %cst_262 = arith.constant dense<0.000000e+00> : vector<32x128xf32>
    %250 = tpu.matmul %247, %249, %cst_262 {dimension_numbers = #tpu.dot_dimension_numbers<[1], [0], [0], [1], [0, 0, 1, 1], [], []>} : vector<32x128xbf16>, vector<128x128xbf16>, vector<32x128xf32> -> vector<32x128xf32>
    %251 = arith.addf %246, %250 : vector<32x128xf32>
    %252 = vector.broadcast %237 : vector<1x128xf32> to vector<32x128xf32>
    %253 = arith.addf %251, %252 : vector<32x128xf32>
    %c0_263 = arith.constant 0 : index
    %c0_264 = arith.constant 0 : index
    %c0_265 = arith.constant 0 : index
    %254 = vector.load %arg11[%c0_263, %c0_264, %c0_265] : memref<1x32x128xf32, #tpu.memory_space<vmem>>, vector<1x32x128xf32>
    %255 = vector.shape_cast %254 : vector<1x32x128xf32> to vector<32x128xf32>
    %256 = vector.shape_cast %253 : vector<32x128xf32> to vector<1x32x128xf32>
    tpu.vector_store %arg11[%c0_263, %c0_264, %c0_265], %256 {strides = array<i32>} : memref<1x32x128xf32, #tpu.memory_space<vmem>>, vector<1x32x128xf32>,
    return
  }
  func.func @transform_0(%arg0: i32) -> (i32, i32, i32) {
    %c0_i32 = arith.constant 0 : i32
    %c0_i32_0 = arith.constant 0 : i32
    %c0_i32_1 = arith.constant 0 : i32
    return %arg0, %c0_i32, %c0_i32_0 : i32, i32, i32
  }
  func.func @transform_1(%arg0: i32) -> (i32, i32, i32) {
    %c0_i32 = arith.constant 0 : i32
    %c0_i32_0 = arith.constant 0 : i32
    %c0_i32_1 = arith.constant 0 : i32
    %c0_i32_2 = arith.constant 0 : i32
    return %c0_i32, %c0_i32_0, %c0_i32_1 : i32, i32, i32
  }
  func.func @transform_2(%arg0: i32) -> (i32, i32, i32, i32) {
    %c0_i32 = arith.constant 0 : i32
    %c0_i32_0 = arith.constant 0 : i32
    %c0_i32_1 = arith.constant 0 : i32
    %c0_i32_2 = arith.constant 0 : i32
    %c0_i32_3 = arith.constant 0 : i32
    return %c0_i32, %c0_i32_0, %c0_i32_1, %c0_i32_2 : i32, i32, i32, i32
  }
  func.func @transform_3(%arg0: i32) -> (i32, i32, i32) {
    %c0_i32 = arith.constant 0 : i32
    %c0_i32_0 = arith.constant 0 : i32
    %c0_i32_1 = arith.constant 0 : i32
    %c0_i32_2 = arith.constant 0 : i32
    return %c0_i32, %c0_i32_0, %c0_i32_1 : i32, i32, i32
  }
  func.func @transform_4(%arg0: i32) -> (i32, i32, i32, i32) {
    %c0_i32 = arith.constant 0 : i32
    %c0_i32_0 = arith.constant 0 : i32
    %c0_i32_1 = arith.constant 0 : i32
    %c0_i32_2 = arith.constant 0 : i32
    %c0_i32_3 = arith.constant 0 : i32
    return %c0_i32, %c0_i32_0, %c0_i32_1, %c0_i32_2 : i32, i32, i32, i32
  }
  func.func @transform_5(%arg0: i32) -> (i32, i32, i32, i32) {
    %c0_i32 = arith.constant 0 : i32
    %c0_i32_0 = arith.constant 0 : i32
    %c0_i32_1 = arith.constant 0 : i32
    %c0_i32_2 = arith.constant 0 : i32
    %c0_i32_3 = arith.constant 0 : i32
    return %c0_i32, %c0_i32_0, %c0_i32_1, %c0_i32_2 : i32, i32, i32, i32
  }
  func.func @transform_6(%arg0: i32) -> (i32, i32, i32) {
    %c0_i32 = arith.constant 0 : i32
    %c0_i32_0 = arith.constant 0 : i32
    %c0_i32_1 = arith.constant 0 : i32
    %c0_i32_2 = arith.constant 0 : i32
    return %c0_i32, %c0_i32_0, %c0_i32_1 : i32, i32, i32
  }
  func.func @transform_7(%arg0: i32) -> (i32, i32, i32) {
    %c0_i32 = arith.constant 0 : i32
    %c0_i32_0 = arith.constant 0 : i32
    %c0_i32_1 = arith.constant 0 : i32
    %c0_i32_2 = arith.constant 0 : i32
    return %c0_i32, %c0_i32_0, %c0_i32_1 : i32, i32, i32
  }
  func.func @transform_8(%arg0: i32) -> (i32, i32) {
    %c0_i32 = arith.constant 0 : i32
    %c0_i32_0 = arith.constant 0 : i32
    %c0_i32_1 = arith.constant 0 : i32
    return %c0_i32, %c0_i32_0 : i32, i32
  }
  func.func @transform_9(%arg0: i32) -> (i32, i32) {
    %c0_i32 = arith.constant 0 : i32
    %c0_i32_0 = arith.constant 0 : i32
    %c0_i32_1 = arith.constant 0 : i32
    return %c0_i32, %c0_i32_0 : i32, i32
  }
  func.func @transform_10(%arg0: i32) -> (i32, i32, i32) {
    %c0_i32 = arith.constant 0 : i32
    %c0_i32_0 = arith.constant 0 : i32
    %c0_i32_1 = arith.constant 0 : i32
    return %arg0, %c0_i32, %c0_i32_0 : i32, i32, i32
  }
}

module attributes {stable_mosaic.version = 11 : i64} {
  func.func @_res_decoder_kernel(%arg0: i32, %arg1: memref<1x10x128xbf16, #tpu.memory_space<vmem>>, %arg2: memref<3x128x128xbf16, #tpu.memory_space<vmem>>, %arg3: memref<4x3x128x128xbf16, #tpu.memory_space<vmem>>, %arg4: memref<4x128x128xbf16, #tpu.memory_space<vmem>>, %arg5: memref<2x2x128x128xbf16, #tpu.memory_space<vmem>>, %arg6: memref<2x2x128x128xbf16, #tpu.memory_space<vmem>>, %arg7: memref<3x128x128xbf16, #tpu.memory_space<vmem>>, %arg8: memref<3x128x128xbf16, #tpu.memory_space<vmem>>, %arg9: memref<12x128xf32, #tpu.memory_space<vmem>>, %arg10: memref<1x128xf32, #tpu.memory_space<vmem>>, %arg11: memref<1x32x128xf32, #tpu.memory_space<vmem>>, %arg12: memref<48x128xbf16, #tpu.memory_space<vmem>>) attributes {dimension_semantics = [#tpu.dimension_semantics<parallel>], iteration_bounds = array<i64: 2>, scalar_prefetch = 0 : i64, scratch_operands = 1 : i64, tpu.core_type = #tpu.core_type<tc>, window_params = [{transform_indices = @transform_0, window_bounds = array<i64: 1, 10, 128>}, {pipeline_mode = #tpu.pipeline_mode<synchronous>, transform_indices = @transform_1, window_bounds = array<i64: 3, 128, 128>}, {pipeline_mode = #tpu.pipeline_mode<synchronous>, transform_indices = @transform_2, window_bounds = array<i64: 4, 3, 128, 128>}, {pipeline_mode = #tpu.pipeline_mode<synchronous>, transform_indices = @transform_3, window_bounds = array<i64: 4, 128, 128>}, {pipeline_mode = #tpu.pipeline_mode<synchronous>, transform_indices = @transform_4, window_bounds = array<i64: 2, 2, 128, 128>}, {pipeline_mode = #tpu.pipeline_mode<synchronous>, transform_indices = @transform_5, window_bounds = array<i64: 2, 2, 128, 128>}, {pipeline_mode = #tpu.pipeline_mode<synchronous>, transform_indices = @transform_6, window_bounds = array<i64: 3, 128, 128>}, {pipeline_mode = #tpu.pipeline_mode<synchronous>, transform_indices = @transform_7, window_bounds = array<i64: 3, 128, 128>}, {pipeline_mode = #tpu.pipeline_mode<synchronous>, transform_indices = @transform_8, window_bounds = array<i64: 12, 128>}, {pipeline_mode = #tpu.pipeline_mode<synchronous>, transform_indices = @transform_9, window_bounds = array<i64: 1, 128>}, {transform_indices = @transform_10, window_bounds = array<i64: 1, 32, 128>}]} {
    %c0 = arith.constant 0 : index
    %c0_0 = arith.constant 0 : index
    %0 = vector.load %arg9[%c0, %c0_0] : memref<12x128xf32, #tpu.memory_space<vmem>>, vector<1x128xf32>
    %c0_1 = arith.constant 0 : index
    %c0_2 = arith.constant 0 : index
    %c0_3 = arith.constant 0 : index
    %1 = vector.load %arg1[%c0_1, %c0_2, %c0_3] : memref<1x10x128xbf16, #tpu.memory_space<vmem>>, vector<1x8x128xbf16>
    %2 = vector.shape_cast %1 : vector<1x8x128xbf16> to vector<8x128xbf16>
    %c0_4 = arith.constant 0 : index
    %c0_5 = arith.constant 0 : index
    %c0_6 = arith.constant 0 : index
    %3 = vector.load %arg2[%c0_4, %c0_5, %c0_6] : memref<3x128x128xbf16, #tpu.memory_space<vmem>>, vector<1x128x128xbf16>
    %4 = vector.shape_cast %3 : vector<1x128x128xbf16> to vector<128x128xbf16>
    %cst = arith.constant dense<0.000000e+00> : vector<8x128xf32>
    %5 = tpu.matmul %2, %4, %cst {dimension_numbers = #tpu.dot_dimension_numbers<[1], [0], [0], [1], [0, 0, 1, 1], [], []>} : vector<8x128xbf16>, vector<128x128xbf16>, vector<8x128xf32> -> vector<8x128xf32>
    %c0_7 = arith.constant 0 : index
    %c1 = arith.constant 1 : index
    %c0_8 = arith.constant 0 : index
    %6 = vector.load %arg1[%c0_7, %c1, %c0_8] : memref<1x10x128xbf16, #tpu.memory_space<vmem>>, vector<1x8x128xbf16>
    %7 = vector.shape_cast %6 : vector<1x8x128xbf16> to vector<8x128xbf16>
    %c1_9 = arith.constant 1 : index
    %c0_10 = arith.constant 0 : index
    %c0_11 = arith.constant 0 : index
    %8 = vector.load %arg2[%c1_9, %c0_10, %c0_11] : memref<3x128x128xbf16, #tpu.memory_space<vmem>>, vector<1x128x128xbf16>
    %9 = vector.shape_cast %8 : vector<1x128x128xbf16> to vector<128x128xbf16>
    %cst_12 = arith.constant dense<0.000000e+00> : vector<8x128xf32>
    %10 = tpu.matmul %7, %9, %cst_12 {dimension_numbers = #tpu.dot_dimension_numbers<[1], [0], [0], [1], [0, 0, 1, 1], [], []>} : vector<8x128xbf16>, vector<128x128xbf16>, vector<8x128xf32> -> vector<8x128xf32>
    %11 = arith.addf %5, %10 : vector<8x128xf32>
    %c0_13 = arith.constant 0 : index
    %c2 = arith.constant 2 : index
    %c0_14 = arith.constant 0 : index
    %12 = vector.load %arg1[%c0_13, %c2, %c0_14] : memref<1x10x128xbf16, #tpu.memory_space<vmem>>, vector<1x8x128xbf16>
    %13 = vector.shape_cast %12 : vector<1x8x128xbf16> to vector<8x128xbf16>
    %c2_15 = arith.constant 2 : index
    %c0_16 = arith.constant 0 : index
    %c0_17 = arith.constant 0 : index
    %14 = vector.load %arg2[%c2_15, %c0_16, %c0_17] : memref<3x128x128xbf16, #tpu.memory_space<vmem>>, vector<1x128x128xbf16>
    %15 = vector.shape_cast %14 : vector<1x128x128xbf16> to vector<128x128xbf16>
    %cst_18 = arith.constant dense<0.000000e+00> : vector<8x128xf32>
    %16 = tpu.matmul %13, %15, %cst_18 {dimension_numbers = #tpu.dot_dimension_numbers<[1], [0], [0], [1], [0, 0, 1, 1], [], []>} : vector<8x128xbf16>, vector<128x128xbf16>, vector<8x128xf32> -> vector<8x128xf32>
    %17 = arith.addf %11, %16 : vector<8x128xf32>
    %18 = vector.broadcast %0 : vector<1x128xf32> to vector<8x128xf32>
    %19 = arith.addf %17, %18 : vector<8x128xf32>
    %cst_19 = arith.constant 0.000000e+00 : f32
    %20 = vector.broadcast %cst_19 : f32 to vector<8x128xf32>
    %21 = arith.maximumf %19, %20 : vector<8x128xf32>
    %c1_20 = arith.constant 1 : index
    %c0_21 = arith.constant 0 : index
    %22 = vector.load %arg9[%c1_20, %c0_21] : memref<12x128xf32, #tpu.memory_space<vmem>>, vector<1x128xf32>
    %c2_22 = arith.constant 2 : index
    %c0_23 = arith.constant 0 : index
    %23 = vector.load %arg9[%c2_22, %c0_23] : memref<12x128xf32, #tpu.memory_space<vmem>>, vector<1x128xf32>
    %cst_24 = arith.constant 0.000000e+00 : f32
    %24 = vector.broadcast %cst_24 : f32 to vector<8x128xf32>
    %25 = arith.maximumf %21, %24 : vector<8x128xf32>
    %26 = arith.truncf %25 : vector<8x128xf32> to vector<8x128xbf16>
    %cst_25 = arith.constant 0.000000e+00 : bf16
    %27 = vector.broadcast %cst_25 : bf16 to vector<8x128xbf16>
    %c0_26 = arith.constant 0 : index
    %c0_27 = arith.constant 0 : index
    %28 = vector.load %arg12[%c0_26, %c0_27] : memref<48x128xbf16, #tpu.memory_space<vmem>>, vector<8x128xbf16>
    tpu.vector_store %arg12[%c0_26, %c0_27], %27 {strides = array<i32>} : memref<48x128xbf16, #tpu.memory_space<vmem>>, vector<8x128xbf16>,
    %cst_28 = arith.constant 0.000000e+00 : bf16
    %29 = vector.broadcast %cst_28 : bf16 to vector<8x128xbf16>
    %c16 = arith.constant 16 : index
    %c0_29 = arith.constant 0 : index
    %30 = vector.load %arg12[%c16, %c0_29] : memref<48x128xbf16, #tpu.memory_space<vmem>>, vector<8x128xbf16>
    tpu.vector_store %arg12[%c16, %c0_29], %29 {strides = array<i32>} : memref<48x128xbf16, #tpu.memory_space<vmem>>, vector<8x128xbf16>,
    %c8 = arith.constant 8 : index
    %c0_30 = arith.constant 0 : index
    %31 = vector.load %arg12[%c8, %c0_30] : memref<48x128xbf16, #tpu.memory_space<vmem>>, vector<8x128xbf16>
    tpu.vector_store %arg12[%c8, %c0_30], %26 {strides = array<i32>} : memref<48x128xbf16, #tpu.memory_space<vmem>>, vector<8x128xbf16>,
    %c5 = arith.constant 5 : index
    %c0_31 = arith.constant 0 : index
    %32 = vector.load %arg12[%c5, %c0_31] : memref<48x128xbf16, #tpu.memory_space<vmem>>, vector<8x128xbf16>
    %c0_32 = arith.constant 0 : index
    %c0_33 = arith.constant 0 : index
    %c0_34 = arith.constant 0 : index
    %c0_35 = arith.constant 0 : index
    %33 = vector.load %arg3[%c0_32, %c0_33, %c0_34, %c0_35] : memref<4x3x128x128xbf16, #tpu.memory_space<vmem>>, vector<1x1x128x128xbf16>
    %34 = vector.shape_cast %33 : vector<1x1x128x128xbf16> to vector<128x128xbf16>
    %cst_36 = arith.constant dense<0.000000e+00> : vector<8x128xf32>
    %35 = tpu.matmul %32, %34, %cst_36 {dimension_numbers = #tpu.dot_dimension_numbers<[1], [0], [0], [1], [0, 0, 1, 1], [], []>} : vector<8x128xbf16>, vector<128x128xbf16>, vector<8x128xf32> -> vector<8x128xf32>
    %c8_37 = arith.constant 8 : index
    %c0_38 = arith.constant 0 : index
    %36 = vector.load %arg12[%c8_37, %c0_38] : memref<48x128xbf16, #tpu.memory_space<vmem>>, vector<8x128xbf16>
    %c0_39 = arith.constant 0 : index
    %c1_40 = arith.constant 1 : index
    %c0_41 = arith.constant 0 : index
    %c0_42 = arith.constant 0 : index
    %37 = vector.load %arg3[%c0_39, %c1_40, %c0_41, %c0_42] : memref<4x3x128x128xbf16, #tpu.memory_space<vmem>>, vector<1x1x128x128xbf16>
    %38 = vector.shape_cast %37 : vector<1x1x128x128xbf16> to vector<128x128xbf16>
    %cst_43 = arith.constant dense<0.000000e+00> : vector<8x128xf32>
    %39 = tpu.matmul %36, %38, %cst_43 {dimension_numbers = #tpu.dot_dimension_numbers<[1], [0], [0], [1], [0, 0, 1, 1], [], []>} : vector<8x128xbf16>, vector<128x128xbf16>, vector<8x128xf32> -> vector<8x128xf32>
    %40 = arith.addf %35, %39 : vector<8x128xf32>
    %c11 = arith.constant 11 : index
    %c0_44 = arith.constant 0 : index
    %41 = vector.load %arg12[%c11, %c0_44] : memref<48x128xbf16, #tpu.memory_space<vmem>>, vector<8x128xbf16>
    %c0_45 = arith.constant 0 : index
    %c2_46 = arith.constant 2 : index
    %c0_47 = arith.constant 0 : index
    %c0_48 = arith.constant 0 : index
    %42 = vector.load %arg3[%c0_45, %c2_46, %c0_47, %c0_48] : memref<4x3x128x128xbf16, #tpu.memory_space<vmem>>, vector<1x1x128x128xbf16>
    %43 = vector.shape_cast %42 : vector<1x1x128x128xbf16> to vector<128x128xbf16>
    %cst_49 = arith.constant dense<0.000000e+00> : vector<8x128xf32>
    %44 = tpu.matmul %41, %43, %cst_49 {dimension_numbers = #tpu.dot_dimension_numbers<[1], [0], [0], [1], [0, 0, 1, 1], [], []>} : vector<8x128xbf16>, vector<128x128xbf16>, vector<8x128xf32> -> vector<8x128xf32>
    %45 = arith.addf %40, %44 : vector<8x128xf32>
    %46 = vector.broadcast %22 : vector<1x128xf32> to vector<8x128xf32>
    %47 = arith.addf %45, %46 : vector<8x128xf32>
    %cst_50 = arith.constant 0.000000e+00 : f32
    %48 = vector.broadcast %cst_50 : f32 to vector<8x128xf32>
    %49 = arith.maximumf %47, %48 : vector<8x128xf32>
    %50 = arith.truncf %49 : vector<8x128xf32> to vector<8x128xbf16>
    %c0_51 = arith.constant 0 : index
    %c0_52 = arith.constant 0 : index
    %c0_53 = arith.constant 0 : index
    %51 = vector.load %arg4[%c0_51, %c0_52, %c0_53] : memref<4x128x128xbf16, #tpu.memory_space<vmem>>, vector<1x128x128xbf16>
    %52 = vector.shape_cast %51 : vector<1x128x128xbf16> to vector<128x128xbf16>
    %cst_54 = arith.constant dense<0.000000e+00> : vector<8x128xf32>
    %53 = tpu.matmul %50, %52, %cst_54 {dimension_numbers = #tpu.dot_dimension_numbers<[1], [0], [0], [1], [0, 0, 1, 1], [], []>} : vector<8x128xbf16>, vector<128x128xbf16>, vector<8x128xf32> -> vector<8x128xf32>
    %54 = vector.broadcast %23 : vector<1x128xf32> to vector<8x128xf32>
    %55 = arith.addf %53, %54 : vector<8x128xf32>
    %56 = arith.addf %21, %55 : vector<8x128xf32>
    %c3 = arith.constant 3 : index
    %c0_55 = arith.constant 0 : index
    %57 = vector.load %arg9[%c3, %c0_55] : memref<12x128xf32, #tpu.memory_space<vmem>>, vector<1x128xf32>
    %c4 = arith.constant 4 : index
    %c0_56 = arith.constant 0 : index
    %58 = vector.load %arg9[%c4, %c0_56] : memref<12x128xf32, #tpu.memory_space<vmem>>, vector<1x128xf32>
    %cst_57 = arith.constant 0.000000e+00 : f32
    %59 = vector.broadcast %cst_57 : f32 to vector<8x128xf32>
    %60 = arith.maximumf %56, %59 : vector<8x128xf32>
    %61 = arith.truncf %60 : vector<8x128xf32> to vector<8x128xbf16>
    %c8_58 = arith.constant 8 : index
    %c0_59 = arith.constant 0 : index
    %62 = vector.load %arg12[%c8_58, %c0_59] : memref<48x128xbf16, #tpu.memory_space<vmem>>, vector<8x128xbf16>
    tpu.vector_store %arg12[%c8_58, %c0_59], %61 {strides = array<i32>} : memref<48x128xbf16, #tpu.memory_space<vmem>>, vector<8x128xbf16>,
    %c7 = arith.constant 7 : index
    %c0_60 = arith.constant 0 : index
    %63 = vector.load %arg12[%c7, %c0_60] : memref<48x128xbf16, #tpu.memory_space<vmem>>, vector<8x128xbf16>
    %c1_61 = arith.constant 1 : index
    %c0_62 = arith.constant 0 : index
    %c0_63 = arith.constant 0 : index
    %c0_64 = arith.constant 0 : index
    %64 = vector.load %arg3[%c1_61, %c0_62, %c0_63, %c0_64] : memref<4x3x128x128xbf16, #tpu.memory_space<vmem>>, vector<1x1x128x128xbf16>
    %65 = vector.shape_cast %64 : vector<1x1x128x128xbf16> to vector<128x128xbf16>
    %cst_65 = arith.constant dense<0.000000e+00> : vector<8x128xf32>
    %66 = tpu.matmul %63, %65, %cst_65 {dimension_numbers = #tpu.dot_dimension_numbers<[1], [0], [0], [1], [0, 0, 1, 1], [], []>} : vector<8x128xbf16>, vector<128x128xbf16>, vector<8x128xf32> -> vector<8x128xf32>
    %c8_66 = arith.constant 8 : index
    %c0_67 = arith.constant 0 : index
    %67 = vector.load %arg12[%c8_66, %c0_67] : memref<48x128xbf16, #tpu.memory_space<vmem>>, vector<8x128xbf16>
    %c1_68 = arith.constant 1 : index
    %c1_69 = arith.constant 1 : index
    %c0_70 = arith.constant 0 : index
    %c0_71 = arith.constant 0 : index
    %68 = vector.load %arg3[%c1_68, %c1_69, %c0_70, %c0_71] : memref<4x3x128x128xbf16, #tpu.memory_space<vmem>>, vector<1x1x128x128xbf16>
    %69 = vector.shape_cast %68 : vector<1x1x128x128xbf16> to vector<128x128xbf16>
    %cst_72 = arith.constant dense<0.000000e+00> : vector<8x128xf32>
    %70 = tpu.matmul %67, %69, %cst_72 {dimension_numbers = #tpu.dot_dimension_numbers<[1], [0], [0], [1], [0, 0, 1, 1], [], []>} : vector<8x128xbf16>, vector<128x128xbf16>, vector<8x128xf32> -> vector<8x128xf32>
    %71 = arith.addf %66, %70 : vector<8x128xf32>
    %c9 = arith.constant 9 : index
    %c0_73 = arith.constant 0 : index
    %72 = vector.load %arg12[%c9, %c0_73] : memref<48x128xbf16, #tpu.memory_space<vmem>>, vector<8x128xbf16>
    %c1_74 = arith.constant 1 : index
    %c2_75 = arith.constant 2 : index
    %c0_76 = arith.constant 0 : index
    %c0_77 = arith.constant 0 : index
    %73 = vector.load %arg3[%c1_74, %c2_75, %c0_76, %c0_77] : memref<4x3x128x128xbf16, #tpu.memory_space<vmem>>, vector<1x1x128x128xbf16>
    %74 = vector.shape_cast %73 : vector<1x1x128x128xbf16> to vector<128x128xbf16>
    %cst_78 = arith.constant dense<0.000000e+00> : vector<8x128xf32>
    %75 = tpu.matmul %72, %74, %cst_78 {dimension_numbers = #tpu.dot_dimension_numbers<[1], [0], [0], [1], [0, 0, 1, 1], [], []>} : vector<8x128xbf16>, vector<128x128xbf16>, vector<8x128xf32> -> vector<8x128xf32>
    %76 = arith.addf %71, %75 : vector<8x128xf32>
    %77 = vector.broadcast %57 : vector<1x128xf32> to vector<8x128xf32>
    %78 = arith.addf %76, %77 : vector<8x128xf32>
    %cst_79 = arith.constant 0.000000e+00 : f32
    %79 = vector.broadcast %cst_79 : f32 to vector<8x128xf32>
    %80 = arith.maximumf %78, %79 : vector<8x128xf32>
    %81 = arith.truncf %80 : vector<8x128xf32> to vector<8x128xbf16>
    %c1_80 = arith.constant 1 : index
    %c0_81 = arith.constant 0 : index
    %c0_82 = arith.constant 0 : index
    %82 = vector.load %arg4[%c1_80, %c0_81, %c0_82] : memref<4x128x128xbf16, #tpu.memory_space<vmem>>, vector<1x128x128xbf16>
    %83 = vector.shape_cast %82 : vector<1x128x128xbf16> to vector<128x128xbf16>
    %cst_83 = arith.constant dense<0.000000e+00> : vector<8x128xf32>
    %84 = tpu.matmul %81, %83, %cst_83 {dimension_numbers = #tpu.dot_dimension_numbers<[1], [0], [0], [1], [0, 0, 1, 1], [], []>} : vector<8x128xbf16>, vector<128x128xbf16>, vector<8x128xf32> -> vector<8x128xf32>
    %85 = vector.broadcast %58 : vector<1x128xf32> to vector<8x128xf32>
    %86 = arith.addf %84, %85 : vector<8x128xf32>
    %87 = arith.addf %56, %86 : vector<8x128xf32>
    %c5_84 = arith.constant 5 : index
    %c0_85 = arith.constant 0 : index
    %88 = vector.load %arg9[%c5_84, %c0_85] : memref<12x128xf32, #tpu.memory_space<vmem>>, vector<1x128xf32>
    %89 = arith.truncf %87 : vector<8x128xf32> to vector<8x128xbf16>
    %c8_86 = arith.constant 8 : index
    %c0_87 = arith.constant 0 : index
    %90 = vector.load %arg12[%c8_86, %c0_87] : memref<48x128xbf16, #tpu.memory_space<vmem>>, vector<8x128xbf16>
    tpu.vector_store %arg12[%c8_86, %c0_87], %89 {strides = array<i32>} : memref<48x128xbf16, #tpu.memory_space<vmem>>, vector<8x128xbf16>,
    %c7_88 = arith.constant 7 : index
    %c0_89 = arith.constant 0 : index
    %91 = vector.load %arg12[%c7_88, %c0_89] : memref<48x128xbf16, #tpu.memory_space<vmem>>, vector<8x128xbf16>
    %c8_90 = arith.constant 8 : index
    %c0_91 = arith.constant 0 : index
    %92 = vector.load %arg12[%c8_90, %c0_91] : memref<48x128xbf16, #tpu.memory_space<vmem>>, vector<8x128xbf16>
    %c9_92 = arith.constant 9 : index
    %c0_93 = arith.constant 0 : index
    %93 = vector.load %arg12[%c9_92, %c0_93] : memref<48x128xbf16, #tpu.memory_space<vmem>>, vector<8x128xbf16>
    %c0_94 = arith.constant 0 : index
    %c0_95 = arith.constant 0 : index
    %c0_96 = arith.constant 0 : index
    %c0_97 = arith.constant 0 : index
    %94 = vector.load %arg5[%c0_94, %c0_95, %c0_96, %c0_97] : memref<2x2x128x128xbf16, #tpu.memory_space<vmem>>, vector<1x1x128x128xbf16>
    %95 = vector.shape_cast %94 : vector<1x1x128x128xbf16> to vector<128x128xbf16>
    %cst_98 = arith.constant dense<0.000000e+00> : vector<8x128xf32>
    %96 = tpu.matmul %91, %95, %cst_98 {dimension_numbers = #tpu.dot_dimension_numbers<[1], [0], [0], [1], [0, 0, 1, 1], [], []>} : vector<8x128xbf16>, vector<128x128xbf16>, vector<8x128xf32> -> vector<8x128xf32>
    %c0_99 = arith.constant 0 : index
    %c1_100 = arith.constant 1 : index
    %c0_101 = arith.constant 0 : index
    %c0_102 = arith.constant 0 : index
    %97 = vector.load %arg5[%c0_99, %c1_100, %c0_101, %c0_102] : memref<2x2x128x128xbf16, #tpu.memory_space<vmem>>, vector<1x1x128x128xbf16>
    %98 = vector.shape_cast %97 : vector<1x1x128x128xbf16> to vector<128x128xbf16>
    %cst_103 = arith.constant dense<0.000000e+00> : vector<8x128xf32>
    %99 = tpu.matmul %92, %98, %cst_103 {dimension_numbers = #tpu.dot_dimension_numbers<[1], [0], [0], [1], [0, 0, 1, 1], [], []>} : vector<8x128xbf16>, vector<128x128xbf16>, vector<8x128xf32> -> vector<8x128xf32>
    %100 = arith.addf %96, %99 : vector<8x128xf32>
    %101 = vector.broadcast %88 : vector<1x128xf32> to vector<8x128xf32>
    %102 = arith.addf %100, %101 : vector<8x128xf32>
    %c0_104 = arith.constant 0 : index
    %c0_105 = arith.constant 0 : index
    %c0_106 = arith.constant 0 : index
    %c0_107 = arith.constant 0 : index
    %103 = vector.load %arg6[%c0_104, %c0_105, %c0_106, %c0_107] : memref<2x2x128x128xbf16, #tpu.memory_space<vmem>>, vector<1x1x128x128xbf16>
    %104 = vector.shape_cast %103 : vector<1x1x128x128xbf16> to vector<128x128xbf16>
    %cst_108 = arith.constant dense<0.000000e+00> : vector<8x128xf32>
    %105 = tpu.matmul %92, %104, %cst_108 {dimension_numbers = #tpu.dot_dimension_numbers<[1], [0], [0], [1], [0, 0, 1, 1], [], []>} : vector<8x128xbf16>, vector<128x128xbf16>, vector<8x128xf32> -> vector<8x128xf32>
    %c0_109 = arith.constant 0 : index
    %c1_110 = arith.constant 1 : index
    %c0_111 = arith.constant 0 : index
    %c0_112 = arith.constant 0 : index
    %106 = vector.load %arg6[%c0_109, %c1_110, %c0_111, %c0_112] : memref<2x2x128x128xbf16, #tpu.memory_space<vmem>>, vector<1x1x128x128xbf16>
    %107 = vector.shape_cast %106 : vector<1x1x128x128xbf16> to vector<128x128xbf16>
    %cst_113 = arith.constant dense<0.000000e+00> : vector<8x128xf32>
    %108 = tpu.matmul %93, %107, %cst_113 {dimension_numbers = #tpu.dot_dimension_numbers<[1], [0], [0], [1], [0, 0, 1, 1], [], []>} : vector<8x128xbf16>, vector<128x128xbf16>, vector<8x128xf32> -> vector<8x128xf32>
    %109 = arith.addf %105, %108 : vector<8x128xf32>
    %110 = vector.broadcast %88 : vector<1x128xf32> to vector<8x128xf32>
    %111 = arith.addf %109, %110 : vector<8x128xf32>
    %112 = vector.shape_cast %102 : vector<8x128xf32> to vector<8x1x128xf32>
    %113 = vector.shape_cast %111 : vector<8x128xf32> to vector<8x1x128xf32>
    %114 = tpu.concatenate %112, %113 in 1 : vector<8x1x128xf32>, vector<8x1x128xf32> -> vector<8x2x128xf32>
    %115 = vector.shape_cast %114 : vector<8x2x128xf32> to vector<16x128xf32>
    %c6 = arith.constant 6 : index
    %c0_114 = arith.constant 0 : index
    %116 = vector.load %arg9[%c6, %c0_114] : memref<12x128xf32, #tpu.memory_space<vmem>>, vector<1x128xf32>
    %c7_115 = arith.constant 7 : index
    %c0_116 = arith.constant 0 : index
    %117 = vector.load %arg9[%c7_115, %c0_116] : memref<12x128xf32, #tpu.memory_space<vmem>>, vector<1x128xf32>
    %cst_117 = arith.constant 0.000000e+00 : f32
    %118 = vector.broadcast %cst_117 : f32 to vector<16x128xf32>
    %119 = arith.maximumf %115, %118 : vector<16x128xf32>
    %120 = arith.truncf %119 : vector<16x128xf32> to vector<16x128xbf16>
    %cst_118 = arith.constant 0.000000e+00 : bf16
    %121 = vector.broadcast %cst_118 : bf16 to vector<8x128xbf16>
    %c0_119 = arith.constant 0 : index
    %c0_120 = arith.constant 0 : index
    %122 = vector.load %arg12[%c0_119, %c0_120] : memref<48x128xbf16, #tpu.memory_space<vmem>>, vector<8x128xbf16>
    tpu.vector_store %arg12[%c0_119, %c0_120], %121 {strides = array<i32>} : memref<48x128xbf16, #tpu.memory_space<vmem>>, vector<8x128xbf16>,
    %cst_121 = arith.constant 0.000000e+00 : bf16
    %123 = vector.broadcast %cst_121 : bf16 to vector<8x128xbf16>
    %c24 = arith.constant 24 : index
    %c0_122 = arith.constant 0 : index
    %124 = vector.load %arg12[%c24, %c0_122] : memref<48x128xbf16, #tpu.memory_space<vmem>>, vector<8x128xbf16>
    tpu.vector_store %arg12[%c24, %c0_122], %123 {strides = array<i32>} : memref<48x128xbf16, #tpu.memory_space<vmem>>, vector<8x128xbf16>,
    %c8_123 = arith.constant 8 : index
    %c0_124 = arith.constant 0 : index
    %125 = vector.load %arg12[%c8_123, %c0_124] : memref<48x128xbf16, #tpu.memory_space<vmem>>, vector<16x128xbf16>
    tpu.vector_store %arg12[%c8_123, %c0_124], %120 {strides = array<i32>} : memref<48x128xbf16, #tpu.memory_space<vmem>>, vector<16x128xbf16>,
    %c5_125 = arith.constant 5 : index
    %c0_126 = arith.constant 0 : index
    %126 = vector.load %arg12[%c5_125, %c0_126] : memref<48x128xbf16, #tpu.memory_space<vmem>>, vector<16x128xbf16>
    %c2_127 = arith.constant 2 : index
    %c0_128 = arith.constant 0 : index
    %c0_129 = arith.constant 0 : index
    %c0_130 = arith.constant 0 : index
    %127 = vector.load %arg3[%c2_127, %c0_128, %c0_129, %c0_130] : memref<4x3x128x128xbf16, #tpu.memory_space<vmem>>, vector<1x1x128x128xbf16>
    %128 = vector.shape_cast %127 : vector<1x1x128x128xbf16> to vector<128x128xbf16>
    %cst_131 = arith.constant dense<0.000000e+00> : vector<16x128xf32>
    %129 = tpu.matmul %126, %128, %cst_131 {dimension_numbers = #tpu.dot_dimension_numbers<[1], [0], [0], [1], [0, 0, 1, 1], [], []>} : vector<16x128xbf16>, vector<128x128xbf16>, vector<16x128xf32> -> vector<16x128xf32>
    %c8_132 = arith.constant 8 : index
    %c0_133 = arith.constant 0 : index
    %130 = vector.load %arg12[%c8_132, %c0_133] : memref<48x128xbf16, #tpu.memory_space<vmem>>, vector<16x128xbf16>
    %c2_134 = arith.constant 2 : index
    %c1_135 = arith.constant 1 : index
    %c0_136 = arith.constant 0 : index
    %c0_137 = arith.constant 0 : index
    %131 = vector.load %arg3[%c2_134, %c1_135, %c0_136, %c0_137] : memref<4x3x128x128xbf16, #tpu.memory_space<vmem>>, vector<1x1x128x128xbf16>
    %132 = vector.shape_cast %131 : vector<1x1x128x128xbf16> to vector<128x128xbf16>
    %cst_138 = arith.constant dense<0.000000e+00> : vector<16x128xf32>
    %133 = tpu.matmul %130, %132, %cst_138 {dimension_numbers = #tpu.dot_dimension_numbers<[1], [0], [0], [1], [0, 0, 1, 1], [], []>} : vector<16x128xbf16>, vector<128x128xbf16>, vector<16x128xf32> -> vector<16x128xf32>
    %134 = arith.addf %129, %133 : vector<16x128xf32>
    %c11_139 = arith.constant 11 : index
    %c0_140 = arith.constant 0 : index
    %135 = vector.load %arg12[%c11_139, %c0_140] : memref<48x128xbf16, #tpu.memory_space<vmem>>, vector<16x128xbf16>
    %c2_141 = arith.constant 2 : index
    %c2_142 = arith.constant 2 : index
    %c0_143 = arith.constant 0 : index
    %c0_144 = arith.constant 0 : index
    %136 = vector.load %arg3[%c2_141, %c2_142, %c0_143, %c0_144] : memref<4x3x128x128xbf16, #tpu.memory_space<vmem>>, vector<1x1x128x128xbf16>
    %137 = vector.shape_cast %136 : vector<1x1x128x128xbf16> to vector<128x128xbf16>
    %cst_145 = arith.constant dense<0.000000e+00> : vector<16x128xf32>
    %138 = tpu.matmul %135, %137, %cst_145 {dimension_numbers = #tpu.dot_dimension_numbers<[1], [0], [0], [1], [0, 0, 1, 1], [], []>} : vector<16x128xbf16>, vector<128x128xbf16>, vector<16x128xf32> -> vector<16x128xf32>
    %139 = arith.addf %134, %138 : vector<16x128xf32>
    %140 = vector.broadcast %116 : vector<1x128xf32> to vector<16x128xf32>
    %141 = arith.addf %139, %140 : vector<16x128xf32>
    %cst_146 = arith.constant 0.000000e+00 : f32
    %142 = vector.broadcast %cst_146 : f32 to vector<16x128xf32>
    %143 = arith.maximumf %141, %142 : vector<16x128xf32>
    %144 = arith.truncf %143 : vector<16x128xf32> to vector<16x128xbf16>
    %c2_147 = arith.constant 2 : index
    %c0_148 = arith.constant 0 : index
    %c0_149 = arith.constant 0 : index
    %145 = vector.load %arg4[%c2_147, %c0_148, %c0_149] : memref<4x128x128xbf16, #tpu.memory_space<vmem>>, vector<1x128x128xbf16>
    %146 = vector.shape_cast %145 : vector<1x128x128xbf16> to vector<128x128xbf16>
    %cst_150 = arith.constant dense<0.000000e+00> : vector<16x128xf32>
    %147 = tpu.matmul %144, %146, %cst_150 {dimension_numbers = #tpu.dot_dimension_numbers<[1], [0], [0], [1], [0, 0, 1, 1], [], []>} : vector<16x128xbf16>, vector<128x128xbf16>, vector<16x128xf32> -> vector<16x128xf32>
    %148 = vector.broadcast %117 : vector<1x128xf32> to vector<16x128xf32>
    %149 = arith.addf %147, %148 : vector<16x128xf32>
    %150 = arith.addf %115, %149 : vector<16x128xf32>
    %c8_151 = arith.constant 8 : index
    %c0_152 = arith.constant 0 : index
    %151 = vector.load %arg9[%c8_151, %c0_152] : memref<12x128xf32, #tpu.memory_space<vmem>>, vector<1x128xf32>
    %c9_153 = arith.constant 9 : index
    %c0_154 = arith.constant 0 : index
    %152 = vector.load %arg9[%c9_153, %c0_154] : memref<12x128xf32, #tpu.memory_space<vmem>>, vector<1x128xf32>
    %cst_155 = arith.constant 0.000000e+00 : f32
    %153 = vector.broadcast %cst_155 : f32 to vector<16x128xf32>
    %154 = arith.maximumf %150, %153 : vector<16x128xf32>
    %155 = arith.truncf %154 : vector<16x128xf32> to vector<16x128xbf16>
    %c8_156 = arith.constant 8 : index
    %c0_157 = arith.constant 0 : index
    %156 = vector.load %arg12[%c8_156, %c0_157] : memref<48x128xbf16, #tpu.memory_space<vmem>>, vector<16x128xbf16>
    tpu.vector_store %arg12[%c8_156, %c0_157], %155 {strides = array<i32>} : memref<48x128xbf16, #tpu.memory_space<vmem>>, vector<16x128xbf16>,
    %c7_158 = arith.constant 7 : index
    %c0_159 = arith.constant 0 : index
    %157 = vector.load %arg12[%c7_158, %c0_159] : memref<48x128xbf16, #tpu.memory_space<vmem>>, vector<16x128xbf16>
    %c3_160 = arith.constant 3 : index
    %c0_161 = arith.constant 0 : index
    %c0_162 = arith.constant 0 : index
    %c0_163 = arith.constant 0 : index
    %158 = vector.load %arg3[%c3_160, %c0_161, %c0_162, %c0_163] : memref<4x3x128x128xbf16, #tpu.memory_space<vmem>>, vector<1x1x128x128xbf16>
    %159 = vector.shape_cast %158 : vector<1x1x128x128xbf16> to vector<128x128xbf16>
    %cst_164 = arith.constant dense<0.000000e+00> : vector<16x128xf32>
    %160 = tpu.matmul %157, %159, %cst_164 {dimension_numbers = #tpu.dot_dimension_numbers<[1], [0], [0], [1], [0, 0, 1, 1], [], []>} : vector<16x128xbf16>, vector<128x128xbf16>, vector<16x128xf32> -> vector<16x128xf32>
    %c8_165 = arith.constant 8 : index
    %c0_166 = arith.constant 0 : index
    %161 = vector.load %arg12[%c8_165, %c0_166] : memref<48x128xbf16, #tpu.memory_space<vmem>>, vector<16x128xbf16>
    %c3_167 = arith.constant 3 : index
    %c1_168 = arith.constant 1 : index
    %c0_169 = arith.constant 0 : index
    %c0_170 = arith.constant 0 : index
    %162 = vector.load %arg3[%c3_167, %c1_168, %c0_169, %c0_170] : memref<4x3x128x128xbf16, #tpu.memory_space<vmem>>, vector<1x1x128x128xbf16>
    %163 = vector.shape_cast %162 : vector<1x1x128x128xbf16> to vector<128x128xbf16>
    %cst_171 = arith.constant dense<0.000000e+00> : vector<16x128xf32>
    %164 = tpu.matmul %161, %163, %cst_171 {dimension_numbers = #tpu.dot_dimension_numbers<[1], [0], [0], [1], [0, 0, 1, 1], [], []>} : vector<16x128xbf16>, vector<128x128xbf16>, vector<16x128xf32> -> vector<16x128xf32>
    %165 = arith.addf %160, %164 : vector<16x128xf32>
    %c9_172 = arith.constant 9 : index
    %c0_173 = arith.constant 0 : index
    %166 = vector.load %arg12[%c9_172, %c0_173] : memref<48x128xbf16, #tpu.memory_space<vmem>>, vector<16x128xbf16>
    %c3_174 = arith.constant 3 : index
    %c2_175 = arith.constant 2 : index
    %c0_176 = arith.constant 0 : index
    %c0_177 = arith.constant 0 : index
    %167 = vector.load %arg3[%c3_174, %c2_175, %c0_176, %c0_177] : memref<4x3x128x128xbf16, #tpu.memory_space<vmem>>, vector<1x1x128x128xbf16>
    %168 = vector.shape_cast %167 : vector<1x1x128x128xbf16> to vector<128x128xbf16>
    %cst_178 = arith.constant dense<0.000000e+00> : vector<16x128xf32>
    %169 = tpu.matmul %166, %168, %cst_178 {dimension_numbers = #tpu.dot_dimension_numbers<[1], [0], [0], [1], [0, 0, 1, 1], [], []>} : vector<16x128xbf16>, vector<128x128xbf16>, vector<16x128xf32> -> vector<16x128xf32>
    %170 = arith.addf %165, %169 : vector<16x128xf32>
    %171 = vector.broadcast %151 : vector<1x128xf32> to vector<16x128xf32>
    %172 = arith.addf %170, %171 : vector<16x128xf32>
    %cst_179 = arith.constant 0.000000e+00 : f32
    %173 = vector.broadcast %cst_179 : f32 to vector<16x128xf32>
    %174 = arith.maximumf %172, %173 : vector<16x128xf32>
    %175 = arith.truncf %174 : vector<16x128xf32> to vector<16x128xbf16>
    %c3_180 = arith.constant 3 : index
    %c0_181 = arith.constant 0 : index
    %c0_182 = arith.constant 0 : index
    %176 = vector.load %arg4[%c3_180, %c0_181, %c0_182] : memref<4x128x128xbf16, #tpu.memory_space<vmem>>, vector<1x128x128xbf16>
    %177 = vector.shape_cast %176 : vector<1x128x128xbf16> to vector<128x128xbf16>
    %cst_183 = arith.constant dense<0.000000e+00> : vector<16x128xf32>
    %178 = tpu.matmul %175, %177, %cst_183 {dimension_numbers = #tpu.dot_dimension_numbers<[1], [0], [0], [1], [0, 0, 1, 1], [], []>} : vector<16x128xbf16>, vector<128x128xbf16>, vector<16x128xf32> -> vector<16x128xf32>
    %179 = vector.broadcast %152 : vector<1x128xf32> to vector<16x128xf32>
    %180 = arith.addf %178, %179 : vector<16x128xf32>
    %181 = arith.addf %150, %180 : vector<16x128xf32>
    %c10 = arith.constant 10 : index
    %c0_184 = arith.constant 0 : index
    %182 = vector.load %arg9[%c10, %c0_184] : memref<12x128xf32, #tpu.memory_space<vmem>>, vector<1x128xf32>
    %183 = arith.truncf %181 : vector<16x128xf32> to vector<16x128xbf16>
    %c8_185 = arith.constant 8 : index
    %c0_186 = arith.constant 0 : index
    %184 = vector.load %arg12[%c8_185, %c0_186] : memref<48x128xbf16, #tpu.memory_space<vmem>>, vector<16x128xbf16>
    tpu.vector_store %arg12[%c8_185, %c0_186], %183 {strides = array<i32>} : memref<48x128xbf16, #tpu.memory_space<vmem>>, vector<16x128xbf16>,
    %c7_187 = arith.constant 7 : index
    %c0_188 = arith.constant 0 : index
    %185 = vector.load %arg12[%c7_187, %c0_188] : memref<48x128xbf16, #tpu.memory_space<vmem>>, vector<16x128xbf16>
    %c8_189 = arith.constant 8 : index
    %c0_190 = arith.constant 0 : index
    %186 = vector.load %arg12[%c8_189, %c0_190] : memref<48x128xbf16, #tpu.memory_space<vmem>>, vector<16x128xbf16>
    %c9_191 = arith.constant 9 : index
    %c0_192 = arith.constant 0 : index
    %187 = vector.load %arg12[%c9_191, %c0_192] : memref<48x128xbf16, #tpu.memory_space<vmem>>, vector<16x128xbf16>
    %c1_193 = arith.constant 1 : index
    %c0_194 = arith.constant 0 : index
    %c0_195 = arith.constant 0 : index
    %c0_196 = arith.constant 0 : index
    %188 = vector.load %arg5[%c1_193, %c0_194, %c0_195, %c0_196] : memref<2x2x128x128xbf16, #tpu.memory_space<vmem>>, vector<1x1x128x128xbf16>
    %189 = vector.shape_cast %188 : vector<1x1x128x128xbf16> to vector<128x128xbf16>
    %cst_197 = arith.constant dense<0.000000e+00> : vector<16x128xf32>
    %190 = tpu.matmul %185, %189, %cst_197 {dimension_numbers = #tpu.dot_dimension_numbers<[1], [0], [0], [1], [0, 0, 1, 1], [], []>} : vector<16x128xbf16>, vector<128x128xbf16>, vector<16x128xf32> -> vector<16x128xf32>
    %c1_198 = arith.constant 1 : index
    %c1_199 = arith.constant 1 : index
    %c0_200 = arith.constant 0 : index
    %c0_201 = arith.constant 0 : index
    %191 = vector.load %arg5[%c1_198, %c1_199, %c0_200, %c0_201] : memref<2x2x128x128xbf16, #tpu.memory_space<vmem>>, vector<1x1x128x128xbf16>
    %192 = vector.shape_cast %191 : vector<1x1x128x128xbf16> to vector<128x128xbf16>
    %cst_202 = arith.constant dense<0.000000e+00> : vector<16x128xf32>
    %193 = tpu.matmul %186, %192, %cst_202 {dimension_numbers = #tpu.dot_dimension_numbers<[1], [0], [0], [1], [0, 0, 1, 1], [], []>} : vector<16x128xbf16>, vector<128x128xbf16>, vector<16x128xf32> -> vector<16x128xf32>
    %194 = arith.addf %190, %193 : vector<16x128xf32>
    %195 = vector.broadcast %182 : vector<1x128xf32> to vector<16x128xf32>
    %196 = arith.addf %194, %195 : vector<16x128xf32>
    %c1_203 = arith.constant 1 : index
    %c0_204 = arith.constant 0 : index
    %c0_205 = arith.constant 0 : index
    %c0_206 = arith.constant 0 : index
    %197 = vector.load %arg6[%c1_203, %c0_204, %c0_205, %c0_206] : memref<2x2x128x128xbf16, #tpu.memory_space<vmem>>, vector<1x1x128x128xbf16>
    %198 = vector.shape_cast %197 : vector<1x1x128x128xbf16> to vector<128x128xbf16>
    %cst_207 = arith.constant dense<0.000000e+00> : vector<16x128xf32>
    %199 = tpu.matmul %186, %198, %cst_207 {dimension_numbers = #tpu.dot_dimension_numbers<[1], [0], [0], [1], [0, 0, 1, 1], [], []>} : vector<16x128xbf16>, vector<128x128xbf16>, vector<16x128xf32> -> vector<16x128xf32>
    %c1_208 = arith.constant 1 : index
    %c1_209 = arith.constant 1 : index
    %c0_210 = arith.constant 0 : index
    %c0_211 = arith.constant 0 : index
    %200 = vector.load %arg6[%c1_208, %c1_209, %c0_210, %c0_211] : memref<2x2x128x128xbf16, #tpu.memory_space<vmem>>, vector<1x1x128x128xbf16>
    %201 = vector.shape_cast %200 : vector<1x1x128x128xbf16> to vector<128x128xbf16>
    %cst_212 = arith.constant dense<0.000000e+00> : vector<16x128xf32>
    %202 = tpu.matmul %187, %201, %cst_212 {dimension_numbers = #tpu.dot_dimension_numbers<[1], [0], [0], [1], [0, 0, 1, 1], [], []>} : vector<16x128xbf16>, vector<128x128xbf16>, vector<16x128xf32> -> vector<16x128xf32>
    %203 = arith.addf %199, %202 : vector<16x128xf32>
    %204 = vector.broadcast %182 : vector<1x128xf32> to vector<16x128xf32>
    %205 = arith.addf %203, %204 : vector<16x128xf32>
    %206 = vector.shape_cast %196 : vector<16x128xf32> to vector<16x1x128xf32>
    %207 = vector.shape_cast %205 : vector<16x128xf32> to vector<16x1x128xf32>
    %208 = tpu.concatenate %206, %207 in 1 : vector<16x1x128xf32>, vector<16x1x128xf32> -> vector<16x2x128xf32>
    %209 = vector.shape_cast %208 : vector<16x2x128xf32> to vector<32x128xf32>
    %210 = arith.truncf %209 : vector<32x128xf32> to vector<32x128xbf16>
    %cst_213 = arith.constant 0.000000e+00 : bf16
    %211 = vector.broadcast %cst_213 : bf16 to vector<8x128xbf16>
    %c0_214 = arith.constant 0 : index
    %c0_215 = arith.constant 0 : index
    %212 = vector.load %arg12[%c0_214, %c0_215] : memref<48x128xbf16, #tpu.memory_space<vmem>>, vector<8x128xbf16>
    tpu.vector_store %arg12[%c0_214, %c0_215], %211 {strides = array<i32>} : memref<48x128xbf16, #tpu.memory_space<vmem>>, vector<8x128xbf16>,
    %cst_216 = arith.constant 0.000000e+00 : bf16
    %213 = vector.broadcast %cst_216 : bf16 to vector<8x128xbf16>
    %c40 = arith.constant 40 : index
    %c0_217 = arith.constant 0 : index
    %214 = vector.load %arg12[%c40, %c0_217] : memref<48x128xbf16, #tpu.memory_space<vmem>>, vector<8x128xbf16>
    tpu.vector_store %arg12[%c40, %c0_217], %213 {strides = array<i32>} : memref<48x128xbf16, #tpu.memory_space<vmem>>, vector<8x128xbf16>,
    %c8_218 = arith.constant 8 : index
    %c0_219 = arith.constant 0 : index
    %215 = vector.load %arg12[%c8_218, %c0_219] : memref<48x128xbf16, #tpu.memory_space<vmem>>, vector<32x128xbf16>
    tpu.vector_store %arg12[%c8_218, %c0_219], %210 {strides = array<i32>} : memref<48x128xbf16, #tpu.memory_space<vmem>>, vector<32x128xbf16>,
    %c11_220 = arith.constant 11 : index
    %c0_221 = arith.constant 0 : index
    %216 = vector.load %arg9[%c11_220, %c0_221] : memref<12x128xf32, #tpu.memory_space<vmem>>, vector<1x128xf32>
    %c7_222 = arith.constant 7 : index
    %c0_223 = arith.constant 0 : index
    %217 = vector.load %arg12[%c7_222, %c0_223] : memref<48x128xbf16, #tpu.memory_space<vmem>>, vector<32x128xbf16>
    %c0_224 = arith.constant 0 : index
    %c0_225 = arith.constant 0 : index
    %c0_226 = arith.constant 0 : index
    %218 = vector.load %arg7[%c0_224, %c0_225, %c0_226] : memref<3x128x128xbf16, #tpu.memory_space<vmem>>, vector<1x128x128xbf16>
    %219 = vector.shape_cast %218 : vector<1x128x128xbf16> to vector<128x128xbf16>
    %cst_227 = arith.constant dense<0.000000e+00> : vector<32x128xf32>
    %220 = tpu.matmul %217, %219, %cst_227 {dimension_numbers = #tpu.dot_dimension_numbers<[1], [0], [0], [1], [0, 0, 1, 1], [], []>} : vector<32x128xbf16>, vector<128x128xbf16>, vector<32x128xf32> -> vector<32x128xf32>
    %c8_228 = arith.constant 8 : index
    %c0_229 = arith.constant 0 : index
    %221 = vector.load %arg12[%c8_228, %c0_229] : memref<48x128xbf16, #tpu.memory_space<vmem>>, vector<32x128xbf16>
    %c1_230 = arith.constant 1 : index
    %c0_231 = arith.constant 0 : index
    %c0_232 = arith.constant 0 : index
    %222 = vector.load %arg7[%c1_230, %c0_231, %c0_232] : memref<3x128x128xbf16, #tpu.memory_space<vmem>>, vector<1x128x128xbf16>
    %223 = vector.shape_cast %222 : vector<1x128x128xbf16> to vector<128x128xbf16>
    %cst_233 = arith.constant dense<0.000000e+00> : vector<32x128xf32>
    %224 = tpu.matmul %221, %223, %cst_233 {dimension_numbers = #tpu.dot_dimension_numbers<[1], [0], [0], [1], [0, 0, 1, 1], [], []>} : vector<32x128xbf16>, vector<128x128xbf16>, vector<32x128xf32> -> vector<32x128xf32>
    %225 = arith.addf %220, %224 : vector<32x128xf32>
    %c9_234 = arith.constant 9 : index
    %c0_235 = arith.constant 0 : index
    %226 = vector.load %arg12[%c9_234, %c0_235] : memref<48x128xbf16, #tpu.memory_space<vmem>>, vector<32x128xbf16>
    %c2_236 = arith.constant 2 : index
    %c0_237 = arith.constant 0 : index
    %c0_238 = arith.constant 0 : index
    %227 = vector.load %arg7[%c2_236, %c0_237, %c0_238] : memref<3x128x128xbf16, #tpu.memory_space<vmem>>, vector<1x128x128xbf16>
    %228 = vector.shape_cast %227 : vector<1x128x128xbf16> to vector<128x128xbf16>
    %cst_239 = arith.constant dense<0.000000e+00> : vector<32x128xf32>
    %229 = tpu.matmul %226, %228, %cst_239 {dimension_numbers = #tpu.dot_dimension_numbers<[1], [0], [0], [1], [0, 0, 1, 1], [], []>} : vector<32x128xbf16>, vector<128x128xbf16>, vector<32x128xf32> -> vector<32x128xf32>
    %230 = arith.addf %225, %229 : vector<32x128xf32>
    %231 = vector.broadcast %216 : vector<1x128xf32> to vector<32x128xf32>
    %232 = arith.addf %230, %231 : vector<32x128xf32>
    %cst_240 = arith.constant 0.000000e+00 : f32
    %233 = vector.broadcast %cst_240 : f32 to vector<32x128xf32>
    %234 = arith.maximumf %232, %233 : vector<32x128xf32>
    %235 = arith.truncf %234 : vector<32x128xf32> to vector<32x128xbf16>
    %c8_241 = arith.constant 8 : index
    %c0_242 = arith.constant 0 : index
    %236 = vector.load %arg12[%c8_241, %c0_242] : memref<48x128xbf16, #tpu.memory_space<vmem>>, vector<32x128xbf16>
    tpu.vector_store %arg12[%c8_241, %c0_242], %235 {strides = array<i32>} : memref<48x128xbf16, #tpu.memory_space<vmem>>, vector<32x128xbf16>,
    %c0_243 = arith.constant 0 : index
    %c0_244 = arith.constant 0 : index
    %237 = vector.load %arg10[%c0_243, %c0_244] : memref<1x128xf32, #tpu.memory_space<vmem>>, vector<1x128xf32>
    %c7_245 = arith.constant 7 : index
    %c0_246 = arith.constant 0 : index
    %238 = vector.load %arg12[%c7_245, %c0_246] : memref<48x128xbf16, #tpu.memory_space<vmem>>, vector<32x128xbf16>
    %c0_247 = arith.constant 0 : index
    %c0_248 = arith.constant 0 : index
    %c0_249 = arith.constant 0 : index
    %239 = vector.load %arg8[%c0_247, %c0_248, %c0_249] : memref<3x128x128xbf16, #tpu.memory_space<vmem>>, vector<1x128x128xbf16>
    %240 = vector.shape_cast %239 : vector<1x128x128xbf16> to vector<128x128xbf16>
    %cst_250 = arith.constant dense<0.000000e+00> : vector<32x128xf32>
    %241 = tpu.matmul %238, %240, %cst_250 {dimension_numbers = #tpu.dot_dimension_numbers<[1], [0], [0], [1], [0, 0, 1, 1], [], []>} : vector<32x128xbf16>, vector<128x128xbf16>, vector<32x128xf32> -> vector<32x128xf32>
    %c8_251 = arith.constant 8 : index
    %c0_252 = arith.constant 0 : index
    %242 = vector.load %arg12[%c8_251, %c0_252] : memref<48x128xbf16, #tpu.memory_space<vmem>>, vector<32x128xbf16>
    %c1_253 = arith.constant 1 : index
    %c0_254 = arith.constant 0 : index
    %c0_255 = arith.constant 0 : index
    %243 = vector.load %arg8[%c1_253, %c0_254, %c0_255] : memref<3x128x128xbf16, #tpu.memory_space<vmem>>, vector<1x128x128xbf16>
    %244 = vector.shape_cast %243 : vector<1x128x128xbf16> to vector<128x128xbf16>
    %cst_256 = arith.constant dense<0.000000e+00> : vector<32x128xf32>
    %245 = tpu.matmul %242, %244, %cst_256 {dimension_numbers = #tpu.dot_dimension_numbers<[1], [0], [0], [1], [0, 0, 1, 1], [], []>} : vector<32x128xbf16>, vector<128x128xbf16>, vector<32x128xf32> -> vector<32x128xf32>
    %246 = arith.addf %241, %245 : vector<32x128xf32>
    %c9_257 = arith.constant 9 : index
    %c0_258 = arith.constant 0 : index
    %247 = vector.load %arg12[%c9_257, %c0_258] : memref<48x128xbf16, #tpu.memory_space<vmem>>, vector<32x128xbf16>
    %c2_259 = arith.constant 2 : index
    %c0_260 = arith.constant 0 : index
    %c0_261 = arith.constant 0 : index
    %248 = vector.load %arg8[%c2_259, %c0_260, %c0_261] : memref<3x128x128xbf16, #tpu.memory_space<vmem>>, vector<1x128x128xbf16>
    %249 = vector.shape_cast %248 : vector<1x128x128xbf16> to vector<128x128xbf16>
    %cst_262 = arith.constant dense<0.000000e+00> : vector<32x128xf32>
    %250 = tpu.matmul %247, %249, %cst_262 {dimension_numbers = #tpu.dot_dimension_numbers<[1], [0], [0], [1], [0, 0, 1, 1], [], []>} : vector<32x128xbf16>, vector<128x128xbf16>, vector<32x128xf32> -> vector<32x128xf32>
    %251 = arith.addf %246, %250 : vector<32x128xf32>
    %252 = vector.broadcast %237 : vector<1x128xf32> to vector<32x128xf32>
    %253 = arith.addf %251, %252 : vector<32x128xf32>
    %c0_263 = arith.constant 0 : index
    %c0_264 = arith.constant 0 : index
    %c0_265 = arith.constant 0 : index
    %254 = vector.load %arg11[%c0_263, %c0_264, %c0_265] : memref<1x32x128xf32, #tpu.memory_space<vmem>>, vector<1x32x128xf32>
    %255 = vector.shape_cast %254 : vector<1x32x128xf32> to vector<32x128xf32>
    %256 = vector.shape_cast %253 : vector<32x128xf32> to vector<1x32x128xf32>
    tpu.vector_store %arg11[%c0_263, %c0_264, %c0_265], %256 {strides = array<i32>} : memref<1x32x128xf32, #tpu.memory_space<vmem>>, vector<1x32x128xf32>,
    return
  }
  func.func @transform_0(%arg0: i32) -> (i32, i32, i32) {
    %c0_i32 = arith.constant 0 : i32
    %c0_i32_0 = arith.constant 0 : i32
    %c0_i32_1 = arith.constant 0 : i32
    return %arg0, %c0_i32, %c0_i32_0 : i32, i32, i32
  }
  func.func @transform_1(%arg0: i32) -> (i32, i32, i32) {
    %c0_i32 = arith.constant 0 : i32
    %c0_i32_0 = arith.constant 0 : i32
    %c0_i32_1 = arith.constant 0 : i32
    %c0_i32_2 = arith.constant 0 : i32
    return %c0_i32, %c0_i32_0, %c0_i32_1 : i32, i32, i32
  }
  func.func @transform_2(%arg0: i32) -> (i32, i32, i32, i32) {
    %c0_i32 = arith.constant 0 : i32
    %c0_i32_0 = arith.constant 0 : i32
    %c0_i32_1 = arith.constant 0 : i32
    %c0_i32_2 = arith.constant 0 : i32
    %c0_i32_3 = arith.constant 0 : i32
    return %c0_i32, %c0_i32_0, %c0_i32_1, %c0_i32_2 : i32, i32, i32, i32
  }
  func.func @transform_3(%arg0: i32) -> (i32, i32, i32) {
    %c0_i32 = arith.constant 0 : i32
    %c0_i32_0 = arith.constant 0 : i32
    %c0_i32_1 = arith.constant 0 : i32
    %c0_i32_2 = arith.constant 0 : i32
    return %c0_i32, %c0_i32_0, %c0_i32_1 : i32, i32, i32
  }
  func.func @transform_4(%arg0: i32) -> (i32, i32, i32, i32) {
    %c0_i32 = arith.constant 0 : i32
    %c0_i32_0 = arith.constant 0 : i32
    %c0_i32_1 = arith.constant 0 : i32
    %c0_i32_2 = arith.constant 0 : i32
    %c0_i32_3 = arith.constant 0 : i32
    return %c0_i32, %c0_i32_0, %c0_i32_1, %c0_i32_2 : i32, i32, i32, i32
  }
  func.func @transform_5(%arg0: i32) -> (i32, i32, i32, i32) {
    %c0_i32 = arith.constant 0 : i32
    %c0_i32_0 = arith.constant 0 : i32
    %c0_i32_1 = arith.constant 0 : i32
    %c0_i32_2 = arith.constant 0 : i32
    %c0_i32_3 = arith.constant 0 : i32
    return %c0_i32, %c0_i32_0, %c0_i32_1, %c0_i32_2 : i32, i32, i32, i32
  }
  func.func @transform_6(%arg0: i32) -> (i32, i32, i32) {
    %c0_i32 = arith.constant 0 : i32
    %c0_i32_0 = arith.constant 0 : i32
    %c0_i32_1 = arith.constant 0 : i32
    %c0_i32_2 = arith.constant 0 : i32
    return %c0_i32, %c0_i32_0, %c0_i32_1 : i32, i32, i32
  }
  func.func @transform_7(%arg0: i32) -> (i32, i32, i32) {
    %c0_i32 = arith.constant 0 : i32
    %c0_i32_0 = arith.constant 0 : i32
    %c0_i32_1 = arith.constant 0 : i32
    %c0_i32_2 = arith.constant 0 : i32
    return %c0_i32, %c0_i32_0, %c0_i32_1 : i32, i32, i32
  }
  func.func @transform_8(%arg0: i32) -> (i32, i32) {
    %c0_i32 = arith.constant 0 : i32
    %c0_i32_0 = arith.constant 0 : i32
    %c0_i32_1 = arith.constant 0 : i32
    return %c0_i32, %c0_i32_0 : i32, i32
  }
  func.func @transform_9(%arg0: i32) -> (i32, i32) {
    %c0_i32 = arith.constant 0 : i32
    %c0_i32_0 = arith.constant 0 : i32
    %c0_i32_1 = arith.constant 0 : i32
    return %c0_i32, %c0_i32_0 : i32, i32
  }
  func.func @transform_10(%arg0: i32) -> (i32, i32, i32) {
    %c0_i32 = arith.constant 0 : i32
    %c0_i32_0 = arith.constant 0 : i32
    %c0_i32_1 = arith.constant 0 : i32
    return %arg0, %c0_i32, %c0_i32_0 : i32, i32, i32
  }
}

</mosaic_0001>

<bundles_post_ra>
// kernel: _lambda_.1
= control target key start
LH: loop header
LB: loop body
LE: loop exit
PB: predicated region body
PF: predicated region fallthrough
CT: control target
= control target key end

     0   :  { %15 = vsyncpa [#allocation4], 0  ;;  %s8307_s0 = inlined_call_operand.vmem [shape: bf16[2,10,128], index: 0, kind: input, shape index: {}]   ;;  %s8308_s1 = inlined_call_operand.hbm [shape: bf16[3,128,128], index: 1, kind: input, shape index: {}]   ;;  %s8309_s2 = inlined_call_operand.hbm [shape: bf16[4,3,128,128], index: 2, kind: input, shape index: {}]   ;;  %s8310_s3 = inlined_call_operand.hbm [shape: bf16[4,128,128], index: 3, kind: input, shape index: {}]   ;;  %s8311_s4 = inlined_call_operand.hbm [shape: bf16[2,2,128,128], index: 4, kind: input, shape index: {}]   ;;  %s8312_s5 = inlined_call_operand.hbm [shape: bf16[2,2,128,128], index: 5, kind: input, shape index: {}]   ;;  %s8313_s6 = inlined_call_operand.hbm [shape: bf16[3,128,128], index: 6, kind: input, shape index: {}]   ;;  %s8314_s7 = inlined_call_operand.hbm [shape: bf16[3,128,128], index: 7, kind: input, shape index: {}]   ;;  %s8315_s8 = inlined_call_operand.vmem [shape: f32[12,128], index: 8, kind: input, shape index: {}]   ;;  %s8316_s9 = inlined_call_operand.vmem [shape: f32[1,128], index: 9, kind: input, shape index: {}]   ;;  %s8317_s10 = inlined_call_operand.vmem [shape: f32[2,32,128], index: 10, kind: output, shape index: {}]  }
   0x1   :  { %16 = vsyncpa [#allocation6], 0 }
   0x2   :  { %17 = vsyncpa [#allocation9], 0 }
   0x3   :  { %18 = vsyncpa [#allocation12], 0  ;;  %s7598_s13 = smov 0  }
   0x4 LB: > { %s7604_s14 = sadd.s32 4294967295, %s7527_s13   ;;  %p5593_p0 = scmp.ge.s32.totalorder %s7527_s13, 1  ;;  %s7527_s13 = sphi %s7598_s13, %s24_s13  }
   0x5   : > { %p270_p1 = scmp.lt.s32.totalorder %s7527_s13, 3  ;;  %p6986_p2 = scmp.eq.s32.totalorder %s7604_s14, 0 }
   0x6   : > { %s7529_s16 = smov [#allocation5]   ;;  %s7530_s18 = smov [#allocation8]  }
   0x7   : > { %p7609_p3 = pnand %p5593_p0, %p270_p1  ;;  %s295_s17 = sshll.u32 %s7529_s16, 4  ;;  %s296_s17 = int_to_ptr.vmem [resolvable:$true] %s295_s17 }
   0x8   : > { %s321_s19 = sshll.u32 %s7530_s18, 4  ;;  %s7531_s21 = smov [#allocation11]   ;;  %s7615_s19 = int_to_ptr.vmem [resolvable:$true] %s321_s19 }
   0x9   : > { %p6964_p4 = pneg %p7609_p3  ;;  %s347_s22 = sshll.u32 %s7531_s21, 4  ;;  %s7623_s22 = int_to_ptr.vmem [resolvable:$true] %s347_s22 }
   0xa   : > { %s7532_s23 = smov [#allocation3]   ;;  %s7334_s26 = scalar_lea.vmem %s296_s17, 12288 }
   0xb   : > { %p7619_p5 = pnand %p6986_p2, %p6964_p4  ;;  %s7625_s24 = sshll.u32 %s7532_s23, 4  ;;  %s283_s24 = int_to_ptr.vmem [resolvable:$true] %s7625_s24 }
   0xc   : > { %p7335_p7 = scmp.ne.s32.totalorder %s296_s17, %s7334_s26  ;;  %p7342_p10 = scmp.lt.s32.totalorder %s296_s17, %s296_s17 }
   0xd   : > { %p7629_p6 = pneg %p7619_p5  ;;  %p7343_p11 = scmp.lt.s32.totalorder %s7334_s26, %s7334_s26 }
   0xf   : > { %p7337_p8 = pnand %p7335_p7, %p7629_p6  ;;  %p7344_p12 = por %p7343_p11, %p7342_p10 }
  0x11   : > { %p7338_p9 = pneg %p7337_p8 }
  0x13   : > { %p7345_p13 = pnand %p7344_p12, %p7338_p9 }
  0x15   : > { %7348 = shalt.err (!%p7345_p13)
}
  0x16   : > { %s7533_s27 = smov 64   ;;  %s7534_s28 = smov 4  }
  0x17   : > { %6970 = dma.hbm_to_vmem [thread:$0]  (!%p7619_p5), %s8309_s2, 12288, %s296_s17, [#allocation6], %s7533_s27, %s7533_s27, %s7534_s28  }
  0x18   : > { %s7360_s11 = scalar_lea.vmem %s7615_s19, 4096  ;;  %p7368_p7 = scmp.lt.s32.totalorder %s7615_s19, %s7615_s19 }
  0x19   : > { %p7361_p0 = scmp.ne.s32.totalorder %s7615_s19, %s7360_s11  ;;  %p7369_p8 = scmp.lt.s32.totalorder %s7360_s11, %s7360_s11 }
  0x1b   : > { %p7363_p1 = pnand %p7361_p0, %p7629_p6  ;;  %p7370_p9 = por %p7369_p8, %p7368_p7 }
  0x1d   : > { %p7364_p4 = pneg %p7363_p1 }
  0x1f   : > { %p7371_p10 = pnand %p7370_p9, %p7364_p4 }
  0x21   : > { %7374 = shalt.err (!%p7371_p10)
}
  0x22   : > { %6976 = dma.hbm_to_vmem [thread:$0]  (!%p7619_p5), %s8311_s4, 4096, %s7615_s19, [#allocation9], %s7533_s27, %s7533_s27, %s7534_s28  }
  0x23   : > { %s7386_s17 = scalar_lea.vmem %s7623_s22, 3072  ;;  %p7394_p0 = scmp.lt.s32.totalorder %s7623_s22, %s7623_s22 }
  0x24   : > { %p7387_p11 = scmp.ne.s32.totalorder %s7623_s22, %s7386_s17  ;;  %p7395_p1 = scmp.lt.s32.totalorder %s7386_s17, %s7386_s17 }
  0x26   : > { %p7389_p12 = pnand %p7387_p11, %p7629_p6  ;;  %p7396_p4 = por %p7395_p1, %p7394_p0 }
  0x28   : > { %p7390_p13 = pneg %p7389_p12 }
  0x2a   : > { %p7397_p7 = pnand %p7396_p4, %p7390_p13 }
  0x2c   : > { %7400 = shalt.err (!%p7397_p7)
}
  0x2d   : > { %6982 = dma.hbm_to_vmem [thread:$0]  (!%p7619_p5), %s8313_s6, 3072, %s7623_s22, [#allocation12], %s7533_s27, %s7533_s27, %s7534_s28  }
  0x2e   : > { %s7412_s19 = scalar_lea.vmem %s283_s24, 3072  ;;  %p7420_p11 = scmp.lt.s32.totalorder %s283_s24, %s283_s24 }
  0x2f   : > { %p7413_p8 = scmp.ne.s32.totalorder %s283_s24, %s7412_s19  ;;  %p7421_p12 = scmp.lt.s32.totalorder %s7412_s19, %s7412_s19 }
  0x31   : > { %p7415_p9 = pnand %p7413_p8, %p7629_p6  ;;  %p7422_p13 = por %p7421_p12, %p7420_p11 }
  0x33   : > { %p7416_p10 = pneg %p7415_p9 }
  0x35   : > { %p7423_p0 = pnand %p7422_p13, %p7416_p10 }
  0x37   : > { %7426 = shalt.err (!%p7423_p0)
}
  0x38   : > { %6967 = dma.hbm_to_vmem [thread:$0]  (!%p7619_p5), %s8308_s1, 3072, %s283_s24, [#allocation4], %s7533_s27, %s7533_s27, %s7534_s28  }
  0x39   : > { %s7535_s22 = smov [#allocation7]   ;;  %s7536_s30 = smov [#allocation10]  }
  0x3a   : > { %s308_s29 = sshll.u32 %s7535_s22, 4  ;;  %s334_s11 = sshll.u32 %s7536_s30, 4  ;;  %s309_s29 = int_to_ptr.vmem [resolvable:$true] %s308_s29  ;;  %s335_s11 = int_to_ptr.vmem [resolvable:$true] %s334_s11 }
  0x3b   : > { %s7438_s12 = scalar_lea.vmem %s309_s29, 4096  ;;  %p7446_p8 = scmp.lt.s32.totalorder %s309_s29, %s309_s29 }
  0x3c   : > { %p7439_p1 = scmp.ne.s32.totalorder %s309_s29, %s7438_s12  ;;  %p7447_p9 = scmp.lt.s32.totalorder %s7438_s12, %s7438_s12 }
  0x3e   : > { %p7441_p4 = pnand %p7439_p1, %p7629_p6  ;;  %p7448_p10 = por %p7447_p9, %p7446_p8 }
  0x40   : > { %p7442_p7 = pneg %p7441_p4 }
  0x42   : > { %p7449_p11 = pnand %p7448_p10, %p7442_p7 }
  0x44   : > { %7452 = shalt.err (!%p7449_p11)
}
  0x45   : > { %6973 = dma.hbm_to_vmem [thread:$0]  (!%p7619_p5), %s8310_s3, 4096, %s309_s29, [#allocation6], %s7533_s27, %s7533_s27, %s7534_s28  }
  0x46   : > { %s7464_s17 = scalar_lea.vmem %s335_s11, 4096  ;;  %p7472_p1 = scmp.lt.s32.totalorder %s335_s11, %s335_s11 }
  0x47   : > { %p7465_p12 = scmp.ne.s32.totalorder %s335_s11, %s7464_s17  ;;  %p7473_p4 = scmp.lt.s32.totalorder %s7464_s17, %s7464_s17 }
  0x49   : > { %p7467_p13 = pnand %p7465_p12, %p7629_p6  ;;  %p7474_p7 = por %p7473_p4, %p7472_p1 }
  0x4b   : > { %p7468_p0 = pneg %p7467_p13 }
  0x4d   : > { %p7475_p8 = pnand %p7474_p7, %p7468_p0 }
  0x4f   : > { %7478 = shalt.err (!%p7475_p8)
}
  0x50   : > { %6979 = dma.hbm_to_vmem [thread:$0]  (!%p7619_p5), %s8312_s5, 4096, %s335_s11, [#allocation9], %s7533_s27, %s7533_s27, %s7534_s28  }
  0x51   : > { %s7537_s19 = smov [#allocation13]  }
  0x52   : > { %s360_s23 = sshll.u32 %s7537_s19, 4  ;;  %s361_s23 = int_to_ptr.vmem [resolvable:$true] %s360_s23 }
  0x53   : > { %s7490_s26 = scalar_lea.vmem %s361_s23, 3072  ;;  %p7498_p12 = scmp.lt.s32.totalorder %s361_s23, %s361_s23 }
  0x54   : > { %p7491_p9 = scmp.ne.s32.totalorder %s361_s23, %s7490_s26  ;;  %p7499_p13 = scmp.lt.s32.totalorder %s7490_s26, %s7490_s26 }
  0x56   : > { %p7493_p10 = pnand %p7491_p9, %p7629_p6  ;;  %p7500_p0 = por %p7499_p13, %p7498_p12 }
  0x58   : > { %p7494_p11 = pneg %p7493_p10 }
  0x5a   : > { %p7501_p1 = pnand %p7500_p0, %p7494_p11 }
  0x5c   : > { %7504 = shalt.err (!%p7501_p1)
}
  0x5d   : > { %6985 = dma.hbm_to_vmem [thread:$0]  (!%p7619_p5), %s8314_s7, 3072, %s361_s23, [#allocation12], %s7533_s27, %s7533_s27, %s7534_s28  }
  0x5e   : > { %390 = sbr.rel (%p7609_p3) target bundleno = 3222 (0xc96), region = 60 }
  0x63   : > { %7510 = dma.done.wait (%p6986_p2), [#allocation4], 3072  }
  0x64   : > { %7512 = vsyncadd (%p6986_p2), [#allocation4], 4294964224 }
  0x65   : > { %7514 = dma.done.wait (%p6986_p2), [#allocation6], 16384  }
  0x66   : > { %7516 = vsyncadd (%p6986_p2), [#allocation6], 4294950912 }
  0x67   : > { %7518 = dma.done.wait (%p6986_p2), [#allocation9], 8192  }
  0x68   : > { %7520 = vsyncadd (%p6986_p2), [#allocation9], 4294959104 }
  0x69   : > { %7522 = dma.done.wait (%p6986_p2), [#allocation12], 6144  }
  0x6a   : > { %7524 = vsyncadd (%p6986_p2), [#allocation12], 4294961152  ;;  %v7538_v0 = vmov 0.0   ;;  %vm7539_vm0 = vmmov 0   ;;  %v7022_v1 = vld [vmem:[#allocation3 + $0x78] sm:$0xff]   ;;  %v7024_v3 = vld [vmem:[#allocation3 + $0x70] sm:$0xff]  }
  0x6b   : > { %6276 = vmatprep.subr.bf16.mxu0 %v7538_v0  ;;  %6296 = vmatprep.subr.bf16.mxu1 %v7538_v0  ;;  %v7023_v2 = vld [vmem:[#allocation3 + $0x38] sm:$0xff]   ;;  %p452_p3 = scmp.lt.s32.totalorder %s7604_s14, 1  ;;  %v7025_v4 = vld [vmem:[#allocation3 + $0x30] sm:$0xff]   ;;  %v7026_v5 = vld [vmem:[#allocation3 + $0x68] sm:$0xff]   ;;  %v7540_v49 = vmov 0   ;;  %vm2349_vm1 = vcmask 1040384  }
  0x6c   : > { %6292 = vmatprep.mubr.msk.bf16.mxu0 %vm7539_vm0, %v7538_v0  ;;  %6312 = vmatprep.mubr.msk.bf16.mxu1 %vm7539_vm0, %v7538_v0  ;;  %v7027_v6 = vld [vmem:[#allocation3 + $0x28] sm:$0xff]   ;;  %v7028_v7 = vld [vmem:[#allocation3 + $0x60] sm:$0xff]   ;;  %v7030_v9 = vld [vmem:[#allocation3 + $0x58] sm:$0xff]   ;;  %810 = vst [vmem:[#allocation2] sm:$0xf] %v7540_v49 }
  0x6d   : > { %6277 = vmatpush3.bf16.msra.mxu0 %v7022_v1  ;;  %6297 = vmatpush3.bf16.msra.mxu1 %v7023_v2  ;;  %s8322_s14 = smov (!%p452_p3, %s7604_s14), 1  ;;  %v7029_v8 = vld [vmem:[#allocation3 + $0x20] sm:$0xff]   ;;  %v7031_v10 = vld [vmem:[#allocation3 + $0x18] sm:$0xff]   ;;  %v7032_v14 = vld [vmem:[#allocation3 + $0x50] sm:$0xff]   ;;  %811 = vst [vmem:[#allocation2 + $0x8] sm:$0xf] %v7540_v49 }
  0x6e   : > { %6278 = vmatprep.subr.bf16.mxu0 %v7538_v0  ;;  %6298 = vmatprep.subr.bf16.mxu1 %v7538_v0  ;;  %s5945_s15 = sshll.u32 %s8322_s14, 3  ;;  %v7033_v15 = vld [vmem:[#allocation3 + $0x10] sm:$0xff]   ;;  %v7034_v17 = vld [vmem:[#allocation3 + $0x48] sm:$0xff]   ;;  %v7036_v19 = vld [vmem:[#allocation3 + $0x40] sm:$0xff]   ;;  %2414 = vst [vmem:[#allocation2 + $0xc] sm:$0xf] %v7540_v49 }
  0x6f   : > { %s456_s27 = scalar_lea.vmem %s8307_s0, %s5945_s15  ;;  %v7035_v18 = vld [vmem:[#allocation3 + $0x8] sm:$0xff]   ;;  %v7037_v24 = vld [vmem:[#allocation3] sm:$0xff]   ;;  %v7039_v26 = vld [vmem:[#allocation3 + $0xb8] sm:$0xff]   ;;  %4530 = vst [vmem:[#allocation2 + $0x14] sm:$0xf] %v7540_v49  ;;  %s5946_s17 = sshll.u32 %s8322_s14, 5 }
  0x70   : > { %v464_v11 = vld [vmem:[%s456_s27] sm:$0xf]  ;;  %v481_v12 = vld [vmem:[%s456_s27 + $0x4] sm:$0x1]  ;;  %v7040_v28 = vld [vmem:[#allocation3 + $0xb0] sm:$0xff]   ;;  %s461_s26 = scalar_lea.vmem %s8317_s10, %s5946_s17 }
  0x71   : > { %6279 = vmatpush3.bf16.msra.mxu0 %v7024_v3  ;;  %6299 = vmatpush3.bf16.msra.mxu1 %v7025_v4  ;;  %v5614_v13 = vcombine.low %v464_v11, %v481_v12  ;;  %v688_v22 = vld [vmem:[%s456_s27] sm:$0xe]  ;;  %v7042_v30 = vld [vmem:[#allocation3 + $0xa0] sm:$0xff]   ;;  %v7043_v31 = vld [vmem:[#allocation3 + $0x98] sm:$0xff]   ;;  %vm2563_vm2 = vsmask.f32 5376 }
  0x72   : > { %6280 = vmatprep.subr.bf16.mxu0 %v7538_v0  ;;  %6300 = vmatprep.subr.bf16.mxu1 %v7538_v0  ;;  %v5631_v23 = vcombine.low %v688_v22, %v481_v12  ;;  %v7041_v29 = vld [vmem:[#allocation3 + $0xa8] sm:$0xff]   ;;  %v7044_v32 = vld [vmem:[#allocation3 + $0x90] sm:$0xff]   ;;  %v7046_v34 = vld [vmem:[#allocation3 + $0x80] sm:$0xff]   ;;  %vm2699_vm3 = vsmask.f32 6400 }
  0x73   : > { %v507_v16 = vshll.u32 %v5614_v13, 16  ;;  %v505_v20 = vshrl.u32 %v5614_v13, 16  ;;  %v7045_v33 = vld [vmem:[#allocation3 + $0x88] sm:$0xff]   ;;  %v7048_v35 = vld [vmem:[#allocation5 + $0x78] sm:$0xff]   ;;  %v7049_v36 = vld [vmem:[#allocation5 + $0x70] sm:$0xff]  }
  0x74   : > { %v709_v25 = vrot.slane %v5631_v23, 1  ;;  %v7051_v37 = vld [vmem:[#allocation5 + $0x38] sm:$0xff]   ;;  %v7050_v38 = vld [vmem:[#allocation5 + $0x68] sm:$0xff]   ;;  %v7052_v39 = vld [vmem:[#allocation5 + $0x60] sm:$0xff]   ;;  %vm3180_vm4 = vsmask.f32 4352 }
  0x75   : > { %6281 = vmatpush3.bf16.msra.mxu0 %v7026_v5  ;;  %6301 = vmatpush3.bf16.msra.mxu1 %v7027_v6  ;;  %v509_v21 = vrot.slane %v507_v16, 1  ;;  %v7053_v40 = vld [vmem:[#allocation5 + $0x30] sm:$0xff]   ;;  %v7054_v41 = vld [vmem:[#allocation5 + $0x58] sm:$0xff]   ;;  %v7055_v42 = vld [vmem:[#allocation5 + $0x28] sm:$0xff]   ;;  %vm3316_vm5 = vsmask.f32 7424 }
  0x76   : > { %6282 = vmatprep.subr.bf16.mxu0 %v7538_v0  ;;  %6302 = vmatprep.subr.bf16.mxu1 %v7538_v0  ;;  %v7056_v43 = vld [vmem:[#allocation5 + $0x50] sm:$0xff]   ;;  %v7057_v44 = vld [vmem:[#allocation5 + $0x20] sm:$0xff]   ;;  %v7058_v45 = vld [vmem:[#allocation5 + $0x48] sm:$0xff]  }
  0x77   : > { %v510_v27 = vor.u32 %v509_v21, %v505_v20  ;;  %v7059_v46 = vld [vmem:[#allocation5 + $0x18] sm:$0xff]   ;;  %v7060_v47 = vld [vmem:[#allocation5 + $0x40] sm:$0xff]   ;;  %v7061_v48 = vld [vmem:[#allocation5 + $0x10] sm:$0xff]  }
  0x78   : > { %v7063_v50 = vld [vmem:[#allocation5 + $0x8] sm:$0xff]   ;;  %v7065_v51 = vld [vmem:[#allocation5] sm:$0xff]   ;;  %v7070_v20 = vld [vmem:[#allocation5 + $0x90] sm:$0xff]  }
  0x79   : > { %6283 = vmatpush3.bf16.msra.mxu0 %v7028_v7  ;;  %6303 = vmatpush3.bf16.msra.mxu1 %v7029_v8  ;;  %v5640_v61 = vld [vmem:[%s8315_s8] ss:$0 sm:$0xff]  ;;  %v7062_v8 = vld [vmem:[#allocation5 + $0xb8] sm:$0xff]  }
  0x7a   : > { %6284 = vmatprep.subr.bf16.mxu0 %v7538_v0  ;;  %6304 = vmatprep.subr.bf16.mxu1 %v7538_v0  ;;  %v7071_v22 = vld [vmem:[#allocation5 + $0x88] sm:$0xff]  }
  0x7d   : > { %6285 = vmatpush3.bf16.msra.mxu0 %v7030_v9  ;;  %6305 = vmatpush3.bf16.msra.mxu1 %v7031_v10 }
  0x7e   : > { %6286 = vmatprep.subr.bf16.mxu0 %v7538_v0  ;;  %6306 = vmatprep.subr.bf16.mxu1 %v7538_v0 }
  0x81   : > { %6287 = vmatpush3.bf16.msra.mxu0 %v7032_v14  ;;  %6307 = vmatpush3.bf16.msra.mxu1 %v7033_v15 }
  0x82   : > { %6288 = vmatprep.subr.bf16.mxu0 %v7538_v0  ;;  %6308 = vmatprep.subr.bf16.mxu1 %v7538_v0 }
  0x85   : > { %6289 = vmatpush3.bf16.msra.mxu0 %v7034_v17  ;;  %6309 = vmatpush3.bf16.msra.mxu1 %v7035_v18  ;;  %v7067_v17 = vld [vmem:[#allocation5 + $0xa8] sm:$0xff]   ;;  %v7068_v18 = vld [vmem:[#allocation5 + $0xa0] sm:$0xff]  }
  0x86   : > { %6290 = vmatprep.subr.bf16.mxu0 %v7538_v0  ;;  %6310 = vmatprep.subr.bf16.mxu1 %v7538_v0 }
  0x89   : > { %6291 = vmatpush3.bf16.msra.mxu0 %v7036_v19  ;;  %6311 = vmatpush3.bf16.msra.mxu1 %v7037_v24  ;;  %v7069_v19 = vld [vmem:[#allocation5 + $0x98] sm:$0xff]  }
  0x8a   : > { %6316 = vmatprep.subr.bf16.mxu0 %v7538_v0  ;;  %6336 = vmatprep.subr.bf16.mxu1 %v7538_v0 }
  0x8c   : > { %6293 = vmatmul.mubr.bf16.vlgmr.msra.gmra.mxu0 %v510_v27  ;;  %6313 = vmatmul.mubr.bf16.vlgmr.msra.gmra.mxu1 %v464_v11  ;;  %v7064_v11 = vld [vmem:[#allocation5 + $0xb0] sm:$0xff]  }
  0x8d   : > { %6317 = vmatpush3.bf16.msra.mxu0 %v7039_v26  ;;  %6332 = vmatprep.mubr.msk.bf16.mxu0 %vm7539_vm0, %v7538_v0 }
  0x8e   : > { %6318 = vmatprep.subr.bf16.mxu0 %v7538_v0  ;;  %6352 = vmatprep.mubr.msk.bf16.mxu1 %vm7539_vm0, %v7538_v0 }
  0x8f   : > { %6337 = vmatpush3.bf16.msra.mxu1 %v7048_v35  ;;  %v7080_v35 = vld [vmem:[#allocation7 + $0x8] sm:$0xff]  }
  0x90   : > { %6338 = vmatprep.subr.bf16.mxu1 %v7538_v0 }
  0x91   : > { %6319 = vmatpush3.bf16.msra.mxu0 %v7040_v28 }
  0x92   : > { %6320 = vmatprep.subr.bf16.mxu0 %v7538_v0 }
  0x93   : > { %6339 = vmatpush3.bf16.msra.mxu1 %v7049_v36  ;;  %v7081_v36 = vld [vmem:[#allocation7] sm:$0xff]  }
  0x94   : > { %6340 = vmatprep.subr.bf16.mxu1 %v7538_v0 }
  0x95   : > { %6321 = vmatpush3.bf16.msra.mxu0 %v7041_v29  ;;  %v7074_v29 = vld [vmem:[#allocation7 + $0x38] sm:$0xff]  }
  0x96   : > { %6322 = vmatprep.subr.bf16.mxu0 %v7538_v0 }
  0x97   : > { %6341 = vmatpush3.bf16.msra.mxu1 %v7050_v38  ;;  %v7083_v38 = vld [vmem:[#allocation5 + $0x130] sm:$0xff]  }
  0x98   : > { %6342 = vmatprep.subr.bf16.mxu1 %v7538_v0 }
  0x99   : > { %6323 = vmatpush3.bf16.msra.mxu0 %v7042_v30  ;;  %v7075_v30 = vld [vmem:[#allocation7 + $0x30] sm:$0xff]  }
  0x9a   : > { %6324 = vmatprep.subr.bf16.mxu0 %v7538_v0 }
  0x9b   : > { %6343 = vmatpush3.bf16.msra.mxu1 %v7052_v39  ;;  %v7084_v39 = vld [vmem:[#allocation5 + $0x128] sm:$0xff]  }
  0x9c   : > { %6344 = vmatprep.subr.bf16.mxu1 %v7538_v0 }
  0x9d   : > { %6325 = vmatpush3.bf16.msra.mxu0 %v7043_v31  ;;  %v7076_v31 = vld [vmem:[#allocation7 + $0x28] sm:$0xff]  }
  0x9e   : > { %6326 = vmatprep.subr.bf16.mxu0 %v7538_v0 }
  0x9f   : > { %6345 = vmatpush3.bf16.msra.mxu1 %v7054_v41 }
  0xa0   : > { %6346 = vmatprep.subr.bf16.mxu1 %v7538_v0 }
  0xa1   : > { %6327 = vmatpush3.bf16.msra.mxu0 %v7044_v32  ;;  %v7077_v32 = vld [vmem:[#allocation7 + $0x20] sm:$0xff]  }
  0xa2   : > { %6328 = vmatprep.subr.bf16.mxu0 %v7538_v0 }
  0xa3   : > { %6347 = vmatpush3.bf16.msra.mxu1 %v7056_v43 }
  0xa4   : > { %6348 = vmatprep.subr.bf16.mxu1 %v7538_v0 }
  0xa5   : > { %6329 = vmatpush3.bf16.msra.mxu0 %v7045_v33  ;;  %v7078_v33 = vld [vmem:[#allocation7 + $0x18] sm:$0xff]  }
  0xa6   : > { %6330 = vmatprep.subr.bf16.mxu0 %v7538_v0 }
  0xa7   : > { %6349 = vmatpush3.bf16.msra.mxu1 %v7058_v45 }
  0xa8   : > { %6350 = vmatprep.subr.bf16.mxu1 %v7538_v0 }
  0xa9   : > { %6331 = vmatpush3.bf16.msra.mxu0 %v7046_v34  ;;  %v7079_v34 = vld [vmem:[#allocation7 + $0x10] sm:$0xff]  }
  0xaa   : > { %6356 = vmatprep.subr.bf16.mxu0 %v7538_v0 }
  0xab   : > { %6351 = vmatpush3.bf16.msra.mxu1 %v7060_v47 }
  0xac   : > { %6333 = vmatmul.mubr.bf16.vlgmr.msra.gmra.mxu0 %v709_v25  ;;  %6376 = vmatprep.subr.bf16.mxu1 %v7538_v0  ;;  %v7072_v25 = vld [vmem:[#allocation5 + $0x80] sm:$0xff]  }
  0xad   : > { %6372 = vmatprep.mubr.msk.bf16.mxu0 %vm7539_vm0, %v7538_v0  ;;  %6357 = vmatpush3.bf16.msra.mxu0 %v7051_v37  ;;  %v7082_v37 = vld [vmem:[#allocation5 + $0x138] sm:$0xff]  }
  0xae   : > { %6358 = vmatprep.subr.bf16.mxu0 %v7538_v0 }
  0xb1   : > { %6359 = vmatpush3.bf16.msra.mxu0 %v7053_v40  ;;  %v7086_v40 = vld [vmem:[#allocation5 + $0x120] sm:$0xff]  }
  0xb2   : > { %6360 = vmatprep.subr.bf16.mxu0 %v7538_v0 }
  0xb5   : > { %6361 = vmatpush3.bf16.msra.mxu0 %v7055_v42 }
  0xb6   : > { %6362 = vmatprep.subr.bf16.mxu0 %v7538_v0 }
  0xb9   : > { %6363 = vmatpush3.bf16.msra.mxu0 %v7057_v44 }
  0xba   : > { %6364 = vmatprep.subr.bf16.mxu0 %v7538_v0 }
  0xbd   : > { %6365 = vmatpush3.bf16.msra.mxu0 %v7059_v46 }
  0xbe   : > { %6366 = vmatprep.subr.bf16.mxu0 %v7538_v0 }
  0xc1   : > { %6367 = vmatpush3.bf16.msra.mxu0 %v7061_v48 }
  0xc2   : > { %6368 = vmatprep.subr.bf16.mxu0 %v7538_v0 }
  0xc5   : > { %6369 = vmatpush3.bf16.msra.mxu0 %v7063_v50 }
  0xc6   : > { %6370 = vmatprep.subr.bf16.mxu0 %v7538_v0 }
  0xc9   : > { %6371 = vmatpush3.bf16.msra.mxu0 %v7065_v51  ;;  %v5667_v51 = vld [vmem:[%s8315_s8 + $0x1] ss:$0 sm:$0xff] }
  0xca   : > { %6396 = vmatprep.subr.bf16.mxu0 %v7538_v0 }
 0x14c   : > { %v594_v52 = vpop.f32.mrf.mxu0  ;;  %v682_v53 = vpop.f32.mrf.mxu1 }
 0x14d   : > { %v683_v60 = vadd.f32 %v682_v53, %v594_v52 }
 0x14e   : > { %v6294_v54 = vpop.f32.mrf.mxu0  ;;  %v6314_v55 = vpop.f32.mrf.mxu1 }
 0x150   : > { %v597_v56 = vpop.f32.mrf.mxu0  ;;  %v685_v57 = vpop.f32.mrf.mxu1 }
 0x152   : > { %v6295_v58 = vpop.f32.mrf.mxu0  ;;  %v6315_v59 = vpop.f32.mrf.mxu1 }
 0x153   : > { %v7085_v59 = vld [vmem:[#allocation5 + $0xf8] sm:$0xff]  }
 0x16c   : > { %v793_v62 = vpop.f32.mrf.mxu0 }
 0x16d   : > { %v799_v63 = vadd.f32 %v793_v62, %v683_v60  ;;  %v7088_v62 = vld [vmem:[#allocation5 + $0x118] sm:$0xff]  }
 0x16e   : > { %v6334_v1 = vpop.f32.mrf.mxu0 }
 0x16f   : > { %v7799_v2 = vadd.f32 %v5640_v61, %v799_v63  ;;  %v7087_v61 = vld [vmem:[#allocation5 + $0xf0] sm:$0xff]   ;;  %v7089_v63 = vld [vmem:[#allocation5 + $0xe8] sm:$0xff]  }
 0x170   : > { %v796_v3 = vpop.f32.mrf.mxu0  ;;  %v7090_v1 = vld [vmem:[#allocation5 + $0x110] sm:$0xff]  }
 0x171   : > { %v805_v4 = vmax.f32 %v7799_v2, 0.0  ;;  %v7091_v3 = vld [vmem:[#allocation5 + $0xe0] sm:$0xff]  }
 0x172   : > { %v6335_v5 = vpop.f32.mrf.mxu0 }
 0x173   : > { %v808_v6 = vmax.f32 %v805_v4, 0.0  ;;  %v7092_v5 = vld [vmem:[#allocation5 + $0x108] sm:$0xff]  }
 0x175   : > { %v809_v7 = vpack.c.bf16 %v808_v6, %v808_v6  ;;  %v7093_v6 = vld [vmem:[#allocation5 + $0xd8] sm:$0xff]  }
 0x177   : > { %812 = vst [vmem:[#allocation2 + $0x4] sm:$0xf] %v809_v7  ;;  %v7094_v7 = vld [vmem:[#allocation5 + $0x100] sm:$0xff]  }
 0x17e   : > { %v831_v9 = vld [vmem:[#allocation2 + $0x4] sm:$0xf] }
 0x17f   : > { %v7066_v10 = vld [vmem:[#allocation2] sm:$0x7c]   ;;  %6353 = vmatmul.mubr.bf16.vlgmr.msra.gmra.mxu1 %v831_v9 }
 0x180   : > { %6377 = vmatpush3.bf16.msra.mxu1 %v7062_v8  ;;  %v943_v12 = vshrl.u32 %v7066_v10, 16  ;;  %v946_v13 = vshll.u32 %v7066_v10, 16  ;;  %6392 = vmatprep.mubr.msk.bf16.mxu1 %vm7539_vm0, %v7538_v0  ;;  %v7073_v21 = vld [vmem:[#allocation2 + $0x4] sm:$0x3e]   ;;  %v7099_v10 = vld [vmem:[#allocation5 + $0xc0] sm:$0xff]  }
 0x181   : > { %6378 = vmatprep.subr.bf16.mxu1 %v7538_v0  ;;  %v1064_v23 = vshrl.u32 %v7073_v21, 16  ;;  %v1067_v24 = vshll.u32 %v7073_v21, 16  ;;  %v7095_v8 = vld [vmem:[#allocation5 + $0xd0] sm:$0xff]   ;;  %v7097_v9 = vld [vmem:[#allocation5 + $0xc8] sm:$0xff]  }
 0x182   : > { %v945_v14 = vrot.slane %v943_v12, 2  ;;  %v948_v15 = vrot.slane %v946_v13, 3  ;;  %v1282_v21 = vld [vmem:[#allocation2] sm:$0x8] }
 0x183   : > { %v1066_v26 = vrot.slane %v1064_v23, 1  ;;  %v1069_v27 = vrot.slane %v1067_v24, 2  ;;  %v7098_v24 = vld [vmem:[#allocation5 + $0x170] sm:$0xff]  }
 0x184   : > { %6379 = vmatpush3.bf16.msra.mxu1 %v7064_v11  ;;  %v949_v16 = vor.u32 %v948_v15, %v945_v14  ;;  %v5668_v11 = vld [vmem:[%s8315_s8 + $0x2] ss:$0 sm:$0xff] }
 0x185   : > { %6380 = vmatprep.subr.bf16.mxu1 %v7538_v0  ;;  %v1070_v28 = vor.u32 %v1069_v27, %v1066_v26  ;;  %v7101_v27 = vld [vmem:[#allocation5 + $0x168] sm:$0xff]  }
 0x186   : > { %6373 = vmatmul.mubr.bf16.vlgmr.msra.gmra.mxu0 %v949_v16 }
 0x187   : > { %6412 = vmatprep.mubr.msk.bf16.mxu0 %vm7539_vm0, %v7538_v0  ;;  %6397 = vmatpush3.bf16.msra.mxu0 %v7074_v29  ;;  %v7102_v29 = vld [vmem:[#allocation5 + $0x160] sm:$0xff]  }
 0x188   : > { %6381 = vmatpush3.bf16.msra.mxu1 %v7067_v17  ;;  %6398 = vmatprep.subr.bf16.mxu0 %v7538_v0 }
 0x189   : > { %6382 = vmatprep.subr.bf16.mxu1 %v7538_v0 }
 0x18b   : > { %6399 = vmatpush3.bf16.msra.mxu0 %v7075_v30  ;;  %v7103_v30 = vld [vmem:[#allocation5 + $0x158] sm:$0xff]  }
 0x18c   : > { %6383 = vmatpush3.bf16.msra.mxu1 %v7068_v18  ;;  %6400 = vmatprep.subr.bf16.mxu0 %v7538_v0 }
 0x18d   : > { %6384 = vmatprep.subr.bf16.mxu1 %v7538_v0 }
 0x18f   : > { %6401 = vmatpush3.bf16.msra.mxu0 %v7076_v31  ;;  %v7104_v31 = vld [vmem:[#allocation5 + $0x150] sm:$0xff]  }
 0x190   : > { %6385 = vmatpush3.bf16.msra.mxu1 %v7069_v19  ;;  %6402 = vmatprep.subr.bf16.mxu0 %v7538_v0 }
 0x191   : > { %6386 = vmatprep.subr.bf16.mxu1 %v7538_v0 }
 0x193   : > { %6403 = vmatpush3.bf16.msra.mxu0 %v7077_v32 }
 0x194   : > { %6387 = vmatpush3.bf16.msra.mxu1 %v7070_v20  ;;  %6404 = vmatprep.subr.bf16.mxu0 %v7538_v0  ;;  %v7096_v20 = vld [vmem:[#allocation5 + $0x178] sm:$0xff]  }
 0x195   : > { %6388 = vmatprep.subr.bf16.mxu1 %v7538_v0 }
 0x197   : > { %6405 = vmatpush3.bf16.msra.mxu0 %v7078_v33  ;;  %v7105_v33 = vld [vmem:[#allocation5 + $0x148] sm:$0xff]  }
 0x198   : > { %6389 = vmatpush3.bf16.msra.mxu1 %v7071_v22  ;;  %6406 = vmatprep.subr.bf16.mxu0 %v7538_v0 }
 0x199   : > { %6390 = vmatprep.subr.bf16.mxu1 %v7538_v0 }
 0x19b   : > { %6407 = vmatpush3.bf16.msra.mxu0 %v7079_v34 }
 0x19c   : > { %6391 = vmatpush3.bf16.msra.mxu1 %v7072_v25  ;;  %6408 = vmatprep.subr.bf16.mxu0 %v7538_v0 }
 0x19d   : > { %6416 = vmatprep.subr.bf16.mxu1 %v7538_v0 }
 0x19f   : > { %6393 = vmatmul.mubr.bf16.vlgmr.msra.gmra.mxu1 %v1070_v28  ;;  %6409 = vmatpush3.bf16.msra.mxu0 %v7080_v35  ;;  %v7106_v35 = vld [vmem:[#allocation5 + $0x140] sm:$0xff]  }
 0x1a0   : > { %6432 = vmatprep.mubr.msk.bf16.mxu1 %vm7539_vm0, %v7538_v0  ;;  %6410 = vmatprep.subr.bf16.mxu0 %v7538_v0 }
 0x1a1   : > { %6417 = vmatpush3.bf16.msra.mxu1 %v7082_v37 }
 0x1a2   : > { %6418 = vmatprep.subr.bf16.mxu1 %v7538_v0 }
 0x1a3   : > { %6411 = vmatpush3.bf16.msra.mxu0 %v7081_v36 }
 0x1a4   : > { %6436 = vmatprep.subr.bf16.mxu0 %v7538_v0 }
 0x1a5   : > { %6419 = vmatpush3.bf16.msra.mxu1 %v7083_v38 }
 0x1a6   : > { %6420 = vmatprep.subr.bf16.mxu1 %v7538_v0 }
 0x1a9   : > { %6421 = vmatpush3.bf16.msra.mxu1 %v7084_v39  ;;  %v7108_v39 = vld [vmem:[#allocation7 + $0x78] sm:$0xff]  }
 0x1aa   : > { %6422 = vmatprep.subr.bf16.mxu1 %v7538_v0 }
 0x1ad   : > { %6423 = vmatpush3.bf16.msra.mxu1 %v7086_v40  ;;  %v7109_v40 = vld [vmem:[#allocation7 + $0x70] sm:$0xff]  }
 0x1ae   : > { %6424 = vmatprep.subr.bf16.mxu1 %v7538_v0 }
 0x1b1   : > { %6425 = vmatpush3.bf16.msra.mxu1 %v7088_v62  ;;  %v5703_v62 = vld [vmem:[%s8315_s8 + $0x3] ss:$0 sm:$0xff] }
 0x1b2   : > { %6426 = vmatprep.subr.bf16.mxu1 %v7538_v0 }
 0x1b5   : > { %6427 = vmatpush3.bf16.msra.mxu1 %v7090_v1 }
 0x1b6   : > { %6428 = vmatprep.subr.bf16.mxu1 %v7538_v0 }
 0x1b9   : > { %6429 = vmatpush3.bf16.msra.mxu1 %v7092_v5 }
 0x1ba   : > { %6430 = vmatprep.subr.bf16.mxu1 %v7538_v0 }
 0x1bd   : > { %6431 = vmatpush3.bf16.msra.mxu1 %v7094_v7 }
 0x1be   : > { %6456 = vmatprep.subr.bf16.mxu1 %v7538_v0 }
 0x23f   : > { %v931_v41 = vpop.f32.mrf.mxu1 }
 0x241   : > { %v6354_v42 = vpop.f32.mrf.mxu1 }
 0x242   : > { %v7111_v42 = vld [vmem:[#allocation7 + $0x60] sm:$0xff]  }
 0x243   : > { %v934_v43 = vpop.f32.mrf.mxu1 }
 0x244   : > { %v7112_v43 = vld [vmem:[#allocation7 + $0x58] sm:$0xff]  }
 0x245   : > { %v6355_v44 = vpop.f32.mrf.mxu1 }
 0x246   : > { %v1033_v45 = vpop.f32.mrf.mxu0  ;;  %v7113_v44 = vld [vmem:[#allocation7 + $0x50] sm:$0xff]  }
 0x247   : > { %v1034_v50 = vadd.f32 %v1033_v45, %v931_v41  ;;  %v7110_v41 = vld [vmem:[#allocation7 + $0x68] sm:$0xff]  }
 0x248   : > { %v6374_v46 = vpop.f32.mrf.mxu0  ;;  %v7114_v45 = vld [vmem:[#allocation7 + $0x48] sm:$0xff]  }
 0x249   : > { %v7115_v46 = vld [vmem:[#allocation7 + $0x40] sm:$0xff]  }
 0x24a   : > { %v1036_v47 = vpop.f32.mrf.mxu0 }
 0x24b   : > { %v7116_v47 = vld [vmem:[#allocation8 + $0x78] sm:$0xff]  }
 0x24c   : > { %v6375_v48 = vpop.f32.mrf.mxu0 }
 0x24d   : > { %v7117_v48 = vld [vmem:[#allocation8 + $0x70] sm:$0xff]  }
 0x25f   : > { %v1154_v52 = vpop.f32.mrf.mxu1 }
 0x260   : > { %v1160_v53 = vadd.f32 %v1154_v52, %v1034_v50  ;;  %v7118_v50 = vld [vmem:[#allocation8 + $0x68] sm:$0xff]   ;;  %v7122_v52 = vld [vmem:[#allocation8 + $0x58] sm:$0xff]  }
 0x261   : > { %v6394_v54 = vpop.f32.mrf.mxu1 }
 0x262   : > { %v1165_v55 = vadd.f32 %v5667_v51, %v1160_v53  ;;  %v7120_v51 = vld [vmem:[#allocation8 + $0x60] sm:$0xff]  }
 0x263   : > { %v1157_v56 = vpop.f32.mrf.mxu1 }
 0x264   : > { %v1166_v57 = vmax.f32 %v1165_v55, 0.0 }
 0x265   : > { %v6395_v58 = vpop.f32.mrf.mxu1 }
 0x266   : > { %v1167_v60 = vpack.c.bf16 %v1166_v57, %v1166_v57 }
 0x268   : > { %6413 = vmatmul.mubr.bf16.vlgmr.msra.gmra.mxu0 %v1167_v60 }
 0x269   : > { %6437 = vmatpush3.bf16.msra.mxu0 %v7085_v59  ;;  %6452 = vmatprep.mubr.msk.bf16.mxu0 %vm7539_vm0, %v7538_v0 }
 0x26a   : > { %6438 = vmatprep.subr.bf16.mxu0 %v7538_v0 }
 0x26d   : > { %6439 = vmatpush3.bf16.msra.mxu0 %v7087_v61 }
 0x26e   : > { %6440 = vmatprep.subr.bf16.mxu0 %v7538_v0 }
 0x271   : > { %6441 = vmatpush3.bf16.msra.mxu0 %v7089_v63 }
 0x272   : > { %6442 = vmatprep.subr.bf16.mxu0 %v7538_v0 }
 0x275   : > { %6443 = vmatpush3.bf16.msra.mxu0 %v7091_v3 }
 0x276   : > { %6444 = vmatprep.subr.bf16.mxu0 %v7538_v0 }
 0x279   : > { %6445 = vmatpush3.bf16.msra.mxu0 %v7093_v6 }
 0x27a   : > { %6446 = vmatprep.subr.bf16.mxu0 %v7538_v0 }
 0x27d   : > { %6447 = vmatpush3.bf16.msra.mxu0 %v7095_v8 }
 0x27e   : > { %6448 = vmatprep.subr.bf16.mxu0 %v7538_v0 }
 0x281   : > { %6449 = vmatpush3.bf16.msra.mxu0 %v7097_v9  ;;  %v7119_v9 = vld [vmem:[#allocation8 + $0x38] sm:$0xff]  }
 0x282   : > { %6450 = vmatprep.subr.bf16.mxu0 %v7538_v0 }
 0x285   : > { %6451 = vmatpush3.bf16.msra.mxu0 %v7099_v10 }
 0x286   : > { %6476 = vmatprep.subr.bf16.mxu0 %v7538_v0 }
 0x328   : > { %v1270_v12 = vpop.f32.mrf.mxu0 }
 0x329   : > { %v1271_v13 = vadd.f32 %v5668_v11, %v1270_v12  ;;  %v7121_v11 = vld [vmem:[#allocation8 + $0x30] sm:$0xff]   ;;  %v7123_v12 = vld [vmem:[#allocation8 + $0x28] sm:$0xff]  }
 0x32a   : > { %v6414_v14 = vpop.f32.mrf.mxu0 }
 0x32b   : > { %v7852_v15 = vadd.f32 %v1271_v13, %v805_v4  ;;  %v7124_v13 = vld [vmem:[#allocation8 + $0x50] sm:$0xff]   ;;  %v7125_v14 = vld [vmem:[#allocation8 + $0x20] sm:$0xff]  }
 0x32c   : > { %v1273_v16 = vpop.f32.mrf.mxu0 }
 0x32d   : > { %v1279_v17 = vmax.f32 %v7852_v15, 0.0  ;;  %v7126_v16 = vld [vmem:[#allocation8 + $0x48] sm:$0xff]  }
 0x32e   : > { %v6415_v18 = vpop.f32.mrf.mxu0 }
 0x32f   : > { %v1280_v19 = vpack.c.bf16 %v1279_v17, %v1279_v17  ;;  %v7127_v17 = vld [vmem:[#allocation8 + $0x18] sm:$0xff]   ;;  %v7128_v18 = vld [vmem:[#allocation8 + $0x40] sm:$0xff]  }
 0x331   : > { %1281 = vst [vmem:[#allocation2 + $0x4] sm:$0xf] %v1280_v19  ;;  %v7129_v19 = vld [vmem:[#allocation8 + $0x10] sm:$0xff]  }
 0x338   : > { %v1283_v22 = vld [vmem:[#allocation2 + $0x4] sm:$0xf] }
 0x339   : > { %6433 = vmatmul.mubr.bf16.vlgmr.msra.gmra.mxu1 %v1283_v22  ;;  %v5685_v23 = vcombine.low %v1282_v21, %v1283_v22  ;;  %v7107_v32 = vld [vmem:[#allocation2 + $0x4] sm:$0x1f]   ;;  %v1749_v21 = vld [vmem:[#allocation2] sm:$0x8]  ;;  %v7132_v22 = vld [vmem:[#allocation8] sm:$0xff]  }
 0x33a   : > { %6457 = vmatpush3.bf16.msra.mxu1 %v7096_v20  ;;  %6472 = vmatprep.mubr.msk.bf16.mxu1 %vm7539_vm0, %v7538_v0  ;;  %v1535_v34 = vshll.u32 %v7107_v32, 16  ;;  %v1533_v37 = vshrl.u32 %v7107_v32, 16  ;;  %v7130_v20 = vld [vmem:[#allocation8 + $0x8] sm:$0xff]   ;;  %2413 = vst [vmem:[#allocation2] sm:$0xf] %v7540_v49  ;;  %v7133_v32 = vld [vmem:[#allocation10 + $0x70] sm:$0xff]  }
 0x33b   : > { %6458 = vmatprep.subr.bf16.mxu1 %v7538_v0  ;;  %v1412_v2 = vshrl.u32 %v5685_v23, 16  ;;  %v1415_v4 = vshll.u32 %v5685_v23, 16  ;;  %v5704_v23 = vld [vmem:[%s8315_s8 + $0x4] ss:$0 sm:$0xff] }
 0x33c   : > { %v1537_v36 = vrot.slane %v1535_v34, 1 }
 0x33d   : > { %v1414_v25 = vrot.slane %v1412_v2, 3  ;;  %v1417_v26 = vrot.slane %v1415_v4, 4 }
 0x33e   : > { %6459 = vmatpush3.bf16.msra.mxu1 %v7098_v24  ;;  %v1538_v38 = vor.u32 %v1537_v36, %v1533_v37  ;;  %v7135_v36 = vld [vmem:[#allocation10 + $0x68] sm:$0xff]   ;;  %v7136_v37 = vld [vmem:[#allocation10 + $0x38] sm:$0xff]  }
 0x33f   : > { %6460 = vmatprep.subr.bf16.mxu1 %v7538_v0  ;;  %v1418_v28 = vor.u32 %v1417_v26, %v1414_v25 }
 0x341   : > { %6453 = vmatmul.mubr.bf16.vlgmr.msra.gmra.mxu0 %v1418_v28 }
 0x342   : > { %6461 = vmatpush3.bf16.msra.mxu1 %v7101_v27  ;;  %6492 = vmatprep.mubr.msk.bf16.mxu0 %vm7539_vm0, %v7538_v0 }
 0x343   : > { %6462 = vmatprep.subr.bf16.mxu1 %v7538_v0  ;;  %6477 = vmatpush3.bf16.msra.mxu0 %v7108_v39  ;;  %v7137_v39 = vld [vmem:[#allocation10 + $0x60] sm:$0xff]  }
 0x344   : > { %6478 = vmatprep.subr.bf16.mxu0 %v7538_v0 }
 0x346   : > { %6463 = vmatpush3.bf16.msra.mxu1 %v7102_v29  ;;  %v7131_v29 = vld [vmem:[#allocation10 + $0x78] sm:$0xff]  }
 0x347   : > { %6464 = vmatprep.subr.bf16.mxu1 %v7538_v0  ;;  %6479 = vmatpush3.bf16.msra.mxu0 %v7109_v40  ;;  %v7138_v40 = vld [vmem:[#allocation10 + $0x30] sm:$0xff]  }
 0x348   : > { %6480 = vmatprep.subr.bf16.mxu0 %v7538_v0 }
 0x34a   : > { %6465 = vmatpush3.bf16.msra.mxu1 %v7103_v30 }
 0x34b   : > { %6466 = vmatprep.subr.bf16.mxu1 %v7538_v0  ;;  %6481 = vmatpush3.bf16.msra.mxu0 %v7110_v41  ;;  %v7139_v41 = vld [vmem:[#allocation10 + $0x58] sm:$0xff]  }
 0x34c   : > { %6482 = vmatprep.subr.bf16.mxu0 %v7538_v0 }
 0x34e   : > { %6467 = vmatpush3.bf16.msra.mxu1 %v7104_v31 }
 0x34f   : > { %6468 = vmatprep.subr.bf16.mxu1 %v7538_v0  ;;  %6483 = vmatpush3.bf16.msra.mxu0 %v7111_v42  ;;  %v7140_v42 = vld [vmem:[#allocation10 + $0x28] sm:$0xff]  }
 0x350   : > { %6484 = vmatprep.subr.bf16.mxu0 %v7538_v0 }
 0x352   : > { %6469 = vmatpush3.bf16.msra.mxu1 %v7105_v33 }
 0x353   : > { %6470 = vmatprep.subr.bf16.mxu1 %v7538_v0  ;;  %6485 = vmatpush3.bf16.msra.mxu0 %v7112_v43  ;;  %v1751_v43 = vld [vmem:[#allocation2 + $0x8] sm:$0x1] }
 0x354   : > { %6486 = vmatprep.subr.bf16.mxu0 %v7538_v0 }
 0x356   : > { %6471 = vmatpush3.bf16.msra.mxu1 %v7106_v35 }
 0x357   : > { %6496 = vmatprep.subr.bf16.mxu1 %v7538_v0  ;;  %6487 = vmatpush3.bf16.msra.mxu0 %v7113_v44  ;;  %v7141_v44 = vld [vmem:[#allocation10 + $0x50] sm:$0xff]  }
 0x358   : > { %6488 = vmatprep.subr.bf16.mxu0 %v7538_v0 }
 0x359   : > { %6473 = vmatmul.mubr.bf16.vlgmr.msra.gmra.mxu1 %v1538_v38 }
 0x35a   : > { %6512 = vmatprep.mubr.msk.bf16.mxu1 %vm7539_vm0, %v7538_v0  ;;  %6497 = vmatpush3.bf16.msra.mxu1 %v7116_v47  ;;  %v7143_v47 = vld [vmem:[#allocation10 + $0x48] sm:$0xff]  }
 0x35b   : > { %6489 = vmatpush3.bf16.msra.mxu0 %v7114_v45  ;;  %6498 = vmatprep.subr.bf16.mxu1 %v7538_v0  ;;  %v7142_v45 = vld [vmem:[#allocation10 + $0x20] sm:$0xff]  }
 0x35c   : > { %6490 = vmatprep.subr.bf16.mxu0 %v7538_v0 }
 0x35e   : > { %6499 = vmatpush3.bf16.msra.mxu1 %v7117_v48  ;;  %v7144_v48 = vld [vmem:[#allocation10 + $0x18] sm:$0xff]  }
 0x35f   : > { %6491 = vmatpush3.bf16.msra.mxu0 %v7115_v46  ;;  %6500 = vmatprep.subr.bf16.mxu1 %v7538_v0 }
 0x360   : > { %6516 = vmatprep.subr.bf16.mxu0 %v7538_v0 }
 0x362   : > { %6501 = vmatpush3.bf16.msra.mxu1 %v7118_v50 }
 0x363   : > { %6502 = vmatprep.subr.bf16.mxu1 %v7538_v0 }
 0x366   : > { %6503 = vmatpush3.bf16.msra.mxu1 %v7120_v51  ;;  %v7145_v51 = vld [vmem:[#allocation10 + $0x40] sm:$0xff]  }
 0x367   : > { %6504 = vmatprep.subr.bf16.mxu1 %v7538_v0 }
 0x36a   : > { %6505 = vmatpush3.bf16.msra.mxu1 %v7122_v52  ;;  %v7146_v52 = vld [vmem:[#allocation10 + $0x10] sm:$0xff]  }
 0x36b   : > { %6506 = vmatprep.subr.bf16.mxu1 %v7538_v0 }
 0x36e   : > { %6507 = vmatpush3.bf16.msra.mxu1 %v7124_v13 }
 0x36f   : > { %6508 = vmatprep.subr.bf16.mxu1 %v7538_v0 }
 0x372   : > { %6509 = vmatpush3.bf16.msra.mxu1 %v7126_v16 }
 0x373   : > { %6510 = vmatprep.subr.bf16.mxu1 %v7538_v0 }
 0x376   : > { %6511 = vmatpush3.bf16.msra.mxu1 %v7128_v18 }
 0x377   : > { %6536 = vmatprep.subr.bf16.mxu1 %v7538_v0 }
 0x3f9   : > { %v1400_v53 = vpop.f32.mrf.mxu1 }
 0x3fb   : > { %v6434_v54 = vpop.f32.mrf.mxu1 }
 0x3fd   : > { %v1403_v55 = vpop.f32.mrf.mxu1 }
 0x3fe   : > { %v7147_v55 = vld [vmem:[#allocation10 + $0x8] sm:$0xff]  }
 0x3ff   : > { %v6435_v56 = vpop.f32.mrf.mxu1 }
 0x401   : > { %v1502_v57 = vpop.f32.mrf.mxu0 }
 0x402   : > { %v1503_v61 = vadd.f32 %v1502_v57, %v1400_v53  ;;  %v7148_v57 = vld [vmem:[#allocation10] sm:$0xff]  }
 0x403   : > { %v6454_v58 = vpop.f32.mrf.mxu0 }
 0x404   : > { %v7149_v58 = vld [vmem:[#allocation5 + $0x1f8] sm:$0xff]  }
 0x405   : > { %v1505_v59 = vpop.f32.mrf.mxu0 }
 0x406   : > { %v7150_v59 = vld [vmem:[#allocation5 + $0x1f0] sm:$0xff]  }
 0x407   : > { %v6455_v60 = vpop.f32.mrf.mxu0 }
 0x408   : > { %v7152_v60 = vld [vmem:[#allocation5 + $0x1b8] sm:$0xff]  }
 0x419   : > { %v1622_v63 = vpop.f32.mrf.mxu1 }
 0x41a   : > { %v1628_v1 = vadd.f32 %v1622_v63, %v1503_v61  ;;  %v7151_v61 = vld [vmem:[#allocation5 + $0x1e8] sm:$0xff]   ;;  %v7153_v63 = vld [vmem:[#allocation5 + $0x1e0] sm:$0xff]  }
 0x41b   : > { %v6474_v3 = vpop.f32.mrf.mxu1 }
 0x41c   : > { %v1633_v5 = vadd.f32 %v5703_v62, %v1628_v1  ;;  %v7154_v62 = vld [vmem:[#allocation5 + $0x1b0] sm:$0xff]   ;;  %v7156_v1 = vld [vmem:[#allocation5 + $0x1a8] sm:$0xff]   ;;  %v7155_v3 = vld [vmem:[#allocation5 + $0x1d8] sm:$0xff]  }
 0x41d   : > { %v1625_v6 = vpop.f32.mrf.mxu1 }
 0x41e   : > { %v1634_v7 = vmax.f32 %v1633_v5, 0.0  ;;  %v7158_v5 = vld [vmem:[#allocation5 + $0x1a0] sm:$0xff]   ;;  %v7157_v6 = vld [vmem:[#allocation5 + $0x1d0] sm:$0xff]  }
 0x41f   : > { %v6475_v8 = vpop.f32.mrf.mxu1 }
 0x420   : > { %v1635_v10 = vpack.c.bf16 %v1634_v7, %v1634_v7  ;;  %v7159_v7 = vld [vmem:[#allocation5 + $0x1c8] sm:$0xff]   ;;  %v7160_v8 = vld [vmem:[#allocation5 + $0x198] sm:$0xff]  }
 0x422   : > { %6493 = vmatmul.mubr.bf16.vlgmr.msra.gmra.mxu0 %v1635_v10  ;;  %v7161_v10 = vld [vmem:[#allocation5 + $0x1c0] sm:$0xff]  }
 0x423   : > { %6517 = vmatpush3.bf16.msra.mxu0 %v7119_v9  ;;  %6532 = vmatprep.mubr.msk.bf16.mxu0 %vm7539_vm0, %v7538_v0  ;;  %v7162_v9 = vld [vmem:[#allocation5 + $0x190] sm:$0xff]  }
 0x424   : > { %6518 = vmatprep.subr.bf16.mxu0 %v7538_v0 }
 0x427   : > { %6519 = vmatpush3.bf16.msra.mxu0 %v7121_v11  ;;  %v7164_v11 = vld [vmem:[#allocation5 + $0x188] sm:$0xff]  }
 0x428   : > { %6520 = vmatprep.subr.bf16.mxu0 %v7538_v0 }
 0x42b   : > { %6521 = vmatpush3.bf16.msra.mxu0 %v7123_v12  ;;  %v7166_v12 = vld [vmem:[#allocation5 + $0x180] sm:$0xff]  }
 0x42c   : > { %6522 = vmatprep.subr.bf16.mxu0 %v7538_v0 }
 0x42f   : > { %6523 = vmatpush3.bf16.msra.mxu0 %v7125_v14 }
 0x430   : > { %6524 = vmatprep.subr.bf16.mxu0 %v7538_v0 }
 0x433   : > { %6525 = vmatpush3.bf16.msra.mxu0 %v7127_v17 }
 0x434   : > { %6526 = vmatprep.subr.bf16.mxu0 %v7538_v0 }
 0x437   : > { %6527 = vmatpush3.bf16.msra.mxu0 %v7129_v19 }
 0x438   : > { %6528 = vmatprep.subr.bf16.mxu0 %v7538_v0 }
 0x43b   : > { %6529 = vmatpush3.bf16.msra.mxu0 %v7130_v20 }
 0x43c   : > { %6530 = vmatprep.subr.bf16.mxu0 %v7538_v0 }
 0x43f   : > { %6531 = vmatpush3.bf16.msra.mxu0 %v7132_v22  ;;  %v7541_v22 = vmov 1966171168  }
 0x440   : > { %6556 = vmatprep.subr.bf16.mxu0 %v7538_v0 }
 0x4e2   : > { %v1739_v24 = vpop.f32.mrf.mxu0 }
 0x4e3   : > { %v1740_v2 = vadd.f32 %v5704_v23, %v1739_v24  ;;  %v2204_v23 = vunpack.c.l.s4 %v7541_v22  ;;  %v2206_v24 = vlaneseq }
 0x4e4   : > { %v6494_v4 = vpop.f32.mrf.mxu0 }
 0x4e5   : > { %v1745_v25 = vadd.f32 %v1740_v2, %v7852_v15  ;;  %v5730_v4 = vld [vmem:[%s8315_s8 + $0x5] ss:$0 sm:$0xff] }
 0x4e6   : > { %v1742_v26 = vpop.f32.mrf.mxu0 }
 0x4e7   : > { %v1747_v27 = vpack.c.bf16 %v1745_v25, %v1745_v25  ;;  %v2205_v25 = vunpack.c.0.s8 %v2204_v23  ;;  %v2207_v26 = vshrl.u32 %v2206_v24, 7 }
 0x4e8   : > { %v6495_v28 = vpop.f32.mrf.mxu0 }
 0x4e9   : > { %1748 = vst [vmem:[#allocation2 + $0x4] sm:$0xf] %v1747_v27 }
 0x4f0   : > { %v7903_v30 = vld [vmem:[#allocation2 + $0x4] sm:$0xf] }
 0x4f1   : > { %6513 = vmatmul.mubr.bf16.vlgmr.msra.gmra.mxu1 %v7903_v30  ;;  %v5721_v31 = vcombine.low %v1749_v21, %v7903_v30  ;;  %v5731_v46 = vcombine.low %v7903_v30, %v1751_v43 }
 0x4f2   : > { %6537 = vmatpush3.bf16.msra.mxu1 %v7131_v29  ;;  %6552 = vmatprep.mubr.msk.bf16.mxu1 %vm7539_vm0, %v7538_v0 }
 0x4f3   : > { %6538 = vmatprep.subr.bf16.mxu1 %v7538_v0  ;;  %v1879_v33 = vshrl.u32 %v5721_v31, 16  ;;  %v1882_v15 = vshll.u32 %v5721_v31, 16  ;;  %v2019_v50 = vshll.u32 %v5731_v46, 16  ;;  %v2017_v54 = vshrl.u32 %v5731_v46, 16 }
 0x4f5   : > { %v1881_v34 = vrot.slane %v1879_v33, 3  ;;  %v1884_v35 = vrot.slane %v1882_v15, 4  ;;  %v2021_v53 = vrot.slane %v2019_v50, 1  ;;  %v7959_v50 = vsub.s32 0, %v2207_v26 }
 0x4f6   : > { %6539 = vmatpush3.bf16.msra.mxu1 %v7133_v32 }
 0x4f7   : > { %6540 = vmatprep.subr.bf16.mxu1 %v7538_v0  ;;  %v1885_v38 = vor.u32 %v1884_v35, %v1881_v34  ;;  %v2022_v56 = vor.u32 %v2021_v53, %v2017_v54  ;;  %v7542_v35 = vmov 1983009808  }
 0x4f9   : > { %6533 = vmatmul.mubr.bf16.vlgmr.msra.gmra.mxu0 %v1885_v38 }
 0x4fa   : > { %6541 = vmatpush3.bf16.msra.mxu1 %v7135_v36  ;;  %6557 = vmatpush3.bf16.msra.mxu0 %v7136_v37  ;;  %v2379_v36 = vunpack.c.l.s4 %v7542_v35 }
 0x4fb   : > { %6542 = vmatprep.subr.bf16.mxu1 %v7538_v0  ;;  %6558 = vmatprep.subr.bf16.mxu0 %v7538_v0 }
 0x4fc   : > { %6572 = vmatprep.mubr.msk.bf16.mxu0 %vm7539_vm0, %v7538_v0 }
 0x4fe   : > { %6543 = vmatpush3.bf16.msra.mxu1 %v7137_v39  ;;  %6559 = vmatpush3.bf16.msra.mxu0 %v7138_v40 }
 0x4ff   : > { %6544 = vmatprep.subr.bf16.mxu1 %v7538_v0  ;;  %6560 = vmatprep.subr.bf16.mxu0 %v7538_v0 }
 0x502   : > { %6545 = vmatpush3.bf16.msra.mxu1 %v7139_v41  ;;  %6561 = vmatpush3.bf16.msra.mxu0 %v7140_v42  ;;  %v2380_v42 = vunpack.c.0.s8 %v2379_v36 }
 0x503   : > { %6546 = vmatprep.subr.bf16.mxu1 %v7538_v0  ;;  %6562 = vmatprep.subr.bf16.mxu0 %v7538_v0 }
 0x506   : > { %6547 = vmatpush3.bf16.msra.mxu1 %v7141_v44  ;;  %6563 = vmatpush3.bf16.msra.mxu0 %v7142_v45 }
 0x507   : > { %6548 = vmatprep.subr.bf16.mxu1 %v7538_v0  ;;  %6564 = vmatprep.subr.bf16.mxu0 %v7538_v0 }
 0x50a   : > { %6549 = vmatpush3.bf16.msra.mxu1 %v7143_v47  ;;  %6565 = vmatpush3.bf16.msra.mxu0 %v7144_v48 }
 0x50b   : > { %6550 = vmatprep.subr.bf16.mxu1 %v7538_v0  ;;  %6566 = vmatprep.subr.bf16.mxu0 %v7538_v0 }
 0x50e   : > { %6551 = vmatpush3.bf16.msra.mxu1 %v7145_v51  ;;  %6567 = vmatpush3.bf16.msra.mxu0 %v7146_v52 }
 0x50f   : > { %6568 = vmatprep.subr.bf16.mxu0 %v7538_v0  ;;  %6576 = vmatprep.subr.bf16.mxu1 %v7538_v0 }
 0x511   : > { %6553 = vmatmul.mubr.bf16.vlgmr.msra.gmra.mxu1 %v2022_v56  ;;  %v7964_v56 = vsub.s32 %v2380_v42, %v2207_v26 }
 0x512   : > { %6569 = vmatpush3.bf16.msra.mxu0 %v7147_v55  ;;  %6592 = vmatprep.mubr.msk.bf16.mxu1 %vm7539_vm0, %v7538_v0 }
 0x513   : > { %6570 = vmatprep.subr.bf16.mxu0 %v7538_v0  ;;  %6577 = vmatpush3.bf16.msra.mxu1 %v7149_v58 }
 0x514   : > { %6578 = vmatprep.subr.bf16.mxu1 %v7538_v0 }
 0x516   : > { %6571 = vmatpush3.bf16.msra.mxu0 %v7148_v57 }
 0x517   : > { %6596 = vmatprep.subr.bf16.mxu0 %v7538_v0  ;;  %6579 = vmatpush3.bf16.msra.mxu1 %v7150_v59 }
 0x518   : > { %6580 = vmatprep.subr.bf16.mxu1 %v7538_v0 }
 0x519   : > { %6573 = vmatmul.mubr.bf16.vlgmr.msra.gmra.mxu0 %v7903_v30  ;;  %v7952_v30 = vsub.s32 %v2205_v25, %v2207_v26 }
 0x51a   : > { %6612 = vmatprep.mubr.msk.bf16.mxu0 %vm7539_vm0, %v7538_v0  ;;  %6597 = vmatpush3.bf16.msra.mxu0 %v7152_v60 }
 0x51b   : > { %6581 = vmatpush3.bf16.msra.mxu1 %v7151_v61  ;;  %6598 = vmatprep.subr.bf16.mxu0 %v7538_v0 }
 0x51c   : > { %6582 = vmatprep.subr.bf16.mxu1 %v7538_v0 }
 0x51e   : > { %6599 = vmatpush3.bf16.msra.mxu0 %v7154_v62 }
 0x51f   : > { %6583 = vmatpush3.bf16.msra.mxu1 %v7153_v63  ;;  %6600 = vmatprep.subr.bf16.mxu0 %v7538_v0 }
 0x520   : > { %6584 = vmatprep.subr.bf16.mxu1 %v7538_v0 }
 0x522   : > { %6601 = vmatpush3.bf16.msra.mxu0 %v7156_v1 }
 0x523   : > { %6585 = vmatpush3.bf16.msra.mxu1 %v7155_v3  ;;  %6602 = vmatprep.subr.bf16.mxu0 %v7538_v0 }
 0x524   : > { %6586 = vmatprep.subr.bf16.mxu1 %v7538_v0 }
 0x526   : > { %6603 = vmatpush3.bf16.msra.mxu0 %v7158_v5 }
 0x527   : > { %6587 = vmatpush3.bf16.msra.mxu1 %v7157_v6  ;;  %6604 = vmatprep.subr.bf16.mxu0 %v7538_v0 }
 0x528   : > { %6588 = vmatprep.subr.bf16.mxu1 %v7538_v0 }
 0x52a   : > { %6605 = vmatpush3.bf16.msra.mxu0 %v7160_v8 }
 0x52b   : > { %6589 = vmatpush3.bf16.msra.mxu1 %v7159_v7  ;;  %6606 = vmatprep.subr.bf16.mxu0 %v7538_v0 }
 0x52c   : > { %6590 = vmatprep.subr.bf16.mxu1 %v7538_v0 }
 0x52e   : > { %6607 = vmatpush3.bf16.msra.mxu0 %v7162_v9 }
 0x52f   : > { %6591 = vmatpush3.bf16.msra.mxu1 %v7161_v10  ;;  %6608 = vmatprep.subr.bf16.mxu0 %v7538_v0 }
 0x530   : > { %6616 = vmatprep.subr.bf16.mxu1 %v7538_v0 }
 0x532   : > { %6609 = vmatpush3.bf16.msra.mxu0 %v7164_v11 }
 0x533   : > { %6610 = vmatprep.subr.bf16.mxu0 %v7538_v0 }
 0x536   : > { %6611 = vmatpush3.bf16.msra.mxu0 %v7166_v12 }
 0x537   : > { %6636 = vmatprep.subr.bf16.mxu0 %v7538_v0 }
 0x5b1   : > { %v1867_v13 = vpop.f32.mrf.mxu1 }
 0x5b3   : > { %v6514_v14 = vpop.f32.mrf.mxu1 }
 0x5b5   : > { %v1870_v16 = vpop.f32.mrf.mxu1 }
 0x5b7   : > { %v6515_v17 = vpop.f32.mrf.mxu1 }
 0x5b9   : > { %v1969_v18 = vpop.f32.mrf.mxu0 }
 0x5ba   : > { %v1970_v2 = vadd.f32 %v1969_v18, %v1867_v13 }
 0x5bb   : > { %v6534_v19 = vpop.f32.mrf.mxu0 }
 0x5bc   : > { %v1979_v28 = vadd.f32 %v5730_v4, %v1970_v2 }
 0x5bd   : > { %v1972_v20 = vpop.f32.mrf.mxu0 }
 0x5be   : > { %v2202_v32 = vcombine.high %v1979_v28, %v1979_v28  ;;  %v2209_v15 = vrot.slane %v1979_v28, %v7952_v30 }
 0x5bf   : > { %v6535_v21 = vpop.f32.mrf.mxu0 }
 0x5c0   : > { %v2216_v38 = vrot.slane %v2202_v32, %v7952_v30  ;;  %v2217_v41 = vcombine.high %v2209_v15, %v2209_v15  ;;  %v2225_v47 = vrot.slane %v2209_v15, %v7952_v30 }
 0x5c2   : > { %v2218_v46 = vcombine.high %v2216_v38, %v2216_v38  ;;  %v2232_v48 = vrot.slane %v2216_v38, %v7952_v30  ;;  %v2239_v55 = vrot.slane %v2217_v41, %v7952_v30  ;;  %v2247_v62 = vcombine.high %v2225_v47, %v2225_v47 }
 0x5c4   : > { %v2246_v61 = vrot.slane %v2218_v46, %v7952_v30  ;;  %v2248_v63 = vcombine.high %v2232_v48, %v2232_v48  ;;  %v2249_v8 = vcombine.high %v2239_v55, %v2239_v55  ;;  %v7165_v46 = vld [vmem:[#allocation5 + $0x238] sm:$0xff]  }
 0x5c6   : > { %v2250_v17 = vcombine.high %v2246_v61, %v2246_v61 }
 0x5d1   : > { %v2106_v27 = vpop.f32.mrf.mxu1 }
 0x5d3   : > { %v6554_v29 = vpop.f32.mrf.mxu1 }
 0x5d5   : > { %v2109_v31 = vpop.f32.mrf.mxu1 }
 0x5d7   : > { %v6555_v33 = vpop.f32.mrf.mxu1 }
 0x5d9   : > { %v2194_v34 = vpop.f32.mrf.mxu0 }
 0x5da   : > { %v2195_v37 = vadd.f32 %v2194_v34, %v2106_v27 }
 0x5db   : > { %v6574_v39 = vpop.f32.mrf.mxu0 }
 0x5dc   : > { %v2200_v40 = vadd.f32 %v5730_v4, %v2195_v37 }
 0x5dd   : > { %v2197_v43 = vpop.f32.mrf.mxu0 }
 0x5de   : > { %v2260_v44 = vcombine.high %v2200_v40, %v2200_v40  ;;  %v2267_v45 = vrot.slane %v2200_v40, %v7952_v30 }
 0x5df   : > { %v6575_v51 = vpop.f32.mrf.mxu0 }
 0x5e0   : > { %v2274_v52 = vrot.slane %v2260_v44, %v7952_v30  ;;  %v2275_v53 = vcombine.high %v2267_v45, %v2267_v45  ;;  %v2283_v54 = vrot.slane %v2267_v45, %v7952_v30  ;;  %v2424_v44 = vld [vmem:[#allocation2] sm:$0xc] }
 0x5e2   : > { %v2276_v57 = vcombine.high %v2274_v52, %v2274_v52  ;;  %v2290_v58 = vrot.slane %v2274_v52, %v7952_v30  ;;  %v2297_v59 = vrot.slane %v2275_v53, %v7952_v30  ;;  %v2305_v60 = vcombine.high %v2283_v54, %v2283_v54 }
 0x5e3   : > { %v2312_v1 = vrot.slane %v2283_v54, %v7959_v50 }
 0x5e4   : > { %v2304_v3 = vrot.slane %v2276_v57, %v7952_v30  ;;  %v2306_v5 = vcombine.high %v2290_v58, %v2290_v58  ;;  %v2307_v6 = vcombine.high %v2297_v59, %v2297_v59  ;;  %v2316_v7 = vrot.slane %v2297_v59, %v7959_v50 }
 0x5e5   : > { %v2320_v9 = vrot.slane %v2305_v60, %v7959_v50  ;;  %v2328_v10 = vrot.slane %v2290_v58, %v7959_v50  ;;  %v7975_v11 = vsel %vm2349_vm1, %v2225_v47, %v2312_v1  ;;  %v7167_v60 = vld [vmem:[#allocation5 + $0x230] sm:$0xff]  }
 0x5e6   : > { %v2308_v12 = vcombine.high %v2304_v3, %v2304_v3  ;;  %v2324_v13 = vrot.slane %v2307_v6, %v7959_v50  ;;  %v2332_v14 = vrot.slane %v2304_v3, %v7959_v50  ;;  %v2336_v16 = vrot.slane %v2306_v5, %v7959_v50  ;;  %v7170_v3 = vld [vmem:[#allocation5 + $0x228] sm:$0xff]   ;;  %v7171_v6 = vld [vmem:[#allocation5 + $0x220] sm:$0xff]  }
 0x5e7   : > { %v7981_v18 = vsel %vm2349_vm1, %v2239_v55, %v2316_v7  ;;  %v7984_v19 = vsel %vm2349_vm1, %v2247_v62, %v2320_v9  ;;  %v7987_v20 = vsel %vm2349_vm1, %v2232_v48, %v2328_v10  ;;  %v2360_v2 = vmax.f32 %v7975_v11, 0.0  ;;  %v7172_v7 = vld [vmem:[#allocation5 + $0x218] sm:$0xff]   ;;  %v7177_v9 = vld [vmem:[#allocation2 + $0xc] ss:$0 sps:$4 sm:$0x33]  }
 0x5e8   : > { %v2340_v21 = vrot.slane %v2308_v12, %v7959_v50  ;;  %v7991_v22 = vsel %vm2349_vm1, %v2249_v8, %v2324_v13  ;;  %v7994_v23 = vsel %vm2349_vm1, %v2246_v61, %v2332_v14  ;;  %v7997_v24 = vsel %vm2349_vm1, %v2248_v63, %v2336_v16  ;;  %v7173_v10 = vld [vmem:[#allocation5 + $0x210] sm:$0xff]  }
 0x5e9   : > { %v2361_v4 = vmax.f32 %v7981_v18, 0.0  ;;  %v2362_v25 = vmax.f32 %v7984_v19, 0.0  ;;  %v2363_v26 = vmax.f32 %v7991_v22, 0.0  ;;  %v2364_v28 = vmax.f32 %v7987_v20, 0.0 }
 0x5ea   : > { %v8004_v27 = vsel %vm2349_vm1, %v2250_v17, %v2340_v21  ;;  %v2365_v29 = vmax.f32 %v7994_v23, 0.0  ;;  %v2366_v31 = vmax.f32 %v7997_v24, 0.0  ;;  %v2709_v14 = vshrl.u32 %v7177_v9, 16  ;;  %v7174_v17 = vld [vmem:[#allocation5 + $0x208] sm:$0xff]  }
 0x5eb   : > { %v2367_v32 = vmax.f32 %v8004_v27, 0.0  ;;  %v2376_v33 = vcombine.low %v2360_v2, %v2361_v4  ;;  %v2377_v15 = vcombine.low %v2362_v25, %v2363_v26  ;;  %v2712_v16 = vshll.u32 %v7177_v9, 16  ;;  %v7175_v26 = vld [vmem:[#allocation5 + $0x200] sm:$0xff]   ;;  %v7192_v9 = vld [vmem:[#allocation5 + $0x298] sm:$0xff]  }
 0x5ec   : > { %v2393_v34 = vcombine.low %v2364_v28, %v2365_v29  ;;  %v2711_v4 = vrot.slane %v2709_v14, 1  ;;  %v7196_v14 = vld [vmem:[#allocation5 + $0x288] sm:$0xff]  }
 0x5ed   : > { %v2384_v35 = vrot.slane %v2376_v33, %v7964_v56  ;;  %v2391_v36 = vrot.slane %v2377_v15, %v7964_v56  ;;  %v2394_v37 = vcombine.low %v2366_v31, %v2367_v32  ;;  %v2714_v25 = vrot.slane %v2712_v16, 2  ;;  %v7178_v32 = vld [vmem:[#allocation7 + $0xb8] sm:$0xff]   ;;  %v7179_v33 = vld [vmem:[#allocation7 + $0xb0] sm:$0xff]   ;;  %v7180_v15 = vld [vmem:[#allocation7 + $0xa8] sm:$0xff]  }
 0x5ee   : > { %v2401_v39 = vrot.slane %v2393_v34, %v7964_v56  ;;  %v7181_v34 = vld [vmem:[#allocation7 + $0xa0] sm:$0xff]   ;;  %v7197_v16 = vld [vmem:[#allocation5 + $0x258] sm:$0xff]  }
 0x5ef   : > { %v2392_v38 = vcombine.low %v2384_v35, %v2391_v36  ;;  %v2408_v40 = vrot.slane %v2394_v37, %v7964_v56  ;;  %v2715_v29 = vor.u32 %v2714_v25, %v2711_v4  ;;  %v7182_v35 = vld [vmem:[#allocation7 + $0x98] sm:$0xff]   ;;  %v7183_v36 = vld [vmem:[#allocation7 + $0x90] sm:$0xff]   ;;  %v7184_v37 = vld [vmem:[#allocation7 + $0x88] sm:$0xff]  }
 0x5f0   : > { %v7203_v4 = vld [vmem:[#allocation5 + $0x240] sm:$0xff]   ;;  %v5780_v25 = vld [vmem:[%s8315_s8 + $0x7] ss:$0 sm:$0xff] }
 0x5f1   : > { %v2409_v41 = vcombine.low %v2401_v39, %v2408_v40  ;;  %v5947_v42 = vpack.c.bf16 %v2392_v38, %v2392_v38  ;;  %v7185_v38 = vld [vmem:[#allocation7 + $0x80] sm:$0xff]  }
 0x5f3   : > { %v5948_v43 = vpack.c.bf16 %v2409_v41, %v2409_v41  ;;  %2422 = vst [vmem:[#allocation2 + $0x4] sm:$0xf] %v5947_v42 }
 0x5f5   : > { %2423 = vst [vmem:[#allocation2 + $0x8] sm:$0xf] %v5948_v43 }
 0x5fa   : > { %v2425_v45 = vld [vmem:[#allocation2 + $0x4] sm:$0xf] }
 0x5fb   : > { %v5759_v47 = vcombine.low %v2424_v44, %v2425_v45 }
 0x5fc   : > { %v2444_v48 = vld [vmem:[#allocation2 + $0x8] sm:$0xf] }
 0x5fd   : > { %v5750_v51 = vcombine.low %v2425_v45, %v2444_v48  ;;  %v7169_v52 = vld [vmem:[#allocation2 + $0x8] ss:$0 sps:$4 sm:$0x77]   ;;  %v2565_v53 = vshrl.u32 %v5759_v47, 16  ;;  %v2568_v54 = vshll.u32 %v5759_v47, 16 }
 0x5fe   : > { %v2573_v58 = vshrl.u32 %v7169_v52, 16  ;;  %v2576_v59 = vshll.u32 %v7169_v52, 16  ;;  %v7176_v8 = vld [vmem:[#allocation2 + $0x4] sm:$0xfe]  }
 0x5ff   : > { %6593 = vmatmul.mubr.bf16.vlgmr.msra.gmra.mxu1 %v5750_v51  ;;  %v2567_v55 = vrot.slane %v2565_v53, 2  ;;  %v2570_v57 = vrot.slane %v2568_v54, 3  ;;  %v2701_v12 = vshrl.u32 %v7176_v8, 16  ;;  %v2704_v13 = vshll.u32 %v7176_v8, 16  ;;  %v5779_v52 = vld [vmem:[%s8315_s8 + $0x6] ss:$0 sm:$0xff] }
 0x600   : > { %6617 = vmatpush3.bf16.msra.mxu1 %v7165_v46  ;;  %6632 = vmatprep.mubr.msk.bf16.mxu1 %vm7539_vm0, %v7538_v0  ;;  %v2575_v62 = vrot.slane %v2573_v58, 2  ;;  %v2578_v63 = vrot.slane %v2576_v59, 3  ;;  %v7191_v8 = vld [vmem:[#allocation5 + $0x270] sm:$0xff]  }
 0x601   : > { %6618 = vmatprep.subr.bf16.mxu1 %v7538_v0  ;;  %v2571_v61 = vor.u32 %v2570_v57, %v2567_v55  ;;  %v2703_v21 = vrot.slane %v2701_v12, 1  ;;  %v2706_v2 = vrot.slane %v2704_v13, 2  ;;  %v7194_v12 = vld [vmem:[#allocation5 + $0x290] sm:$0xff]   ;;  %v7195_v13 = vld [vmem:[#allocation5 + $0x260] sm:$0xff]  }
 0x602   : > { %v2579_v1 = vor.u32 %v2578_v63, %v2575_v62 }
 0x603   : > { %v2707_v28 = vor.u32 %v2706_v2, %v2703_v21  ;;  %v7199_v21 = vld [vmem:[#allocation5 + $0x250] sm:$0xff]   ;;  %v7201_v2 = vld [vmem:[#allocation5 + $0x248] sm:$0xff]  }
 0x604   : > { %6619 = vmatpush3.bf16.msra.mxu1 %v7167_v60  ;;  %v2580_v5 = vsel %vm2563_vm2, %v2571_v61, %v2579_v1  ;;  %v7186_v1 = vld [vmem:[#allocation5 + $0x2b8] sm:$0xff]  }
 0x605   : > { %6620 = vmatprep.subr.bf16.mxu1 %v7538_v0  ;;  %6613 = vmatmul.mubr.bf16.vlgmr.msra.gmra.mxu0 %v2580_v5  ;;  %v2716_v31 = vsel %vm2699_vm3, %v2707_v28, %v2715_v29  ;;  %v7188_v5 = vld [vmem:[#allocation5 + $0x2a8] sm:$0xff]  }
 0x606   : > { %6652 = vmatprep.mubr.msk.bf16.mxu0 %vm7539_vm0, %v7538_v0  ;;  %6637 = vmatpush3.bf16.msra.mxu0 %v7178_v32 }
 0x607   : > { %6638 = vmatprep.subr.bf16.mxu0 %v7538_v0 }
 0x608   : > { %6621 = vmatpush3.bf16.msra.mxu1 %v7170_v3  ;;  %v7187_v3 = vld [vmem:[#allocation5 + $0x2b0] sm:$0xff]  }
 0x609   : > { %6622 = vmatprep.subr.bf16.mxu1 %v7538_v0 }
 0x60a   : > { %6639 = vmatpush3.bf16.msra.mxu0 %v7179_v33 }
 0x60b   : > { %6640 = vmatprep.subr.bf16.mxu0 %v7538_v0 }
 0x60c   : > { %6623 = vmatpush3.bf16.msra.mxu1 %v7171_v6  ;;  %v7189_v6 = vld [vmem:[#allocation5 + $0x278] sm:$0xff]  }
 0x60d   : > { %6624 = vmatprep.subr.bf16.mxu1 %v7538_v0 }
 0x60e   : > { %6641 = vmatpush3.bf16.msra.mxu0 %v7180_v15 }
 0x60f   : > { %6642 = vmatprep.subr.bf16.mxu0 %v7538_v0 }
 0x610   : > { %6625 = vmatpush3.bf16.msra.mxu1 %v7172_v7  ;;  %v7190_v7 = vld [vmem:[#allocation5 + $0x2a0] sm:$0xff]  }
 0x611   : > { %6626 = vmatprep.subr.bf16.mxu1 %v7538_v0 }
 0x612   : > { %6643 = vmatpush3.bf16.msra.mxu0 %v7181_v34 }
 0x613   : > { %6644 = vmatprep.subr.bf16.mxu0 %v7538_v0 }
 0x614   : > { %6627 = vmatpush3.bf16.msra.mxu1 %v7173_v10  ;;  %v7193_v10 = vld [vmem:[#allocation5 + $0x268] sm:$0xff]  }
 0x615   : > { %6628 = vmatprep.subr.bf16.mxu1 %v7538_v0 }
 0x616   : > { %6645 = vmatpush3.bf16.msra.mxu0 %v7182_v35 }
 0x617   : > { %6646 = vmatprep.subr.bf16.mxu0 %v7538_v0 }
 0x618   : > { %6629 = vmatpush3.bf16.msra.mxu1 %v7174_v17  ;;  %v7198_v17 = vld [vmem:[#allocation5 + $0x280] sm:$0xff]  }
 0x619   : > { %6630 = vmatprep.subr.bf16.mxu1 %v7538_v0 }
 0x61a   : > { %6647 = vmatpush3.bf16.msra.mxu0 %v7183_v36 }
 0x61b   : > { %6648 = vmatprep.subr.bf16.mxu0 %v7538_v0 }
 0x61c   : > { %6631 = vmatpush3.bf16.msra.mxu1 %v7175_v26 }
 0x61d   : > { %6656 = vmatprep.subr.bf16.mxu1 %v7538_v0 }
 0x61e   : > { %6649 = vmatpush3.bf16.msra.mxu0 %v7184_v37 }
 0x61f   : > { %6633 = vmatmul.mubr.bf16.vlgmr.msra.gmra.mxu1 %v2716_v31  ;;  %6650 = vmatprep.subr.bf16.mxu0 %v7538_v0 }
 0x620   : > { %6672 = vmatprep.mubr.msk.bf16.mxu1 %vm7539_vm0, %v7538_v0  ;;  %6657 = vmatpush3.bf16.msra.mxu1 %v7186_v1 }
 0x621   : > { %6658 = vmatprep.subr.bf16.mxu1 %v7538_v0 }
 0x622   : > { %6651 = vmatpush3.bf16.msra.mxu0 %v7185_v38 }
 0x623   : > { %6676 = vmatprep.subr.bf16.mxu0 %v7538_v0 }
 0x624   : > { %6659 = vmatpush3.bf16.msra.mxu1 %v7187_v3 }
 0x625   : > { %6660 = vmatprep.subr.bf16.mxu1 %v7538_v0 }
 0x628   : > { %6661 = vmatpush3.bf16.msra.mxu1 %v7188_v5  ;;  %v3044_v5 = vld [vmem:[#allocation2] sm:$0x8] }
 0x629   : > { %6662 = vmatprep.subr.bf16.mxu1 %v7538_v0 }
 0x62c   : > { %6663 = vmatpush3.bf16.msra.mxu1 %v7190_v7 }
 0x62d   : > { %6664 = vmatprep.subr.bf16.mxu1 %v7538_v0 }
 0x630   : > { %6665 = vmatpush3.bf16.msra.mxu1 %v7192_v9 }
 0x631   : > { %6666 = vmatprep.subr.bf16.mxu1 %v7538_v0 }
 0x634   : > { %6667 = vmatpush3.bf16.msra.mxu1 %v7194_v12  ;;  %v7202_v12 = vld [vmem:[#allocation5 + $0x2f8] sm:$0xff]  }
 0x635   : > { %6668 = vmatprep.subr.bf16.mxu1 %v7538_v0 }
 0x638   : > { %6669 = vmatpush3.bf16.msra.mxu1 %v7196_v14 }
 0x639   : > { %6670 = vmatprep.subr.bf16.mxu1 %v7538_v0 }
 0x63c   : > { %6671 = vmatpush3.bf16.msra.mxu1 %v7198_v17 }
 0x63d   : > { %6696 = vmatprep.subr.bf16.mxu1 %v7538_v0 }
 0x6bf   : > { %v2550_v39 = vpop.f32.mrf.mxu1 }
 0x6c1   : > { %v6594_v40 = vpop.f32.mrf.mxu1 }
 0x6c3   : > { %v2553_v41 = vpop.f32.mrf.mxu1 }
 0x6c5   : > { %v6595_v42 = vpop.f32.mrf.mxu1  ;;  %v2664_v43 = vpop.f32.mrf.mxu0 }
 0x6c6   : > { %v2665_v47 = vadd.f32 %v2664_v43, %v2550_v39 }
 0x6c7   : > { %v6614_v44 = vpop.f32.mrf.mxu0 }
 0x6c9   : > { %v2667_v45 = vpop.f32.mrf.mxu0 }
 0x6ca   : > { %v2668_v54 = vadd.f32 %v2667_v45, %v2553_v41 }
 0x6cb   : > { %v6615_v46 = vpop.f32.mrf.mxu0 }
 0x6df   : > { %v2800_v48 = vpop.f32.mrf.mxu1 }
 0x6e0   : > { %v2807_v51 = vadd.f32 %v2800_v48, %v2665_v47 }
 0x6e1   : > { %v6634_v53 = vpop.f32.mrf.mxu1 }
 0x6e2   : > { %v2813_v57 = vadd.f32 %v5779_v52, %v2807_v51 }
 0x6e3   : > { %v2803_v55 = vpop.f32.mrf.mxu1 }
 0x6e4   : > { %v2808_v58 = vadd.f32 %v2803_v55, %v2668_v54  ;;  %v2815_v61 = vmax.f32 %v2813_v57, 0.0 }
 0x6e5   : > { %v6635_v59 = vpop.f32.mrf.mxu1 }
 0x6e6   : > { %v2814_v60 = vadd.f32 %v5779_v52, %v2808_v58 }
 0x6e8   : > { %v2816_v62 = vmax.f32 %v2814_v60, 0.0 }
 0x6ea   : > { %v2817_v63 = vpack.c.bf16 %v2816_v62, %v2815_v61 }
 0x6ec   : > { %6653 = vmatmul.mubr.bf16.vlgmr.msra.gmra.mxu0 %v2817_v63 }
 0x6ed   : > { %6692 = vmatprep.mubr.msk.bf16.mxu0 %vm7539_vm0, %v7538_v0  ;;  %6677 = vmatpush3.bf16.msra.mxu0 %v7189_v6 }
 0x6ee   : > { %6678 = vmatprep.subr.bf16.mxu0 %v7538_v0 }
 0x6f1   : > { %6679 = vmatpush3.bf16.msra.mxu0 %v7191_v8 }
 0x6f2   : > { %6680 = vmatprep.subr.bf16.mxu0 %v7538_v0 }
 0x6f5   : > { %6681 = vmatpush3.bf16.msra.mxu0 %v7193_v10 }
 0x6f6   : > { %6682 = vmatprep.subr.bf16.mxu0 %v7538_v0 }
 0x6f9   : > { %6683 = vmatpush3.bf16.msra.mxu0 %v7195_v13 }
 0x6fa   : > { %6684 = vmatprep.subr.bf16.mxu0 %v7538_v0 }
 0x6fd   : > { %6685 = vmatpush3.bf16.msra.mxu0 %v7197_v16 }
 0x6fe   : > { %6686 = vmatprep.subr.bf16.mxu0 %v7538_v0 }
 0x701   : > { %6687 = vmatpush3.bf16.msra.mxu0 %v7199_v21 }
 0x702   : > { %6688 = vmatprep.subr.bf16.mxu0 %v7538_v0 }
 0x705   : > { %6689 = vmatpush3.bf16.msra.mxu0 %v7201_v2 }
 0x706   : > { %6690 = vmatprep.subr.bf16.mxu0 %v7538_v0 }
 0x709   : > { %6691 = vmatpush3.bf16.msra.mxu0 %v7203_v4  ;;  %v7204_v4 = vld [vmem:[#allocation5 + $0x2f0] sm:$0xff]  }
 0x70a   : > { %6716 = vmatprep.subr.bf16.mxu0 %v7538_v0 }
 0x7ac   : > { %v2921_v26 = vpop.f32.mrf.mxu0 }
 0x7ad   : > { %v2922_v28 = vadd.f32 %v5780_v25, %v2921_v26 }
 0x7ae   : > { %v6654_v29 = vpop.f32.mrf.mxu0 }
 0x7af   : > { %v2930_v31 = vcombine.high %v2922_v28, %v2922_v28  ;;  %v2937_v32 = vrot.slane %v2922_v28, %v7964_v56 }
 0x7b0   : > { %v2924_v33 = vpop.f32.mrf.mxu0 }
 0x7b1   : > { %v2944_v15 = vrot.slane %v2930_v31, %v7964_v56  ;;  %v2945_v34 = vcombine.high %v2937_v32, %v2937_v32  ;;  %v8063_v35 = vadd.f32 %v2937_v32, %v7975_v11  ;;  %v2925_v36 = vadd.f32 %v5780_v25, %v2924_v33  ;;  %v7207_v31 = vld [vmem:[#allocation5 + $0x2e8] sm:$0xff]   ;;  %v7208_v33 = vld [vmem:[#allocation5 + $0x2e0] sm:$0xff]  }
 0x7b2   : > { %v6655_v37 = vpop.f32.mrf.mxu0 }
 0x7b3   : > { %v2946_v38 = vcombine.high %v2944_v15, %v2944_v15  ;;  %v8066_v39 = vadd.f32 %v2945_v34, %v7981_v18  ;;  %v8069_v40 = vadd.f32 %v2944_v15, %v7984_v19  ;;  %v2947_v41 = vcombine.high %v2925_v36, %v2925_v36  ;;  %v7209_v15 = vld [vmem:[#allocation5 + $0x2d8] sm:$0xff]   ;;  %v7214_v37 = vld [vmem:[#allocation2 + $0xc] ss:$0 sps:$4 sm:$0x11]  }
 0x7b4   : > { %v2954_v42 = vrot.slane %v2925_v36, %v7964_v56  ;;  %v2982_v44 = vmax.f32 %v8063_v35, 0.0  ;;  %v7210_v36 = vld [vmem:[#allocation5 + $0x2d0] sm:$0xff]  }
 0x7b5   : > { %v8073_v43 = vadd.f32 %v2946_v38, %v7991_v22  ;;  %v2983_v11 = vmax.f32 %v8066_v39, 0.0  ;;  %v2961_v45 = vrot.slane %v2947_v41, %v7964_v56  ;;  %v2984_v18 = vmax.f32 %v8069_v40, 0.0  ;;  %v7211_v41 = vld [vmem:[#allocation5 + $0x2c8] sm:$0xff]  }
 0x7b6   : > { %v2962_v46 = vcombine.high %v2954_v42, %v2954_v42  ;;  %v8079_v47 = vadd.f32 %v2954_v42, %v7987_v20 }
 0x7b7   : > { %v2985_v19 = vmax.f32 %v8073_v43, 0.0  ;;  %v2998_v48 = vcombine.low %v2982_v44, %v2983_v11  ;;  %v2963_v51 = vcombine.high %v2961_v45, %v2961_v45  ;;  %v8087_v22 = vadd.f32 %v2961_v45, %v7997_v24  ;;  %v7212_v11 = vld [vmem:[#allocation5 + $0x2c0] sm:$0xff]  }
 0x7b8   : > { %v8084_v52 = vadd.f32 %v2962_v46, %v7994_v23  ;;  %v2986_v55 = vmax.f32 %v8079_v47, 0.0  ;;  %v3325_v44 = vshll.u32 %v7214_v37, 16  ;;  %v7234_v37 = vld [vmem:[#allocation8 + $0xc8] sm:$0xff]  }
 0x7b9   : > { %v2999_v53 = vcombine.low %v2984_v18, %v2985_v19  ;;  %v8090_v54 = vadd.f32 %v2963_v51, %v8004_v27  ;;  %v3006_v57 = vrot.slane %v2998_v48, %v7964_v56  ;;  %v2988_v59 = vmax.f32 %v8087_v22, 0.0  ;;  %v7215_v48 = vld [vmem:[#allocation7 + $0xf8] sm:$0xff]   ;;  %v7216_v51 = vld [vmem:[#allocation7 + $0xf0] sm:$0xff]  }
 0x7ba   : > { %v2987_v20 = vmax.f32 %v8084_v52, 0.0  ;;  %v3327_v18 = vrot.slane %v3325_v44, 1  ;;  %v7237_v44 = vld [vmem:[#allocation8 + $0x88] sm:$0xff]  }
 0x7bb   : > { %v3013_v58 = vrot.slane %v2999_v53, %v7964_v56  ;;  %v2989_v23 = vmax.f32 %v8090_v54, 0.0  ;;  %v7217_v53 = vld [vmem:[#allocation7 + $0xe8] sm:$0xff]  }
 0x7bc   : > { %v3015_v60 = vcombine.low %v2986_v55, %v2987_v20  ;;  %v7218_v55 = vld [vmem:[#allocation7 + $0xe0] sm:$0xff]   ;;  %v7219_v20 = vld [vmem:[#allocation7 + $0xd8] sm:$0xff]  }
 0x7bd   : > { %v3014_v61 = vcombine.low %v3006_v57, %v3013_v58  ;;  %v3016_v24 = vcombine.low %v2988_v59, %v2989_v23  ;;  %v7220_v57 = vld [vmem:[#allocation7 + $0xd0] sm:$0xff]   ;;  %v7221_v58 = vld [vmem:[#allocation7 + $0xc8] sm:$0xff]   ;;  %v7222_v59 = vld [vmem:[#allocation7 + $0xc0] sm:$0xff]  }
 0x7be   : > { %v3023_v63 = vrot.slane %v3015_v60, %v7964_v56 }
 0x7bf   : > { %v5949_v62 = vpack.c.bf16 %v3014_v61, %v3014_v61  ;;  %v3030_v27 = vrot.slane %v3016_v24, %v7964_v56 }
 0x7c1   : > { %3042 = vst [vmem:[#allocation2 + $0x4] sm:$0xf] %v5949_v62  ;;  %v3031_v1 = vcombine.low %v3023_v63, %v3030_v27 }
 0x7c3   : > { %v5950_v3 = vpack.c.bf16 %v3031_v1, %v3031_v1 }
 0x7c5   : > { %3043 = vst [vmem:[#allocation2 + $0x8] sm:$0xf] %v5950_v3 }
 0x7c8   : > { %v3045_v6 = vld [vmem:[#allocation2 + $0x4] sm:$0xf] }
 0x7c9   : > { %v5800_v7 = vcombine.low %v3044_v5, %v3045_v6 }
 0x7cb   : > { %v3182_v8 = vshrl.u32 %v5800_v7, 16  ;;  %v3185_v9 = vshll.u32 %v5800_v7, 16  ;;  %v5820_v7 = vld [vmem:[%s8315_s8 + $0x8] ss:$0 sm:$0xff] }
 0x7cc   : > { %v3046_v10 = vld [vmem:[#allocation2 + $0x8] sm:$0xf] }
 0x7cd   : > { %v5791_v13 = vcombine.low %v3045_v6, %v3046_v10  ;;  %v5801_v14 = vcombine.low %v3046_v10, %v3046_v10  ;;  %v3184_v16 = vrot.slane %v3182_v8, 3  ;;  %v3187_v17 = vrot.slane %v3185_v9, 4  ;;  %v7213_v34 = vld [vmem:[#allocation2 + $0x4] sm:$0xff]  }
 0x7ce   : > { %v3320_v38 = vshll.u32 %v7213_v34, 16  ;;  %v3318_v45 = vshrl.u32 %v7213_v34, 16  ;;  %v7232_v34 = vld [vmem:[#allocation8 + $0xd0] sm:$0xff]  }
 0x7cf   : > { %6673 = vmatmul.mubr.bf16.vlgmr.msra.gmra.mxu1 %v5791_v13  ;;  %v3190_v21 = vshrl.u32 %v5801_v14, 16  ;;  %v3193_v2 = vshll.u32 %v5801_v14, 16  ;;  %v3188_v28 = vor.u32 %v3187_v17, %v3184_v16 }
 0x7d0   : > { %6697 = vmatpush3.bf16.msra.mxu1 %v7202_v12  ;;  %6712 = vmatprep.mubr.msk.bf16.mxu1 %vm7539_vm0, %v7538_v0  ;;  %v3322_v42 = vrot.slane %v3320_v38, 1  ;;  %v7235_v38 = vld [vmem:[#allocation8 + $0x90] sm:$0xff]  }
 0x7d1   : > { %6698 = vmatprep.subr.bf16.mxu1 %v7538_v0  ;;  %v3192_v25 = vrot.slane %v3190_v21, 3  ;;  %v3195_v26 = vrot.slane %v3193_v2, 4 }
 0x7d2   : > { %v3323_v46 = vor.u32 %v3322_v42, %v3318_v45  ;;  %v3647_v42 = vld [vmem:[#allocation2] sm:$0x8]  ;;  %v5821_v45 = vld [vmem:[%s8315_s8 + $0x9] ss:$0 sm:$0xff] }
 0x7d3   : > { %v3196_v29 = vor.u32 %v3195_v26, %v3192_v25  ;;  %v7224_v25 = vld [vmem:[#allocation8 + $0xf0] sm:$0xff]   ;;  %v7225_v26 = vld [vmem:[#allocation8 + $0xb8] sm:$0xff]   ;;  %4529 = vst [vmem:[#allocation2] sm:$0xf] %v7540_v49 }
 0x7d4   : > { %6699 = vmatpush3.bf16.msra.mxu1 %v7204_v4  ;;  %v3328_v19 = vsel %vm3316_vm5, %v3323_v46, %v3327_v18  ;;  %v7223_v4 = vld [vmem:[#allocation8 + $0xf8] sm:$0xff]  }
 0x7d5   : > { %v3197_v32 = vsel %vm3180_vm4, %v3188_v28, %v3196_v29  ;;  %6700 = vmatprep.subr.bf16.mxu1 %v7538_v0  ;;  %v7226_v28 = vld [vmem:[#allocation8 + $0xe8] sm:$0xff]   ;;  %v7227_v29 = vld [vmem:[#allocation8 + $0xb0] sm:$0xff]  }
 0x7d6   : > { %6693 = vmatmul.mubr.bf16.vlgmr.msra.gmra.mxu0 %v3197_v32  ;;  %v7229_v32 = vld [vmem:[#allocation8 + $0xa8] sm:$0xff]  }
 0x7d7   : > { %6732 = vmatprep.mubr.msk.bf16.mxu0 %vm7539_vm0, %v7538_v0  ;;  %6717 = vmatpush3.bf16.msra.mxu0 %v7215_v48 }
 0x7d8   : > { %6701 = vmatpush3.bf16.msra.mxu1 %v7207_v31  ;;  %6718 = vmatprep.subr.bf16.mxu0 %v7538_v0  ;;  %v7228_v31 = vld [vmem:[#allocation8 + $0xe0] sm:$0xff]  }
 0x7d9   : > { %6702 = vmatprep.subr.bf16.mxu1 %v7538_v0 }
 0x7db   : > { %6719 = vmatpush3.bf16.msra.mxu0 %v7216_v51 }
 0x7dc   : > { %6703 = vmatpush3.bf16.msra.mxu1 %v7208_v33  ;;  %6720 = vmatprep.subr.bf16.mxu0 %v7538_v0  ;;  %v7230_v33 = vld [vmem:[#allocation8 + $0xd8] sm:$0xff]  }
 0x7dd   : > { %6704 = vmatprep.subr.bf16.mxu1 %v7538_v0 }
 0x7df   : > { %6721 = vmatpush3.bf16.msra.mxu0 %v7217_v53 }
 0x7e0   : > { %6705 = vmatpush3.bf16.msra.mxu1 %v7209_v15  ;;  %6722 = vmatprep.subr.bf16.mxu0 %v7538_v0  ;;  %v7231_v15 = vld [vmem:[#allocation8 + $0xa0] sm:$0xff]  }
 0x7e1   : > { %6706 = vmatprep.subr.bf16.mxu1 %v7538_v0 }
 0x7e3   : > { %6723 = vmatpush3.bf16.msra.mxu0 %v7218_v55 }
 0x7e4   : > { %6707 = vmatpush3.bf16.msra.mxu1 %v7210_v36  ;;  %6724 = vmatprep.subr.bf16.mxu0 %v7538_v0  ;;  %v7233_v36 = vld [vmem:[#allocation8 + $0x98] sm:$0xff]  }
 0x7e5   : > { %6708 = vmatprep.subr.bf16.mxu1 %v7538_v0 }
 0x7e7   : > { %6725 = vmatpush3.bf16.msra.mxu0 %v7219_v20 }
 0x7e8   : > { %6709 = vmatpush3.bf16.msra.mxu1 %v7211_v41  ;;  %6726 = vmatprep.subr.bf16.mxu0 %v7538_v0  ;;  %v7236_v41 = vld [vmem:[#allocation8 + $0xc0] sm:$0xff]  }
 0x7e9   : > { %6710 = vmatprep.subr.bf16.mxu1 %v7538_v0 }
 0x7eb   : > { %6727 = vmatpush3.bf16.msra.mxu0 %v7220_v57 }
 0x7ec   : > { %6711 = vmatpush3.bf16.msra.mxu1 %v7212_v11  ;;  %6728 = vmatprep.subr.bf16.mxu0 %v7538_v0  ;;  %v7241_v11 = vld [vmem:[#allocation8 + $0x80] sm:$0xff]  }
 0x7ed   : > { %6736 = vmatprep.subr.bf16.mxu1 %v7538_v0 }
 0x7ef   : > { %6713 = vmatmul.mubr.bf16.vlgmr.msra.gmra.mxu1 %v3328_v19  ;;  %6729 = vmatpush3.bf16.msra.mxu0 %v7221_v58 }
 0x7f0   : > { %6752 = vmatprep.mubr.msk.bf16.mxu1 %vm7539_vm0, %v7538_v0  ;;  %6730 = vmatprep.subr.bf16.mxu0 %v7538_v0 }
 0x7f1   : > { %6737 = vmatpush3.bf16.msra.mxu1 %v7223_v4 }
 0x7f2   : > { %6738 = vmatprep.subr.bf16.mxu1 %v7538_v0 }
 0x7f3   : > { %6731 = vmatpush3.bf16.msra.mxu0 %v7222_v59 }
 0x7f4   : > { %6756 = vmatprep.subr.bf16.mxu0 %v7538_v0 }
 0x7f5   : > { %6739 = vmatpush3.bf16.msra.mxu1 %v7224_v25 }
 0x7f6   : > { %6740 = vmatprep.subr.bf16.mxu1 %v7538_v0 }
 0x7f9   : > { %6741 = vmatpush3.bf16.msra.mxu1 %v7226_v28 }
 0x7fa   : > { %6742 = vmatprep.subr.bf16.mxu1 %v7538_v0 }
 0x7fd   : > { %6743 = vmatpush3.bf16.msra.mxu1 %v7228_v31 }
 0x7fe   : > { %6744 = vmatprep.subr.bf16.mxu1 %v7538_v0 }
 0x801   : > { %6745 = vmatpush3.bf16.msra.mxu1 %v7230_v33 }
 0x802   : > { %6746 = vmatprep.subr.bf16.mxu1 %v7538_v0 }
 0x805   : > { %6747 = vmatpush3.bf16.msra.mxu1 %v7232_v34 }
 0x806   : > { %6748 = vmatprep.subr.bf16.mxu1 %v7538_v0 }
 0x809   : > { %6749 = vmatpush3.bf16.msra.mxu1 %v7234_v37  ;;  %v7244_v37 = vld [vmem:[#allocation10 + $0xb8] sm:$0xff]  }
 0x80a   : > { %6750 = vmatprep.subr.bf16.mxu1 %v7538_v0 }
 0x80d   : > { %6751 = vmatpush3.bf16.msra.mxu1 %v7236_v41 }
 0x80e   : > { %6776 = vmatprep.subr.bf16.mxu1 %v7538_v0 }
 0x88f   : > { %v3169_v23 = vpop.f32.mrf.mxu1 }
 0x891   : > { %v6674_v60 = vpop.f32.mrf.mxu1 }
 0x893   : > { %v3172_v61 = vpop.f32.mrf.mxu1 }
 0x895   : > { %v6675_v24 = vpop.f32.mrf.mxu1 }
 0x896   : > { %v3281_v62 = vpop.f32.mrf.mxu0 }
 0x897   : > { %v3282_v3 = vadd.f32 %v3281_v62, %v3169_v23 }
 0x898   : > { %v6694_v63 = vpop.f32.mrf.mxu0 }
 0x89a   : > { %v3284_v27 = vpop.f32.mrf.mxu0 }
 0x89b   : > { %v3285_v9 = vadd.f32 %v3284_v27, %v3172_v61 }
 0x89c   : > { %v6695_v1 = vpop.f32.mrf.mxu0 }
 0x8af   : > { %v3412_v5 = vpop.f32.mrf.mxu1 }
 0x8b0   : > { %v3419_v6 = vadd.f32 %v3412_v5, %v3282_v3 }
 0x8b1   : > { %v6714_v8 = vpop.f32.mrf.mxu1 }
 0x8b2   : > { %v3425_v12 = vadd.f32 %v5820_v7, %v3419_v6 }
 0x8b3   : > { %v3415_v10 = vpop.f32.mrf.mxu1 }
 0x8b4   : > { %v3420_v13 = vadd.f32 %v3415_v10, %v3285_v9  ;;  %v3427_v17 = vmax.f32 %v3425_v12, 0.0 }
 0x8b5   : > { %v6715_v14 = vpop.f32.mrf.mxu1 }
 0x8b6   : > { %v3426_v16 = vadd.f32 %v5820_v7, %v3420_v13 }
 0x8b8   : > { %v3428_v21 = vmax.f32 %v3426_v16, 0.0 }
 0x8ba   : > { %v3429_v2 = vpack.c.bf16 %v3428_v21, %v3427_v17 }
 0x8bc   : > { %6733 = vmatmul.mubr.bf16.vlgmr.msra.gmra.mxu0 %v3429_v2 }
 0x8bd   : > { %6772 = vmatprep.mubr.msk.bf16.mxu0 %vm7539_vm0, %v7538_v0  ;;  %6757 = vmatpush3.bf16.msra.mxu0 %v7225_v26 }
 0x8be   : > { %6758 = vmatprep.subr.bf16.mxu0 %v7538_v0 }
 0x8c1   : > { %6759 = vmatpush3.bf16.msra.mxu0 %v7227_v29 }
 0x8c2   : > { %6760 = vmatprep.subr.bf16.mxu0 %v7538_v0 }
 0x8c5   : > { %6761 = vmatpush3.bf16.msra.mxu0 %v7229_v32  ;;  %v7242_v32 = vld [vmem:[#allocation10 + $0xf0] sm:$0xff]  }
 0x8c6   : > { %6762 = vmatprep.subr.bf16.mxu0 %v7538_v0 }
 0x8c9   : > { %6763 = vmatpush3.bf16.msra.mxu0 %v7231_v15 }
 0x8ca   : > { %6764 = vmatprep.subr.bf16.mxu0 %v7538_v0 }
 0x8cd   : > { %6765 = vmatpush3.bf16.msra.mxu0 %v7233_v36 }
 0x8ce   : > { %6766 = vmatprep.subr.bf16.mxu0 %v7538_v0 }
 0x8d1   : > { %6767 = vmatpush3.bf16.msra.mxu0 %v7235_v38  ;;  %v7245_v38 = vld [vmem:[#allocation10 + $0xe8] sm:$0xff]  }
 0x8d2   : > { %6768 = vmatprep.subr.bf16.mxu0 %v7538_v0 }
 0x8d5   : > { %6769 = vmatpush3.bf16.msra.mxu0 %v7237_v44  ;;  %v7247_v44 = vld [vmem:[#allocation10 + $0xe0] sm:$0xff]  }
 0x8d6   : > { %6770 = vmatprep.subr.bf16.mxu0 %v7538_v0 }
 0x8d9   : > { %6771 = vmatpush3.bf16.msra.mxu0 %v7241_v11  ;;  %v7248_v11 = vld [vmem:[#allocation10 + $0xa8] sm:$0xff]  }
 0x8da   : > { %6796 = vmatprep.subr.bf16.mxu0 %v7538_v0 }
 0x97c   : > { %v3533_v46 = vpop.f32.mrf.mxu0 }
 0x97d   : > { %v3534_v49 = vadd.f32 %v5821_v45, %v3533_v46  ;;  %v7250_v46 = vld [vmem:[#allocation10 + $0xa0] sm:$0xff]  }
 0x97e   : > { %v6734_v18 = vpop.f32.mrf.mxu0 }
 0x97f   : > { %v3542_v19 = vcombine.high %v3534_v49, %v3534_v49  ;;  %v3549_v48 = vrot.slane %v3534_v49, %v7964_v56  ;;  %v7251_v49 = vld [vmem:[#allocation10 + $0xd0] sm:$0xff]  }
 0x980   : > { %v3536_v51 = vpop.f32.mrf.mxu0  ;;  %v7256_v18 = vld [vmem:[#allocation2 + $0xc] ss:$0 sps:$4 sm:$0x11]  }
 0x981   : > { %v3556_v53 = vrot.slane %v3542_v19, %v7964_v56  ;;  %v3557_v55 = vcombine.high %v3549_v48, %v3549_v48  ;;  %v3537_v20 = vadd.f32 %v5821_v45, %v3536_v51  ;;  %v3584_v59 = vadd.f32 %v3549_v48, %v8063_v35  ;;  %v7249_v45 = vld [vmem:[#allocation10 + $0xd8] sm:$0xff]   ;;  %v7253_v51 = vld [vmem:[#allocation10 + $0xc8] sm:$0xff]  }
 0x982   : > { %v6735_v57 = vpop.f32.mrf.mxu0  ;;  %v7252_v48 = vld [vmem:[#allocation10 + $0x98] sm:$0xff]  }
 0x983   : > { %v3558_v58 = vcombine.high %v3556_v53, %v3556_v53  ;;  %v3585_v23 = vadd.f32 %v3557_v55, %v8066_v39  ;;  %v3559_v60 = vcombine.high %v3537_v20, %v3537_v20  ;;  %v3566_v61 = vrot.slane %v3537_v20, %v7964_v56  ;;  %v7254_v20 = vld [vmem:[#allocation10 + $0x90] sm:$0xff]   ;;  %v7255_v57 = vld [vmem:[#allocation10 + $0xc0] sm:$0xff]  }
 0x984   : > { %v3586_v24 = vadd.f32 %v3556_v53, %v8069_v40  ;;  %v3942_v55 = vshll.u32 %v7256_v18, 16 }
 0x985   : > { %v3587_v62 = vadd.f32 %v3558_v58, %v8073_v43  ;;  %v3601_v63 = vcombine.low %v3584_v59, %v3585_v23  ;;  %v3573_v27 = vrot.slane %v3559_v60, %v7964_v56  ;;  %v3574_v1 = vcombine.high %v3566_v61, %v3566_v61  ;;  %v7257_v60 = vld [vmem:[#allocation10 + $0x88] sm:$0xff]  }
 0x986   : > { %v3588_v6 = vadd.f32 %v3566_v61, %v8079_v47  ;;  %v3944_v23 = vrot.slane %v3942_v55, 1 }
 0x987   : > { %v3602_v3 = vcombine.low %v3586_v24, %v3587_v62  ;;  %v3575_v5 = vcombine.high %v3573_v27, %v3573_v27  ;;  %v3589_v7 = vadd.f32 %v3574_v1, %v8084_v52  ;;  %v3609_v35 = vrot.slane %v3601_v63, %v7964_v56  ;;  %v7258_v24 = vld [vmem:[#allocation10 + $0x80] sm:$0xff]   ;;  %v7259_v62 = vld [vmem:[#allocation11 + $0x78] sm:$0xff]   ;;  %v7260_v63 = vld [vmem:[#allocation11 + $0x70] sm:$0xff]  }
 0x988   : > { %v3590_v8 = vadd.f32 %v3573_v27, %v8087_v22  ;;  %v7240_v22 = vld [vmem:[#allocation10 + $0xf8] sm:$0xff]   ;;  %v7261_v27 = vld [vmem:[#allocation11 + $0x68] sm:$0xff]  }
 0x989   : > { %v3616_v39 = vrot.slane %v3602_v3, %v7964_v56  ;;  %v3591_v40 = vadd.f32 %v3575_v5, %v8090_v54  ;;  %v3618_v9 = vcombine.low %v3588_v6, %v3589_v7  ;;  %v7262_v1 = vld [vmem:[#allocation11 + $0x38] sm:$0xff]   ;;  %v7263_v3 = vld [vmem:[#allocation11 + $0x60] sm:$0xff]   ;;  %v7264_v5 = vld [vmem:[#allocation11 + $0x30] sm:$0xff]  }
 0x98a   : > { %v7266_v6 = vld [vmem:[#allocation11 + $0x28] sm:$0xff]   ;;  %v7267_v7 = vld [vmem:[#allocation11 + $0x50] sm:$0xff]  }
 0x98b   : > { %v3617_v43 = vcombine.low %v3609_v35, %v3616_v39  ;;  %v3619_v10 = vcombine.low %v3590_v8, %v3591_v40  ;;  %v3626_v13 = vrot.slane %v3618_v9, %v7964_v56  ;;  %v7268_v35 = vld [vmem:[#allocation11 + $0x20] sm:$0xff]   ;;  %v7269_v39 = vld [vmem:[#allocation11 + $0x48] sm:$0xff]   ;;  %v7270_v8 = vld [vmem:[#allocation11 + $0x18] sm:$0xff]  }
 0x98c   : > { %v7271_v40 = vld [vmem:[#allocation11 + $0x40] sm:$0xff]   ;;  %v7272_v9 = vld [vmem:[#allocation11 + $0x10] sm:$0xff]  }
 0x98d   : > { %v5951_v12 = vpack.c.bf16 %v3617_v43, %v3617_v43  ;;  %v3633_v14 = vrot.slane %v3619_v10, %v7964_v56  ;;  %v7276_v43 = vld [vmem:[#allocation11 + $0x8] sm:$0xff]   ;;  %v8191_v10 = vld [vmem:[#allocation11 + $0xb8] sm:$0xff]  }
 0x98f   : > { %3645 = vst [vmem:[#allocation2 + $0x4] sm:$0xf] %v5951_v12  ;;  %v3634_v47 = vcombine.low %v3626_v13, %v3633_v14  ;;  %v7280_v12 = vld [vmem:[#allocation11] sm:$0xff]  }
 0x991   : > { %v5952_v16 = vpack.c.bf16 %v3634_v47, %v3634_v47 }
 0x993   : > { %3646 = vst [vmem:[#allocation2 + $0x8] sm:$0xf] %v5952_v16 }
 0x996   : > { %v3648_v52 = vld [vmem:[#allocation2 + $0x4] sm:$0xf] }
 0x997   : > { %v5841_v17 = vcombine.low %v3647_v42, %v3648_v52  ;;  %v7246_v42 = vld [vmem:[#allocation10 + $0xb0] sm:$0xff]  }
 0x999   : > { %v3785_v21 = vshrl.u32 %v5841_v17, 16  ;;  %v3788_v2 = vshll.u32 %v5841_v17, 16 }
 0x99a   : > { %v3649_v4 = vld [vmem:[#allocation2 + $0x8] sm:$0xf] }
 0x99b   : > { %v8165_v25 = vcombine.low %v3648_v52, %v3649_v4  ;;  %v5842_v54 = vcombine.low %v3649_v4, %v3649_v4  ;;  %v3787_v26 = vrot.slane %v3785_v21, 3  ;;  %v3790_v28 = vrot.slane %v3788_v2, 4 }
 0x99d   : > { %6753 = vmatmul.mubr.bf16.vlgmr.msra.gmra.mxu1 %v8165_v25  ;;  %v3793_v29 = vshrl.u32 %v5842_v54, 16  ;;  %v3796_v31 = vshll.u32 %v5842_v54, 16  ;;  %v3791_v34 = vor.u32 %v3790_v28, %v3787_v26  ;;  %v3937_v19 = vshll.u32 %v8165_v25, 16 }
 0x99e   : > { %6777 = vmatpush3.bf16.msra.mxu1 %v7240_v22  ;;  %6792 = vmatprep.mubr.msk.bf16.mxu1 %vm7539_vm0, %v7538_v0  ;;  %v3935_v58 = vshrl.u32 %v8165_v25, 16  ;;  %v5851_v22 = vld [vmem:[%s8315_s8 + $0xa] ss:$0 sm:$0xff] }
 0x99f   : > { %6778 = vmatprep.subr.bf16.mxu1 %v7538_v0  ;;  %v3795_v33 = vrot.slane %v3793_v29, 3  ;;  %v3798_v15 = vrot.slane %v3796_v31, 4  ;;  %v3939_v53 = vrot.slane %v3937_v19, 1 }
 0x9a1   : > { %v3799_v36 = vor.u32 %v3798_v15, %v3795_v33  ;;  %v3940_v59 = vor.u32 %v3939_v53, %v3935_v58 }
 0x9a2   : > { %6779 = vmatpush3.bf16.msra.mxu1 %v7242_v32 }
 0x9a3   : > { %v3800_v41 = vsel %vm3180_vm4, %v3791_v34, %v3799_v36  ;;  %6780 = vmatprep.subr.bf16.mxu1 %v7538_v0  ;;  %v3945_v61 = vsel %vm3316_vm5, %v3940_v59, %v3944_v23 }
 0x9a4   : > { %6773 = vmatmul.mubr.bf16.vlgmr.msra.gmra.mxu0 %v3800_v41 }
 0x9a5   : > { %6797 = vmatpush3.bf16.msra.mxu0 %v7244_v37  ;;  %6812 = vmatprep.mubr.msk.bf16.mxu0 %vm7539_vm0, %v7538_v0 }
 0x9a6   : > { %6781 = vmatpush3.bf16.msra.mxu1 %v7245_v38  ;;  %6798 = vmatprep.subr.bf16.mxu0 %v7538_v0 }
 0x9a7   : > { %6782 = vmatprep.subr.bf16.mxu1 %v7538_v0 }
 0x9a9   : > { %6799 = vmatpush3.bf16.msra.mxu0 %v7246_v42 }
 0x9aa   : > { %6783 = vmatpush3.bf16.msra.mxu1 %v7247_v44  ;;  %6800 = vmatprep.subr.bf16.mxu0 %v7538_v0 }
 0x9ab   : > { %6784 = vmatprep.subr.bf16.mxu1 %v7538_v0 }
 0x9ad   : > { %6801 = vmatpush3.bf16.msra.mxu0 %v7248_v11 }
 0x9ae   : > { %6785 = vmatpush3.bf16.msra.mxu1 %v7249_v45  ;;  %6802 = vmatprep.subr.bf16.mxu0 %v7538_v0 }
 0x9af   : > { %6786 = vmatprep.subr.bf16.mxu1 %v7538_v0 }
 0x9b1   : > { %6803 = vmatpush3.bf16.msra.mxu0 %v7250_v46 }
 0x9b2   : > { %6787 = vmatpush3.bf16.msra.mxu1 %v7251_v49  ;;  %6804 = vmatprep.subr.bf16.mxu0 %v7538_v0 }
 0x9b3   : > { %6788 = vmatprep.subr.bf16.mxu1 %v7538_v0 }
 0x9b5   : > { %6805 = vmatpush3.bf16.msra.mxu0 %v7252_v48 }
 0x9b6   : > { %6789 = vmatpush3.bf16.msra.mxu1 %v7253_v51  ;;  %6806 = vmatprep.subr.bf16.mxu0 %v7538_v0 }
 0x9b7   : > { %6790 = vmatprep.subr.bf16.mxu1 %v7538_v0 }
 0x9b9   : > { %6807 = vmatpush3.bf16.msra.mxu0 %v7254_v20 }
 0x9ba   : > { %6791 = vmatpush3.bf16.msra.mxu1 %v7255_v57  ;;  %6808 = vmatprep.subr.bf16.mxu0 %v7538_v0 }
 0x9bb   : > { %6816 = vmatprep.subr.bf16.mxu1 %v7259_v62 }
 0x9bd   : > { %6793 = vmatmul.mubr.bf16.vlgmr.msra.gmra.mxu1 %v3945_v61  ;;  %6809 = vmatpush3.bf16.msra.mxu0 %v7257_v60 }
 0x9be   : > { %6810 = vmatprep.subr.bf16.mxu0 %v7538_v0  ;;  %6817 = vmatpush3.bf16.msra.mxu1 %v7259_v62  ;;  %v7265_v0 = vld [vmem:[#allocation11 + $0x58] sm:$0xff]  }
 0x9bf   : > { %6818 = vmatprep.subr.bf16.mxu1 %v7260_v63 }
 0x9c1   : > { %6811 = vmatpush3.bf16.msra.mxu0 %v7258_v24 }
 0x9c2   : > { %6819 = vmatpush3.bf16.msra.mxu1 %v7260_v63  ;;  %6836 = vmatprep.subr.bf16.mxu0 %v7262_v1 }
 0x9c3   : > { %6820 = vmatprep.subr.bf16.mxu1 %v7261_v27 }
 0x9c4   : > { %6813 = vmatmul.mubr.bf16.vlgmr.msra.gmra.mxu0 %v8165_v25 }
 0x9c5   : > { %6837 = vmatpush3.bf16.msra.mxu0 %v7262_v1 }
 0x9c6   : > { %6821 = vmatpush3.bf16.msra.mxu1 %v7261_v27  ;;  %6838 = vmatprep.subr.bf16.mxu0 %v7264_v5 }
 0x9c7   : > { %6822 = vmatprep.subr.bf16.mxu1 %v7263_v3 }
 0x9c9   : > { %6839 = vmatpush3.bf16.msra.mxu0 %v7264_v5 }
 0x9ca   : > { %6823 = vmatpush3.bf16.msra.mxu1 %v7263_v3  ;;  %6840 = vmatprep.subr.bf16.mxu0 %v7266_v6 }
 0x9cb   : > { %6824 = vmatprep.subr.bf16.mxu1 %v7265_v0 }
 0x9cd   : > { %6841 = vmatpush3.bf16.msra.mxu0 %v7266_v6 }
 0x9ce   : > { %6825 = vmatpush3.bf16.msra.mxu1 %v7265_v0  ;;  %6842 = vmatprep.subr.bf16.mxu0 %v7268_v35 }
 0x9cf   : > { %6826 = vmatprep.subr.bf16.mxu1 %v7267_v7 }
 0x9d1   : > { %6843 = vmatpush3.bf16.msra.mxu0 %v7268_v35 }
 0x9d2   : > { %6827 = vmatpush3.bf16.msra.mxu1 %v7267_v7  ;;  %6844 = vmatprep.subr.bf16.mxu0 %v7270_v8 }
 0x9d3   : > { %6828 = vmatprep.subr.bf16.mxu1 %v7269_v39 }
 0x9d5   : > { %6845 = vmatpush3.bf16.msra.mxu0 %v7270_v8 }
 0x9d6   : > { %6829 = vmatpush3.bf16.msra.mxu1 %v7269_v39  ;;  %6846 = vmatprep.subr.bf16.mxu0 %v7272_v9 }
 0x9d7   : > { %6830 = vmatprep.subr.bf16.mxu1 %v7271_v40 }
 0x9d9   : > { %6847 = vmatpush3.bf16.msra.mxu0 %v7272_v9 }
 0x9da   : > { %6831 = vmatpush3.bf16.msra.mxu1 %v7271_v40  ;;  %6848 = vmatprep.subr.bf16.mxu0 %v7276_v43 }
 0x9db   : > { %6856 = vmatprep.subr.bf16.mxu1 %v8191_v10 }
 0x9dd   : > { %6849 = vmatpush3.bf16.msra.mxu0 %v7276_v43 }
 0x9de   : > { %6850 = vmatprep.subr.bf16.mxu0 %v7280_v12 }
 0x9e1   : > { %6851 = vmatpush3.bf16.msra.mxu0 %v7280_v12 }
 0xa5d   : > { %v3773_v13 = vpop.f32.mrf.mxu1 }
 0xa5f   : > { %v6754_v14 = vpop.f32.mrf.mxu1 }
 0xa61   : > { %v3776_v47 = vpop.f32.mrf.mxu1 }
 0xa63   : > { %v6755_v16 = vpop.f32.mrf.mxu1 }
 0xa64   : > { %v3884_v52 = vpop.f32.mrf.mxu0 }
 0xa65   : > { %v3885_v4 = vadd.f32 %v3884_v52, %v3773_v13 }
 0xa66   : > { %v6774_v17 = vpop.f32.mrf.mxu0 }
 0xa67   : > { %v3895_v25 = vadd.f32 %v5851_v22, %v3885_v4 }
 0xa68   : > { %v3887_v21 = vpop.f32.mrf.mxu0 }
 0xa69   : > { %v3888_v54 = vadd.f32 %v3887_v21, %v3776_v47  ;;  %v4129_v26 = vcombine.high %v3895_v25, %v3895_v25  ;;  %v4136_v31 = vrot.slane %v3895_v25, %v7952_v30 }
 0xa6a   : > { %v6775_v2 = vpop.f32.mrf.mxu0 }
 0xa6b   : > { %v3896_v28 = vadd.f32 %v5851_v22, %v3888_v54  ;;  %v4143_v33 = vrot.slane %v4129_v26, %v7952_v30  ;;  %v4144_v36 = vcombine.high %v4136_v31, %v4136_v31  ;;  %v4152_v45 = vrot.slane %v4136_v31, %v7952_v30 }
 0xa6d   : > { %v4178_v15 = vcombine.high %v3896_v28, %v3896_v28  ;;  %v4145_v38 = vcombine.high %v4143_v33, %v4143_v33  ;;  %v4185_v41 = vrot.slane %v3896_v28, %v7952_v30  ;;  %v4159_v46 = vrot.slane %v4143_v33, %v7952_v30 }
 0xa6e   : > { %v4166_v49 = vrot.slane %v4144_v36, %v7952_v30  ;;  %v4174_v23 = vcombine.high %v4152_v45, %v4152_v45 }
 0xa6f   : > { %v4192_v42 = vrot.slane %v4178_v15, %v7952_v30  ;;  %v4173_v48 = vrot.slane %v4145_v38, %v7952_v30  ;;  %v4193_v51 = vcombine.high %v4185_v41, %v4185_v41  ;;  %v8206_v55 = vrot.slane %v4185_v41, %v7952_v30 }
 0xa70   : > { %v4175_v60 = vcombine.high %v4159_v46, %v4159_v46  ;;  %v4176_v61 = vcombine.high %v4166_v49, %v4166_v49 }
 0xa71   : > { %v4194_v53 = vcombine.high %v4192_v42, %v4192_v42  ;;  %v8210_v24 = vrot.slane %v4192_v42, %v7952_v30  ;;  %v4177_v5 = vcombine.high %v4173_v48, %v4173_v48  ;;  %v8215_v0 = vrot.slane %v4193_v51, %v7952_v30 }
 0xa72   : > { %v4223_v7 = vcombine.high %v8206_v55, %v8206_v55 }
 0xa73   : > { %v8218_v6 = vrot.slane %v4194_v53, %v7952_v30  ;;  %v4224_v9 = vcombine.high %v8210_v24, %v8210_v24  ;;  %v4225_v17 = vcombine.high %v8215_v0, %v8215_v0 }
 0xa75   : > { %v4226_v21 = vcombine.high %v8218_v6, %v8218_v6 }
 0xa7d   : > { %v4029_v29 = vpop.f32.mrf.mxu1 }
 0xa7f   : > { %v6794_v32 = vpop.f32.mrf.mxu1 }
 0xa81   : > { %v4032_v34 = vpop.f32.mrf.mxu1 }
 0xa83   : > { %v6795_v37 = vpop.f32.mrf.mxu1 }
 0xa84   : > { %v4118_v44 = vpop.f32.mrf.mxu0 }
 0xa85   : > { %v4119_v11 = vadd.f32 %v4118_v44, %v4029_v29 }
 0xa86   : > { %v6814_v18 = vpop.f32.mrf.mxu0 }
 0xa87   : > { %v4125_v19 = vadd.f32 %v5851_v22, %v4119_v11 }
 0xa88   : > { %v4121_v20 = vpop.f32.mrf.mxu0 }
 0xa89   : > { %v4245_v57 = vcombine.high %v4125_v19, %v4125_v19  ;;  %v4252_v58 = vrot.slane %v4125_v19, %v7952_v30  ;;  %v4122_v59 = vadd.f32 %v4121_v20, %v4032_v34 }
 0xa8a   : > { %v6815_v62 = vpop.f32.mrf.mxu0 }
 0xa8b   : > { %v4259_v63 = vrot.slane %v4245_v57, %v7952_v30  ;;  %v4260_v27 = vcombine.high %v4252_v58, %v4252_v58  ;;  %v4268_v1 = vrot.slane %v4252_v58, %v7952_v30  ;;  %v4126_v3 = vadd.f32 %v5851_v22, %v4122_v59 }
 0xa8d   : > { %v4261_v35 = vcombine.high %v4259_v63, %v4259_v63  ;;  %v4275_v39 = vrot.slane %v4259_v63, %v7952_v30  ;;  %v4282_v8 = vrot.slane %v4260_v27, %v7952_v30  ;;  %v4290_v40 = vcombine.high %v4268_v1, %v4268_v1 }
 0xa8e   : > { %v4346_v43 = vrot.slane %v4268_v1, %v7959_v50  ;;  %v4294_v12 = vcombine.high %v4126_v3, %v4126_v3  ;;  %v4301_v13 = vrot.slane %v4126_v3, %v7952_v30 }
 0xa8f   : > { %v4289_v14 = vrot.slane %v4261_v35, %v7952_v30  ;;  %v4291_v47 = vcombine.high %v4275_v39, %v4275_v39  ;;  %v4292_v16 = vcombine.high %v4282_v8, %v4282_v8  ;;  %v4350_v52 = vrot.slane %v4282_v8, %v7959_v50 }
 0xa90   : > { %v4354_v2 = vrot.slane %v4290_v40, %v7959_v50  ;;  %v4308_v4 = vrot.slane %v4294_v12, %v7952_v30  ;;  %v4362_v28 = vrot.slane %v4275_v39, %v7959_v50  ;;  %v4423_v29 = vsel %vm2349_vm1, %v4152_v45, %v4346_v43 }
 0xa91   : > { %v4293_v22 = vcombine.high %v4289_v14, %v4289_v14  ;;  %v4358_v25 = vrot.slane %v4292_v16, %v7959_v50  ;;  %v4366_v54 = vrot.slane %v4289_v14, %v7959_v50  ;;  %v4370_v26 = vrot.slane %v4291_v47, %v7959_v50 }
 0xa92   : > { %v4424_v31 = vsel %vm2349_vm1, %v4166_v49, %v4350_v52  ;;  %v4309_v32 = vcombine.high %v4301_v13, %v4301_v13  ;;  %v4425_v15 = vsel %vm2349_vm1, %v4174_v23, %v4354_v2  ;;  %v4310_v42 = vcombine.high %v4308_v4, %v4308_v4 }
 0xa93   : > { %v4374_v33 = vrot.slane %v4293_v22, %v7959_v50  ;;  %v4426_v34 = vsel %vm2349_vm1, %v4176_v61, %v4358_v25  ;;  %v4428_v36 = vsel %vm2349_vm1, %v4173_v48, %v4366_v54  ;;  %v4429_v37 = vsel %vm2349_vm1, %v4175_v60, %v4370_v26 }
 0xa94   : > { %v4455_v38 = vcombine.low %v4423_v29, %v4424_v31  ;;  %v4456_v41 = vcombine.low %v4425_v15, %v4426_v34  ;;  %v4317_v11 = vrot.slane %v4301_v13, %v7952_v30  ;;  %v4324_v45 = vrot.slane %v4308_v4, %v7952_v30 }
 0xa95   : > { %v4430_v44 = vsel %vm2349_vm1, %v4177_v5, %v4374_v33  ;;  %v4331_v49 = vrot.slane %v4309_v32, %v7952_v30  ;;  %v4427_v18 = vsel %vm2349_vm1, %v4159_v46, %v4362_v28  ;;  %v4338_v53 = vrot.slane %v4310_v42, %v7952_v30 }
 0xa96   : > { %v4463_v19 = vrot.slane %v4455_v38, %v7964_v56  ;;  %v4470_v51 = vrot.slane %v4456_v41, %v7964_v56  ;;  %v4473_v48 = vcombine.low %v4429_v37, %v4430_v44  ;;  %v4339_v20 = vcombine.high %v4317_v11, %v4317_v11 }
 0xa97   : > { %v4340_v57 = vcombine.high %v4324_v45, %v4324_v45  ;;  %v4341_v58 = vcombine.high %v4331_v49, %v4331_v49  ;;  %v4472_v23 = vcombine.low %v4427_v18, %v4428_v36  ;;  %v4378_v60 = vrot.slane %v4317_v11, %v7959_v50 }
 0xa98   : > { %v4471_v59 = vcombine.low %v4463_v19, %v4470_v51  ;;  %v4382_v61 = vrot.slane %v4331_v49, %v7959_v50  ;;  %v4342_v62 = vcombine.high %v4338_v53, %v4338_v53  ;;  %v4386_v63 = vrot.slane %v4339_v20, %v7959_v50 }
 0xa99   : > { %v4390_v46 = vrot.slane %v4341_v58, %v7959_v50  ;;  %v4394_v27 = vrot.slane %v4324_v45, %v7959_v50  ;;  %v4487_v1 = vrot.slane %v4473_v48, %v7964_v56  ;;  %v4398_v30 = vrot.slane %v4338_v53, %v7959_v50 }
 0xa9a   : > { %v5953_v3 = vpack.c.bf16 %v4471_v59, %v4471_v59  ;;  %v4402_v5 = vrot.slane %v4340_v57, %v7959_v50  ;;  %v4406_v35 = vrot.slane %v4342_v62, %v7959_v50  ;;  %v4431_v39 = vsel %vm2349_vm1, %v8206_v55, %v4378_v60 }
 0xa9b   : > { %v4432_v8 = vsel %vm2349_vm1, %v8215_v0, %v4382_v61  ;;  %v4433_v40 = vsel %vm2349_vm1, %v4223_v7, %v4386_v63  ;;  %v4434_v43 = vsel %vm2349_vm1, %v4225_v17, %v4390_v46  ;;  %v4435_v12 = vsel %vm2349_vm1, %v8210_v24, %v4394_v27 }
 0xa9c   : > { %4545 = vst [vmem:[#allocation2 + $0x4] sm:$0xf] %v5953_v3  ;;  %v4436_v13 = vsel %vm2349_vm1, %v8218_v6, %v4398_v30  ;;  %v4437_v14 = vsel %vm2349_vm1, %v4224_v9, %v4402_v5  ;;  %v4438_v50 = vsel %vm2349_vm1, %v4226_v21, %v4406_v35  ;;  %v4489_v47 = vcombine.low %v4431_v39, %v4432_v8  ;;  %v4550_v21 = vld [vmem:[#allocation2] sm:$0x8]  ;;  %v7286_v30 = vld [vmem:[#allocation11 + $0x98] sm:$0xff]   ;;  %v7287_v5 = vld [vmem:[#allocation11 + $0x90] sm:$0xff]  }
 0xa9d   : > { %v4490_v55 = vcombine.low %v4433_v40, %v4434_v43  ;;  %v4506_v16 = vcombine.low %v4435_v12, %v4436_v13  ;;  %v4507_v52 = vcombine.low %v4437_v14, %v4438_v50  ;;  %v4480_v0 = vrot.slane %v4472_v23, %v7964_v56  ;;  %v7284_v23 = vld [vmem:[#allocation11 + $0xa8] sm:$0xff]   ;;  %v7290_v39 = vld [vmem:[#allocation2 + $0x14] ss:$0 sps:$4 sm:$0x11]   ;;  %v7289_v8 = vld [vmem:[#allocation11 + $0x80] sm:$0xff]  }
 0xa9e   : > { %v4497_v7 = vrot.slane %v4489_v47, %v7964_v56  ;;  %v7288_v35 = vld [vmem:[#allocation11 + $0x88] sm:$0xff]   ;;  %v4878_v40 = vshll.u32 %v7290_v39, 16  ;;  %v7291_v50 = vld [vmem:[#allocation13 + $0x78] sm:$0xff]   ;;  %v7292_v47 = vld [vmem:[#allocation13 + $0x70] sm:$0xff]  }
 0xa9f   : > { %v4504_v17 = vrot.slane %v4490_v55, %v7964_v56  ;;  %v4514_v2 = vrot.slane %v4506_v16, %v7964_v56  ;;  %v4521_v24 = vrot.slane %v4507_v52, %v7964_v56  ;;  %v4488_v4 = vcombine.low %v4480_v0, %v4487_v1  ;;  %v7281_v56 = vld [vmem:[#allocation11 + $0xb0] sm:$0xff]   ;;  %v7285_v1 = vld [vmem:[#allocation11 + $0xa0] sm:$0xff]   ;;  %6876 = vmatprep.subr.bf16.mxu0 %v7291_v50  ;;  %v7293_v55 = vld [vmem:[#allocation13 + $0x68] sm:$0xff]  }
 0xaa0   : > { %v4880_v13 = vrot.slane %v4878_v40, 1  ;;  %v7294_v16 = vld [vmem:[#allocation13 + $0x38] sm:$0xff]   ;;  %v7295_v52 = vld [vmem:[#allocation13 + $0x60] sm:$0xff]   ;;  %v7296_v0 = vld [vmem:[#allocation13 + $0x30] sm:$0xff]  }
 0xaa1   : > { %v4505_v6 = vcombine.low %v4497_v7, %v4504_v17  ;;  %v4522_v22 = vcombine.low %v4514_v2, %v4521_v24  ;;  %v7297_v7 = vld [vmem:[#allocation13 + $0x58] sm:$0xff]   ;;  %v7298_v17 = vld [vmem:[#allocation13 + $0x28] sm:$0xff]   ;;  %v7299_v2 = vld [vmem:[#allocation13 + $0x50] sm:$0xff]  }
 0xaa2   : > { %v7300_v24 = vld [vmem:[#allocation13 + $0x20] sm:$0xff]  }
 0xaa3   : > { %v5964_v9 = vpack.c.bf16 %v4505_v6, %v4488_v4  ;;  %v5956_v25 = vpack.c.bf16 %v4522_v22, %v4522_v22  ;;  %v4551_v54 = vld [vmem:[#allocation2 + $0x4] sm:$0xf]  ;;  %v7302_v6 = vld [vmem:[#allocation13 + $0x18] sm:$0xff]   ;;  %v7303_v22 = vld [vmem:[#allocation13 + $0x40] sm:$0xff]  }
 0xaa4   : > { %v5883_v26 = vcombine.low %v4550_v21, %v4551_v54  ;;  %v7301_v4 = vld [vmem:[#allocation13 + $0x48] sm:$0xff]   ;;  %v8286_v21 = vld [vmem:[#allocation13 + $0xb8] sm:$0xff]  }
 0xaa5   : > { %5971 = vst [vmem:[#allocation2 + $0x8] sm:$0xff] %v5964_v9   ;;  %4548 = vst [vmem:[#allocation2 + $0x10] sm:$0xf] %v5956_v25  ;;  %v7304_v9 = vld [vmem:[#allocation13 + $0x10] sm:$0xff]   ;;  %v7308_v25 = vld [vmem:[#allocation13 + $0x8] sm:$0xff]  }
 0xaa6   : > { %v4703_v28 = vshrl.u32 %v5883_v26, 16  ;;  %v4706_v29 = vshll.u32 %v5883_v26, 16 }
 0xaa8   : > { %v4705_v42 = vrot.slane %v4703_v28, 3  ;;  %v4708_v44 = vrot.slane %v4706_v29, 4 }
 0xaaa   : > { %v4709_v60 = vor.u32 %v4708_v44, %v4705_v42 }
 0xaac   : > { %v4552_v31 = vld [vmem:[#allocation2 + $0x8] sm:$0xf]  ;;  %v4553_v32 = vld [vmem:[#allocation2 + $0xc] sm:$0xf]  ;;  %v4554_v34 = vld [vmem:[#allocation2 + $0x10] sm:$0xf] }
 0xaad   : > { %v5873_v33 = vcombine.low %v4551_v54, %v4552_v31  ;;  %v5884_v15 = vcombine.low %v4552_v31, %v4553_v32  ;;  %v5874_v36 = vcombine.low %v4553_v32, %v4554_v34  ;;  %v5885_v37 = vcombine.low %v4554_v34, %v4554_v34  ;;  %v7282_v38 = vld [vmem:[#allocation2 + $0x4] sm:$0xff]   ;;  %v7283_v41 = vld [vmem:[#allocation2 + $0xc] sm:$0xff]   ;;  %v7312_v54 = vld [vmem:[#allocation13] sm:$0xff]  }
 0xaae   : > { %v4865_v49 = vshll.u32 %v7282_v38, 16  ;;  %v4870_v18 = vshll.u32 %v7283_v41, 16  ;;  %v4863_v20 = vshrl.u32 %v7282_v38, 16  ;;  %v4874_v43 = vshrl.u32 %v7283_v41, 16 }
 0xaaf   : > { %6832 = vmatprep.mubr.bf16.mxu1 %v5873_v33  ;;  %v4711_v11 = vshrl.u32 %v5884_v15, 16  ;;  %v4714_v45 = vshll.u32 %v5884_v15, 16  ;;  %v4720_v19 = vshrl.u32 %v5885_v37, 16  ;;  %v4723_v53 = vshll.u32 %v5885_v37, 16 }
 0xab0   : > { %6833 = vmatmul.mubr.bf16.vlgmr.msra.gmra.mxu1 %v5874_v36  ;;  %v4867_v57 = vrot.slane %v4865_v49, 1  ;;  %v4872_v58 = vrot.slane %v4870_v18, 1 }
 0xab1   : > { %6857 = vmatpush3.bf16.msra.mxu1 %v8191_v10  ;;  %v4713_v51 = vrot.slane %v4711_v11, 3  ;;  %v4716_v48 = vrot.slane %v4714_v45, 4  ;;  %v4722_v59 = vrot.slane %v4720_v19, 3  ;;  %v4725_v62 = vrot.slane %v4723_v53, 4  ;;  %v5905_v11 = vld [vmem:[%s8315_s8 + $0xb] ss:$0 sm:$0xff] }
 0xab2   : > { %6858 = vmatprep.subr.bf16.mxu1 %v7281_v56  ;;  %v4868_v63 = vor.u32 %v4867_v57, %v4863_v20  ;;  %v4876_v12 = vor.u32 %v4874_v43, %v4872_v58 }
 0xab3   : > { %v4717_v61 = vor.u32 %v4716_v48, %v4713_v51  ;;  %v4726_v27 = vor.u32 %v4725_v62, %v4722_v59 }
 0xab4   : > { %v4873_v10 = vsel %vm3316_vm5, %v4868_v63, %v4872_v58  ;;  %v4881_v14 = vsel %vm3316_vm5, %v4876_v12, %v4880_v13 }
 0xab5   : > { %6859 = vmatpush3.bf16.msra.mxu1 %v7281_v56  ;;  %v4718_v46 = vsel %vm3180_vm4, %v4709_v60, %v4717_v61  ;;  %6872 = vmatprep.mubr.bf16.mxu1 %v4873_v10  ;;  %v4727_v3 = vsel %vm3180_vm4, %v4717_v61, %v4726_v27 }
 0xab6   : > { %6852 = vmatprep.mubr.bf16.mxu0 %v4718_v46  ;;  %6860 = vmatprep.subr.bf16.mxu1 %v7284_v23  ;;  %v5018_v46 = vld [vmem:[#allocation2] sm:$0x8] }
 0xab7   : > { %6853 = vmatmul.mubr.bf16.vlgmr.msra.gmra.mxu0 %v4727_v3 }
 0xab8   : > { %6877 = vmatpush3.bf16.msra.mxu0 %v7291_v50 }
 0xab9   : > { %6861 = vmatpush3.bf16.msra.mxu1 %v7284_v23  ;;  %6878 = vmatprep.subr.bf16.mxu0 %v7292_v47 }
 0xaba   : > { %6862 = vmatprep.subr.bf16.mxu1 %v7285_v1 }
 0xabc   : > { %6879 = vmatpush3.bf16.msra.mxu0 %v7292_v47 }
 0xabd   : > { %6863 = vmatpush3.bf16.msra.mxu1 %v7285_v1  ;;  %6880 = vmatprep.subr.bf16.mxu0 %v7293_v55 }
 0xabe   : > { %6864 = vmatprep.subr.bf16.mxu1 %v7286_v30 }
 0xac0   : > { %6881 = vmatpush3.bf16.msra.mxu0 %v7293_v55 }
 0xac1   : > { %6865 = vmatpush3.bf16.msra.mxu1 %v7286_v30  ;;  %6882 = vmatprep.subr.bf16.mxu0 %v7295_v52 }
 0xac2   : > { %6866 = vmatprep.subr.bf16.mxu1 %v7287_v5 }
 0xac4   : > { %6883 = vmatpush3.bf16.msra.mxu0 %v7295_v52 }
 0xac5   : > { %6867 = vmatpush3.bf16.msra.mxu1 %v7287_v5  ;;  %6884 = vmatprep.subr.bf16.mxu0 %v7297_v7 }
 0xac6   : > { %6868 = vmatprep.subr.bf16.mxu1 %v7288_v35 }
 0xac8   : > { %6885 = vmatpush3.bf16.msra.mxu0 %v7297_v7 }
 0xac9   : > { %6869 = vmatpush3.bf16.msra.mxu1 %v7288_v35  ;;  %6886 = vmatprep.subr.bf16.mxu0 %v7299_v2 }
 0xaca   : > { %6870 = vmatprep.subr.bf16.mxu1 %v7289_v8 }
 0xacc   : > { %6887 = vmatpush3.bf16.msra.mxu0 %v7299_v2 }
 0xacd   : > { %6871 = vmatpush3.bf16.msra.mxu1 %v7289_v8  ;;  %6888 = vmatprep.subr.bf16.mxu0 %v7301_v4 }
 0xace   : > { %6896 = vmatprep.subr.bf16.mxu1 %v7294_v16 }
 0xad0   : > { %6873 = vmatmul.mubr.bf16.vlgmr.msra.gmra.mxu1 %v4881_v14  ;;  %6889 = vmatpush3.bf16.msra.mxu0 %v7301_v4  ;;  %v7313_v14 = vld [vmem:[#allocation13 + $0xb0] sm:$0xff]  }
 0xad1   : > { %6897 = vmatpush3.bf16.msra.mxu1 %v7294_v16  ;;  %6890 = vmatprep.subr.bf16.mxu0 %v7303_v22 }
 0xad2   : > { %6898 = vmatprep.subr.bf16.mxu1 %v7296_v0 }
 0xad4   : > { %6891 = vmatpush3.bf16.msra.mxu0 %v7303_v22 }
 0xad5   : > { %6899 = vmatpush3.bf16.msra.mxu1 %v7296_v0  ;;  %6916 = vmatprep.subr.bf16.mxu0 %v8286_v21 }
 0xad6   : > { %6900 = vmatprep.subr.bf16.mxu1 %v7298_v17 }
 0xad9   : > { %6901 = vmatpush3.bf16.msra.mxu1 %v7298_v17 }
 0xada   : > { %6902 = vmatprep.subr.bf16.mxu1 %v7300_v24 }
 0xadd   : > { %6903 = vmatpush3.bf16.msra.mxu1 %v7300_v24 }
 0xade   : > { %6904 = vmatprep.subr.bf16.mxu1 %v7302_v6 }
 0xae1   : > { %6905 = vmatpush3.bf16.msra.mxu1 %v7302_v6 }
 0xae2   : > { %6906 = vmatprep.subr.bf16.mxu1 %v7304_v9 }
 0xae5   : > { %6907 = vmatpush3.bf16.msra.mxu1 %v7304_v9 }
 0xae6   : > { %6908 = vmatprep.subr.bf16.mxu1 %v7308_v25 }
 0xae9   : > { %6909 = vmatpush3.bf16.msra.mxu1 %v7308_v25 }
 0xaea   : > { %6910 = vmatprep.subr.bf16.mxu1 %v7312_v54 }
 0xaed   : > { %6911 = vmatpush3.bf16.msra.mxu1 %v7312_v54 }
 0xb70   : > { %v6834_v26 = vpop.f32.mrf.mxu1 }
 0xb72   : > { %v4682_v28 = vpop.f32.mrf.mxu1 }
 0xb74   : > { %v6835_v31 = vpop.f32.mrf.mxu1 }
 0xb76   : > { %v4685_v33 = vpop.f32.mrf.mxu1 }
 0xb77   : > { %v6854_v29 = vpop.f32.mrf.mxu0 }
 0xb78   : > { %v4821_v36 = vadd.f32 %v6854_v29, %v6834_v26 }
 0xb79   : > { %v4812_v32 = vpop.f32.mrf.mxu0 }
 0xb7a   : > { %v4813_v37 = vadd.f32 %v4812_v32, %v4682_v28 }
 0xb7b   : > { %v6855_v15 = vpop.f32.mrf.mxu0 }
 0xb7c   : > { %v4824_v41 = vadd.f32 %v6855_v15, %v6835_v31  ;;  %v7316_v31 = vld [vmem:[#allocation13 + $0xa8] sm:$0xff]  }
 0xb7d   : > { %v4815_v56 = vpop.f32.mrf.mxu0 }
 0xb7e   : > { %v4816_v49 = vadd.f32 %v4815_v56, %v4685_v33  ;;  %v7322_v56 = vld [vmem:[#allocation2 + $0x14] ss:$0 sps:$4 sm:$0x11]  }
 0xb90   : > { %v6874_v34 = vpop.f32.mrf.mxu1 }
 0xb91   : > { %v4983_v42 = vadd.f32 %v6874_v34, %v4821_v36  ;;  %v7318_v34 = vld [vmem:[#allocation13 + $0x98] sm:$0xff]   ;;  %v7319_v36 = vld [vmem:[#allocation13 + $0x90] sm:$0xff]  }
 0xb92   : > { %v4966_v38 = vpop.f32.mrf.mxu1 }
 0xb93   : > { %v4981_v44 = vadd.f32 %v4966_v38, %v4813_v37  ;;  %v4991_v48 = vadd.f32 %v5905_v11, %v4983_v42  ;;  %v7320_v37 = vld [vmem:[#allocation13 + $0x88] sm:$0xff]   ;;  %v7321_v38 = vld [vmem:[#allocation13 + $0x80] sm:$0xff]  }
 0xb94   : > { %v6875_v45 = vpop.f32.mrf.mxu1 }
 0xb95   : > { %v4989_v18 = vadd.f32 %v5905_v11, %v4981_v44  ;;  %v4984_v19 = vadd.f32 %v6875_v45, %v4824_v41  ;;  %v4995_v60 = vmax.f32 %v4991_v48, 0.0  ;;  %v5346_v41 = vshll.u32 %v7322_v56, 16 }
 0xb96   : > { %v4969_v51 = vpop.f32.mrf.mxu1 }
 0xb97   : > { %v4993_v53 = vmax.f32 %v4989_v18, 0.0  ;;  %v4992_v20 = vadd.f32 %v5905_v11, %v4984_v19  ;;  %v4982_v57 = vadd.f32 %v4969_v51, %v4816_v49 }
 0xb99   : > { %v5957_v58 = vpack.c.bf16 %v4993_v53, %v4993_v53  ;;  %v4996_v59 = vmax.f32 %v4992_v20, 0.0  ;;  %v4990_v23 = vadd.f32 %v5905_v11, %v4982_v57  ;;  %v5348_v11 = vrot.slane %v5346_v41, 1 }
 0xb9b   : > { %5013 = vst [vmem:[#allocation2 + $0x4] sm:$0xf] %v5957_v58  ;;  %v5960_v61 = vpack.c.bf16 %v4996_v59, %v4996_v59  ;;  %v4994_v62 = vmax.f32 %v4990_v23, 0.0  ;;  %v5942_v58 = vld [vmem:[%s8316_s9] ss:$0 sm:$0xff] }
 0xb9d   : > { %5016 = vst [vmem:[#allocation2 + $0x10] sm:$0xf] %v5960_v61  ;;  %v5969_v63 = vpack.c.bf16 %v4995_v60, %v4994_v62 }
 0xb9f   : > { %5972 = vst [vmem:[#allocation2 + $0x8] sm:$0xff] %v5969_v63  }
 0xba2   : > { %v5019_v27 = vld [vmem:[#allocation2 + $0x4] sm:$0xf] }
 0xba3   : > { %v5920_v10 = vcombine.low %v5018_v46, %v5019_v27 }
 0xba4   : > { %v5022_v1 = vld [vmem:[#allocation2 + $0x10] sm:$0xf] }
 0xba5   : > { %v5171_v3 = vshrl.u32 %v5920_v10, 16  ;;  %v5174_v30 = vshll.u32 %v5920_v10, 16  ;;  %v5922_v5 = vcombine.low %v5022_v1, %v5022_v1 }
 0xba6   : > { %v5020_v35 = vld [vmem:[#allocation2 + $0x8] sm:$0xf]  ;;  %v5021_v39 = vld [vmem:[#allocation2 + $0xc] sm:$0xf] }
 0xba7   : > { %v5910_v8 = vcombine.low %v5019_v27, %v5020_v35  ;;  %v5921_v40 = vcombine.low %v5020_v35, %v5021_v39  ;;  %v5911_v43 = vcombine.low %v5021_v39, %v5022_v1  ;;  %v7314_v12 = vld [vmem:[#allocation2 + $0x4] sm:$0xff]   ;;  %v7315_v13 = vld [vmem:[#allocation2 + $0xc] sm:$0xff]   ;;  %v5173_v50 = vrot.slane %v5171_v3, 3 }
 0xba8   : > { %v5176_v47 = vrot.slane %v5174_v30, 4  ;;  %v5188_v55 = vshrl.u32 %v5922_v5, 16  ;;  %v5191_v16 = vshll.u32 %v5922_v5, 16  ;;  %v5333_v7 = vshll.u32 %v7314_v12, 16 }
 0xba9   : > { %6892 = vmatprep.mubr.bf16.mxu0 %v5910_v8  ;;  %v5179_v52 = vshrl.u32 %v5921_v40, 16  ;;  %v5182_v0 = vshll.u32 %v5921_v40, 16  ;;  %v5338_v17 = vshll.u32 %v7315_v13, 16  ;;  %v5331_v22 = vshrl.u32 %v7314_v12, 16 }
 0xbaa   : > { %6893 = vmatmul.mubr.bf16.vlgmr.msra.gmra.mxu0 %v5911_v43  ;;  %v5190_v2 = vrot.slane %v5188_v55, 3  ;;  %v5193_v24 = vrot.slane %v5191_v16, 4  ;;  %v5335_v9 = vrot.slane %v5333_v7, 1  ;;  %v5177_v25 = vor.u32 %v5176_v47, %v5173_v50 }
 0xbab   : > { %6917 = vmatpush3.bf16.msra.mxu0 %v8286_v21  ;;  %v5181_v4 = vrot.slane %v5179_v52, 3  ;;  %v5184_v6 = vrot.slane %v5182_v0, 4  ;;  %v5340_v28 = vrot.slane %v5338_v17, 1  ;;  %v7317_v21 = vld [vmem:[#allocation13 + $0xa0] sm:$0xff]   ;;  %v5342_v42 = vshrl.u32 %v7315_v13, 16 }
 0xbac   : > { %6918 = vmatprep.subr.bf16.mxu0 %v7313_v14  ;;  %v5336_v26 = vor.u32 %v5335_v9, %v5331_v22  ;;  %v5194_v29 = vor.u32 %v5193_v24, %v5190_v2 }
 0xbad   : > { %v5185_v54 = vor.u32 %v5184_v6, %v5181_v4  ;;  %v5344_v44 = vor.u32 %v5342_v42, %v5340_v28 }
 0xbae   : > { %v5341_v33 = vsel %vm3316_vm5, %v5336_v26, %v5340_v28 }
 0xbaf   : > { %6919 = vmatpush3.bf16.msra.mxu0 %v7313_v14  ;;  %v5186_v32 = vsel %vm3180_vm4, %v5177_v25, %v5185_v54  ;;  %v5195_v15 = vsel %vm3180_vm4, %v5185_v54, %v5194_v29  ;;  %6932 = vmatprep.mubr.bf16.mxu0 %v5341_v33  ;;  %v5349_v45 = vsel %vm3316_vm5, %v5344_v44, %v5348_v11 }
 0xbb0   : > { %6912 = vmatprep.mubr.bf16.mxu1 %v5186_v32  ;;  %6920 = vmatprep.subr.bf16.mxu0 %v7316_v31 }
 0xbb1   : > { %6913 = vmatmul.mubr.bf16.vlgmr.msra.gmra.mxu1 %v5195_v15 }
 0xbb3   : > { %6921 = vmatpush3.bf16.msra.mxu0 %v7316_v31 }
 0xbb4   : > { %6922 = vmatprep.subr.bf16.mxu0 %v7317_v21 }
 0xbb7   : > { %6923 = vmatpush3.bf16.msra.mxu0 %v7317_v21 }
 0xbb8   : > { %6924 = vmatprep.subr.bf16.mxu0 %v7318_v34 }
 0xbbb   : > { %6925 = vmatpush3.bf16.msra.mxu0 %v7318_v34 }
 0xbbc   : > { %6926 = vmatprep.subr.bf16.mxu0 %v7319_v36 }
 0xbbf   : > { %6927 = vmatpush3.bf16.msra.mxu0 %v7319_v36 }
 0xbc0   : > { %6928 = vmatprep.subr.bf16.mxu0 %v7320_v37 }
 0xbc3   : > { %6929 = vmatpush3.bf16.msra.mxu0 %v7320_v37 }
 0xbc4   : > { %6930 = vmatprep.subr.bf16.mxu0 %v7321_v38 }
 0xbc7   : > { %6931 = vmatpush3.bf16.msra.mxu0 %v7321_v38 }
 0xbca   : > { %6933 = vmatmul.mubr.bf16.vlgmr.msra.gmra.mxu0 %v5349_v45 }
 0xc6a   : > { %v6894_v49 = vpop.f32.mrf.mxu0 }
 0xc6c   : > { %v5150_v18 = vpop.f32.mrf.mxu0 }
 0xc6e   : > { %v6895_v51 = vpop.f32.mrf.mxu0 }
 0xc70   : > { %v5153_v53 = vpop.f32.mrf.mxu0 }
 0xc71   : > { %v6914_v19 = vpop.f32.mrf.mxu1 }
 0xc72   : > { %v5289_v57 = vadd.f32 %v6914_v19, %v6894_v49 }
 0xc73   : > { %v5280_v48 = vpop.f32.mrf.mxu1 }
 0xc74   : > { %v5281_v23 = vadd.f32 %v5280_v48, %v5150_v18 }
 0xc75   : > { %v6915_v20 = vpop.f32.mrf.mxu1 }
 0xc76   : > { %v5292_v63 = vadd.f32 %v6915_v20, %v6895_v51 }
 0xc77   : > { %v5283_v61 = vpop.f32.mrf.mxu1 }
 0xc78   : > { %v5284_v1 = vadd.f32 %v5283_v61, %v5153_v53 }
 0xc8a   : > { %v6934_v59 = vpop.f32.mrf.mxu0 }
 0xc8b   : > { %v5451_v60 = vadd.f32 %v6934_v59, %v5289_v57 }
 0xc8c   : > { %v5434_v62 = vpop.f32.mrf.mxu0 }
 0xc8d   : > { %v5461_v46 = vadd.f32 %v5942_v58, %v5451_v60  ;;  %v5449_v27 = vadd.f32 %v5434_v62, %v5281_v23 }
 0xc8e   : > { %v6935_v10 = vpop.f32.mrf.mxu0 }
 0xc8f   : > { %5465 = vst [vmem:[%s461_s26 + $0x10] sm:$0xff] %v5461_v46  ;;  %v5459_v3 = vadd.f32 %v5942_v58, %v5449_v27  ;;  %v5452_v30 = vadd.f32 %v6935_v10, %v5292_v63 }
 0xc90   : > { %v5437_v5 = vpop.f32.mrf.mxu0 }
 0xc91   : > { %5463 = vst [vmem:[%s461_s26] sm:$0xff] %v5459_v3  ;;  %v5462_v35 = vadd.f32 %v5942_v58, %v5452_v30  ;;  %v5450_v39 = vadd.f32 %v5437_v5, %v5284_v1 }
 0xc93   : > { %5466 = vst [vmem:[%s461_s26 + $0x18] sm:$0xff] %v5462_v35  ;;  %v5460_v8 = vadd.f32 %v5942_v58, %v5450_v39 }
 0xc95   : > { %5464 = vst [vmem:[%s461_s26 + $0x8] sm:$0xff] %v5460_v8 }
 0xc96 PF: > { %s24_s13 = sadd.s32 1, %s7527_s13  }
 0xc97   : > { %p21_p2 = scmp.ge.s32.totalorder %s24_s13, 4  }
 0xc99   :  { %23 = sbr.rel (!%p21_p2) target bundleno = 4 (0x4), region = 145 }
 0xc9e   :  { %5488 = vsyncpa [#allocation4], 1 }
 0xc9f   :  { %5490 = vsyncpa [#allocation4 + $0x1], 1 }
 0xca0   :  { %5491 = vsyncpa [#allocation6], 1 }
 0xca1   :  { %5492 = vsyncpa [#allocation9], 1 }
 0xca2   :  { %5493 = vsyncpa [#allocation12], 1 }

// kernel: _lambda_.1
= control target key start
LH: loop header
LB: loop body
LE: loop exit
PB: predicated region body
PF: predicated region fallthrough
CT: control target
= control target key end

     0   :  { %15 = vsyncpa [#allocation4], 0  ;;  %s8307_s0 = inlined_call_operand.vmem [shape: bf16[2,10,128], index: 0, kind: input, shape index: {}]   ;;  %s8308_s1 = inlined_call_operand.hbm [shape: bf16[3,128,128], index: 1, kind: input, shape index: {}]   ;;  %s8309_s2 = inlined_call_operand.hbm [shape: bf16[4,3,128,128], index: 2, kind: input, shape index: {}]   ;;  %s8310_s3 = inlined_call_operand.hbm [shape: bf16[4,128,128], index: 3, kind: input, shape index: {}]   ;;  %s8311_s4 = inlined_call_operand.hbm [shape: bf16[2,2,128,128], index: 4, kind: input, shape index: {}]   ;;  %s8312_s5 = inlined_call_operand.hbm [shape: bf16[2,2,128,128], index: 5, kind: input, shape index: {}]   ;;  %s8313_s6 = inlined_call_operand.hbm [shape: bf16[3,128,128], index: 6, kind: input, shape index: {}]   ;;  %s8314_s7 = inlined_call_operand.hbm [shape: bf16[3,128,128], index: 7, kind: input, shape index: {}]   ;;  %s8315_s8 = inlined_call_operand.vmem [shape: f32[12,128], index: 8, kind: input, shape index: {}]   ;;  %s8316_s9 = inlined_call_operand.vmem [shape: f32[1,128], index: 9, kind: input, shape index: {}]   ;;  %s8317_s10 = inlined_call_operand.vmem [shape: f32[2,32,128], index: 10, kind: output, shape index: {}]  }
   0x1   :  { %16 = vsyncpa [#allocation6], 0 }
   0x2   :  { %17 = vsyncpa [#allocation9], 0 }
   0x3   :  { %18 = vsyncpa [#allocation12], 0  ;;  %s7598_s13 = smov 0  }
   0x4 LB: > { %s7604_s14 = sadd.s32 4294967295, %s7527_s13   ;;  %p5593_p0 = scmp.ge.s32.totalorder %s7527_s13, 1  ;;  %s7527_s13 = sphi %s7598_s13, %s24_s13  }
   0x5   : > { %p270_p1 = scmp.lt.s32.totalorder %s7527_s13, 3  ;;  %p6986_p2 = scmp.eq.s32.totalorder %s7604_s14, 0 }
   0x6   : > { %s7529_s16 = smov [#allocation5]   ;;  %s7530_s18 = smov [#allocation8]  }
   0x7   : > { %p7609_p3 = pnand %p5593_p0, %p270_p1  ;;  %s295_s17 = sshll.u32 %s7529_s16, 4  ;;  %s296_s17 = int_to_ptr.vmem [resolvable:$true] %s295_s17 }
   0x8   : > { %s321_s19 = sshll.u32 %s7530_s18, 4  ;;  %s7531_s21 = smov [#allocation11]   ;;  %s7615_s19 = int_to_ptr.vmem [resolvable:$true] %s321_s19 }
   0x9   : > { %p6964_p4 = pneg %p7609_p3  ;;  %s347_s22 = sshll.u32 %s7531_s21, 4  ;;  %s7623_s22 = int_to_ptr.vmem [resolvable:$true] %s347_s22 }
   0xa   : > { %s7532_s23 = smov [#allocation3]   ;;  %s7334_s26 = scalar_lea.vmem %s296_s17, 12288 }
   0xb   : > { %p7619_p5 = pnand %p6986_p2, %p6964_p4  ;;  %s7625_s24 = sshll.u32 %s7532_s23, 4  ;;  %s283_s24 = int_to_ptr.vmem [resolvable:$true] %s7625_s24 }
   0xc   : > { %p7335_p7 = scmp.ne.s32.totalorder %s296_s17, %s7334_s26  ;;  %p7342_p10 = scmp.lt.s32.totalorder %s296_s17, %s296_s17 }
   0xd   : > { %p7629_p6 = pneg %p7619_p5  ;;  %p7343_p11 = scmp.lt.s32.totalorder %s7334_s26, %s7334_s26 }
   0xf   : > { %p7337_p8 = pnand %p7335_p7, %p7629_p6  ;;  %p7344_p12 = por %p7343_p11, %p7342_p10 }
  0x11   : > { %p7338_p9 = pneg %p7337_p8 }
  0x13   : > { %p7345_p13 = pnand %p7344_p12, %p7338_p9 }
  0x15   : > { %7348 = shalt.err (!%p7345_p13)
}
  0x16   : > { %s7533_s27 = smov 64   ;;  %s7534_s28 = smov 4  }
  0x17   : > { %6970 = dma.hbm_to_vmem [thread:$0]  (!%p7619_p5), %s8309_s2, 12288, %s296_s17, [#allocation6], %s7533_s27, %s7533_s27, %s7534_s28  }
  0x18   : > { %s7360_s11 = scalar_lea.vmem %s7615_s19, 4096  ;;  %p7368_p7 = scmp.lt.s32.totalorder %s7615_s19, %s7615_s19 }
  0x19   : > { %p7361_p0 = scmp.ne.s32.totalorder %s7615_s19, %s7360_s11  ;;  %p7369_p8 = scmp.lt.s32.totalorder %s7360_s11, %s7360_s11 }
  0x1b   : > { %p7363_p1 = pnand %p7361_p0, %p7629_p6  ;;  %p7370_p9 = por %p7369_p8, %p7368_p7 }
  0x1d   : > { %p7364_p4 = pneg %p7363_p1 }
  0x1f   : > { %p7371_p10 = pnand %p7370_p9, %p7364_p4 }
  0x21   : > { %7374 = shalt.err (!%p7371_p10)
}
  0x22   : > { %6976 = dma.hbm_to_vmem [thread:$0]  (!%p7619_p5), %s8311_s4, 4096, %s7615_s19, [#allocation9], %s7533_s27, %s7533_s27, %s7534_s28  }
  0x23   : > { %s7386_s17 = scalar_lea.vmem %s7623_s22, 3072  ;;  %p7394_p0 = scmp.lt.s32.totalorder %s7623_s22, %s7623_s22 }
  0x24   : > { %p7387_p11 = scmp.ne.s32.totalorder %s7623_s22, %s7386_s17  ;;  %p7395_p1 = scmp.lt.s32.totalorder %s7386_s17, %s7386_s17 }
  0x26   : > { %p7389_p12 = pnand %p7387_p11, %p7629_p6  ;;  %p7396_p4 = por %p7395_p1, %p7394_p0 }
  0x28   : > { %p7390_p13 = pneg %p7389_p12 }
  0x2a   : > { %p7397_p7 = pnand %p7396_p4, %p7390_p13 }
  0x2c   : > { %7400 = shalt.err (!%p7397_p7)
}
  0x2d   : > { %6982 = dma.hbm_to_vmem [thread:$0]  (!%p7619_p5), %s8313_s6, 3072, %s7623_s22, [#allocation12], %s7533_s27, %s7533_s27, %s7534_s28  }
  0x2e   : > { %s7412_s19 = scalar_lea.vmem %s283_s24, 3072  ;;  %p7420_p11 = scmp.lt.s32.totalorder %s283_s24, %s283_s24 }
  0x2f   : > { %p7413_p8 = scmp.ne.s32.totalorder %s283_s24, %s7412_s19  ;;  %p7421_p12 = scmp.lt.s32.totalorder %s7412_s19, %s7412_s19 }
  0x31   : > { %p7415_p9 = pnand %p7413_p8, %p7629_p6  ;;  %p7422_p13 = por %p7421_p12, %p7420_p11 }
  0x33   : > { %p7416_p10 = pneg %p7415_p9 }
  0x35   : > { %p7423_p0 = pnand %p7422_p13, %p7416_p10 }
  0x37   : > { %7426 = shalt.err (!%p7423_p0)
}
  0x38   : > { %6967 = dma.hbm_to_vmem [thread:$0]  (!%p7619_p5), %s8308_s1, 3072, %s283_s24, [#allocation4], %s7533_s27, %s7533_s27, %s7534_s28  }
  0x39   : > { %s7535_s22 = smov [#allocation7]   ;;  %s7536_s30 = smov [#allocation10]  }
  0x3a   : > { %s308_s29 = sshll.u32 %s7535_s22, 4  ;;  %s334_s11 = sshll.u32 %s7536_s30, 4  ;;  %s309_s29 = int_to_ptr.vmem [resolvable:$true] %s308_s29  ;;  %s335_s11 = int_to_ptr.vmem [resolvable:$true] %s334_s11 }
  0x3b   : > { %s7438_s12 = scalar_lea.vmem %s309_s29, 4096  ;;  %p7446_p8 = scmp.lt.s32.totalorder %s309_s29, %s309_s29 }
  0x3c   : > { %p7439_p1 = scmp.ne.s32.totalorder %s309_s29, %s7438_s12  ;;  %p7447_p9 = scmp.lt.s32.totalorder %s7438_s12, %s7438_s12 }
  0x3e   : > { %p7441_p4 = pnand %p7439_p1, %p7629_p6  ;;  %p7448_p10 = por %p7447_p9, %p7446_p8 }
  0x40   : > { %p7442_p7 = pneg %p7441_p4 }
  0x42   : > { %p7449_p11 = pnand %p7448_p10, %p7442_p7 }
  0x44   : > { %7452 = shalt.err (!%p7449_p11)
}
  0x45   : > { %6973 = dma.hbm_to_vmem [thread:$0]  (!%p7619_p5), %s8310_s3, 4096, %s309_s29, [#allocation6], %s7533_s27, %s7533_s27, %s7534_s28  }
  0x46   : > { %s7464_s17 = scalar_lea.vmem %s335_s11, 4096  ;;  %p7472_p1 = scmp.lt.s32.totalorder %s335_s11, %s335_s11 }
  0x47   : > { %p7465_p12 = scmp.ne.s32.totalorder %s335_s11, %s7464_s17  ;;  %p7473_p4 = scmp.lt.s32.totalorder %s7464_s17, %s7464_s17 }
  0x49   : > { %p7467_p13 = pnand %p7465_p12, %p7629_p6  ;;  %p7474_p7 = por %p7473_p4, %p7472_p1 }
  0x4b   : > { %p7468_p0 = pneg %p7467_p13 }
  0x4d   : > { %p7475_p8 = pnand %p7474_p7, %p7468_p0 }
  0x4f   : > { %7478 = shalt.err (!%p7475_p8)
}
  0x50   : > { %6979 = dma.hbm_to_vmem [thread:$0]  (!%p7619_p5), %s8312_s5, 4096, %s335_s11, [#allocation9], %s7533_s27, %s7533_s27, %s7534_s28  }
  0x51   : > { %s7537_s19 = smov [#allocation13]  }
  0x52   : > { %s360_s23 = sshll.u32 %s7537_s19, 4  ;;  %s361_s23 = int_to_ptr.vmem [resolvable:$true] %s360_s23 }
  0x53   : > { %s7490_s26 = scalar_lea.vmem %s361_s23, 3072  ;;  %p7498_p12 = scmp.lt.s32.totalorder %s361_s23, %s361_s23 }
  0x54   : > { %p7491_p9 = scmp.ne.s32.totalorder %s361_s23, %s7490_s26  ;;  %p7499_p13 = scmp.lt.s32.totalorder %s7490_s26, %s7490_s26 }
  0x56   : > { %p7493_p10 = pnand %p7491_p9, %p7629_p6  ;;  %p7500_p0 = por %p7499_p13, %p7498_p12 }
  0x58   : > { %p7494_p11 = pneg %p7493_p10 }
  0x5a   : > { %p7501_p1 = pnand %p7500_p0, %p7494_p11 }
  0x5c   : > { %7504 = shalt.err (!%p7501_p1)
}
  0x5d   : > { %6985 = dma.hbm_to_vmem [thread:$0]  (!%p7619_p5), %s8314_s7, 3072, %s361_s23, [#allocation12], %s7533_s27, %s7533_s27, %s7534_s28  }
  0x5e   : > { %390 = sbr.rel (%p7609_p3) target bundleno = 3222 (0xc96), region = 60 }
  0x63   : > { %7510 = dma.done.wait (%p6986_p2), [#allocation4], 3072  }
  0x64   : > { %7512 = vsyncadd (%p6986_p2), [#allocation4], 4294964224 }
  0x65   : > { %7514 = dma.done.wait (%p6986_p2), [#allocation6], 16384  }
  0x66   : > { %7516 = vsyncadd (%p6986_p2), [#allocation6], 4294950912 }
  0x67   : > { %7518 = dma.done.wait (%p6986_p2), [#allocation9], 8192  }
  0x68   : > { %7520 = vsyncadd (%p6986_p2), [#allocation9], 4294959104 }
  0x69   : > { %7522 = dma.done.wait (%p6986_p2), [#allocation12], 6144  }
  0x6a   : > { %7524 = vsyncadd (%p6986_p2), [#allocation12], 4294961152  ;;  %v7538_v0 = vmov 0.0   ;;  %vm7539_vm0 = vmmov 0   ;;  %v7022_v1 = vld [vmem:[#allocation3 + $0x78] sm:$0xff]   ;;  %v7024_v3 = vld [vmem:[#allocation3 + $0x70] sm:$0xff]  }
  0x6b   : > { %6276 = vmatprep.subr.bf16.mxu0 %v7538_v0  ;;  %6296 = vmatprep.subr.bf16.mxu1 %v7538_v0  ;;  %v7023_v2 = vld [vmem:[#allocation3 + $0x38] sm:$0xff]   ;;  %p452_p3 = scmp.lt.s32.totalorder %s7604_s14, 1  ;;  %v7025_v4 = vld [vmem:[#allocation3 + $0x30] sm:$0xff]   ;;  %v7026_v5 = vld [vmem:[#allocation3 + $0x68] sm:$0xff]   ;;  %v7540_v49 = vmov 0   ;;  %vm2349_vm1 = vcmask 1040384  }
  0x6c   : > { %6292 = vmatprep.mubr.msk.bf16.mxu0 %vm7539_vm0, %v7538_v0  ;;  %6312 = vmatprep.mubr.msk.bf16.mxu1 %vm7539_vm0, %v7538_v0  ;;  %v7027_v6 = vld [vmem:[#allocation3 + $0x28] sm:$0xff]   ;;  %v7028_v7 = vld [vmem:[#allocation3 + $0x60] sm:$0xff]   ;;  %v7030_v9 = vld [vmem:[#allocation3 + $0x58] sm:$0xff]   ;;  %810 = vst [vmem:[#allocation2] sm:$0xf] %v7540_v49 }
  0x6d   : > { %6277 = vmatpush3.bf16.msra.mxu0 %v7022_v1  ;;  %6297 = vmatpush3.bf16.msra.mxu1 %v7023_v2  ;;  %s8322_s14 = smov (!%p452_p3, %s7604_s14), 1  ;;  %v7029_v8 = vld [vmem:[#allocation3 + $0x20] sm:$0xff]   ;;  %v7031_v10 = vld [vmem:[#allocation3 + $0x18] sm:$0xff]   ;;  %v7032_v14 = vld [vmem:[#allocation3 + $0x50] sm:$0xff]   ;;  %811 = vst [vmem:[#allocation2 + $0x8] sm:$0xf] %v7540_v49 }
  0x6e   : > { %6278 = vmatprep.subr.bf16.mxu0 %v7538_v0  ;;  %6298 = vmatprep.subr.bf16.mxu1 %v7538_v0  ;;  %s5945_s15 = sshll.u32 %s8322_s14, 3  ;;  %v7033_v15 = vld [vmem:[#allocation3 + $0x10] sm:$0xff]   ;;  %v7034_v17 = vld [vmem:[#allocation3 + $0x48] sm:$0xff]   ;;  %v7036_v19 = vld [vmem:[#allocation3 + $0x40] sm:$0xff]   ;;  %2414 = vst [vmem:[#allocation2 + $0xc] sm:$0xf] %v7540_v49 }
  0x6f   : > { %s456_s27 = scalar_lea.vmem %s8307_s0, %s5945_s15  ;;  %v7035_v18 = vld [vmem:[#allocation3 + $0x8] sm:$0xff]   ;;  %v7037_v24 = vld [vmem:[#allocation3] sm:$0xff]   ;;  %v7039_v26 = vld [vmem:[#allocation3 + $0xb8] sm:$0xff]   ;;  %4530 = vst [vmem:[#allocation2 + $0x14] sm:$0xf] %v7540_v49  ;;  %s5946_s17 = sshll.u32 %s8322_s14, 5 }
  0x70   : > { %v464_v11 = vld [vmem:[%s456_s27] sm:$0xf]  ;;  %v481_v12 = vld [vmem:[%s456_s27 + $0x4] sm:$0x1]  ;;  %v7040_v28 = vld [vmem:[#allocation3 + $0xb0] sm:$0xff]   ;;  %s461_s26 = scalar_lea.vmem %s8317_s10, %s5946_s17 }
  0x71   : > { %6279 = vmatpush3.bf16.msra.mxu0 %v7024_v3  ;;  %6299 = vmatpush3.bf16.msra.mxu1 %v7025_v4  ;;  %v5614_v13 = vcombine.low %v464_v11, %v481_v12  ;;  %v688_v22 = vld [vmem:[%s456_s27] sm:$0xe]  ;;  %v7042_v30 = vld [vmem:[#allocation3 + $0xa0] sm:$0xff]   ;;  %v7043_v31 = vld [vmem:[#allocation3 + $0x98] sm:$0xff]   ;;  %vm2563_vm2 = vsmask.f32 5376 }
  0x72   : > { %6280 = vmatprep.subr.bf16.mxu0 %v7538_v0  ;;  %6300 = vmatprep.subr.bf16.mxu1 %v7538_v0  ;;  %v5631_v23 = vcombine.low %v688_v22, %v481_v12  ;;  %v7041_v29 = vld [vmem:[#allocation3 + $0xa8] sm:$0xff]   ;;  %v7044_v32 = vld [vmem:[#allocation3 + $0x90] sm:$0xff]   ;;  %v7046_v34 = vld [vmem:[#allocation3 + $0x80] sm:$0xff]   ;;  %vm2699_vm3 = vsmask.f32 6400 }
  0x73   : > { %v507_v16 = vshll.u32 %v5614_v13, 16  ;;  %v505_v20 = vshrl.u32 %v5614_v13, 16  ;;  %v7045_v33 = vld [vmem:[#allocation3 + $0x88] sm:$0xff]   ;;  %v7048_v35 = vld [vmem:[#allocation5 + $0x78] sm:$0xff]   ;;  %v7049_v36 = vld [vmem:[#allocation5 + $0x70] sm:$0xff]  }
  0x74   : > { %v709_v25 = vrot.slane %v5631_v23, 1  ;;  %v7051_v37 = vld [vmem:[#allocation5 + $0x38] sm:$0xff]   ;;  %v7050_v38 = vld [vmem:[#allocation5 + $0x68] sm:$0xff]   ;;  %v7052_v39 = vld [vmem:[#allocation5 + $0x60] sm:$0xff]   ;;  %vm3180_vm4 = vsmask.f32 4352 }
  0x75   : > { %6281 = vmatpush3.bf16.msra.mxu0 %v7026_v5  ;;  %6301 = vmatpush3.bf16.msra.mxu1 %v7027_v6  ;;  %v509_v21 = vrot.slane %v507_v16, 1  ;;  %v7053_v40 = vld [vmem:[#allocation5 + $0x30] sm:$0xff]   ;;  %v7054_v41 = vld [vmem:[#allocation5 + $0x58] sm:$0xff]   ;;  %v7055_v42 = vld [vmem:[#allocation5 + $0x28] sm:$0xff]   ;;  %vm3316_vm5 = vsmask.f32 7424 }
  0x76   : > { %6282 = vmatprep.subr.bf16.mxu0 %v7538_v0  ;;  %6302 = vmatprep.subr.bf16.mxu1 %v7538_v0  ;;  %v7056_v43 = vld [vmem:[#allocation5 + $0x50] sm:$0xff]   ;;  %v7057_v44 = vld [vmem:[#allocation5 + $0x20] sm:$0xff]   ;;  %v7058_v45 = vld [vmem:[#allocation5 + $0x48] sm:$0xff]  }
  0x77   : > { %v510_v27 = vor.u32 %v509_v21, %v505_v20  ;;  %v7059_v46 = vld [vmem:[#allocation5 + $0x18] sm:$0xff]   ;;  %v7060_v47 = vld [vmem:[#allocation5 + $0x40] sm:$0xff]   ;;  %v7061_v48 = vld [vmem:[#allocation5 + $0x10] sm:$0xff]  }
  0x78   : > { %v7063_v50 = vld [vmem:[#allocation5 + $0x8] sm:$0xff]   ;;  %v7065_v51 = vld [vmem:[#allocation5] sm:$0xff]   ;;  %v7070_v20 = vld [vmem:[#allocation5 + $0x90] sm:$0xff]  }
  0x79   : > { %6283 = vmatpush3.bf16.msra.mxu0 %v7028_v7  ;;  %6303 = vmatpush3.bf16.msra.mxu1 %v7029_v8  ;;  %v5640_v61 = vld [vmem:[%s8315_s8] ss:$0 sm:$0xff]  ;;  %v7062_v8 = vld [vmem:[#allocation5 + $0xb8] sm:$0xff]  }
  0x7a   : > { %6284 = vmatprep.subr.bf16.mxu0 %v7538_v0  ;;  %6304 = vmatprep.subr.bf16.mxu1 %v7538_v0  ;;  %v7071_v22 = vld [vmem:[#allocation5 + $0x88] sm:$0xff]  }
  0x7d   : > { %6285 = vmatpush3.bf16.msra.mxu0 %v7030_v9  ;;  %6305 = vmatpush3.bf16.msra.mxu1 %v7031_v10 }
  0x7e   : > { %6286 = vmatprep.subr.bf16.mxu0 %v7538_v0  ;;  %6306 = vmatprep.subr.bf16.mxu1 %v7538_v0 }
  0x81   : > { %6287 = vmatpush3.bf16.msra.mxu0 %v7032_v14  ;;  %6307 = vmatpush3.bf16.msra.mxu1 %v7033_v15 }
  0x82   : > { %6288 = vmatprep.subr.bf16.mxu0 %v7538_v0  ;;  %6308 = vmatprep.subr.bf16.mxu1 %v7538_v0 }
  0x85   : > { %6289 = vmatpush3.bf16.msra.mxu0 %v7034_v17  ;;  %6309 = vmatpush3.bf16.msra.mxu1 %v7035_v18  ;;  %v7067_v17 = vld [vmem:[#allocation5 + $0xa8] sm:$0xff]   ;;  %v7068_v18 = vld [vmem:[#allocation5 + $0xa0] sm:$0xff]  }
  0x86   : > { %6290 = vmatprep.subr.bf16.mxu0 %v7538_v0  ;;  %6310 = vmatprep.subr.bf16.mxu1 %v7538_v0 }
  0x89   : > { %6291 = vmatpush3.bf16.msra.mxu0 %v7036_v19  ;;  %6311 = vmatpush3.bf16.msra.mxu1 %v7037_v24  ;;  %v7069_v19 = vld [vmem:[#allocation5 + $0x98] sm:$0xff]  }
  0x8a   : > { %6316 = vmatprep.subr.bf16.mxu0 %v7538_v0  ;;  %6336 = vmatprep.subr.bf16.mxu1 %v7538_v0 }
  0x8c   : > { %6293 = vmatmul.mubr.bf16.vlgmr.msra.gmra.mxu0 %v510_v27  ;;  %6313 = vmatmul.mubr.bf16.vlgmr.msra.gmra.mxu1 %v464_v11  ;;  %v7064_v11 = vld [vmem:[#allocation5 + $0xb0] sm:$0xff]  }
  0x8d   : > { %6317 = vmatpush3.bf16.msra.mxu0 %v7039_v26  ;;  %6332 = vmatprep.mubr.msk.bf16.mxu0 %vm7539_vm0, %v7538_v0 }
  0x8e   : > { %6318 = vmatprep.subr.bf16.mxu0 %v7538_v0  ;;  %6352 = vmatprep.mubr.msk.bf16.mxu1 %vm7539_vm0, %v7538_v0 }
  0x8f   : > { %6337 = vmatpush3.bf16.msra.mxu1 %v7048_v35  ;;  %v7080_v35 = vld [vmem:[#allocation7 + $0x8] sm:$0xff]  }
  0x90   : > { %6338 = vmatprep.subr.bf16.mxu1 %v7538_v0 }
  0x91   : > { %6319 = vmatpush3.bf16.msra.mxu0 %v7040_v28 }
  0x92   : > { %6320 = vmatprep.subr.bf16.mxu0 %v7538_v0 }
  0x93   : > { %6339 = vmatpush3.bf16.msra.mxu1 %v7049_v36  ;;  %v7081_v36 = vld [vmem:[#allocation7] sm:$0xff]  }
  0x94   : > { %6340 = vmatprep.subr.bf16.mxu1 %v7538_v0 }
  0x95   : > { %6321 = vmatpush3.bf16.msra.mxu0 %v7041_v29  ;;  %v7074_v29 = vld [vmem:[#allocation7 + $0x38] sm:$0xff]  }
  0x96   : > { %6322 = vmatprep.subr.bf16.mxu0 %v7538_v0 }
  0x97   : > { %6341 = vmatpush3.bf16.msra.mxu1 %v7050_v38  ;;  %v7083_v38 = vld [vmem:[#allocation5 + $0x130] sm:$0xff]  }
  0x98   : > { %6342 = vmatprep.subr.bf16.mxu1 %v7538_v0 }
  0x99   : > { %6323 = vmatpush3.bf16.msra.mxu0 %v7042_v30  ;;  %v7075_v30 = vld [vmem:[#allocation7 + $0x30] sm:$0xff]  }
  0x9a   : > { %6324 = vmatprep.subr.bf16.mxu0 %v7538_v0 }
  0x9b   : > { %6343 = vmatpush3.bf16.msra.mxu1 %v7052_v39  ;;  %v7084_v39 = vld [vmem:[#allocation5 + $0x128] sm:$0xff]  }
  0x9c   : > { %6344 = vmatprep.subr.bf16.mxu1 %v7538_v0 }
  0x9d   : > { %6325 = vmatpush3.bf16.msra.mxu0 %v7043_v31  ;;  %v7076_v31 = vld [vmem:[#allocation7 + $0x28] sm:$0xff]  }
  0x9e   : > { %6326 = vmatprep.subr.bf16.mxu0 %v7538_v0 }
  0x9f   : > { %6345 = vmatpush3.bf16.msra.mxu1 %v7054_v41 }
  0xa0   : > { %6346 = vmatprep.subr.bf16.mxu1 %v7538_v0 }
  0xa1   : > { %6327 = vmatpush3.bf16.msra.mxu0 %v7044_v32  ;;  %v7077_v32 = vld [vmem:[#allocation7 + $0x20] sm:$0xff]  }
  0xa2   : > { %6328 = vmatprep.subr.bf16.mxu0 %v7538_v0 }
  0xa3   : > { %6347 = vmatpush3.bf16.msra.mxu1 %v7056_v43 }
  0xa4   : > { %6348 = vmatprep.subr.bf16.mxu1 %v7538_v0 }
  0xa5   : > { %6329 = vmatpush3.bf16.msra.mxu0 %v7045_v33  ;;  %v7078_v33 = vld [vmem:[#allocation7 + $0x18] sm:$0xff]  }
  0xa6   : > { %6330 = vmatprep.subr.bf16.mxu0 %v7538_v0 }
  0xa7   : > { %6349 = vmatpush3.bf16.msra.mxu1 %v7058_v45 }
  0xa8   : > { %6350 = vmatprep.subr.bf16.mxu1 %v7538_v0 }
  0xa9   : > { %6331 = vmatpush3.bf16.msra.mxu0 %v7046_v34  ;;  %v7079_v34 = vld [vmem:[#allocation7 + $0x10] sm:$0xff]  }
  0xaa   : > { %6356 = vmatprep.subr.bf16.mxu0 %v7538_v0 }
  0xab   : > { %6351 = vmatpush3.bf16.msra.mxu1 %v7060_v47 }
  0xac   : > { %6333 = vmatmul.mubr.bf16.vlgmr.msra.gmra.mxu0 %v709_v25  ;;  %6376 = vmatprep.subr.bf16.mxu1 %v7538_v0  ;;  %v7072_v25 = vld [vmem:[#allocation5 + $0x80] sm:$0xff]  }
  0xad   : > { %6372 = vmatprep.mubr.msk.bf16.mxu0 %vm7539_vm0, %v7538_v0  ;;  %6357 = vmatpush3.bf16.msra.mxu0 %v7051_v37  ;;  %v7082_v37 = vld [vmem:[#allocation5 + $0x138] sm:$0xff]  }
  0xae   : > { %6358 = vmatprep.subr.bf16.mxu0 %v7538_v0 }
  0xb1   : > { %6359 = vmatpush3.bf16.msra.mxu0 %v7053_v40  ;;  %v7086_v40 = vld [vmem:[#allocation5 + $0x120] sm:$0xff]  }
  0xb2   : > { %6360 = vmatprep.subr.bf16.mxu0 %v7538_v0 }
  0xb5   : > { %6361 = vmatpush3.bf16.msra.mxu0 %v7055_v42 }
  0xb6   : > { %6362 = vmatprep.subr.bf16.mxu0 %v7538_v0 }
  0xb9   : > { %6363 = vmatpush3.bf16.msra.mxu0 %v7057_v44 }
  0xba   : > { %6364 = vmatprep.subr.bf16.mxu0 %v7538_v0 }
  0xbd   : > { %6365 = vmatpush3.bf16.msra.mxu0 %v7059_v46 }
  0xbe   : > { %6366 = vmatprep.subr.bf16.mxu0 %v7538_v0 }
  0xc1   : > { %6367 = vmatpush3.bf16.msra.mxu0 %v7061_v48 }
  0xc2   : > { %6368 = vmatprep.subr.bf16.mxu0 %v7538_v0 }
  0xc5   : > { %6369 = vmatpush3.bf16.msra.mxu0 %v7063_v50 }
  0xc6   : > { %6370 = vmatprep.subr.bf16.mxu0 %v7538_v0 }
  0xc9   : > { %6371 = vmatpush3.bf16.msra.mxu0 %v7065_v51  ;;  %v5667_v51 = vld [vmem:[%s8315_s8 + $0x1] ss:$0 sm:$0xff] }
  0xca   : > { %6396 = vmatprep.subr.bf16.mxu0 %v7538_v0 }
 0x14c   : > { %v594_v52 = vpop.f32.mrf.mxu0  ;;  %v682_v53 = vpop.f32.mrf.mxu1 }
 0x14d   : > { %v683_v60 = vadd.f32 %v682_v53, %v594_v52 }
 0x14e   : > { %v6294_v54 = vpop.f32.mrf.mxu0  ;;  %v6314_v55 = vpop.f32.mrf.mxu1 }
 0x150   : > { %v597_v56 = vpop.f32.mrf.mxu0  ;;  %v685_v57 = vpop.f32.mrf.mxu1 }
 0x152   : > { %v6295_v58 = vpop.f32.mrf.mxu0  ;;  %v6315_v59 = vpop.f32.mrf.mxu1 }
 0x153   : > { %v7085_v59 = vld [vmem:[#allocation5 + $0xf8] sm:$0xff]  }
 0x16c   : > { %v793_v62 = vpop.f32.mrf.mxu0 }
 0x16d   : > { %v799_v63 = vadd.f32 %v793_v62, %v683_v60  ;;  %v7088_v62 = vld [vmem:[#allocation5 + $0x118] sm:$0xff]  }
 0x16e   : > { %v6334_v1 = vpop.f32.mrf.mxu0 }
 0x16f   : > { %v7799_v2 = vadd.f32 %v5640_v61, %v799_v63  ;;  %v7087_v61 = vld [vmem:[#allocation5 + $0xf0] sm:$0xff]   ;;  %v7089_v63 = vld [vmem:[#allocation5 + $0xe8] sm:$0xff]  }
 0x170   : > { %v796_v3 = vpop.f32.mrf.mxu0  ;;  %v7090_v1 = vld [vmem:[#allocation5 + $0x110] sm:$0xff]  }
 0x171   : > { %v805_v4 = vmax.f32 %v7799_v2, 0.0  ;;  %v7091_v3 = vld [vmem:[#allocation5 + $0xe0] sm:$0xff]  }
 0x172   : > { %v6335_v5 = vpop.f32.mrf.mxu0 }
 0x173   : > { %v808_v6 = vmax.f32 %v805_v4, 0.0  ;;  %v7092_v5 = vld [vmem:[#allocation5 + $0x108] sm:$0xff]  }
 0x175   : > { %v809_v7 = vpack.c.bf16 %v808_v6, %v808_v6  ;;  %v7093_v6 = vld [vmem:[#allocation5 + $0xd8] sm:$0xff]  }
 0x177   : > { %812 = vst [vmem:[#allocation2 + $0x4] sm:$0xf] %v809_v7  ;;  %v7094_v7 = vld [vmem:[#allocation5 + $0x100] sm:$0xff]  }
 0x17e   : > { %v831_v9 = vld [vmem:[#allocation2 + $0x4] sm:$0xf] }
 0x17f   : > { %v7066_v10 = vld [vmem:[#allocation2] sm:$0x7c]   ;;  %6353 = vmatmul.mubr.bf16.vlgmr.msra.gmra.mxu1 %v831_v9 }
 0x180   : > { %6377 = vmatpush3.bf16.msra.mxu1 %v7062_v8  ;;  %v943_v12 = vshrl.u32 %v7066_v10, 16  ;;  %v946_v13 = vshll.u32 %v7066_v10, 16  ;;  %6392 = vmatprep.mubr.msk.bf16.mxu1 %vm7539_vm0, %v7538_v0  ;;  %v7073_v21 = vld [vmem:[#allocation2 + $0x4] sm:$0x3e]   ;;  %v7099_v10 = vld [vmem:[#allocation5 + $0xc0] sm:$0xff]  }
 0x181   : > { %6378 = vmatprep.subr.bf16.mxu1 %v7538_v0  ;;  %v1064_v23 = vshrl.u32 %v7073_v21, 16  ;;  %v1067_v24 = vshll.u32 %v7073_v21, 16  ;;  %v7095_v8 = vld [vmem:[#allocation5 + $0xd0] sm:$0xff]   ;;  %v7097_v9 = vld [vmem:[#allocation5 + $0xc8] sm:$0xff]  }
 0x182   : > { %v945_v14 = vrot.slane %v943_v12, 2  ;;  %v948_v15 = vrot.slane %v946_v13, 3  ;;  %v1282_v21 = vld [vmem:[#allocation2] sm:$0x8] }
 0x183   : > { %v1066_v26 = vrot.slane %v1064_v23, 1  ;;  %v1069_v27 = vrot.slane %v1067_v24, 2  ;;  %v7098_v24 = vld [vmem:[#allocation5 + $0x170] sm:$0xff]  }
 0x184   : > { %6379 = vmatpush3.bf16.msra.mxu1 %v7064_v11  ;;  %v949_v16 = vor.u32 %v948_v15, %v945_v14  ;;  %v5668_v11 = vld [vmem:[%s8315_s8 + $0x2] ss:$0 sm:$0xff] }
 0x185   : > { %6380 = vmatprep.subr.bf16.mxu1 %v7538_v0  ;;  %v1070_v28 = vor.u32 %v1069_v27, %v1066_v26  ;;  %v7101_v27 = vld [vmem:[#allocation5 + $0x168] sm:$0xff]  }
 0x186   : > { %6373 = vmatmul.mubr.bf16.vlgmr.msra.gmra.mxu0 %v949_v16 }
 0x187   : > { %6412 = vmatprep.mubr.msk.bf16.mxu0 %vm7539_vm0, %v7538_v0  ;;  %6397 = vmatpush3.bf16.msra.mxu0 %v7074_v29  ;;  %v7102_v29 = vld [vmem:[#allocation5 + $0x160] sm:$0xff]  }
 0x188   : > { %6381 = vmatpush3.bf16.msra.mxu1 %v7067_v17  ;;  %6398 = vmatprep.subr.bf16.mxu0 %v7538_v0 }
 0x189   : > { %6382 = vmatprep.subr.bf16.mxu1 %v7538_v0 }
 0x18b   : > { %6399 = vmatpush3.bf16.msra.mxu0 %v7075_v30  ;;  %v7103_v30 = vld [vmem:[#allocation5 + $0x158] sm:$0xff]  }
 0x18c   : > { %6383 = vmatpush3.bf16.msra.mxu1 %v7068_v18  ;;  %6400 = vmatprep.subr.bf16.mxu0 %v7538_v0 }
 0x18d   : > { %6384 = vmatprep.subr.bf16.mxu1 %v7538_v0 }
 0x18f   : > { %6401 = vmatpush3.bf16.msra.mxu0 %v7076_v31  ;;  %v7104_v31 = vld [vmem:[#allocation5 + $0x150] sm:$0xff]  }
 0x190   : > { %6385 = vmatpush3.bf16.msra.mxu1 %v7069_v19  ;;  %6402 = vmatprep.subr.bf16.mxu0 %v7538_v0 }
 0x191   : > { %6386 = vmatprep.subr.bf16.mxu1 %v7538_v0 }
 0x193   : > { %6403 = vmatpush3.bf16.msra.mxu0 %v7077_v32 }
 0x194   : > { %6387 = vmatpush3.bf16.msra.mxu1 %v7070_v20  ;;  %6404 = vmatprep.subr.bf16.mxu0 %v7538_v0  ;;  %v7096_v20 = vld [vmem:[#allocation5 + $0x178] sm:$0xff]  }
 0x195   : > { %6388 = vmatprep.subr.bf16.mxu1 %v7538_v0 }
 0x197   : > { %6405 = vmatpush3.bf16.msra.mxu0 %v7078_v33  ;;  %v7105_v33 = vld [vmem:[#allocation5 + $0x148] sm:$0xff]  }
 0x198   : > { %6389 = vmatpush3.bf16.msra.mxu1 %v7071_v22  ;;  %6406 = vmatprep.subr.bf16.mxu0 %v7538_v0 }
 0x199   : > { %6390 = vmatprep.subr.bf16.mxu1 %v7538_v0 }
 0x19b   : > { %6407 = vmatpush3.bf16.msra.mxu0 %v7079_v34 }
 0x19c   : > { %6391 = vmatpush3.bf16.msra.mxu1 %v7072_v25  ;;  %6408 = vmatprep.subr.bf16.mxu0 %v7538_v0 }
 0x19d   : > { %6416 = vmatprep.subr.bf16.mxu1 %v7538_v0 }
 0x19f   : > { %6393 = vmatmul.mubr.bf16.vlgmr.msra.gmra.mxu1 %v1070_v28  ;;  %6409 = vmatpush3.bf16.msra.mxu0 %v7080_v35  ;;  %v7106_v35 = vld [vmem:[#allocation5 + $0x140] sm:$0xff]  }
 0x1a0   : > { %6432 = vmatprep.mubr.msk.bf16.mxu1 %vm7539_vm0, %v7538_v0  ;;  %6410 = vmatprep.subr.bf16.mxu0 %v7538_v0 }
 0x1a1   : > { %6417 = vmatpush3.bf16.msra.mxu1 %v7082_v37 }
 0x1a2   : > { %6418 = vmatprep.subr.bf16.mxu1 %v7538_v0 }
 0x1a3   : > { %6411 = vmatpush3.bf16.msra.mxu0 %v7081_v36 }
 0x1a4   : > { %6436 = vmatprep.subr.bf16.mxu0 %v7538_v0 }
 0x1a5   : > { %6419 = vmatpush3.bf16.msra.mxu1 %v7083_v38 }
 0x1a6   : > { %6420 = vmatprep.subr.bf16.mxu1 %v7538_v0 }
 0x1a9   : > { %6421 = vmatpush3.bf16.msra.mxu1 %v7084_v39  ;;  %v7108_v39 = vld [vmem:[#allocation7 + $0x78] sm:$0xff]  }
 0x1aa   : > { %6422 = vmatprep.subr.bf16.mxu1 %v7538_v0 }
 0x1ad   : > { %6423 = vmatpush3.bf16.msra.mxu1 %v7086_v40  ;;  %v7109_v40 = vld [vmem:[#allocation7 + $0x70] sm:$0xff]  }
 0x1ae   : > { %6424 = vmatprep.subr.bf16.mxu1 %v7538_v0 }
 0x1b1   : > { %6425 = vmatpush3.bf16.msra.mxu1 %v7088_v62  ;;  %v5703_v62 = vld [vmem:[%s8315_s8 + $0x3] ss:$0 sm:$0xff] }
 0x1b2   : > { %6426 = vmatprep.subr.bf16.mxu1 %v7538_v0 }
 0x1b5   : > { %6427 = vmatpush3.bf16.msra.mxu1 %v7090_v1 }
 0x1b6   : > { %6428 = vmatprep.subr.bf16.mxu1 %v7538_v0 }
 0x1b9   : > { %6429 = vmatpush3.bf16.msra.mxu1 %v7092_v5 }
 0x1ba   : > { %6430 = vmatprep.subr.bf16.mxu1 %v7538_v0 }
 0x1bd   : > { %6431 = vmatpush3.bf16.msra.mxu1 %v7094_v7 }
 0x1be   : > { %6456 = vmatprep.subr.bf16.mxu1 %v7538_v0 }
 0x23f   : > { %v931_v41 = vpop.f32.mrf.mxu1 }
 0x241   : > { %v6354_v42 = vpop.f32.mrf.mxu1 }
 0x242   : > { %v7111_v42 = vld [vmem:[#allocation7 + $0x60] sm:$0xff]  }
 0x243   : > { %v934_v43 = vpop.f32.mrf.mxu1 }
 0x244   : > { %v7112_v43 = vld [vmem:[#allocation7 + $0x58] sm:$0xff]  }
 0x245   : > { %v6355_v44 = vpop.f32.mrf.mxu1 }
 0x246   : > { %v1033_v45 = vpop.f32.mrf.mxu0  ;;  %v7113_v44 = vld [vmem:[#allocation7 + $0x50] sm:$0xff]  }
 0x247   : > { %v1034_v50 = vadd.f32 %v1033_v45, %v931_v41  ;;  %v7110_v41 = vld [vmem:[#allocation7 + $0x68] sm:$0xff]  }
 0x248   : > { %v6374_v46 = vpop.f32.mrf.mxu0  ;;  %v7114_v45 = vld [vmem:[#allocation7 + $0x48] sm:$0xff]  }
 0x249   : > { %v7115_v46 = vld [vmem:[#allocation7 + $0x40] sm:$0xff]  }
 0x24a   : > { %v1036_v47 = vpop.f32.mrf.mxu0 }
 0x24b   : > { %v7116_v47 = vld [vmem:[#allocation8 + $0x78] sm:$0xff]  }
 0x24c   : > { %v6375_v48 = vpop.f32.mrf.mxu0 }
 0x24d   : > { %v7117_v48 = vld [vmem:[#allocation8 + $0x70] sm:$0xff]  }
 0x25f   : > { %v1154_v52 = vpop.f32.mrf.mxu1 }
 0x260   : > { %v1160_v53 = vadd.f32 %v1154_v52, %v1034_v50  ;;  %v7118_v50 = vld [vmem:[#allocation8 + $0x68] sm:$0xff]   ;;  %v7122_v52 = vld [vmem:[#allocation8 + $0x58] sm:$0xff]  }
 0x261   : > { %v6394_v54 = vpop.f32.mrf.mxu1 }
 0x262   : > { %v1165_v55 = vadd.f32 %v5667_v51, %v1160_v53  ;;  %v7120_v51 = vld [vmem:[#allocation8 + $0x60] sm:$0xff]  }
 0x263   : > { %v1157_v56 = vpop.f32.mrf.mxu1 }
 0x264   : > { %v1166_v57 = vmax.f32 %v1165_v55, 0.0 }
 0x265   : > { %v6395_v58 = vpop.f32.mrf.mxu1 }
 0x266   : > { %v1167_v60 = vpack.c.bf16 %v1166_v57, %v1166_v57 }
 0x268   : > { %6413 = vmatmul.mubr.bf16.vlgmr.msra.gmra.mxu0 %v1167_v60 }
 0x269   : > { %6437 = vmatpush3.bf16.msra.mxu0 %v7085_v59  ;;  %6452 = vmatprep.mubr.msk.bf16.mxu0 %vm7539_vm0, %v7538_v0 }
 0x26a   : > { %6438 = vmatprep.subr.bf16.mxu0 %v7538_v0 }
 0x26d   : > { %6439 = vmatpush3.bf16.msra.mxu0 %v7087_v61 }
 0x26e   : > { %6440 = vmatprep.subr.bf16.mxu0 %v7538_v0 }
 0x271   : > { %6441 = vmatpush3.bf16.msra.mxu0 %v7089_v63 }
 0x272   : > { %6442 = vmatprep.subr.bf16.mxu0 %v7538_v0 }
 0x275   : > { %6443 = vmatpush3.bf16.msra.mxu0 %v7091_v3 }
 0x276   : > { %6444 = vmatprep.subr.bf16.mxu0 %v7538_v0 }
 0x279   : > { %6445 = vmatpush3.bf16.msra.mxu0 %v7093_v6 }
 0x27a   : > { %6446 = vmatprep.subr.bf16.mxu0 %v7538_v0 }
 0x27d   : > { %6447 = vmatpush3.bf16.msra.mxu0 %v7095_v8 }
 0x27e   : > { %6448 = vmatprep.subr.bf16.mxu0 %v7538_v0 }
 0x281   : > { %6449 = vmatpush3.bf16.msra.mxu0 %v7097_v9  ;;  %v7119_v9 = vld [vmem:[#allocation8 + $0x38] sm:$0xff]  }
 0x282   : > { %6450 = vmatprep.subr.bf16.mxu0 %v7538_v0 }
 0x285   : > { %6451 = vmatpush3.bf16.msra.mxu0 %v7099_v10 }
 0x286   : > { %6476 = vmatprep.subr.bf16.mxu0 %v7538_v0 }
 0x328   : > { %v1270_v12 = vpop.f32.mrf.mxu0 }
 0x329   : > { %v1271_v13 = vadd.f32 %v5668_v11, %v1270_v12  ;;  %v7121_v11 = vld [vmem:[#allocation8 + $0x30] sm:$0xff]   ;;  %v7123_v12 = vld [vmem:[#allocation8 + $0x28] sm:$0xff]  }
 0x32a   : > { %v6414_v14 = vpop.f32.mrf.mxu0 }
 0x32b   : > { %v7852_v15 = vadd.f32 %v1271_v13, %v805_v4  ;;  %v7124_v13 = vld [vmem:[#allocation8 + $0x50] sm:$0xff]   ;;  %v7125_v14 = vld [vmem:[#allocation8 + $0x20] sm:$0xff]  }
 0x32c   : > { %v1273_v16 = vpop.f32.mrf.mxu0 }
 0x32d   : > { %v1279_v17 = vmax.f32 %v7852_v15, 0.0  ;;  %v7126_v16 = vld [vmem:[#allocation8 + $0x48] sm:$0xff]  }
 0x32e   : > { %v6415_v18 = vpop.f32.mrf.mxu0 }
 0x32f   : > { %v1280_v19 = vpack.c.bf16 %v1279_v17, %v1279_v17  ;;  %v7127_v17 = vld [vmem:[#allocation8 + $0x18] sm:$0xff]   ;;  %v7128_v18 = vld [vmem:[#allocation8 + $0x40] sm:$0xff]  }
 0x331   : > { %1281 = vst [vmem:[#allocation2 + $0x4] sm:$0xf] %v1280_v19  ;;  %v7129_v19 = vld [vmem:[#allocation8 + $0x10] sm:$0xff]  }
 0x338   : > { %v1283_v22 = vld [vmem:[#allocation2 + $0x4] sm:$0xf] }
 0x339   : > { %6433 = vmatmul.mubr.bf16.vlgmr.msra.gmra.mxu1 %v1283_v22  ;;  %v5685_v23 = vcombine.low %v1282_v21, %v1283_v22  ;;  %v7107_v32 = vld [vmem:[#allocation2 + $0x4] sm:$0x1f]   ;;  %v1749_v21 = vld [vmem:[#allocation2] sm:$0x8]  ;;  %v7132_v22 = vld [vmem:[#allocation8] sm:$0xff]  }
 0x33a   : > { %6457 = vmatpush3.bf16.msra.mxu1 %v7096_v20  ;;  %6472 = vmatprep.mubr.msk.bf16.mxu1 %vm7539_vm0, %v7538_v0  ;;  %v1535_v34 = vshll.u32 %v7107_v32, 16  ;;  %v1533_v37 = vshrl.u32 %v7107_v32, 16  ;;  %v7130_v20 = vld [vmem:[#allocation8 + $0x8] sm:$0xff]   ;;  %2413 = vst [vmem:[#allocation2] sm:$0xf] %v7540_v49  ;;  %v7133_v32 = vld [vmem:[#allocation10 + $0x70] sm:$0xff]  }
 0x33b   : > { %6458 = vmatprep.subr.bf16.mxu1 %v7538_v0  ;;  %v1412_v2 = vshrl.u32 %v5685_v23, 16  ;;  %v1415_v4 = vshll.u32 %v5685_v23, 16  ;;  %v5704_v23 = vld [vmem:[%s8315_s8 + $0x4] ss:$0 sm:$0xff] }
 0x33c   : > { %v1537_v36 = vrot.slane %v1535_v34, 1 }
 0x33d   : > { %v1414_v25 = vrot.slane %v1412_v2, 3  ;;  %v1417_v26 = vrot.slane %v1415_v4, 4 }
 0x33e   : > { %6459 = vmatpush3.bf16.msra.mxu1 %v7098_v24  ;;  %v1538_v38 = vor.u32 %v1537_v36, %v1533_v37  ;;  %v7135_v36 = vld [vmem:[#allocation10 + $0x68] sm:$0xff]   ;;  %v7136_v37 = vld [vmem:[#allocation10 + $0x38] sm:$0xff]  }
 0x33f   : > { %6460 = vmatprep.subr.bf16.mxu1 %v7538_v0  ;;  %v1418_v28 = vor.u32 %v1417_v26, %v1414_v25 }
 0x341   : > { %6453 = vmatmul.mubr.bf16.vlgmr.msra.gmra.mxu0 %v1418_v28 }
 0x342   : > { %6461 = vmatpush3.bf16.msra.mxu1 %v7101_v27  ;;  %6492 = vmatprep.mubr.msk.bf16.mxu0 %vm7539_vm0, %v7538_v0 }
 0x343   : > { %6462 = vmatprep.subr.bf16.mxu1 %v7538_v0  ;;  %6477 = vmatpush3.bf16.msra.mxu0 %v7108_v39  ;;  %v7137_v39 = vld [vmem:[#allocation10 + $0x60] sm:$0xff]  }
 0x344   : > { %6478 = vmatprep.subr.bf16.mxu0 %v7538_v0 }
 0x346   : > { %6463 = vmatpush3.bf16.msra.mxu1 %v7102_v29  ;;  %v7131_v29 = vld [vmem:[#allocation10 + $0x78] sm:$0xff]  }
 0x347   : > { %6464 = vmatprep.subr.bf16.mxu1 %v7538_v0  ;;  %6479 = vmatpush3.bf16.msra.mxu0 %v7109_v40  ;;  %v7138_v40 = vld [vmem:[#allocation10 + $0x30] sm:$0xff]  }
 0x348   : > { %6480 = vmatprep.subr.bf16.mxu0 %v7538_v0 }
 0x34a   : > { %6465 = vmatpush3.bf16.msra.mxu1 %v7103_v30 }
 0x34b   : > { %6466 = vmatprep.subr.bf16.mxu1 %v7538_v0  ;;  %6481 = vmatpush3.bf16.msra.mxu0 %v7110_v41  ;;  %v7139_v41 = vld [vmem:[#allocation10 + $0x58] sm:$0xff]  }
 0x34c   : > { %6482 = vmatprep.subr.bf16.mxu0 %v7538_v0 }
 0x34e   : > { %6467 = vmatpush3.bf16.msra.mxu1 %v7104_v31 }
 0x34f   : > { %6468 = vmatprep.subr.bf16.mxu1 %v7538_v0  ;;  %6483 = vmatpush3.bf16.msra.mxu0 %v7111_v42  ;;  %v7140_v42 = vld [vmem:[#allocation10 + $0x28] sm:$0xff]  }
 0x350   : > { %6484 = vmatprep.subr.bf16.mxu0 %v7538_v0 }
 0x352   : > { %6469 = vmatpush3.bf16.msra.mxu1 %v7105_v33 }
 0x353   : > { %6470 = vmatprep.subr.bf16.mxu1 %v7538_v0  ;;  %6485 = vmatpush3.bf16.msra.mxu0 %v7112_v43  ;;  %v1751_v43 = vld [vmem:[#allocation2 + $0x8] sm:$0x1] }
 0x354   : > { %6486 = vmatprep.subr.bf16.mxu0 %v7538_v0 }
 0x356   : > { %6471 = vmatpush3.bf16.msra.mxu1 %v7106_v35 }
 0x357   : > { %6496 = vmatprep.subr.bf16.mxu1 %v7538_v0  ;;  %6487 = vmatpush3.bf16.msra.mxu0 %v7113_v44  ;;  %v7141_v44 = vld [vmem:[#allocation10 + $0x50] sm:$0xff]  }
 0x358   : > { %6488 = vmatprep.subr.bf16.mxu0 %v7538_v0 }
 0x359   : > { %6473 = vmatmul.mubr.bf16.vlgmr.msra.gmra.mxu1 %v1538_v38 }
 0x35a   : > { %6512 = vmatprep.mubr.msk.bf16.mxu1 %vm7539_vm0, %v7538_v0  ;;  %6497 = vmatpush3.bf16.msra.mxu1 %v7116_v47  ;;  %v7143_v47 = vld [vmem:[#allocation10 + $0x48] sm:$0xff]  }
 0x35b   : > { %6489 = vmatpush3.bf16.msra.mxu0 %v7114_v45  ;;  %6498 = vmatprep.subr.bf16.mxu1 %v7538_v0  ;;  %v7142_v45 = vld [vmem:[#allocation10 + $0x20] sm:$0xff]  }
 0x35c   : > { %6490 = vmatprep.subr.bf16.mxu0 %v7538_v0 }
 0x35e   : > { %6499 = vmatpush3.bf16.msra.mxu1 %v7117_v48  ;;  %v7144_v48 = vld [vmem:[#allocation10 + $0x18] sm:$0xff]  }
 0x35f   : > { %6491 = vmatpush3.bf16.msra.mxu0 %v7115_v46  ;;  %6500 = vmatprep.subr.bf16.mxu1 %v7538_v0 }
 0x360   : > { %6516 = vmatprep.subr.bf16.mxu0 %v7538_v0 }
 0x362   : > { %6501 = vmatpush3.bf16.msra.mxu1 %v7118_v50 }
 0x363   : > { %6502 = vmatprep.subr.bf16.mxu1 %v7538_v0 }
 0x366   : > { %6503 = vmatpush3.bf16.msra.mxu1 %v7120_v51  ;;  %v7145_v51 = vld [vmem:[#allocation10 + $0x40] sm:$0xff]  }
 0x367   : > { %6504 = vmatprep.subr.bf16.mxu1 %v7538_v0 }
 0x36a   : > { %6505 = vmatpush3.bf16.msra.mxu1 %v7122_v52  ;;  %v7146_v52 = vld [vmem:[#allocation10 + $0x10] sm:$0xff]  }
 0x36b   : > { %6506 = vmatprep.subr.bf16.mxu1 %v7538_v0 }
 0x36e   : > { %6507 = vmatpush3.bf16.msra.mxu1 %v7124_v13 }
 0x36f   : > { %6508 = vmatprep.subr.bf16.mxu1 %v7538_v0 }
 0x372   : > { %6509 = vmatpush3.bf16.msra.mxu1 %v7126_v16 }
 0x373   : > { %6510 = vmatprep.subr.bf16.mxu1 %v7538_v0 }
 0x376   : > { %6511 = vmatpush3.bf16.msra.mxu1 %v7128_v18 }
 0x377   : > { %6536 = vmatprep.subr.bf16.mxu1 %v7538_v0 }
 0x3f9   : > { %v1400_v53 = vpop.f32.mrf.mxu1 }
 0x3fb   : > { %v6434_v54 = vpop.f32.mrf.mxu1 }
 0x3fd   : > { %v1403_v55 = vpop.f32.mrf.mxu1 }
 0x3fe   : > { %v7147_v55 = vld [vmem:[#allocation10 + $0x8] sm:$0xff]  }
 0x3ff   : > { %v6435_v56 = vpop.f32.mrf.mxu1 }
 0x401   : > { %v1502_v57 = vpop.f32.mrf.mxu0 }
 0x402   : > { %v1503_v61 = vadd.f32 %v1502_v57, %v1400_v53  ;;  %v7148_v57 = vld [vmem:[#allocation10] sm:$0xff]  }
 0x403   : > { %v6454_v58 = vpop.f32.mrf.mxu0 }
 0x404   : > { %v7149_v58 = vld [vmem:[#allocation5 + $0x1f8] sm:$0xff]  }
 0x405   : > { %v1505_v59 = vpop.f32.mrf.mxu0 }
 0x406   : > { %v7150_v59 = vld [vmem:[#allocation5 + $0x1f0] sm:$0xff]  }
 0x407   : > { %v6455_v60 = vpop.f32.mrf.mxu0 }
 0x408   : > { %v7152_v60 = vld [vmem:[#allocation5 + $0x1b8] sm:$0xff]  }
 0x419   : > { %v1622_v63 = vpop.f32.mrf.mxu1 }
 0x41a   : > { %v1628_v1 = vadd.f32 %v1622_v63, %v1503_v61  ;;  %v7151_v61 = vld [vmem:[#allocation5 + $0x1e8] sm:$0xff]   ;;  %v7153_v63 = vld [vmem:[#allocation5 + $0x1e0] sm:$0xff]  }
 0x41b   : > { %v6474_v3 = vpop.f32.mrf.mxu1 }
 0x41c   : > { %v1633_v5 = vadd.f32 %v5703_v62, %v1628_v1  ;;  %v7154_v62 = vld [vmem:[#allocation5 + $0x1b0] sm:$0xff]   ;;  %v7156_v1 = vld [vmem:[#allocation5 + $0x1a8] sm:$0xff]   ;;  %v7155_v3 = vld [vmem:[#allocation5 + $0x1d8] sm:$0xff]  }
 0x41d   : > { %v1625_v6 = vpop.f32.mrf.mxu1 }
 0x41e   : > { %v1634_v7 = vmax.f32 %v1633_v5, 0.0  ;;  %v7158_v5 = vld [vmem:[#allocation5 + $0x1a0] sm:$0xff]   ;;  %v7157_v6 = vld [vmem:[#allocation5 + $0x1d0] sm:$0xff]  }
 0x41f   : > { %v6475_v8 = vpop.f32.mrf.mxu1 }
 0x420   : > { %v1635_v10 = vpack.c.bf16 %v1634_v7, %v1634_v7  ;;  %v7159_v7 = vld [vmem:[#allocation5 + $0x1c8] sm:$0xff]   ;;  %v7160_v8 = vld [vmem:[#allocation5 + $0x198] sm:$0xff]  }
 0x422   : > { %6493 = vmatmul.mubr.bf16.vlgmr.msra.gmra.mxu0 %v1635_v10  ;;  %v7161_v10 = vld [vmem:[#allocation5 + $0x1c0] sm:$0xff]  }
 0x423   : > { %6517 = vmatpush3.bf16.msra.mxu0 %v7119_v9  ;;  %6532 = vmatprep.mubr.msk.bf16.mxu0 %vm7539_vm0, %v7538_v0  ;;  %v7162_v9 = vld [vmem:[#allocation5 + $0x190] sm:$0xff]  }
 0x424   : > { %6518 = vmatprep.subr.bf16.mxu0 %v7538_v0 }
 0x427   : > { %6519 = vmatpush3.bf16.msra.mxu0 %v7121_v11  ;;  %v7164_v11 = vld [vmem:[#allocation5 + $0x188] sm:$0xff]  }
 0x428   : > { %6520 = vmatprep.subr.bf16.mxu0 %v7538_v0 }
 0x42b   : > { %6521 = vmatpush3.bf16.msra.mxu0 %v7123_v12  ;;  %v7166_v12 = vld [vmem:[#allocation5 + $0x180] sm:$0xff]  }
 0x42c   : > { %6522 = vmatprep.subr.bf16.mxu0 %v7538_v0 }
 0x42f   : > { %6523 = vmatpush3.bf16.msra.mxu0 %v7125_v14 }
 0x430   : > { %6524 = vmatprep.subr.bf16.mxu0 %v7538_v0 }
 0x433   : > { %6525 = vmatpush3.bf16.msra.mxu0 %v7127_v17 }
 0x434   : > { %6526 = vmatprep.subr.bf16.mxu0 %v7538_v0 }
 0x437   : > { %6527 = vmatpush3.bf16.msra.mxu0 %v7129_v19 }
 0x438   : > { %6528 = vmatprep.subr.bf16.mxu0 %v7538_v0 }
 0x43b   : > { %6529 = vmatpush3.bf16.msra.mxu0 %v7130_v20 }
 0x43c   : > { %6530 = vmatprep.subr.bf16.mxu0 %v7538_v0 }
 0x43f   : > { %6531 = vmatpush3.bf16.msra.mxu0 %v7132_v22  ;;  %v7541_v22 = vmov 1966171168  }
 0x440   : > { %6556 = vmatprep.subr.bf16.mxu0 %v7538_v0 }
 0x4e2   : > { %v1739_v24 = vpop.f32.mrf.mxu0 }
 0x4e3   : > { %v1740_v2 = vadd.f32 %v5704_v23, %v1739_v24  ;;  %v2204_v23 = vunpack.c.l.s4 %v7541_v22  ;;  %v2206_v24 = vlaneseq }
 0x4e4   : > { %v6494_v4 = vpop.f32.mrf.mxu0 }
 0x4e5   : > { %v1745_v25 = vadd.f32 %v1740_v2, %v7852_v15  ;;  %v5730_v4 = vld [vmem:[%s8315_s8 + $0x5] ss:$0 sm:$0xff] }
 0x4e6   : > { %v1742_v26 = vpop.f32.mrf.mxu0 }
 0x4e7   : > { %v1747_v27 = vpack.c.bf16 %v1745_v25, %v1745_v25  ;;  %v2205_v25 = vunpack.c.0.s8 %v2204_v23  ;;  %v2207_v26 = vshrl.u32 %v2206_v24, 7 }
 0x4e8   : > { %v6495_v28 = vpop.f32.mrf.mxu0 }
 0x4e9   : > { %1748 = vst [vmem:[#allocation2 + $0x4] sm:$0xf] %v1747_v27 }
 0x4f0   : > { %v7903_v30 = vld [vmem:[#allocation2 + $0x4] sm:$0xf] }
 0x4f1   : > { %6513 = vmatmul.mubr.bf16.vlgmr.msra.gmra.mxu1 %v7903_v30  ;;  %v5721_v31 = vcombine.low %v1749_v21, %v7903_v30  ;;  %v5731_v46 = vcombine.low %v7903_v30, %v1751_v43 }
 0x4f2   : > { %6537 = vmatpush3.bf16.msra.mxu1 %v7131_v29  ;;  %6552 = vmatprep.mubr.msk.bf16.mxu1 %vm7539_vm0, %v7538_v0 }
 0x4f3   : > { %6538 = vmatprep.subr.bf16.mxu1 %v7538_v0  ;;  %v1879_v33 = vshrl.u32 %v5721_v31, 16  ;;  %v1882_v15 = vshll.u32 %v5721_v31, 16  ;;  %v2019_v50 = vshll.u32 %v5731_v46, 16  ;;  %v2017_v54 = vshrl.u32 %v5731_v46, 16 }
 0x4f5   : > { %v1881_v34 = vrot.slane %v1879_v33, 3  ;;  %v1884_v35 = vrot.slane %v1882_v15, 4  ;;  %v2021_v53 = vrot.slane %v2019_v50, 1  ;;  %v7959_v50 = vsub.s32 0, %v2207_v26 }
 0x4f6   : > { %6539 = vmatpush3.bf16.msra.mxu1 %v7133_v32 }
 0x4f7   : > { %6540 = vmatprep.subr.bf16.mxu1 %v7538_v0  ;;  %v1885_v38 = vor.u32 %v1884_v35, %v1881_v34  ;;  %v2022_v56 = vor.u32 %v2021_v53, %v2017_v54  ;;  %v7542_v35 = vmov 1983009808  }
 0x4f9   : > { %6533 = vmatmul.mubr.bf16.vlgmr.msra.gmra.mxu0 %v1885_v38 }
 0x4fa   : > { %6541 = vmatpush3.bf16.msra.mxu1 %v7135_v36  ;;  %6557 = vmatpush3.bf16.msra.mxu0 %v7136_v37  ;;  %v2379_v36 = vunpack.c.l.s4 %v7542_v35 }
 0x4fb   : > { %6542 = vmatprep.subr.bf16.mxu1 %v7538_v0  ;;  %6558 = vmatprep.subr.bf16.mxu0 %v7538_v0 }
 0x4fc   : > { %6572 = vmatprep.mubr.msk.bf16.mxu0 %vm7539_vm0, %v7538_v0 }
 0x4fe   : > { %6543 = vmatpush3.bf16.msra.mxu1 %v7137_v39  ;;  %6559 = vmatpush3.bf16.msra.mxu0 %v7138_v40 }
 0x4ff   : > { %6544 = vmatprep.subr.bf16.mxu1 %v7538_v0  ;;  %6560 = vmatprep.subr.bf16.mxu0 %v7538_v0 }
 0x502   : > { %6545 = vmatpush3.bf16.msra.mxu1 %v7139_v41  ;;  %6561 = vmatpush3.bf16.msra.mxu0 %v7140_v42  ;;  %v2380_v42 = vunpack.c.0.s8 %v2379_v36 }
 0x503   : > { %6546 = vmatprep.subr.bf16.mxu1 %v7538_v0  ;;  %6562 = vmatprep.subr.bf16.mxu0 %v7538_v0 }
 0x506   : > { %6547 = vmatpush3.bf16.msra.mxu1 %v7141_v44  ;;  %6563 = vmatpush3.bf16.msra.mxu0 %v7142_v45 }
 0x507   : > { %6548 = vmatprep.subr.bf16.mxu1 %v7538_v0  ;;  %6564 = vmatprep.subr.bf16.mxu0 %v7538_v0 }
 0x50a   : > { %6549 = vmatpush3.bf16.msra.mxu1 %v7143_v47  ;;  %6565 = vmatpush3.bf16.msra.mxu0 %v7144_v48 }
 0x50b   : > { %6550 = vmatprep.subr.bf16.mxu1 %v7538_v0  ;;  %6566 = vmatprep.subr.bf16.mxu0 %v7538_v0 }
 0x50e   : > { %6551 = vmatpush3.bf16.msra.mxu1 %v7145_v51  ;;  %6567 = vmatpush3.bf16.msra.mxu0 %v7146_v52 }
 0x50f   : > { %6568 = vmatprep.subr.bf16.mxu0 %v7538_v0  ;;  %6576 = vmatprep.subr.bf16.mxu1 %v7538_v0 }
 0x511   : > { %6553 = vmatmul.mubr.bf16.vlgmr.msra.gmra.mxu1 %v2022_v56  ;;  %v7964_v56 = vsub.s32 %v2380_v42, %v2207_v26 }
 0x512   : > { %6569 = vmatpush3.bf16.msra.mxu0 %v7147_v55  ;;  %6592 = vmatprep.mubr.msk.bf16.mxu1 %vm7539_vm0, %v7538_v0 }
 0x513   : > { %6570 = vmatprep.subr.bf16.mxu0 %v7538_v0  ;;  %6577 = vmatpush3.bf16.msra.mxu1 %v7149_v58 }
 0x514   : > { %6578 = vmatprep.subr.bf16.mxu1 %v7538_v0 }
 0x516   : > { %6571 = vmatpush3.bf16.msra.mxu0 %v7148_v57 }
 0x517   : > { %6596 = vmatprep.subr.bf16.mxu0 %v7538_v0  ;;  %6579 = vmatpush3.bf16.msra.mxu1 %v7150_v59 }
 0x518   : > { %6580 = vmatprep.subr.bf16.mxu1 %v7538_v0 }
 0x519   : > { %6573 = vmatmul.mubr.bf16.vlgmr.msra.gmra.mxu0 %v7903_v30  ;;  %v7952_v30 = vsub.s32 %v2205_v25, %v2207_v26 }
 0x51a   : > { %6612 = vmatprep.mubr.msk.bf16.mxu0 %vm7539_vm0, %v7538_v0  ;;  %6597 = vmatpush3.bf16.msra.mxu0 %v7152_v60 }
 0x51b   : > { %6581 = vmatpush3.bf16.msra.mxu1 %v7151_v61  ;;  %6598 = vmatprep.subr.bf16.mxu0 %v7538_v0 }
 0x51c   : > { %6582 = vmatprep.subr.bf16.mxu1 %v7538_v0 }
 0x51e   : > { %6599 = vmatpush3.bf16.msra.mxu0 %v7154_v62 }
 0x51f   : > { %6583 = vmatpush3.bf16.msra.mxu1 %v7153_v63  ;;  %6600 = vmatprep.subr.bf16.mxu0 %v7538_v0 }
 0x520   : > { %6584 = vmatprep.subr.bf16.mxu1 %v7538_v0 }
 0x522   : > { %6601 = vmatpush3.bf16.msra.mxu0 %v7156_v1 }
 0x523   : > { %6585 = vmatpush3.bf16.msra.mxu1 %v7155_v3  ;;  %6602 = vmatprep.subr.bf16.mxu0 %v7538_v0 }
 0x524   : > { %6586 = vmatprep.subr.bf16.mxu1 %v7538_v0 }
 0x526   : > { %6603 = vmatpush3.bf16.msra.mxu0 %v7158_v5 }
 0x527   : > { %6587 = vmatpush3.bf16.msra.mxu1 %v7157_v6  ;;  %6604 = vmatprep.subr.bf16.mxu0 %v7538_v0 }
 0x528   : > { %6588 = vmatprep.subr.bf16.mxu1 %v7538_v0 }
 0x52a   : > { %6605 = vmatpush3.bf16.msra.mxu0 %v7160_v8 }
 0x52b   : > { %6589 = vmatpush3.bf16.msra.mxu1 %v7159_v7  ;;  %6606 = vmatprep.subr.bf16.mxu0 %v7538_v0 }
 0x52c   : > { %6590 = vmatprep.subr.bf16.mxu1 %v7538_v0 }
 0x52e   : > { %6607 = vmatpush3.bf16.msra.mxu0 %v7162_v9 }
 0x52f   : > { %6591 = vmatpush3.bf16.msra.mxu1 %v7161_v10  ;;  %6608 = vmatprep.subr.bf16.mxu0 %v7538_v0 }
 0x530   : > { %6616 = vmatprep.subr.bf16.mxu1 %v7538_v0 }
 0x532   : > { %6609 = vmatpush3.bf16.msra.mxu0 %v7164_v11 }
 0x533   : > { %6610 = vmatprep.subr.bf16.mxu0 %v7538_v0 }
 0x536   : > { %6611 = vmatpush3.bf16.msra.mxu0 %v7166_v12 }
 0x537   : > { %6636 = vmatprep.subr.bf16.mxu0 %v7538_v0 }
 0x5b1   : > { %v1867_v13 = vpop.f32.mrf.mxu1 }
 0x5b3   : > { %v6514_v14 = vpop.f32.mrf.mxu1 }
 0x5b5   : > { %v1870_v16 = vpop.f32.mrf.mxu1 }
 0x5b7   : > { %v6515_v17 = vpop.f32.mrf.mxu1 }
 0x5b9   : > { %v1969_v18 = vpop.f32.mrf.mxu0 }
 0x5ba   : > { %v1970_v2 = vadd.f32 %v1969_v18, %v1867_v13 }
 0x5bb   : > { %v6534_v19 = vpop.f32.mrf.mxu0 }
 0x5bc   : > { %v1979_v28 = vadd.f32 %v5730_v4, %v1970_v2 }
 0x5bd   : > { %v1972_v20 = vpop.f32.mrf.mxu0 }
 0x5be   : > { %v2202_v32 = vcombine.high %v1979_v28, %v1979_v28  ;;  %v2209_v15 = vrot.slane %v1979_v28, %v7952_v30 }
 0x5bf   : > { %v6535_v21 = vpop.f32.mrf.mxu0 }
 0x5c0   : > { %v2216_v38 = vrot.slane %v2202_v32, %v7952_v30  ;;  %v2217_v41 = vcombine.high %v2209_v15, %v2209_v15  ;;  %v2225_v47 = vrot.slane %v2209_v15, %v7952_v30 }
 0x5c2   : > { %v2218_v46 = vcombine.high %v2216_v38, %v2216_v38  ;;  %v2232_v48 = vrot.slane %v2216_v38, %v7952_v30  ;;  %v2239_v55 = vrot.slane %v2217_v41, %v7952_v30  ;;  %v2247_v62 = vcombine.high %v2225_v47, %v2225_v47 }
 0x5c4   : > { %v2246_v61 = vrot.slane %v2218_v46, %v7952_v30  ;;  %v2248_v63 = vcombine.high %v2232_v48, %v2232_v48  ;;  %v2249_v8 = vcombine.high %v2239_v55, %v2239_v55  ;;  %v7165_v46 = vld [vmem:[#allocation5 + $0x238] sm:$0xff]  }
 0x5c6   : > { %v2250_v17 = vcombine.high %v2246_v61, %v2246_v61 }
 0x5d1   : > { %v2106_v27 = vpop.f32.mrf.mxu1 }
 0x5d3   : > { %v6554_v29 = vpop.f32.mrf.mxu1 }
 0x5d5   : > { %v2109_v31 = vpop.f32.mrf.mxu1 }
 0x5d7   : > { %v6555_v33 = vpop.f32.mrf.mxu1 }
 0x5d9   : > { %v2194_v34 = vpop.f32.mrf.mxu0 }
 0x5da   : > { %v2195_v37 = vadd.f32 %v2194_v34, %v2106_v27 }
 0x5db   : > { %v6574_v39 = vpop.f32.mrf.mxu0 }
 0x5dc   : > { %v2200_v40 = vadd.f32 %v5730_v4, %v2195_v37 }
 0x5dd   : > { %v2197_v43 = vpop.f32.mrf.mxu0 }
 0x5de   : > { %v2260_v44 = vcombine.high %v2200_v40, %v2200_v40  ;;  %v2267_v45 = vrot.slane %v2200_v40, %v7952_v30 }
 0x5df   : > { %v6575_v51 = vpop.f32.mrf.mxu0 }
 0x5e0   : > { %v2274_v52 = vrot.slane %v2260_v44, %v7952_v30  ;;  %v2275_v53 = vcombine.high %v2267_v45, %v2267_v45  ;;  %v2283_v54 = vrot.slane %v2267_v45, %v7952_v30  ;;  %v2424_v44 = vld [vmem:[#allocation2] sm:$0xc] }
 0x5e2   : > { %v2276_v57 = vcombine.high %v2274_v52, %v2274_v52  ;;  %v2290_v58 = vrot.slane %v2274_v52, %v7952_v30  ;;  %v2297_v59 = vrot.slane %v2275_v53, %v7952_v30  ;;  %v2305_v60 = vcombine.high %v2283_v54, %v2283_v54 }
 0x5e3   : > { %v2312_v1 = vrot.slane %v2283_v54, %v7959_v50 }
 0x5e4   : > { %v2304_v3 = vrot.slane %v2276_v57, %v7952_v30  ;;  %v2306_v5 = vcombine.high %v2290_v58, %v2290_v58  ;;  %v2307_v6 = vcombine.high %v2297_v59, %v2297_v59  ;;  %v2316_v7 = vrot.slane %v2297_v59, %v7959_v50 }
 0x5e5   : > { %v2320_v9 = vrot.slane %v2305_v60, %v7959_v50  ;;  %v2328_v10 = vrot.slane %v2290_v58, %v7959_v50  ;;  %v7975_v11 = vsel %vm2349_vm1, %v2225_v47, %v2312_v1  ;;  %v7167_v60 = vld [vmem:[#allocation5 + $0x230] sm:$0xff]  }
 0x5e6   : > { %v2308_v12 = vcombine.high %v2304_v3, %v2304_v3  ;;  %v2324_v13 = vrot.slane %v2307_v6, %v7959_v50  ;;  %v2332_v14 = vrot.slane %v2304_v3, %v7959_v50  ;;  %v2336_v16 = vrot.slane %v2306_v5, %v7959_v50  ;;  %v7170_v3 = vld [vmem:[#allocation5 + $0x228] sm:$0xff]   ;;  %v7171_v6 = vld [vmem:[#allocation5 + $0x220] sm:$0xff]  }
 0x5e7   : > { %v7981_v18 = vsel %vm2349_vm1, %v2239_v55, %v2316_v7  ;;  %v7984_v19 = vsel %vm2349_vm1, %v2247_v62, %v2320_v9  ;;  %v7987_v20 = vsel %vm2349_vm1, %v2232_v48, %v2328_v10  ;;  %v2360_v2 = vmax.f32 %v7975_v11, 0.0  ;;  %v7172_v7 = vld [vmem:[#allocation5 + $0x218] sm:$0xff]   ;;  %v7177_v9 = vld [vmem:[#allocation2 + $0xc] ss:$0 sps:$4 sm:$0x33]  }
 0x5e8   : > { %v2340_v21 = vrot.slane %v2308_v12, %v7959_v50  ;;  %v7991_v22 = vsel %vm2349_vm1, %v2249_v8, %v2324_v13  ;;  %v7994_v23 = vsel %vm2349_vm1, %v2246_v61, %v2332_v14  ;;  %v7997_v24 = vsel %vm2349_vm1, %v2248_v63, %v2336_v16  ;;  %v7173_v10 = vld [vmem:[#allocation5 + $0x210] sm:$0xff]  }
 0x5e9   : > { %v2361_v4 = vmax.f32 %v7981_v18, 0.0  ;;  %v2362_v25 = vmax.f32 %v7984_v19, 0.0  ;;  %v2363_v26 = vmax.f32 %v7991_v22, 0.0  ;;  %v2364_v28 = vmax.f32 %v7987_v20, 0.0 }
 0x5ea   : > { %v8004_v27 = vsel %vm2349_vm1, %v2250_v17, %v2340_v21  ;;  %v2365_v29 = vmax.f32 %v7994_v23, 0.0  ;;  %v2366_v31 = vmax.f32 %v7997_v24, 0.0  ;;  %v2709_v14 = vshrl.u32 %v7177_v9, 16  ;;  %v7174_v17 = vld [vmem:[#allocation5 + $0x208] sm:$0xff]  }
 0x5eb   : > { %v2367_v32 = vmax.f32 %v8004_v27, 0.0  ;;  %v2376_v33 = vcombine.low %v2360_v2, %v2361_v4  ;;  %v2377_v15 = vcombine.low %v2362_v25, %v2363_v26  ;;  %v2712_v16 = vshll.u32 %v7177_v9, 16  ;;  %v7175_v26 = vld [vmem:[#allocation5 + $0x200] sm:$0xff]   ;;  %v7192_v9 = vld [vmem:[#allocation5 + $0x298] sm:$0xff]  }
 0x5ec   : > { %v2393_v34 = vcombine.low %v2364_v28, %v2365_v29  ;;  %v2711_v4 = vrot.slane %v2709_v14, 1  ;;  %v7196_v14 = vld [vmem:[#allocation5 + $0x288] sm:$0xff]  }
 0x5ed   : > { %v2384_v35 = vrot.slane %v2376_v33, %v7964_v56  ;;  %v2391_v36 = vrot.slane %v2377_v15, %v7964_v56  ;;  %v2394_v37 = vcombine.low %v2366_v31, %v2367_v32  ;;  %v2714_v25 = vrot.slane %v2712_v16, 2  ;;  %v7178_v32 = vld [vmem:[#allocation7 + $0xb8] sm:$0xff]   ;;  %v7179_v33 = vld [vmem:[#allocation7 + $0xb0] sm:$0xff]   ;;  %v7180_v15 = vld [vmem:[#allocation7 + $0xa8] sm:$0xff]  }
 0x5ee   : > { %v2401_v39 = vrot.slane %v2393_v34, %v7964_v56  ;;  %v7181_v34 = vld [vmem:[#allocation7 + $0xa0] sm:$0xff]   ;;  %v7197_v16 = vld [vmem:[#allocation5 + $0x258] sm:$0xff]  }
 0x5ef   : > { %v2392_v38 = vcombine.low %v2384_v35, %v2391_v36  ;;  %v2408_v40 = vrot.slane %v2394_v37, %v7964_v56  ;;  %v2715_v29 = vor.u32 %v2714_v25, %v2711_v4  ;;  %v7182_v35 = vld [vmem:[#allocation7 + $0x98] sm:$0xff]   ;;  %v7183_v36 = vld [vmem:[#allocation7 + $0x90] sm:$0xff]   ;;  %v7184_v37 = vld [vmem:[#allocation7 + $0x88] sm:$0xff]  }
 0x5f0   : > { %v7203_v4 = vld [vmem:[#allocation5 + $0x240] sm:$0xff]   ;;  %v5780_v25 = vld [vmem:[%s8315_s8 + $0x7] ss:$0 sm:$0xff] }
 0x5f1   : > { %v2409_v41 = vcombine.low %v2401_v39, %v2408_v40  ;;  %v5947_v42 = vpack.c.bf16 %v2392_v38, %v2392_v38  ;;  %v7185_v38 = vld [vmem:[#allocation7 + $0x80] sm:$0xff]  }
 0x5f3   : > { %v5948_v43 = vpack.c.bf16 %v2409_v41, %v2409_v41  ;;  %2422 = vst [vmem:[#allocation2 + $0x4] sm:$0xf] %v5947_v42 }
 0x5f5   : > { %2423 = vst [vmem:[#allocation2 + $0x8] sm:$0xf] %v5948_v43 }
 0x5fa   : > { %v2425_v45 = vld [vmem:[#allocation2 + $0x4] sm:$0xf] }
 0x5fb   : > { %v5759_v47 = vcombine.low %v2424_v44, %v2425_v45 }
 0x5fc   : > { %v2444_v48 = vld [vmem:[#allocation2 + $0x8] sm:$0xf] }
 0x5fd   : > { %v5750_v51 = vcombine.low %v2425_v45, %v2444_v48  ;;  %v7169_v52 = vld [vmem:[#allocation2 + $0x8] ss:$0 sps:$4 sm:$0x77]   ;;  %v2565_v53 = vshrl.u32 %v5759_v47, 16  ;;  %v2568_v54 = vshll.u32 %v5759_v47, 16 }
 0x5fe   : > { %v2573_v58 = vshrl.u32 %v7169_v52, 16  ;;  %v2576_v59 = vshll.u32 %v7169_v52, 16  ;;  %v7176_v8 = vld [vmem:[#allocation2 + $0x4] sm:$0xfe]  }
 0x5ff   : > { %6593 = vmatmul.mubr.bf16.vlgmr.msra.gmra.mxu1 %v5750_v51  ;;  %v2567_v55 = vrot.slane %v2565_v53, 2  ;;  %v2570_v57 = vrot.slane %v2568_v54, 3  ;;  %v2701_v12 = vshrl.u32 %v7176_v8, 16  ;;  %v2704_v13 = vshll.u32 %v7176_v8, 16  ;;  %v5779_v52 = vld [vmem:[%s8315_s8 + $0x6] ss:$0 sm:$0xff] }
 0x600   : > { %6617 = vmatpush3.bf16.msra.mxu1 %v7165_v46  ;;  %6632 = vmatprep.mubr.msk.bf16.mxu1 %vm7539_vm0, %v7538_v0  ;;  %v2575_v62 = vrot.slane %v2573_v58, 2  ;;  %v2578_v63 = vrot.slane %v2576_v59, 3  ;;  %v7191_v8 = vld [vmem:[#allocation5 + $0x270] sm:$0xff]  }
 0x601   : > { %6618 = vmatprep.subr.bf16.mxu1 %v7538_v0  ;;  %v2571_v61 = vor.u32 %v2570_v57, %v2567_v55  ;;  %v2703_v21 = vrot.slane %v2701_v12, 1  ;;  %v2706_v2 = vrot.slane %v2704_v13, 2  ;;  %v7194_v12 = vld [vmem:[#allocation5 + $0x290] sm:$0xff]   ;;  %v7195_v13 = vld [vmem:[#allocation5 + $0x260] sm:$0xff]  }
 0x602   : > { %v2579_v1 = vor.u32 %v2578_v63, %v2575_v62 }
 0x603   : > { %v2707_v28 = vor.u32 %v2706_v2, %v2703_v21  ;;  %v7199_v21 = vld [vmem:[#allocation5 + $0x250] sm:$0xff]   ;;  %v7201_v2 = vld [vmem:[#allocation5 + $0x248] sm:$0xff]  }
 0x604   : > { %6619 = vmatpush3.bf16.msra.mxu1 %v7167_v60  ;;  %v2580_v5 = vsel %vm2563_vm2, %v2571_v61, %v2579_v1  ;;  %v7186_v1 = vld [vmem:[#allocation5 + $0x2b8] sm:$0xff]  }
 0x605   : > { %6620 = vmatprep.subr.bf16.mxu1 %v7538_v0  ;;  %6613 = vmatmul.mubr.bf16.vlgmr.msra.gmra.mxu0 %v2580_v5  ;;  %v2716_v31 = vsel %vm2699_vm3, %v2707_v28, %v2715_v29  ;;  %v7188_v5 = vld [vmem:[#allocation5 + $0x2a8] sm:$0xff]  }
 0x606   : > { %6652 = vmatprep.mubr.msk.bf16.mxu0 %vm7539_vm0, %v7538_v0  ;;  %6637 = vmatpush3.bf16.msra.mxu0 %v7178_v32 }
 0x607   : > { %6638 = vmatprep.subr.bf16.mxu0 %v7538_v0 }
 0x608   : > { %6621 = vmatpush3.bf16.msra.mxu1 %v7170_v3  ;;  %v7187_v3 = vld [vmem:[#allocation5 + $0x2b0] sm:$0xff]  }
 0x609   : > { %6622 = vmatprep.subr.bf16.mxu1 %v7538_v0 }
 0x60a   : > { %6639 = vmatpush3.bf16.msra.mxu0 %v7179_v33 }
 0x60b   : > { %6640 = vmatprep.subr.bf16.mxu0 %v7538_v0 }
 0x60c   : > { %6623 = vmatpush3.bf16.msra.mxu1 %v7171_v6  ;;  %v7189_v6 = vld [vmem:[#allocation5 + $0x278] sm:$0xff]  }
 0x60d   : > { %6624 = vmatprep.subr.bf16.mxu1 %v7538_v0 }
 0x60e   : > { %6641 = vmatpush3.bf16.msra.mxu0 %v7180_v15 }
 0x60f   : > { %6642 = vmatprep.subr.bf16.mxu0 %v7538_v0 }
 0x610   : > { %6625 = vmatpush3.bf16.msra.mxu1 %v7172_v7  ;;  %v7190_v7 = vld [vmem:[#allocation5 + $0x2a0] sm:$0xff]  }
 0x611   : > { %6626 = vmatprep.subr.bf16.mxu1 %v7538_v0 }
 0x612   : > { %6643 = vmatpush3.bf16.msra.mxu0 %v7181_v34 }
 0x613   : > { %6644 = vmatprep.subr.bf16.mxu0 %v7538_v0 }
 0x614   : > { %6627 = vmatpush3.bf16.msra.mxu1 %v7173_v10  ;;  %v7193_v10 = vld [vmem:[#allocation5 + $0x268] sm:$0xff]  }
 0x615   : > { %6628 = vmatprep.subr.bf16.mxu1 %v7538_v0 }
 0x616   : > { %6645 = vmatpush3.bf16.msra.mxu0 %v7182_v35 }
 0x617   : > { %6646 = vmatprep.subr.bf16.mxu0 %v7538_v0 }
 0x618   : > { %6629 = vmatpush3.bf16.msra.mxu1 %v7174_v17  ;;  %v7198_v17 = vld [vmem:[#allocation5 + $0x280] sm:$0xff]  }
 0x619   : > { %6630 = vmatprep.subr.bf16.mxu1 %v7538_v0 }
 0x61a   : > { %6647 = vmatpush3.bf16.msra.mxu0 %v7183_v36 }
 0x61b   : > { %6648 = vmatprep.subr.bf16.mxu0 %v7538_v0 }
 0x61c   : > { %6631 = vmatpush3.bf16.msra.mxu1 %v7175_v26 }
 0x61d   : > { %6656 = vmatprep.subr.bf16.mxu1 %v7538_v0 }
 0x61e   : > { %6649 = vmatpush3.bf16.msra.mxu0 %v7184_v37 }
 0x61f   : > { %6633 = vmatmul.mubr.bf16.vlgmr.msra.gmra.mxu1 %v2716_v31  ;;  %6650 = vmatprep.subr.bf16.mxu0 %v7538_v0 }
 0x620   : > { %6672 = vmatprep.mubr.msk.bf16.mxu1 %vm7539_vm0, %v7538_v0  ;;  %6657 = vmatpush3.bf16.msra.mxu1 %v7186_v1 }
 0x621   : > { %6658 = vmatprep.subr.bf16.mxu1 %v7538_v0 }
 0x622   : > { %6651 = vmatpush3.bf16.msra.mxu0 %v7185_v38 }
 0x623   : > { %6676 = vmatprep.subr.bf16.mxu0 %v7538_v0 }
 0x624   : > { %6659 = vmatpush3.bf16.msra.mxu1 %v7187_v3 }
 0x625   : > { %6660 = vmatprep.subr.bf16.mxu1 %v7538_v0 }
 0x628   : > { %6661 = vmatpush3.bf16.msra.mxu1 %v7188_v5  ;;  %v3044_v5 = vld [vmem:[#allocation2] sm:$0x8] }
 0x629   : > { %6662 = vmatprep.subr.bf16.mxu1 %v7538_v0 }
 0x62c   : > { %6663 = vmatpush3.bf16.msra.mxu1 %v7190_v7 }
 0x62d   : > { %6664 = vmatprep.subr.bf16.mxu1 %v7538_v0 }
 0x630   : > { %6665 = vmatpush3.bf16.msra.mxu1 %v7192_v9 }
 0x631   : > { %6666 = vmatprep.subr.bf16.mxu1 %v7538_v0 }
 0x634   : > { %6667 = vmatpush3.bf16.msra.mxu1 %v7194_v12  ;;  %v7202_v12 = vld [vmem:[#allocation5 + $0x2f8] sm:$0xff]  }
 0x635   : > { %6668 = vmatprep.subr.bf16.mxu1 %v7538_v0 }
 0x638   : > { %6669 = vmatpush3.bf16.msra.mxu1 %v7196_v14 }
 0x639   : > { %6670 = vmatprep.subr.bf16.mxu1 %v7538_v0 }
 0x63c   : > { %6671 = vmatpush3.bf16.msra.mxu1 %v7198_v17 }
 0x63d   : > { %6696 = vmatprep.subr.bf16.mxu1 %v7538_v0 }
 0x6bf   : > { %v2550_v39 = vpop.f32.mrf.mxu1 }
 0x6c1   : > { %v6594_v40 = vpop.f32.mrf.mxu1 }
 0x6c3   : > { %v2553_v41 = vpop.f32.mrf.mxu1 }
 0x6c5   : > { %v6595_v42 = vpop.f32.mrf.mxu1  ;;  %v2664_v43 = vpop.f32.mrf.mxu0 }
 0x6c6   : > { %v2665_v47 = vadd.f32 %v2664_v43, %v2550_v39 }
 0x6c7   : > { %v6614_v44 = vpop.f32.mrf.mxu0 }
 0x6c9   : > { %v2667_v45 = vpop.f32.mrf.mxu0 }
 0x6ca   : > { %v2668_v54 = vadd.f32 %v2667_v45, %v2553_v41 }
 0x6cb   : > { %v6615_v46 = vpop.f32.mrf.mxu0 }
 0x6df   : > { %v2800_v48 = vpop.f32.mrf.mxu1 }
 0x6e0   : > { %v2807_v51 = vadd.f32 %v2800_v48, %v2665_v47 }
 0x6e1   : > { %v6634_v53 = vpop.f32.mrf.mxu1 }
 0x6e2   : > { %v2813_v57 = vadd.f32 %v5779_v52, %v2807_v51 }
 0x6e3   : > { %v2803_v55 = vpop.f32.mrf.mxu1 }
 0x6e4   : > { %v2808_v58 = vadd.f32 %v2803_v55, %v2668_v54  ;;  %v2815_v61 = vmax.f32 %v2813_v57, 0.0 }
 0x6e5   : > { %v6635_v59 = vpop.f32.mrf.mxu1 }
 0x6e6   : > { %v2814_v60 = vadd.f32 %v5779_v52, %v2808_v58 }
 0x6e8   : > { %v2816_v62 = vmax.f32 %v2814_v60, 0.0 }
 0x6ea   : > { %v2817_v63 = vpack.c.bf16 %v2816_v62, %v2815_v61 }
 0x6ec   : > { %6653 = vmatmul.mubr.bf16.vlgmr.msra.gmra.mxu0 %v2817_v63 }
 0x6ed   : > { %6692 = vmatprep.mubr.msk.bf16.mxu0 %vm7539_vm0, %v7538_v0  ;;  %6677 = vmatpush3.bf16.msra.mxu0 %v7189_v6 }
 0x6ee   : > { %6678 = vmatprep.subr.bf16.mxu0 %v7538_v0 }
 0x6f1   : > { %6679 = vmatpush3.bf16.msra.mxu0 %v7191_v8 }
 0x6f2   : > { %6680 = vmatprep.subr.bf16.mxu0 %v7538_v0 }
 0x6f5   : > { %6681 = vmatpush3.bf16.msra.mxu0 %v7193_v10 }
 0x6f6   : > { %6682 = vmatprep.subr.bf16.mxu0 %v7538_v0 }
 0x6f9   : > { %6683 = vmatpush3.bf16.msra.mxu0 %v7195_v13 }
 0x6fa   : > { %6684 = vmatprep.subr.bf16.mxu0 %v7538_v0 }
 0x6fd   : > { %6685 = vmatpush3.bf16.msra.mxu0 %v7197_v16 }
 0x6fe   : > { %6686 = vmatprep.subr.bf16.mxu0 %v7538_v0 }
 0x701   : > { %6687 = vmatpush3.bf16.msra.mxu0 %v7199_v21 }
 0x702   : > { %6688 = vmatprep.subr.bf16.mxu0 %v7538_v0 }
 0x705   : > { %6689 = vmatpush3.bf16.msra.mxu0 %v7201_v2 }
 0x706   : > { %6690 = vmatprep.subr.bf16.mxu0 %v7538_v0 }
 0x709   : > { %6691 = vmatpush3.bf16.msra.mxu0 %v7203_v4  ;;  %v7204_v4 = vld [vmem:[#allocation5 + $0x2f0] sm:$0xff]  }
 0x70a   : > { %6716 = vmatprep.subr.bf16.mxu0 %v7538_v0 }
 0x7ac   : > { %v2921_v26 = vpop.f32.mrf.mxu0 }
 0x7ad   : > { %v2922_v28 = vadd.f32 %v5780_v25, %v2921_v26 }
 0x7ae   : > { %v6654_v29 = vpop.f32.mrf.mxu0 }
 0x7af   : > { %v2930_v31 = vcombine.high %v2922_v28, %v2922_v28  ;;  %v2937_v32 = vrot.slane %v2922_v28, %v7964_v56 }
 0x7b0   : > { %v2924_v33 = vpop.f32.mrf.mxu0 }
 0x7b1   : > { %v2944_v15 = vrot.slane %v2930_v31, %v7964_v56  ;;  %v2945_v34 = vcombine.high %v2937_v32, %v2937_v32  ;;  %v8063_v35 = vadd.f32 %v2937_v32, %v7975_v11  ;;  %v2925_v36 = vadd.f32 %v5780_v25, %v2924_v33  ;;  %v7207_v31 = vld [vmem:[#allocation5 + $0x2e8] sm:$0xff]   ;;  %v7208_v33 = vld [vmem:[#allocation5 + $0x2e0] sm:$0xff]  }
 0x7b2   : > { %v6655_v37 = vpop.f32.mrf.mxu0 }
 0x7b3   : > { %v2946_v38 = vcombine.high %v2944_v15, %v2944_v15  ;;  %v8066_v39 = vadd.f32 %v2945_v34, %v7981_v18  ;;  %v8069_v40 = vadd.f32 %v2944_v15, %v7984_v19  ;;  %v2947_v41 = vcombine.high %v2925_v36, %v2925_v36  ;;  %v7209_v15 = vld [vmem:[#allocation5 + $0x2d8] sm:$0xff]   ;;  %v7214_v37 = vld [vmem:[#allocation2 + $0xc] ss:$0 sps:$4 sm:$0x11]  }
 0x7b4   : > { %v2954_v42 = vrot.slane %v2925_v36, %v7964_v56  ;;  %v2982_v44 = vmax.f32 %v8063_v35, 0.0  ;;  %v7210_v36 = vld [vmem:[#allocation5 + $0x2d0] sm:$0xff]  }
 0x7b5   : > { %v8073_v43 = vadd.f32 %v2946_v38, %v7991_v22  ;;  %v2983_v11 = vmax.f32 %v8066_v39, 0.0  ;;  %v2961_v45 = vrot.slane %v2947_v41, %v7964_v56  ;;  %v2984_v18 = vmax.f32 %v8069_v40, 0.0  ;;  %v7211_v41 = vld [vmem:[#allocation5 + $0x2c8] sm:$0xff]  }
 0x7b6   : > { %v2962_v46 = vcombine.high %v2954_v42, %v2954_v42  ;;  %v8079_v47 = vadd.f32 %v2954_v42, %v7987_v20 }
 0x7b7   : > { %v2985_v19 = vmax.f32 %v8073_v43, 0.0  ;;  %v2998_v48 = vcombine.low %v2982_v44, %v2983_v11  ;;  %v2963_v51 = vcombine.high %v2961_v45, %v2961_v45  ;;  %v8087_v22 = vadd.f32 %v2961_v45, %v7997_v24  ;;  %v7212_v11 = vld [vmem:[#allocation5 + $0x2c0] sm:$0xff]  }
 0x7b8   : > { %v8084_v52 = vadd.f32 %v2962_v46, %v7994_v23  ;;  %v2986_v55 = vmax.f32 %v8079_v47, 0.0  ;;  %v3325_v44 = vshll.u32 %v7214_v37, 16  ;;  %v7234_v37 = vld [vmem:[#allocation8 + $0xc8] sm:$0xff]  }
 0x7b9   : > { %v2999_v53 = vcombine.low %v2984_v18, %v2985_v19  ;;  %v8090_v54 = vadd.f32 %v2963_v51, %v8004_v27  ;;  %v3006_v57 = vrot.slane %v2998_v48, %v7964_v56  ;;  %v2988_v59 = vmax.f32 %v8087_v22, 0.0  ;;  %v7215_v48 = vld [vmem:[#allocation7 + $0xf8] sm:$0xff]   ;;  %v7216_v51 = vld [vmem:[#allocation7 + $0xf0] sm:$0xff]  }
 0x7ba   : > { %v2987_v20 = vmax.f32 %v8084_v52, 0.0  ;;  %v3327_v18 = vrot.slane %v3325_v44, 1  ;;  %v7237_v44 = vld [vmem:[#allocation8 + $0x88] sm:$0xff]  }
 0x7bb   : > { %v3013_v58 = vrot.slane %v2999_v53, %v7964_v56  ;;  %v2989_v23 = vmax.f32 %v8090_v54, 0.0  ;;  %v7217_v53 = vld [vmem:[#allocation7 + $0xe8] sm:$0xff]  }
 0x7bc   : > { %v3015_v60 = vcombine.low %v2986_v55, %v2987_v20  ;;  %v7218_v55 = vld [vmem:[#allocation7 + $0xe0] sm:$0xff]   ;;  %v7219_v20 = vld [vmem:[#allocation7 + $0xd8] sm:$0xff]  }
 0x7bd   : > { %v3014_v61 = vcombine.low %v3006_v57, %v3013_v58  ;;  %v3016_v24 = vcombine.low %v2988_v59, %v2989_v23  ;;  %v7220_v57 = vld [vmem:[#allocation7 + $0xd0] sm:$0xff]   ;;  %v7221_v58 = vld [vmem:[#allocation7 + $0xc8] sm:$0xff]   ;;  %v7222_v59 = vld [vmem:[#allocation7 + $0xc0] sm:$0xff]  }
 0x7be   : > { %v3023_v63 = vrot.slane %v3015_v60, %v7964_v56 }
 0x7bf   : > { %v5949_v62 = vpack.c.bf16 %v3014_v61, %v3014_v61  ;;  %v3030_v27 = vrot.slane %v3016_v24, %v7964_v56 }
 0x7c1   : > { %3042 = vst [vmem:[#allocation2 + $0x4] sm:$0xf] %v5949_v62  ;;  %v3031_v1 = vcombine.low %v3023_v63, %v3030_v27 }
 0x7c3   : > { %v5950_v3 = vpack.c.bf16 %v3031_v1, %v3031_v1 }
 0x7c5   : > { %3043 = vst [vmem:[#allocation2 + $0x8] sm:$0xf] %v5950_v3 }
 0x7c8   : > { %v3045_v6 = vld [vmem:[#allocation2 + $0x4] sm:$0xf] }
 0x7c9   : > { %v5800_v7 = vcombine.low %v3044_v5, %v3045_v6 }
 0x7cb   : > { %v3182_v8 = vshrl.u32 %v5800_v7, 16  ;;  %v3185_v9 = vshll.u32 %v5800_v7, 16  ;;  %v5820_v7 = vld [vmem:[%s8315_s8 + $0x8] ss:$0 sm:$0xff] }
 0x7cc   : > { %v3046_v10 = vld [vmem:[#allocation2 + $0x8] sm:$0xf] }
 0x7cd   : > { %v5791_v13 = vcombine.low %v3045_v6, %v3046_v10  ;;  %v5801_v14 = vcombine.low %v3046_v10, %v3046_v10  ;;  %v3184_v16 = vrot.slane %v3182_v8, 3  ;;  %v3187_v17 = vrot.slane %v3185_v9, 4  ;;  %v7213_v34 = vld [vmem:[#allocation2 + $0x4] sm:$0xff]  }
 0x7ce   : > { %v3320_v38 = vshll.u32 %v7213_v34, 16  ;;  %v3318_v45 = vshrl.u32 %v7213_v34, 16  ;;  %v7232_v34 = vld [vmem:[#allocation8 + $0xd0] sm:$0xff]  }
 0x7cf   : > { %6673 = vmatmul.mubr.bf16.vlgmr.msra.gmra.mxu1 %v5791_v13  ;;  %v3190_v21 = vshrl.u32 %v5801_v14, 16  ;;  %v3193_v2 = vshll.u32 %v5801_v14, 16  ;;  %v3188_v28 = vor.u32 %v3187_v17, %v3184_v16 }
 0x7d0   : > { %6697 = vmatpush3.bf16.msra.mxu1 %v7202_v12  ;;  %6712 = vmatprep.mubr.msk.bf16.mxu1 %vm7539_vm0, %v7538_v0  ;;  %v3322_v42 = vrot.slane %v3320_v38, 1  ;;  %v7235_v38 = vld [vmem:[#allocation8 + $0x90] sm:$0xff]  }
 0x7d1   : > { %6698 = vmatprep.subr.bf16.mxu1 %v7538_v0  ;;  %v3192_v25 = vrot.slane %v3190_v21, 3  ;;  %v3195_v26 = vrot.slane %v3193_v2, 4 }
 0x7d2   : > { %v3323_v46 = vor.u32 %v3322_v42, %v3318_v45  ;;  %v3647_v42 = vld [vmem:[#allocation2] sm:$0x8]  ;;  %v5821_v45 = vld [vmem:[%s8315_s8 + $0x9] ss:$0 sm:$0xff] }
 0x7d3   : > { %v3196_v29 = vor.u32 %v3195_v26, %v3192_v25  ;;  %v7224_v25 = vld [vmem:[#allocation8 + $0xf0] sm:$0xff]   ;;  %v7225_v26 = vld [vmem:[#allocation8 + $0xb8] sm:$0xff]   ;;  %4529 = vst [vmem:[#allocation2] sm:$0xf] %v7540_v49 }
 0x7d4   : > { %6699 = vmatpush3.bf16.msra.mxu1 %v7204_v4  ;;  %v3328_v19 = vsel %vm3316_vm5, %v3323_v46, %v3327_v18  ;;  %v7223_v4 = vld [vmem:[#allocation8 + $0xf8] sm:$0xff]  }
 0x7d5   : > { %v3197_v32 = vsel %vm3180_vm4, %v3188_v28, %v3196_v29  ;;  %6700 = vmatprep.subr.bf16.mxu1 %v7538_v0  ;;  %v7226_v28 = vld [vmem:[#allocation8 + $0xe8] sm:$0xff]   ;;  %v7227_v29 = vld [vmem:[#allocation8 + $0xb0] sm:$0xff]  }
 0x7d6   : > { %6693 = vmatmul.mubr.bf16.vlgmr.msra.gmra.mxu0 %v3197_v32  ;;  %v7229_v32 = vld [vmem:[#allocation8 + $0xa8] sm:$0xff]  }
 0x7d7   : > { %6732 = vmatprep.mubr.msk.bf16.mxu0 %vm7539_vm0, %v7538_v0  ;;  %6717 = vmatpush3.bf16.msra.mxu0 %v7215_v48 }
 0x7d8   : > { %6701 = vmatpush3.bf16.msra.mxu1 %v7207_v31  ;;  %6718 = vmatprep.subr.bf16.mxu0 %v7538_v0  ;;  %v7228_v31 = vld [vmem:[#allocation8 + $0xe0] sm:$0xff]  }
 0x7d9   : > { %6702 = vmatprep.subr.bf16.mxu1 %v7538_v0 }
 0x7db   : > { %6719 = vmatpush3.bf16.msra.mxu0 %v7216_v51 }
 0x7dc   : > { %6703 = vmatpush3.bf16.msra.mxu1 %v7208_v33  ;;  %6720 = vmatprep.subr.bf16.mxu0 %v7538_v0  ;;  %v7230_v33 = vld [vmem:[#allocation8 + $0xd8] sm:$0xff]  }
 0x7dd   : > { %6704 = vmatprep.subr.bf16.mxu1 %v7538_v0 }
 0x7df   : > { %6721 = vmatpush3.bf16.msra.mxu0 %v7217_v53 }
 0x7e0   : > { %6705 = vmatpush3.bf16.msra.mxu1 %v7209_v15  ;;  %6722 = vmatprep.subr.bf16.mxu0 %v7538_v0  ;;  %v7231_v15 = vld [vmem:[#allocation8 + $0xa0] sm:$0xff]  }
 0x7e1   : > { %6706 = vmatprep.subr.bf16.mxu1 %v7538_v0 }
 0x7e3   : > { %6723 = vmatpush3.bf16.msra.mxu0 %v7218_v55 }
 0x7e4   : > { %6707 = vmatpush3.bf16.msra.mxu1 %v7210_v36  ;;  %6724 = vmatprep.subr.bf16.mxu0 %v7538_v0  ;;  %v7233_v36 = vld [vmem:[#allocation8 + $0x98] sm:$0xff]  }
 0x7e5   : > { %6708 = vmatprep.subr.bf16.mxu1 %v7538_v0 }
 0x7e7   : > { %6725 = vmatpush3.bf16.msra.mxu0 %v7219_v20 }
 0x7e8   : > { %6709 = vmatpush3.bf16.msra.mxu1 %v7211_v41  ;;  %6726 = vmatprep.subr.bf16.mxu0 %v7538_v0  ;;  %v7236_v41 = vld [vmem:[#allocation8 + $0xc0] sm:$0xff]  }
 0x7e9   : > { %6710 = vmatprep.subr.bf16.mxu1 %v7538_v0 }
 0x7eb   : > { %6727 = vmatpush3.bf16.msra.mxu0 %v7220_v57 }
 0x7ec   : > { %6711 = vmatpush3.bf16.msra.mxu1 %v7212_v11  ;;  %6728 = vmatprep.subr.bf16.mxu0 %v7538_v0  ;;  %v7241_v11 = vld [vmem:[#allocation8 + $0x80] sm:$0xff]  }
 0x7ed   : > { %6736 = vmatprep.subr.bf16.mxu1 %v7538_v0 }
 0x7ef   : > { %6713 = vmatmul.mubr.bf16.vlgmr.msra.gmra.mxu1 %v3328_v19  ;;  %6729 = vmatpush3.bf16.msra.mxu0 %v7221_v58 }
 0x7f0   : > { %6752 = vmatprep.mubr.msk.bf16.mxu1 %vm7539_vm0, %v7538_v0  ;;  %6730 = vmatprep.subr.bf16.mxu0 %v7538_v0 }
 0x7f1   : > { %6737 = vmatpush3.bf16.msra.mxu1 %v7223_v4 }
 0x7f2   : > { %6738 = vmatprep.subr.bf16.mxu1 %v7538_v0 }
 0x7f3   : > { %6731 = vmatpush3.bf16.msra.mxu0 %v7222_v59 }
 0x7f4   : > { %6756 = vmatprep.subr.bf16.mxu0 %v7538_v0 }
 0x7f5   : > { %6739 = vmatpush3.bf16.msra.mxu1 %v7224_v25 }
 0x7f6   : > { %6740 = vmatprep.subr.bf16.mxu1 %v7538_v0 }
 0x7f9   : > { %6741 = vmatpush3.bf16.msra.mxu1 %v7226_v28 }
 0x7fa   : > { %6742 = vmatprep.subr.bf16.mxu1 %v7538_v0 }
 0x7fd   : > { %6743 = vmatpush3.bf16.msra.mxu1 %v7228_v31 }
 0x7fe   : > { %6744 = vmatprep.subr.bf16.mxu1 %v7538_v0 }
 0x801   : > { %6745 = vmatpush3.bf16.msra.mxu1 %v7230_v33 }
 0x802   : > { %6746 = vmatprep.subr.bf16.mxu1 %v7538_v0 }
 0x805   : > { %6747 = vmatpush3.bf16.msra.mxu1 %v7232_v34 }
 0x806   : > { %6748 = vmatprep.subr.bf16.mxu1 %v7538_v0 }
 0x809   : > { %6749 = vmatpush3.bf16.msra.mxu1 %v7234_v37  ;;  %v7244_v37 = vld [vmem:[#allocation10 + $0xb8] sm:$0xff]  }
 0x80a   : > { %6750 = vmatprep.subr.bf16.mxu1 %v7538_v0 }
 0x80d   : > { %6751 = vmatpush3.bf16.msra.mxu1 %v7236_v41 }
 0x80e   : > { %6776 = vmatprep.subr.bf16.mxu1 %v7538_v0 }
 0x88f   : > { %v3169_v23 = vpop.f32.mrf.mxu1 }
 0x891   : > { %v6674_v60 = vpop.f32.mrf.mxu1 }
 0x893   : > { %v3172_v61 = vpop.f32.mrf.mxu1 }
 0x895   : > { %v6675_v24 = vpop.f32.mrf.mxu1 }
 0x896   : > { %v3281_v62 = vpop.f32.mrf.mxu0 }
 0x897   : > { %v3282_v3 = vadd.f32 %v3281_v62, %v3169_v23 }
 0x898   : > { %v6694_v63 = vpop.f32.mrf.mxu0 }
 0x89a   : > { %v3284_v27 = vpop.f32.mrf.mxu0 }
 0x89b   : > { %v3285_v9 = vadd.f32 %v3284_v27, %v3172_v61 }
 0x89c   : > { %v6695_v1 = vpop.f32.mrf.mxu0 }
 0x8af   : > { %v3412_v5 = vpop.f32.mrf.mxu1 }
 0x8b0   : > { %v3419_v6 = vadd.f32 %v3412_v5, %v3282_v3 }
 0x8b1   : > { %v6714_v8 = vpop.f32.mrf.mxu1 }
 0x8b2   : > { %v3425_v12 = vadd.f32 %v5820_v7, %v3419_v6 }
 0x8b3   : > { %v3415_v10 = vpop.f32.mrf.mxu1 }
 0x8b4   : > { %v3420_v13 = vadd.f32 %v3415_v10, %v3285_v9  ;;  %v3427_v17 = vmax.f32 %v3425_v12, 0.0 }
 0x8b5   : > { %v6715_v14 = vpop.f32.mrf.mxu1 }
 0x8b6   : > { %v3426_v16 = vadd.f32 %v5820_v7, %v3420_v13 }
 0x8b8   : > { %v3428_v21 = vmax.f32 %v3426_v16, 0.0 }
 0x8ba   : > { %v3429_v2 = vpack.c.bf16 %v3428_v21, %v3427_v17 }
 0x8bc   : > { %6733 = vmatmul.mubr.bf16.vlgmr.msra.gmra.mxu0 %v3429_v2 }
 0x8bd   : > { %6772 = vmatprep.mubr.msk.bf16.mxu0 %vm7539_vm0, %v7538_v0  ;;  %6757 = vmatpush3.bf16.msra.mxu0 %v7225_v26 }
 0x8be   : > { %6758 = vmatprep.subr.bf16.mxu0 %v7538_v0 }
 0x8c1   : > { %6759 = vmatpush3.bf16.msra.mxu0 %v7227_v29 }
 0x8c2   : > { %6760 = vmatprep.subr.bf16.mxu0 %v7538_v0 }
 0x8c5   : > { %6761 = vmatpush3.bf16.msra.mxu0 %v7229_v32  ;;  %v7242_v32 = vld [vmem:[#allocation10 + $0xf0] sm:$0xff]  }
 0x8c6   : > { %6762 = vmatprep.subr.bf16.mxu0 %v7538_v0 }
 0x8c9   : > { %6763 = vmatpush3.bf16.msra.mxu0 %v7231_v15 }
 0x8ca   : > { %6764 = vmatprep.subr.bf16.mxu0 %v7538_v0 }
 0x8cd   : > { %6765 = vmatpush3.bf16.msra.mxu0 %v7233_v36 }
 0x8ce   : > { %6766 = vmatprep.subr.bf16.mxu0 %v7538_v0 }
 0x8d1   : > { %6767 = vmatpush3.bf16.msra.mxu0 %v7235_v38  ;;  %v7245_v38 = vld [vmem:[#allocation10 + $0xe8] sm:$0xff]  }
 0x8d2   : > { %6768 = vmatprep.subr.bf16.mxu0 %v7538_v0 }
 0x8d5   : > { %6769 = vmatpush3.bf16.msra.mxu0 %v7237_v44  ;;  %v7247_v44 = vld [vmem:[#allocation10 + $0xe0] sm:$0xff]  }
 0x8d6   : > { %6770 = vmatprep.subr.bf16.mxu0 %v7538_v0 }
 0x8d9   : > { %6771 = vmatpush3.bf16.msra.mxu0 %v7241_v11  ;;  %v7248_v11 = vld [vmem:[#allocation10 + $0xa8] sm:$0xff]  }
 0x8da   : > { %6796 = vmatprep.subr.bf16.mxu0 %v7538_v0 }
 0x97c   : > { %v3533_v46 = vpop.f32.mrf.mxu0 }
 0x97d   : > { %v3534_v49 = vadd.f32 %v5821_v45, %v3533_v46  ;;  %v7250_v46 = vld [vmem:[#allocation10 + $0xa0] sm:$0xff]  }
 0x97e   : > { %v6734_v18 = vpop.f32.mrf.mxu0 }
 0x97f   : > { %v3542_v19 = vcombine.high %v3534_v49, %v3534_v49  ;;  %v3549_v48 = vrot.slane %v3534_v49, %v7964_v56  ;;  %v7251_v49 = vld [vmem:[#allocation10 + $0xd0] sm:$0xff]  }
 0x980   : > { %v3536_v51 = vpop.f32.mrf.mxu0  ;;  %v7256_v18 = vld [vmem:[#allocation2 + $0xc] ss:$0 sps:$4 sm:$0x11]  }
 0x981   : > { %v3556_v53 = vrot.slane %v3542_v19, %v7964_v56  ;;  %v3557_v55 = vcombine.high %v3549_v48, %v3549_v48  ;;  %v3537_v20 = vadd.f32 %v5821_v45, %v3536_v51  ;;  %v3584_v59 = vadd.f32 %v3549_v48, %v8063_v35  ;;  %v7249_v45 = vld [vmem:[#allocation10 + $0xd8] sm:$0xff]   ;;  %v7253_v51 = vld [vmem:[#allocation10 + $0xc8] sm:$0xff]  }
 0x982   : > { %v6735_v57 = vpop.f32.mrf.mxu0  ;;  %v7252_v48 = vld [vmem:[#allocation10 + $0x98] sm:$0xff]  }
 0x983   : > { %v3558_v58 = vcombine.high %v3556_v53, %v3556_v53  ;;  %v3585_v23 = vadd.f32 %v3557_v55, %v8066_v39  ;;  %v3559_v60 = vcombine.high %v3537_v20, %v3537_v20  ;;  %v3566_v61 = vrot.slane %v3537_v20, %v7964_v56  ;;  %v7254_v20 = vld [vmem:[#allocation10 + $0x90] sm:$0xff]   ;;  %v7255_v57 = vld [vmem:[#allocation10 + $0xc0] sm:$0xff]  }
 0x984   : > { %v3586_v24 = vadd.f32 %v3556_v53, %v8069_v40  ;;  %v3942_v55 = vshll.u32 %v7256_v18, 16 }
 0x985   : > { %v3587_v62 = vadd.f32 %v3558_v58, %v8073_v43  ;;  %v3601_v63 = vcombine.low %v3584_v59, %v3585_v23  ;;  %v3573_v27 = vrot.slane %v3559_v60, %v7964_v56  ;;  %v3574_v1 = vcombine.high %v3566_v61, %v3566_v61  ;;  %v7257_v60 = vld [vmem:[#allocation10 + $0x88] sm:$0xff]  }
 0x986   : > { %v3588_v6 = vadd.f32 %v3566_v61, %v8079_v47  ;;  %v3944_v23 = vrot.slane %v3942_v55, 1 }
 0x987   : > { %v3602_v3 = vcombine.low %v3586_v24, %v3587_v62  ;;  %v3575_v5 = vcombine.high %v3573_v27, %v3573_v27  ;;  %v3589_v7 = vadd.f32 %v3574_v1, %v8084_v52  ;;  %v3609_v35 = vrot.slane %v3601_v63, %v7964_v56  ;;  %v7258_v24 = vld [vmem:[#allocation10 + $0x80] sm:$0xff]   ;;  %v7259_v62 = vld [vmem:[#allocation11 + $0x78] sm:$0xff]   ;;  %v7260_v63 = vld [vmem:[#allocation11 + $0x70] sm:$0xff]  }
 0x988   : > { %v3590_v8 = vadd.f32 %v3573_v27, %v8087_v22  ;;  %v7240_v22 = vld [vmem:[#allocation10 + $0xf8] sm:$0xff]   ;;  %v7261_v27 = vld [vmem:[#allocation11 + $0x68] sm:$0xff]  }
 0x989   : > { %v3616_v39 = vrot.slane %v3602_v3, %v7964_v56  ;;  %v3591_v40 = vadd.f32 %v3575_v5, %v8090_v54  ;;  %v3618_v9 = vcombine.low %v3588_v6, %v3589_v7  ;;  %v7262_v1 = vld [vmem:[#allocation11 + $0x38] sm:$0xff]   ;;  %v7263_v3 = vld [vmem:[#allocation11 + $0x60] sm:$0xff]   ;;  %v7264_v5 = vld [vmem:[#allocation11 + $0x30] sm:$0xff]  }
 0x98a   : > { %v7266_v6 = vld [vmem:[#allocation11 + $0x28] sm:$0xff]   ;;  %v7267_v7 = vld [vmem:[#allocation11 + $0x50] sm:$0xff]  }
 0x98b   : > { %v3617_v43 = vcombine.low %v3609_v35, %v3616_v39  ;;  %v3619_v10 = vcombine.low %v3590_v8, %v3591_v40  ;;  %v3626_v13 = vrot.slane %v3618_v9, %v7964_v56  ;;  %v7268_v35 = vld [vmem:[#allocation11 + $0x20] sm:$0xff]   ;;  %v7269_v39 = vld [vmem:[#allocation11 + $0x48] sm:$0xff]   ;;  %v7270_v8 = vld [vmem:[#allocation11 + $0x18] sm:$0xff]  }
 0x98c   : > { %v7271_v40 = vld [vmem:[#allocation11 + $0x40] sm:$0xff]   ;;  %v7272_v9 = vld [vmem:[#allocation11 + $0x10] sm:$0xff]  }
 0x98d   : > { %v5951_v12 = vpack.c.bf16 %v3617_v43, %v3617_v43  ;;  %v3633_v14 = vrot.slane %v3619_v10, %v7964_v56  ;;  %v7276_v43 = vld [vmem:[#allocation11 + $0x8] sm:$0xff]   ;;  %v8191_v10 = vld [vmem:[#allocation11 + $0xb8] sm:$0xff]  }
 0x98f   : > { %3645 = vst [vmem:[#allocation2 + $0x4] sm:$0xf] %v5951_v12  ;;  %v3634_v47 = vcombine.low %v3626_v13, %v3633_v14  ;;  %v7280_v12 = vld [vmem:[#allocation11] sm:$0xff]  }
 0x991   : > { %v5952_v16 = vpack.c.bf16 %v3634_v47, %v3634_v47 }
 0x993   : > { %3646 = vst [vmem:[#allocation2 + $0x8] sm:$0xf] %v5952_v16 }
 0x996   : > { %v3648_v52 = vld [vmem:[#allocation2 + $0x4] sm:$0xf] }
 0x997   : > { %v5841_v17 = vcombine.low %v3647_v42, %v3648_v52  ;;  %v7246_v42 = vld [vmem:[#allocation10 + $0xb0] sm:$0xff]  }
 0x999   : > { %v3785_v21 = vshrl.u32 %v5841_v17, 16  ;;  %v3788_v2 = vshll.u32 %v5841_v17, 16 }
 0x99a   : > { %v3649_v4 = vld [vmem:[#allocation2 + $0x8] sm:$0xf] }
 0x99b   : > { %v8165_v25 = vcombine.low %v3648_v52, %v3649_v4  ;;  %v5842_v54 = vcombine.low %v3649_v4, %v3649_v4  ;;  %v3787_v26 = vrot.slane %v3785_v21, 3  ;;  %v3790_v28 = vrot.slane %v3788_v2, 4 }
 0x99d   : > { %6753 = vmatmul.mubr.bf16.vlgmr.msra.gmra.mxu1 %v8165_v25  ;;  %v3793_v29 = vshrl.u32 %v5842_v54, 16  ;;  %v3796_v31 = vshll.u32 %v5842_v54, 16  ;;  %v3791_v34 = vor.u32 %v3790_v28, %v3787_v26  ;;  %v3937_v19 = vshll.u32 %v8165_v25, 16 }
 0x99e   : > { %6777 = vmatpush3.bf16.msra.mxu1 %v7240_v22  ;;  %6792 = vmatprep.mubr.msk.bf16.mxu1 %vm7539_vm0, %v7538_v0  ;;  %v3935_v58 = vshrl.u32 %v8165_v25, 16  ;;  %v5851_v22 = vld [vmem:[%s8315_s8 + $0xa] ss:$0 sm:$0xff] }
 0x99f   : > { %6778 = vmatprep.subr.bf16.mxu1 %v7538_v0  ;;  %v3795_v33 = vrot.slane %v3793_v29, 3  ;;  %v3798_v15 = vrot.slane %v3796_v31, 4  ;;  %v3939_v53 = vrot.slane %v3937_v19, 1 }
 0x9a1   : > { %v3799_v36 = vor.u32 %v3798_v15, %v3795_v33  ;;  %v3940_v59 = vor.u32 %v3939_v53, %v3935_v58 }
 0x9a2   : > { %6779 = vmatpush3.bf16.msra.mxu1 %v7242_v32 }
 0x9a3   : > { %v3800_v41 = vsel %vm3180_vm4, %v3791_v34, %v3799_v36  ;;  %6780 = vmatprep.subr.bf16.mxu1 %v7538_v0  ;;  %v3945_v61 = vsel %vm3316_vm5, %v3940_v59, %v3944_v23 }
 0x9a4   : > { %6773 = vmatmul.mubr.bf16.vlgmr.msra.gmra.mxu0 %v3800_v41 }
 0x9a5   : > { %6797 = vmatpush3.bf16.msra.mxu0 %v7244_v37  ;;  %6812 = vmatprep.mubr.msk.bf16.mxu0 %vm7539_vm0, %v7538_v0 }
 0x9a6   : > { %6781 = vmatpush3.bf16.msra.mxu1 %v7245_v38  ;;  %6798 = vmatprep.subr.bf16.mxu0 %v7538_v0 }
 0x9a7   : > { %6782 = vmatprep.subr.bf16.mxu1 %v7538_v0 }
 0x9a9   : > { %6799 = vmatpush3.bf16.msra.mxu0 %v7246_v42 }
 0x9aa   : > { %6783 = vmatpush3.bf16.msra.mxu1 %v7247_v44  ;;  %6800 = vmatprep.subr.bf16.mxu0 %v7538_v0 }
 0x9ab   : > { %6784 = vmatprep.subr.bf16.mxu1 %v7538_v0 }
 0x9ad   : > { %6801 = vmatpush3.bf16.msra.mxu0 %v7248_v11 }
 0x9ae   : > { %6785 = vmatpush3.bf16.msra.mxu1 %v7249_v45  ;;  %6802 = vmatprep.subr.bf16.mxu0 %v7538_v0 }
 0x9af   : > { %6786 = vmatprep.subr.bf16.mxu1 %v7538_v0 }
 0x9b1   : > { %6803 = vmatpush3.bf16.msra.mxu0 %v7250_v46 }
 0x9b2   : > { %6787 = vmatpush3.bf16.msra.mxu1 %v7251_v49  ;;  %6804 = vmatprep.subr.bf16.mxu0 %v7538_v0 }
 0x9b3   : > { %6788 = vmatprep.subr.bf16.mxu1 %v7538_v0 }
 0x9b5   : > { %6805 = vmatpush3.bf16.msra.mxu0 %v7252_v48 }
 0x9b6   : > { %6789 = vmatpush3.bf16.msra.mxu1 %v7253_v51  ;;  %6806 = vmatprep.subr.bf16.mxu0 %v7538_v0 }
 0x9b7   : > { %6790 = vmatprep.subr.bf16.mxu1 %v7538_v0 }
 0x9b9   : > { %6807 = vmatpush3.bf16.msra.mxu0 %v7254_v20 }
 0x9ba   : > { %6791 = vmatpush3.bf16.msra.mxu1 %v7255_v57  ;;  %6808 = vmatprep.subr.bf16.mxu0 %v7538_v0 }
 0x9bb   : > { %6816 = vmatprep.subr.bf16.mxu1 %v7259_v62 }
 0x9bd   : > { %6793 = vmatmul.mubr.bf16.vlgmr.msra.gmra.mxu1 %v3945_v61  ;;  %6809 = vmatpush3.bf16.msra.mxu0 %v7257_v60 }
 0x9be   : > { %6810 = vmatprep.subr.bf16.mxu0 %v7538_v0  ;;  %6817 = vmatpush3.bf16.msra.mxu1 %v7259_v62  ;;  %v7265_v0 = vld [vmem:[#allocation11 + $0x58] sm:$0xff]  }
 0x9bf   : > { %6818 = vmatprep.subr.bf16.mxu1 %v7260_v63 }
 0x9c1   : > { %6811 = vmatpush3.bf16.msra.mxu0 %v7258_v24 }
 0x9c2   : > { %6819 = vmatpush3.bf16.msra.mxu1 %v7260_v63  ;;  %6836 = vmatprep.subr.bf16.mxu0 %v7262_v1 }
 0x9c3   : > { %6820 = vmatprep.subr.bf16.mxu1 %v7261_v27 }
 0x9c4   : > { %6813 = vmatmul.mubr.bf16.vlgmr.msra.gmra.mxu0 %v8165_v25 }
 0x9c5   : > { %6837 = vmatpush3.bf16.msra.mxu0 %v7262_v1 }
 0x9c6   : > { %6821 = vmatpush3.bf16.msra.mxu1 %v7261_v27  ;;  %6838 = vmatprep.subr.bf16.mxu0 %v7264_v5 }
 0x9c7   : > { %6822 = vmatprep.subr.bf16.mxu1 %v7263_v3 }
 0x9c9   : > { %6839 = vmatpush3.bf16.msra.mxu0 %v7264_v5 }
 0x9ca   : > { %6823 = vmatpush3.bf16.msra.mxu1 %v7263_v3  ;;  %6840 = vmatprep.subr.bf16.mxu0 %v7266_v6 }
 0x9cb   : > { %6824 = vmatprep.subr.bf16.mxu1 %v7265_v0 }
 0x9cd   : > { %6841 = vmatpush3.bf16.msra.mxu0 %v7266_v6 }
 0x9ce   : > { %6825 = vmatpush3.bf16.msra.mxu1 %v7265_v0  ;;  %6842 = vmatprep.subr.bf16.mxu0 %v7268_v35 }
 0x9cf   : > { %6826 = vmatprep.subr.bf16.mxu1 %v7267_v7 }
 0x9d1   : > { %6843 = vmatpush3.bf16.msra.mxu0 %v7268_v35 }
 0x9d2   : > { %6827 = vmatpush3.bf16.msra.mxu1 %v7267_v7  ;;  %6844 = vmatprep.subr.bf16.mxu0 %v7270_v8 }
 0x9d3   : > { %6828 = vmatprep.subr.bf16.mxu1 %v7269_v39 }
 0x9d5   : > { %6845 = vmatpush3.bf16.msra.mxu0 %v7270_v8 }
 0x9d6   : > { %6829 = vmatpush3.bf16.msra.mxu1 %v7269_v39  ;;  %6846 = vmatprep.subr.bf16.mxu0 %v7272_v9 }
 0x9d7   : > { %6830 = vmatprep.subr.bf16.mxu1 %v7271_v40 }
 0x9d9   : > { %6847 = vmatpush3.bf16.msra.mxu0 %v7272_v9 }
 0x9da   : > { %6831 = vmatpush3.bf16.msra.mxu1 %v7271_v40  ;;  %6848 = vmatprep.subr.bf16.mxu0 %v7276_v43 }
 0x9db   : > { %6856 = vmatprep.subr.bf16.mxu1 %v8191_v10 }
 0x9dd   : > { %6849 = vmatpush3.bf16.msra.mxu0 %v7276_v43 }
 0x9de   : > { %6850 = vmatprep.subr.bf16.mxu0 %v7280_v12 }
 0x9e1   : > { %6851 = vmatpush3.bf16.msra.mxu0 %v7280_v12 }
 0xa5d   : > { %v3773_v13 = vpop.f32.mrf.mxu1 }
 0xa5f   : > { %v6754_v14 = vpop.f32.mrf.mxu1 }
 0xa61   : > { %v3776_v47 = vpop.f32.mrf.mxu1 }
 0xa63   : > { %v6755_v16 = vpop.f32.mrf.mxu1 }
 0xa64   : > { %v3884_v52 = vpop.f32.mrf.mxu0 }
 0xa65   : > { %v3885_v4 = vadd.f32 %v3884_v52, %v3773_v13 }
 0xa66   : > { %v6774_v17 = vpop.f32.mrf.mxu0 }
 0xa67   : > { %v3895_v25 = vadd.f32 %v5851_v22, %v3885_v4 }
 0xa68   : > { %v3887_v21 = vpop.f32.mrf.mxu0 }
 0xa69   : > { %v3888_v54 = vadd.f32 %v3887_v21, %v3776_v47  ;;  %v4129_v26 = vcombine.high %v3895_v25, %v3895_v25  ;;  %v4136_v31 = vrot.slane %v3895_v25, %v7952_v30 }
 0xa6a   : > { %v6775_v2 = vpop.f32.mrf.mxu0 }
 0xa6b   : > { %v3896_v28 = vadd.f32 %v5851_v22, %v3888_v54  ;;  %v4143_v33 = vrot.slane %v4129_v26, %v7952_v30  ;;  %v4144_v36 = vcombine.high %v4136_v31, %v4136_v31  ;;  %v4152_v45 = vrot.slane %v4136_v31, %v7952_v30 }
 0xa6d   : > { %v4178_v15 = vcombine.high %v3896_v28, %v3896_v28  ;;  %v4145_v38 = vcombine.high %v4143_v33, %v4143_v33  ;;  %v4185_v41 = vrot.slane %v3896_v28, %v7952_v30  ;;  %v4159_v46 = vrot.slane %v4143_v33, %v7952_v30 }
 0xa6e   : > { %v4166_v49 = vrot.slane %v4144_v36, %v7952_v30  ;;  %v4174_v23 = vcombine.high %v4152_v45, %v4152_v45 }
 0xa6f   : > { %v4192_v42 = vrot.slane %v4178_v15, %v7952_v30  ;;  %v4173_v48 = vrot.slane %v4145_v38, %v7952_v30  ;;  %v4193_v51 = vcombine.high %v4185_v41, %v4185_v41  ;;  %v8206_v55 = vrot.slane %v4185_v41, %v7952_v30 }
 0xa70   : > { %v4175_v60 = vcombine.high %v4159_v46, %v4159_v46  ;;  %v4176_v61 = vcombine.high %v4166_v49, %v4166_v49 }
 0xa71   : > { %v4194_v53 = vcombine.high %v4192_v42, %v4192_v42  ;;  %v8210_v24 = vrot.slane %v4192_v42, %v7952_v30  ;;  %v4177_v5 = vcombine.high %v4173_v48, %v4173_v48  ;;  %v8215_v0 = vrot.slane %v4193_v51, %v7952_v30 }
 0xa72   : > { %v4223_v7 = vcombine.high %v8206_v55, %v8206_v55 }
 0xa73   : > { %v8218_v6 = vrot.slane %v4194_v53, %v7952_v30  ;;  %v4224_v9 = vcombine.high %v8210_v24, %v8210_v24  ;;  %v4225_v17 = vcombine.high %v8215_v0, %v8215_v0 }
 0xa75   : > { %v4226_v21 = vcombine.high %v8218_v6, %v8218_v6 }
 0xa7d   : > { %v4029_v29 = vpop.f32.mrf.mxu1 }
 0xa7f   : > { %v6794_v32 = vpop.f32.mrf.mxu1 }
 0xa81   : > { %v4032_v34 = vpop.f32.mrf.mxu1 }
 0xa83   : > { %v6795_v37 = vpop.f32.mrf.mxu1 }
 0xa84   : > { %v4118_v44 = vpop.f32.mrf.mxu0 }
 0xa85   : > { %v4119_v11 = vadd.f32 %v4118_v44, %v4029_v29 }
 0xa86   : > { %v6814_v18 = vpop.f32.mrf.mxu0 }
 0xa87   : > { %v4125_v19 = vadd.f32 %v5851_v22, %v4119_v11 }
 0xa88   : > { %v4121_v20 = vpop.f32.mrf.mxu0 }
 0xa89   : > { %v4245_v57 = vcombine.high %v4125_v19, %v4125_v19  ;;  %v4252_v58 = vrot.slane %v4125_v19, %v7952_v30  ;;  %v4122_v59 = vadd.f32 %v4121_v20, %v4032_v34 }
 0xa8a   : > { %v6815_v62 = vpop.f32.mrf.mxu0 }
 0xa8b   : > { %v4259_v63 = vrot.slane %v4245_v57, %v7952_v30  ;;  %v4260_v27 = vcombine.high %v4252_v58, %v4252_v58  ;;  %v4268_v1 = vrot.slane %v4252_v58, %v7952_v30  ;;  %v4126_v3 = vadd.f32 %v5851_v22, %v4122_v59 }
 0xa8d   : > { %v4261_v35 = vcombine.high %v4259_v63, %v4259_v63  ;;  %v4275_v39 = vrot.slane %v4259_v63, %v7952_v30  ;;  %v4282_v8 = vrot.slane %v4260_v27, %v7952_v30  ;;  %v4290_v40 = vcombine.high %v4268_v1, %v4268_v1 }
 0xa8e   : > { %v4346_v43 = vrot.slane %v4268_v1, %v7959_v50  ;;  %v4294_v12 = vcombine.high %v4126_v3, %v4126_v3  ;;  %v4301_v13 = vrot.slane %v4126_v3, %v7952_v30 }
 0xa8f   : > { %v4289_v14 = vrot.slane %v4261_v35, %v7952_v30  ;;  %v4291_v47 = vcombine.high %v4275_v39, %v4275_v39  ;;  %v4292_v16 = vcombine.high %v4282_v8, %v4282_v8  ;;  %v4350_v52 = vrot.slane %v4282_v8, %v7959_v50 }
 0xa90   : > { %v4354_v2 = vrot.slane %v4290_v40, %v7959_v50  ;;  %v4308_v4 = vrot.slane %v4294_v12, %v7952_v30  ;;  %v4362_v28 = vrot.slane %v4275_v39, %v7959_v50  ;;  %v4423_v29 = vsel %vm2349_vm1, %v4152_v45, %v4346_v43 }
 0xa91   : > { %v4293_v22 = vcombine.high %v4289_v14, %v4289_v14  ;;  %v4358_v25 = vrot.slane %v4292_v16, %v7959_v50  ;;  %v4366_v54 = vrot.slane %v4289_v14, %v7959_v50  ;;  %v4370_v26 = vrot.slane %v4291_v47, %v7959_v50 }
 0xa92   : > { %v4424_v31 = vsel %vm2349_vm1, %v4166_v49, %v4350_v52  ;;  %v4309_v32 = vcombine.high %v4301_v13, %v4301_v13  ;;  %v4425_v15 = vsel %vm2349_vm1, %v4174_v23, %v4354_v2  ;;  %v4310_v42 = vcombine.high %v4308_v4, %v4308_v4 }
 0xa93   : > { %v4374_v33 = vrot.slane %v4293_v22, %v7959_v50  ;;  %v4426_v34 = vsel %vm2349_vm1, %v4176_v61, %v4358_v25  ;;  %v4428_v36 = vsel %vm2349_vm1, %v4173_v48, %v4366_v54  ;;  %v4429_v37 = vsel %vm2349_vm1, %v4175_v60, %v4370_v26 }
 0xa94   : > { %v4455_v38 = vcombine.low %v4423_v29, %v4424_v31  ;;  %v4456_v41 = vcombine.low %v4425_v15, %v4426_v34  ;;  %v4317_v11 = vrot.slane %v4301_v13, %v7952_v30  ;;  %v4324_v45 = vrot.slane %v4308_v4, %v7952_v30 }
 0xa95   : > { %v4430_v44 = vsel %vm2349_vm1, %v4177_v5, %v4374_v33  ;;  %v4331_v49 = vrot.slane %v4309_v32, %v7952_v30  ;;  %v4427_v18 = vsel %vm2349_vm1, %v4159_v46, %v4362_v28  ;;  %v4338_v53 = vrot.slane %v4310_v42, %v7952_v30 }
 0xa96   : > { %v4463_v19 = vrot.slane %v4455_v38, %v7964_v56  ;;  %v4470_v51 = vrot.slane %v4456_v41, %v7964_v56  ;;  %v4473_v48 = vcombine.low %v4429_v37, %v4430_v44  ;;  %v4339_v20 = vcombine.high %v4317_v11, %v4317_v11 }
 0xa97   : > { %v4340_v57 = vcombine.high %v4324_v45, %v4324_v45  ;;  %v4341_v58 = vcombine.high %v4331_v49, %v4331_v49  ;;  %v4472_v23 = vcombine.low %v4427_v18, %v4428_v36  ;;  %v4378_v60 = vrot.slane %v4317_v11, %v7959_v50 }
 0xa98   : > { %v4471_v59 = vcombine.low %v4463_v19, %v4470_v51  ;;  %v4382_v61 = vrot.slane %v4331_v49, %v7959_v50  ;;  %v4342_v62 = vcombine.high %v4338_v53, %v4338_v53  ;;  %v4386_v63 = vrot.slane %v4339_v20, %v7959_v50 }
 0xa99   : > { %v4390_v46 = vrot.slane %v4341_v58, %v7959_v50  ;;  %v4394_v27 = vrot.slane %v4324_v45, %v7959_v50  ;;  %v4487_v1 = vrot.slane %v4473_v48, %v7964_v56  ;;  %v4398_v30 = vrot.slane %v4338_v53, %v7959_v50 }
 0xa9a   : > { %v5953_v3 = vpack.c.bf16 %v4471_v59, %v4471_v59  ;;  %v4402_v5 = vrot.slane %v4340_v57, %v7959_v50  ;;  %v4406_v35 = vrot.slane %v4342_v62, %v7959_v50  ;;  %v4431_v39 = vsel %vm2349_vm1, %v8206_v55, %v4378_v60 }
 0xa9b   : > { %v4432_v8 = vsel %vm2349_vm1, %v8215_v0, %v4382_v61  ;;  %v4433_v40 = vsel %vm2349_vm1, %v4223_v7, %v4386_v63  ;;  %v4434_v43 = vsel %vm2349_vm1, %v4225_v17, %v4390_v46  ;;  %v4435_v12 = vsel %vm2349_vm1, %v8210_v24, %v4394_v27 }
 0xa9c   : > { %4545 = vst [vmem:[#allocation2 + $0x4] sm:$0xf] %v5953_v3  ;;  %v4436_v13 = vsel %vm2349_vm1, %v8218_v6, %v4398_v30  ;;  %v4437_v14 = vsel %vm2349_vm1, %v4224_v9, %v4402_v5  ;;  %v4438_v50 = vsel %vm2349_vm1, %v4226_v21, %v4406_v35  ;;  %v4489_v47 = vcombine.low %v4431_v39, %v4432_v8  ;;  %v4550_v21 = vld [vmem:[#allocation2] sm:$0x8]  ;;  %v7286_v30 = vld [vmem:[#allocation11 + $0x98] sm:$0xff]   ;;  %v7287_v5 = vld [vmem:[#allocation11 + $0x90] sm:$0xff]  }
 0xa9d   : > { %v4490_v55 = vcombine.low %v4433_v40, %v4434_v43  ;;  %v4506_v16 = vcombine.low %v4435_v12, %v4436_v13  ;;  %v4507_v52 = vcombine.low %v4437_v14, %v4438_v50  ;;  %v4480_v0 = vrot.slane %v4472_v23, %v7964_v56  ;;  %v7284_v23 = vld [vmem:[#allocation11 + $0xa8] sm:$0xff]   ;;  %v7290_v39 = vld [vmem:[#allocation2 + $0x14] ss:$0 sps:$4 sm:$0x11]   ;;  %v7289_v8 = vld [vmem:[#allocation11 + $0x80] sm:$0xff]  }
 0xa9e   : > { %v4497_v7 = vrot.slane %v4489_v47, %v7964_v56  ;;  %v7288_v35 = vld [vmem:[#allocation11 + $0x88] sm:$0xff]   ;;  %v4878_v40 = vshll.u32 %v7290_v39, 16  ;;  %v7291_v50 = vld [vmem:[#allocation13 + $0x78] sm:$0xff]   ;;  %v7292_v47 = vld [vmem:[#allocation13 + $0x70] sm:$0xff]  }
 0xa9f   : > { %v4504_v17 = vrot.slane %v4490_v55, %v7964_v56  ;;  %v4514_v2 = vrot.slane %v4506_v16, %v7964_v56  ;;  %v4521_v24 = vrot.slane %v4507_v52, %v7964_v56  ;;  %v4488_v4 = vcombine.low %v4480_v0, %v4487_v1  ;;  %v7281_v56 = vld [vmem:[#allocation11 + $0xb0] sm:$0xff]   ;;  %v7285_v1 = vld [vmem:[#allocation11 + $0xa0] sm:$0xff]   ;;  %6876 = vmatprep.subr.bf16.mxu0 %v7291_v50  ;;  %v7293_v55 = vld [vmem:[#allocation13 + $0x68] sm:$0xff]  }
 0xaa0   : > { %v4880_v13 = vrot.slane %v4878_v40, 1  ;;  %v7294_v16 = vld [vmem:[#allocation13 + $0x38] sm:$0xff]   ;;  %v7295_v52 = vld [vmem:[#allocation13 + $0x60] sm:$0xff]   ;;  %v7296_v0 = vld [vmem:[#allocation13 + $0x30] sm:$0xff]  }
 0xaa1   : > { %v4505_v6 = vcombine.low %v4497_v7, %v4504_v17  ;;  %v4522_v22 = vcombine.low %v4514_v2, %v4521_v24  ;;  %v7297_v7 = vld [vmem:[#allocation13 + $0x58] sm:$0xff]   ;;  %v7298_v17 = vld [vmem:[#allocation13 + $0x28] sm:$0xff]   ;;  %v7299_v2 = vld [vmem:[#allocation13 + $0x50] sm:$0xff]  }
 0xaa2   : > { %v7300_v24 = vld [vmem:[#allocation13 + $0x20] sm:$0xff]  }
 0xaa3   : > { %v5964_v9 = vpack.c.bf16 %v4505_v6, %v4488_v4  ;;  %v5956_v25 = vpack.c.bf16 %v4522_v22, %v4522_v22  ;;  %v4551_v54 = vld [vmem:[#allocation2 + $0x4] sm:$0xf]  ;;  %v7302_v6 = vld [vmem:[#allocation13 + $0x18] sm:$0xff]   ;;  %v7303_v22 = vld [vmem:[#allocation13 + $0x40] sm:$0xff]  }
 0xaa4   : > { %v5883_v26 = vcombine.low %v4550_v21, %v4551_v54  ;;  %v7301_v4 = vld [vmem:[#allocation13 + $0x48] sm:$0xff]   ;;  %v8286_v21 = vld [vmem:[#allocation13 + $0xb8] sm:$0xff]  }
 0xaa5   : > { %5971 = vst [vmem:[#allocation2 + $0x8] sm:$0xff] %v5964_v9   ;;  %4548 = vst [vmem:[#allocation2 + $0x10] sm:$0xf] %v5956_v25  ;;  %v7304_v9 = vld [vmem:[#allocation13 + $0x10] sm:$0xff]   ;;  %v7308_v25 = vld [vmem:[#allocation13 + $0x8] sm:$0xff]  }
 0xaa6   : > { %v4703_v28 = vshrl.u32 %v5883_v26, 16  ;;  %v4706_v29 = vshll.u32 %v5883_v26, 16 }
 0xaa8   : > { %v4705_v42 = vrot.slane %v4703_v28, 3  ;;  %v4708_v44 = vrot.slane %v4706_v29, 4 }
 0xaaa   : > { %v4709_v60 = vor.u32 %v4708_v44, %v4705_v42 }
 0xaac   : > { %v4552_v31 = vld [vmem:[#allocation2 + $0x8] sm:$0xf]  ;;  %v4553_v32 = vld [vmem:[#allocation2 + $0xc] sm:$0xf]  ;;  %v4554_v34 = vld [vmem:[#allocation2 + $0x10] sm:$0xf] }
 0xaad   : > { %v5873_v33 = vcombine.low %v4551_v54, %v4552_v31  ;;  %v5884_v15 = vcombine.low %v4552_v31, %v4553_v32  ;;  %v5874_v36 = vcombine.low %v4553_v32, %v4554_v34  ;;  %v5885_v37 = vcombine.low %v4554_v34, %v4554_v34  ;;  %v7282_v38 = vld [vmem:[#allocation2 + $0x4] sm:$0xff]   ;;  %v7283_v41 = vld [vmem:[#allocation2 + $0xc] sm:$0xff]   ;;  %v7312_v54 = vld [vmem:[#allocation13] sm:$0xff]  }
 0xaae   : > { %v4865_v49 = vshll.u32 %v7282_v38, 16  ;;  %v4870_v18 = vshll.u32 %v7283_v41, 16  ;;  %v4863_v20 = vshrl.u32 %v7282_v38, 16  ;;  %v4874_v43 = vshrl.u32 %v7283_v41, 16 }
 0xaaf   : > { %6832 = vmatprep.mubr.bf16.mxu1 %v5873_v33  ;;  %v4711_v11 = vshrl.u32 %v5884_v15, 16  ;;  %v4714_v45 = vshll.u32 %v5884_v15, 16  ;;  %v4720_v19 = vshrl.u32 %v5885_v37, 16  ;;  %v4723_v53 = vshll.u32 %v5885_v37, 16 }
 0xab0   : > { %6833 = vmatmul.mubr.bf16.vlgmr.msra.gmra.mxu1 %v5874_v36  ;;  %v4867_v57 = vrot.slane %v4865_v49, 1  ;;  %v4872_v58 = vrot.slane %v4870_v18, 1 }
 0xab1   : > { %6857 = vmatpush3.bf16.msra.mxu1 %v8191_v10  ;;  %v4713_v51 = vrot.slane %v4711_v11, 3  ;;  %v4716_v48 = vrot.slane %v4714_v45, 4  ;;  %v4722_v59 = vrot.slane %v4720_v19, 3  ;;  %v4725_v62 = vrot.slane %v4723_v53, 4  ;;  %v5905_v11 = vld [vmem:[%s8315_s8 + $0xb] ss:$0 sm:$0xff] }
 0xab2   : > { %6858 = vmatprep.subr.bf16.mxu1 %v7281_v56  ;;  %v4868_v63 = vor.u32 %v4867_v57, %v4863_v20  ;;  %v4876_v12 = vor.u32 %v4874_v43, %v4872_v58 }
 0xab3   : > { %v4717_v61 = vor.u32 %v4716_v48, %v4713_v51  ;;  %v4726_v27 = vor.u32 %v4725_v62, %v4722_v59 }
 0xab4   : > { %v4873_v10 = vsel %vm3316_vm5, %v4868_v63, %v4872_v58  ;;  %v4881_v14 = vsel %vm3316_vm5, %v4876_v12, %v4880_v13 }
 0xab5   : > { %6859 = vmatpush3.bf16.msra.mxu1 %v7281_v56  ;;  %v4718_v46 = vsel %vm3180_vm4, %v4709_v60, %v4717_v61  ;;  %6872 = vmatprep.mubr.bf16.mxu1 %v4873_v10  ;;  %v4727_v3 = vsel %vm3180_vm4, %v4717_v61, %v4726_v27 }
 0xab6   : > { %6852 = vmatprep.mubr.bf16.mxu0 %v4718_v46  ;;  %6860 = vmatprep.subr.bf16.mxu1 %v7284_v23  ;;  %v5018_v46 = vld [vmem:[#allocation2] sm:$0x8] }
 0xab7   : > { %6853 = vmatmul.mubr.bf16.vlgmr.msra.gmra.mxu0 %v4727_v3 }
 0xab8   : > { %6877 = vmatpush3.bf16.msra.mxu0 %v7291_v50 }
 0xab9   : > { %6861 = vmatpush3.bf16.msra.mxu1 %v7284_v23  ;;  %6878 = vmatprep.subr.bf16.mxu0 %v7292_v47 }
 0xaba   : > { %6862 = vmatprep.subr.bf16.mxu1 %v7285_v1 }
 0xabc   : > { %6879 = vmatpush3.bf16.msra.mxu0 %v7292_v47 }
 0xabd   : > { %6863 = vmatpush3.bf16.msra.mxu1 %v7285_v1  ;;  %6880 = vmatprep.subr.bf16.mxu0 %v7293_v55 }
 0xabe   : > { %6864 = vmatprep.subr.bf16.mxu1 %v7286_v30 }
 0xac0   : > { %6881 = vmatpush3.bf16.msra.mxu0 %v7293_v55 }
 0xac1   : > { %6865 = vmatpush3.bf16.msra.mxu1 %v7286_v30  ;;  %6882 = vmatprep.subr.bf16.mxu0 %v7295_v52 }
 0xac2   : > { %6866 = vmatprep.subr.bf16.mxu1 %v7287_v5 }
 0xac4   : > { %6883 = vmatpush3.bf16.msra.mxu0 %v7295_v52 }
 0xac5   : > { %6867 = vmatpush3.bf16.msra.mxu1 %v7287_v5  ;;  %6884 = vmatprep.subr.bf16.mxu0 %v7297_v7 }
 0xac6   : > { %6868 = vmatprep.subr.bf16.mxu1 %v7288_v35 }
 0xac8   : > { %6885 = vmatpush3.bf16.msra.mxu0 %v7297_v7 }
 0xac9   : > { %6869 = vmatpush3.bf16.msra.mxu1 %v7288_v35  ;;  %6886 = vmatprep.subr.bf16.mxu0 %v7299_v2 }
 0xaca   : > { %6870 = vmatprep.subr.bf16.mxu1 %v7289_v8 }
 0xacc   : > { %6887 = vmatpush3.bf16.msra.mxu0 %v7299_v2 }
 0xacd   : > { %6871 = vmatpush3.bf16.msra.mxu1 %v7289_v8  ;;  %6888 = vmatprep.subr.bf16.mxu0 %v7301_v4 }
 0xace   : > { %6896 = vmatprep.subr.bf16.mxu1 %v7294_v16 }
 0xad0   : > { %6873 = vmatmul.mubr.bf16.vlgmr.msra.gmra.mxu1 %v4881_v14  ;;  %6889 = vmatpush3.bf16.msra.mxu0 %v7301_v4  ;;  %v7313_v14 = vld [vmem:[#allocation13 + $0xb0] sm:$0xff]  }
 0xad1   : > { %6897 = vmatpush3.bf16.msra.mxu1 %v7294_v16  ;;  %6890 = vmatprep.subr.bf16.mxu0 %v7303_v22 }
 0xad2   : > { %6898 = vmatprep.subr.bf16.mxu1 %v7296_v0 }
 0xad4   : > { %6891 = vmatpush3.bf16.msra.mxu0 %v7303_v22 }
 0xad5   : > { %6899 = vmatpush3.bf16.msra.mxu1 %v7296_v0  ;;  %6916 = vmatprep.subr.bf16.mxu0 %v8286_v21 }
 0xad6   : > { %6900 = vmatprep.subr.bf16.mxu1 %v7298_v17 }
 0xad9   : > { %6901 = vmatpush3.bf16.msra.mxu1 %v7298_v17 }
 0xada   : > { %6902 = vmatprep.subr.bf16.mxu1 %v7300_v24 }
 0xadd   : > { %6903 = vmatpush3.bf16.msra.mxu1 %v7300_v24 }
 0xade   : > { %6904 = vmatprep.subr.bf16.mxu1 %v7302_v6 }
 0xae1   : > { %6905 = vmatpush3.bf16.msra.mxu1 %v7302_v6 }
 0xae2   : > { %6906 = vmatprep.subr.bf16.mxu1 %v7304_v9 }
 0xae5   : > { %6907 = vmatpush3.bf16.msra.mxu1 %v7304_v9 }
 0xae6   : > { %6908 = vmatprep.subr.bf16.mxu1 %v7308_v25 }
 0xae9   : > { %6909 = vmatpush3.bf16.msra.mxu1 %v7308_v25 }
 0xaea   : > { %6910 = vmatprep.subr.bf16.mxu1 %v7312_v54 }
 0xaed   : > { %6911 = vmatpush3.bf16.msra.mxu1 %v7312_v54 }
 0xb70   : > { %v6834_v26 = vpop.f32.mrf.mxu1 }
 0xb72   : > { %v4682_v28 = vpop.f32.mrf.mxu1 }
 0xb74   : > { %v6835_v31 = vpop.f32.mrf.mxu1 }
 0xb76   : > { %v4685_v33 = vpop.f32.mrf.mxu1 }
 0xb77   : > { %v6854_v29 = vpop.f32.mrf.mxu0 }
 0xb78   : > { %v4821_v36 = vadd.f32 %v6854_v29, %v6834_v26 }
 0xb79   : > { %v4812_v32 = vpop.f32.mrf.mxu0 }
 0xb7a   : > { %v4813_v37 = vadd.f32 %v4812_v32, %v4682_v28 }
 0xb7b   : > { %v6855_v15 = vpop.f32.mrf.mxu0 }
 0xb7c   : > { %v4824_v41 = vadd.f32 %v6855_v15, %v6835_v31  ;;  %v7316_v31 = vld [vmem:[#allocation13 + $0xa8] sm:$0xff]  }
 0xb7d   : > { %v4815_v56 = vpop.f32.mrf.mxu0 }
 0xb7e   : > { %v4816_v49 = vadd.f32 %v4815_v56, %v4685_v33  ;;  %v7322_v56 = vld [vmem:[#allocation2 + $0x14] ss:$0 sps:$4 sm:$0x11]  }
 0xb90   : > { %v6874_v34 = vpop.f32.mrf.mxu1 }
 0xb91   : > { %v4983_v42 = vadd.f32 %v6874_v34, %v4821_v36  ;;  %v7318_v34 = vld [vmem:[#allocation13 + $0x98] sm:$0xff]   ;;  %v7319_v36 = vld [vmem:[#allocation13 + $0x90] sm:$0xff]  }
 0xb92   : > { %v4966_v38 = vpop.f32.mrf.mxu1 }
 0xb93   : > { %v4981_v44 = vadd.f32 %v4966_v38, %v4813_v37  ;;  %v4991_v48 = vadd.f32 %v5905_v11, %v4983_v42  ;;  %v7320_v37 = vld [vmem:[#allocation13 + $0x88] sm:$0xff]   ;;  %v7321_v38 = vld [vmem:[#allocation13 + $0x80] sm:$0xff]  }
 0xb94   : > { %v6875_v45 = vpop.f32.mrf.mxu1 }
 0xb95   : > { %v4989_v18 = vadd.f32 %v5905_v11, %v4981_v44  ;;  %v4984_v19 = vadd.f32 %v6875_v45, %v4824_v41  ;;  %v4995_v60 = vmax.f32 %v4991_v48, 0.0  ;;  %v5346_v41 = vshll.u32 %v7322_v56, 16 }
 0xb96   : > { %v4969_v51 = vpop.f32.mrf.mxu1 }
 0xb97   : > { %v4993_v53 = vmax.f32 %v4989_v18, 0.0  ;;  %v4992_v20 = vadd.f32 %v5905_v11, %v4984_v19  ;;  %v4982_v57 = vadd.f32 %v4969_v51, %v4816_v49 }
 0xb99   : > { %v5957_v58 = vpack.c.bf16 %v4993_v53, %v4993_v53  ;;  %v4996_v59 = vmax.f32 %v4992_v20, 0.0  ;;  %v4990_v23 = vadd.f32 %v5905_v11, %v4982_v57  ;;  %v5348_v11 = vrot.slane %v5346_v41, 1 }
 0xb9b   : > { %5013 = vst [vmem:[#allocation2 + $0x4] sm:$0xf] %v5957_v58  ;;  %v5960_v61 = vpack.c.bf16 %v4996_v59, %v4996_v59  ;;  %v4994_v62 = vmax.f32 %v4990_v23, 0.0  ;;  %v5942_v58 = vld [vmem:[%s8316_s9] ss:$0 sm:$0xff] }
 0xb9d   : > { %5016 = vst [vmem:[#allocation2 + $0x10] sm:$0xf] %v5960_v61  ;;  %v5969_v63 = vpack.c.bf16 %v4995_v60, %v4994_v62 }
 0xb9f   : > { %5972 = vst [vmem:[#allocation2 + $0x8] sm:$0xff] %v5969_v63  }
 0xba2   : > { %v5019_v27 = vld [vmem:[#allocation2 + $0x4] sm:$0xf] }
 0xba3   : > { %v5920_v10 = vcombine.low %v5018_v46, %v5019_v27 }
 0xba4   : > { %v5022_v1 = vld [vmem:[#allocation2 + $0x10] sm:$0xf] }
 0xba5   : > { %v5171_v3 = vshrl.u32 %v5920_v10, 16  ;;  %v5174_v30 = vshll.u32 %v5920_v10, 16  ;;  %v5922_v5 = vcombine.low %v5022_v1, %v5022_v1 }
 0xba6   : > { %v5020_v35 = vld [vmem:[#allocation2 + $0x8] sm:$0xf]  ;;  %v5021_v39 = vld [vmem:[#allocation2 + $0xc] sm:$0xf] }
 0xba7   : > { %v5910_v8 = vcombine.low %v5019_v27, %v5020_v35  ;;  %v5921_v40 = vcombine.low %v5020_v35, %v5021_v39  ;;  %v5911_v43 = vcombine.low %v5021_v39, %v5022_v1  ;;  %v7314_v12 = vld [vmem:[#allocation2 + $0x4] sm:$0xff]   ;;  %v7315_v13 = vld [vmem:[#allocation2 + $0xc] sm:$0xff]   ;;  %v5173_v50 = vrot.slane %v5171_v3, 3 }
 0xba8   : > { %v5176_v47 = vrot.slane %v5174_v30, 4  ;;  %v5188_v55 = vshrl.u32 %v5922_v5, 16  ;;  %v5191_v16 = vshll.u32 %v5922_v5, 16  ;;  %v5333_v7 = vshll.u32 %v7314_v12, 16 }
 0xba9   : > { %6892 = vmatprep.mubr.bf16.mxu0 %v5910_v8  ;;  %v5179_v52 = vshrl.u32 %v5921_v40, 16  ;;  %v5182_v0 = vshll.u32 %v5921_v40, 16  ;;  %v5338_v17 = vshll.u32 %v7315_v13, 16  ;;  %v5331_v22 = vshrl.u32 %v7314_v12, 16 }
 0xbaa   : > { %6893 = vmatmul.mubr.bf16.vlgmr.msra.gmra.mxu0 %v5911_v43  ;;  %v5190_v2 = vrot.slane %v5188_v55, 3  ;;  %v5193_v24 = vrot.slane %v5191_v16, 4  ;;  %v5335_v9 = vrot.slane %v5333_v7, 1  ;;  %v5177_v25 = vor.u32 %v5176_v47, %v5173_v50 }
 0xbab   : > { %6917 = vmatpush3.bf16.msra.mxu0 %v8286_v21  ;;  %v5181_v4 = vrot.slane %v5179_v52, 3  ;;  %v5184_v6 = vrot.slane %v5182_v0, 4  ;;  %v5340_v28 = vrot.slane %v5338_v17, 1  ;;  %v7317_v21 = vld [vmem:[#allocation13 + $0xa0] sm:$0xff]   ;;  %v5342_v42 = vshrl.u32 %v7315_v13, 16 }
 0xbac   : > { %6918 = vmatprep.subr.bf16.mxu0 %v7313_v14  ;;  %v5336_v26 = vor.u32 %v5335_v9, %v5331_v22  ;;  %v5194_v29 = vor.u32 %v5193_v24, %v5190_v2 }
 0xbad   : > { %v5185_v54 = vor.u32 %v5184_v6, %v5181_v4  ;;  %v5344_v44 = vor.u32 %v5342_v42, %v5340_v28 }
 0xbae   : > { %v5341_v33 = vsel %vm3316_vm5, %v5336_v26, %v5340_v28 }
 0xbaf   : > { %6919 = vmatpush3.bf16.msra.mxu0 %v7313_v14  ;;  %v5186_v32 = vsel %vm3180_vm4, %v5177_v25, %v5185_v54  ;;  %v5195_v15 = vsel %vm3180_vm4, %v5185_v54, %v5194_v29  ;;  %6932 = vmatprep.mubr.bf16.mxu0 %v5341_v33  ;;  %v5349_v45 = vsel %vm3316_vm5, %v5344_v44, %v5348_v11 }
 0xbb0   : > { %6912 = vmatprep.mubr.bf16.mxu1 %v5186_v32  ;;  %6920 = vmatprep.subr.bf16.mxu0 %v7316_v31 }
 0xbb1   : > { %6913 = vmatmul.mubr.bf16.vlgmr.msra.gmra.mxu1 %v5195_v15 }
 0xbb3   : > { %6921 = vmatpush3.bf16.msra.mxu0 %v7316_v31 }
 0xbb4   : > { %6922 = vmatprep.subr.bf16.mxu0 %v7317_v21 }
 0xbb7   : > { %6923 = vmatpush3.bf16.msra.mxu0 %v7317_v21 }
 0xbb8   : > { %6924 = vmatprep.subr.bf16.mxu0 %v7318_v34 }
 0xbbb   : > { %6925 = vmatpush3.bf16.msra.mxu0 %v7318_v34 }
 0xbbc   : > { %6926 = vmatprep.subr.bf16.mxu0 %v7319_v36 }
 0xbbf   : > { %6927 = vmatpush3.bf16.msra.mxu0 %v7319_v36 }
 0xbc0   : > { %6928 = vmatprep.subr.bf16.mxu0 %v7320_v37 }
 0xbc3   : > { %6929 = vmatpush3.bf16.msra.mxu0 %v7320_v37 }
 0xbc4   : > { %6930 = vmatprep.subr.bf16.mxu0 %v7321_v38 }
 0xbc7   : > { %6931 = vmatpush3.bf16.msra.mxu0 %v7321_v38 }
 0xbca   : > { %6933 = vmatmul.mubr.bf16.vlgmr.msra.gmra.mxu0 %v5349_v45 }
 0xc6a   : > { %v6894_v49 = vpop.f32.mrf.mxu0 }
 0xc6c   : > { %v5150_v18 = vpop.f32.mrf.mxu0 }
 0xc6e   : > { %v6895_v51 = vpop.f32.mrf.mxu0 }
 0xc70   : > { %v5153_v53 = vpop.f32.mrf.mxu0 }
 0xc71   : > { %v6914_v19 = vpop.f32.mrf.mxu1 }
 0xc72   : > { %v5289_v57 = vadd.f32 %v6914_v19, %v6894_v49 }
 0xc73   : > { %v5280_v48 = vpop.f32.mrf.mxu1 }
 0xc74   : > { %v5281_v23 = vadd.f32 %v5280_v48, %v5150_v18 }
 0xc75   : > { %v6915_v20 = vpop.f32.mrf.mxu1 }
 0xc76   : > { %v5292_v63 = vadd.f32 %v6915_v20, %v6895_v51 }
 0xc77   : > { %v5283_v61 = vpop.f32.mrf.mxu1 }
 0xc78   : > { %v5284_v1 = vadd.f32 %v5283_v61, %v5153_v53 }
 0xc8a   : > { %v6934_v59 = vpop.f32.mrf.mxu0 }
 0xc8b   : > { %v5451_v60 = vadd.f32 %v6934_v59, %v5289_v57 }
 0xc8c   : > { %v5434_v62 = vpop.f32.mrf.mxu0 }
 0xc8d   : > { %v5461_v46 = vadd.f32 %v5942_v58, %v5451_v60  ;;  %v5449_v27 = vadd.f32 %v5434_v62, %v5281_v23 }
 0xc8e   : > { %v6935_v10 = vpop.f32.mrf.mxu0 }
 0xc8f   : > { %5465 = vst [vmem:[%s461_s26 + $0x10] sm:$0xff] %v5461_v46  ;;  %v5459_v3 = vadd.f32 %v5942_v58, %v5449_v27  ;;  %v5452_v30 = vadd.f32 %v6935_v10, %v5292_v63 }
 0xc90   : > { %v5437_v5 = vpop.f32.mrf.mxu0 }
 0xc91   : > { %5463 = vst [vmem:[%s461_s26] sm:$0xff] %v5459_v3  ;;  %v5462_v35 = vadd.f32 %v5942_v58, %v5452_v30  ;;  %v5450_v39 = vadd.f32 %v5437_v5, %v5284_v1 }
 0xc93   : > { %5466 = vst [vmem:[%s461_s26 + $0x18] sm:$0xff] %v5462_v35  ;;  %v5460_v8 = vadd.f32 %v5942_v58, %v5450_v39 }
 0xc95   : > { %5464 = vst [vmem:[%s461_s26 + $0x8] sm:$0xff] %v5460_v8 }
 0xc96 PF: > { %s24_s13 = sadd.s32 1, %s7527_s13  }
 0xc97   : > { %p21_p2 = scmp.ge.s32.totalorder %s24_s13, 4  }
 0xc99   :  { %23 = sbr.rel (!%p21_p2) target bundleno = 4 (0x4), region = 145 }
 0xc9e   :  { %5488 = vsyncpa [#allocation4], 1 }
 0xc9f   :  { %5490 = vsyncpa [#allocation4 + $0x1], 1 }
 0xca0   :  { %5491 = vsyncpa [#allocation6], 1 }
 0xca1   :  { %5492 = vsyncpa [#allocation9], 1 }
 0xca2   :  { %5493 = vsyncpa [#allocation12], 1 }

</bundles_post_ra>
